<compile_context>
chip_gen: v5e
topology: v5e:2x2
jax: 0.10.0
libtpu: 0.0.40
codegen_flags: <defaults>
</compile_context>

<pallas_src>
import functools

import jax
import jax.numpy as jnp
from jax.experimental import pallas as pl
from jax.experimental.pallas import tpu as pltpu

# ---------------- model hyper-parameters (args) ----------------
B = 2            # batch_size
S = 3            # sample_size (candidate news per user)
MC = 50          # clicked news per user (hard-coded `repeat(50, ...)`)
L = 8            # title length (words per news title)
WD = 32          # word_embedding_dim
NF = 32          # cnn_num_filters
WS = 3           # cnn_window_sizes (odd -> 'same' padding)
PAD = (WS - 1) // 2
Q = 16           # query_vector_dim
EMB = 32         # user embedding_dim
USER_NUM = 10
VOCAB = 100
NEWS_NUM = 20
CAT_NUM = 8      # category_num
CAT_DIM = 16     # category_embedding_dim
ATT_DIM = 8
ATT_HEADS = 4
MULTI = ATT_DIM * ATT_HEADS   # multi_dim = 32

KC = 128                        # im2col K (WS*WD = 96, zero-padded to 128 lanes)
T_ALL = S + MC                  # 53 titles per user (cand + clicked)
T_PAD = T_ALL + (T_ALL % 2)     # 54 -> T_PAD*L multiple of 16 (bf16 sublane tile)
TL = T_PAD * L                  # 432 im2col rows per user

# ---- packed weight-slab row offsets (f32 slab, [W_ROWS, 128]) ----
_R_UE = 0                        # ue fc1|fc2   [EMB, 2Q]
_R_QP = _R_UE + EMB              # query proj   [2Q, 3*NF] (block structured)
_R_CAT = _R_QP + 2 * Q           # cat fc1      [CAT_DIM, MULTI]
_R_ADD = _R_CAT + CAT_DIM        # additive att [MULTI, Q]
W_ROWS = _R_ADD + MULTI          # 112 (multiple of 8)


# =====================================================================
# Fused kernel: one grid step handles `nb` users end-to-end on chip
# =====================================================================
def _fused_npa_kernel(u_ref, titles_ref, cat_ref, w_ref, b_ref, cw_ref, out_ref):
  f32 = jnp.float32
  nb = u_ref.shape[0]

  # ---- static views into the packed weight / bias slabs ----
  ue_w = w_ref[_R_UE:_R_UE + EMB, 0:2 * Q]            # [EMB, 2Q]
  qp_w = w_ref[_R_QP:_R_QP + 2 * Q, 0:3 * NF]         # [2Q, 3NF]
  cat_w = w_ref[_R_CAT:_R_CAT + CAT_DIM, 0:MULTI]     # [CAT_DIM, MULTI]
  add_w = w_ref[_R_ADD:_R_ADD + MULTI, 0:Q]           # [MULTI, Q]
  ue_b = b_ref[0:1, 0:2 * Q]
  qp_b = b_ref[1:2, 0:3 * NF]
  cat_b = b_ref[2:3, 0:MULTI]
  add_b = b_ref[3:4, 0:Q]
  add_q = b_ref[4:5, 0:Q]
  conv_b = b_ref[5:6, 0:2 * NF]

  # ---- user_embedding_encoder: fc1|fc2 fused, relu ----
  u = u_ref[...].reshape(nb, EMB)
  uv_both = jnp.maximum(
      jnp.dot(u, ue_w, preferred_element_type=f32) + ue_b, 0.0)       # [nb, 2Q]

  # ---- fused personalized query projections (cand | click | user-att) ----
  qproj = jnp.tanh(jnp.dot(uv_both, qp_w, preferred_element_type=f32) + qp_b)  # [nb, 3NF]
  q_cand = qproj[:, 0:NF]
  q_click = qproj[:, NF:2 * NF]
  q_user = qproj[:, 2 * NF:3 * NF]

  # ---- conv over ALL titles (cand + clicked, both filter banks): one MXU push ----
  x = titles_ref[...]                                                  # [nb*TL, KC] bf16
  conv = jnp.dot(x, cw_ref[...], preferred_element_type=f32)           # [nb*TL, 2NF]
  word_rep = jnp.maximum(conv + conv_b, 0.0)                           # relu (dropout=id)
  word_rep = word_rep.reshape(nb, T_PAD, L, 2 * NF)                    # tile-aligned (L=8)
  wr_cand = word_rep[:, 0:S, :, 0:NF]                                  # [nb, S, L, NF]
  wr_click = word_rep[:, S:S + MC, :, NF:2 * NF]                       # [nb, MC, L, NF]

  def word_attend(wr, q):
    # personalized word attention; softmax in numer/denom form (no weight tensor)
    qb = q.reshape(nb, 1, 1, NF)
    sc = jnp.sum(wr * qb, axis=3, keepdims=True)                       # [nb, T, L, 1]
    m = jnp.max(sc, axis=2, keepdims=True)
    e = jnp.exp(sc - m)
    numer = jnp.sum(e * wr, axis=2)                                    # [nb, T, NF]
    denom = jnp.sum(e, axis=2)                                         # [nb, T, 1]
    return numer * pl.reciprocal(denom, approx=True)                   # [nb, T, NF]

  news_rep = word_attend(wr_cand, q_cand)                              # [nb, S, NF]
  click_rep = word_attend(wr_click, q_click)                           # [nb, MC, NF]

  # ---- per-user tail: click-level attention, score, category branch ----
  rows = []
  for uidx in range(nb):                                               # static (nb <= 2)
    cr = click_rep[uidx]                                               # [MC, NF]
    qr = q_user[uidx:uidx + 1, :]                                      # [1, NF]
    # click-level personalized attention; scores as a lane-dense row, pooling on MXU
    sc = jax.lax.dot_general(qr, cr, (((1,), (1,)), ((), ())),
                             preferred_element_type=f32)               # [1, MC]
    m = jnp.max(sc, axis=1, keepdims=True)
    e = jnp.exp(sc - m)
    denom = jnp.sum(e, axis=1, keepdims=True)
    numer = jnp.dot(e, cr, preferred_element_type=f32)                 # [1, NF] (MXU)
    user_rep = numer * pl.reciprocal(denom, approx=True)               # [1, NF]

    nr = news_rep[uidx]                                                # [S, NF]
    score_u = jax.lax.dot_general(user_rep, nr, (((1,), (1,)), ((), ())),
                                  preferred_element_type=f32)          # [1, S] (MXU)

    # user_att_encoder (category branch feeding the zeroshot user tower)
    cat_u = cat_ref[uidx]                                              # [MC, CAT_DIM]
    h = jnp.tanh(jnp.dot(cat_u, cat_w, preferred_element_type=f32) + cat_b)   # [MC, MULTI]
    proj = jnp.tanh(jnp.dot(h, add_w, preferred_element_type=f32) + add_b)    # [MC, Q]
    sc2 = jax.lax.dot_general(add_q, proj, (((1,), (1,)), ((), ())),
                              preferred_element_type=f32)              # [1, MC]
    m2 = jnp.max(sc2, axis=1, keepdims=True)
    e2 = jnp.exp(sc2 - m2)
    d2 = jnp.sum(e2, axis=1, keepdims=True)
    num2 = jnp.dot(e2, h, preferred_element_type=f32)                  # [1, MULTI] (MXU)
    uatt = jnp.tanh(num2 * pl.reciprocal(d2, approx=True))             # [1, MULTI]

    # one lane-dense 128-wide output row: score | 0 | user_att_rep | 0
    rows.append(jnp.concatenate(
        [score_u, jnp.zeros((1, 32 - S), f32), uatt,
         jnp.zeros((1, 128 - 32 - MULTI), f32)], axis=1))              # [1, 128]

  packed = rows[0] if nb == 1 else jnp.concatenate(rows, axis=0)       # [nb, 128]
  out_ref[...] = packed.reshape(nb, 1, 128)


def _pick_grid_size(b):
  # v7x has 2 TensorCores per chip -> one user per (core-parallel) grid step.
  # v5e / v6e have a single TensorCore -> one fused step for the whole batch
  # (grid steps are a serial loop there; extra steps are pure overhead).
  try:
    kind = jax.devices()[0].device_kind.lower()
  except Exception:
    kind = ""
  if "v7" in kind and b > 1:
    return b
  return 1


def fused_npa_pallas(u_emb, titles_flat, cat_emb, w_slab, b_slab, conv_w, grid_size):
  b = u_emb.shape[0]
  assert b % grid_size == 0
  nb = b // grid_size
  full2 = lambda shape: pl.BlockSpec(shape, lambda i: (0, 0))

  return pl.pallas_call(
      _fused_npa_kernel,
      out_shape=jax.ShapeDtypeStruct((b, 1, 128), jnp.float32),
      grid=(grid_size,),
      in_specs=[
          pl.BlockSpec((nb, 1, EMB), lambda i: (i, 0, 0)),         # user embeddings
          pl.BlockSpec((nb * TL, KC), lambda i: (i, 0)),           # im2col titles (bf16)
          pl.BlockSpec((nb, MC, CAT_DIM), lambda i: (i, 0, 0)),    # clicked categories
          full2((W_ROWS, 128)),                                    # packed f32 weights
          full2((8, 128)),                                         # packed biases/queries
          full2((KC, 2 * NF)),                                     # packed bf16 conv filters
      ],
      out_specs=pl.BlockSpec((nb, 1, 128), lambda i: (i, 0, 0)),   # score | user_att_rep
      compiler_params=pltpu.CompilerParams(dimension_semantics=("parallel",)),
  )(u_emb, titles_flat, cat_emb, w_slab, b_slab, conv_w)


# =====================================================================
# Parameter initialization (deterministic, synthetic)
# =====================================================================
def init_params(key):
  ks = jax.random.split(key, 22)
  nrm = lambda k, shape, s=0.1: (s * jax.random.normal(k, shape)).astype(jnp.float32)
  return {
      "word_embedding": nrm(ks[0], (VOCAB, WD)),
      "user_embedding": nrm(ks[1], (USER_NUM, EMB)),
      "category_embedding": nrm(ks[2], (CAT_NUM, CAT_DIM)),
      # user_embedding_encoder
      "ue_fc1_w": nrm(ks[3], (EMB, Q)), "ue_fc1_b": nrm(ks[4], (1, Q)),
      "ue_fc2_w": nrm(ks[5], (EMB, Q)), "ue_fc2_b": nrm(ks[6], (1, Q)),
      # self.news_encoder (candidate-news branch)
      "cand_conv_w": nrm(ks[7], (WS, WD, NF)), "cand_conv_b": nrm(ks[8], (1, NF)),
      "cand_att_w": nrm(ks[9], (Q, NF)), "cand_att_b": nrm(ks[10], (1, NF)),
      # self.user_encoder.news_encoder (clicked-news branch, separate params)
      "click_conv_w": nrm(ks[11], (WS, WD, NF)), "click_conv_b": nrm(ks[12], (1, NF)),
      "click_att_w": nrm(ks[13], (Q, NF)), "click_att_b": nrm(ks[14], (1, NF)),
      # self.user_encoder.user_attention
      "uatt_w": nrm(ks[15], (Q, NF)), "uatt_b": nrm(ks[16], (1, NF)),
      # user_att_encoder
      "cat_fc1_w": nrm(ks[17], (CAT_DIM, MULTI)), "cat_fc1_b": nrm(ks[18], (1, MULTI)),
      "add_w": nrm(ks[19], (MULTI, Q)), "add_b": nrm(ks[20], (1, Q)),
      "add_q": nrm(ks[21], (1, Q)),
  }


# =====================================================================
# Wrapper: lookups / im2col / weight packing in plain JAX, rest fused
# =====================================================================
def _im2col_titles(emb):
  # emb: [B, T, L, WD] -> [B, T, L, KC]  ('same' conv padding, K 96 -> 128)
  xp = jnp.pad(emb, ((0, 0), (0, 0), (PAD, PAD), (0, 0)))
  cols = jnp.concatenate([xp[:, :, w:w + L, :] for w in range(WS)], axis=-1)
  return jnp.pad(cols, ((0, 0), (0, 0), (0, 0), (0, KC - WS * WD)))


def zeroshot_npa_forward(params, news_title_word_index, news_category_index,
                         candidate_newsindex, user_index, user_clicked_newsindex):
  b, s = candidate_newsindex.shape
  we = params["word_embedding"]

  # --- embedding lookups (glue) ---
  cand_emb = we[news_title_word_index[candidate_newsindex]]        # [B, S, L, WD]
  click_emb = we[news_title_word_index[user_clicked_newsindex]]    # [B, MC, L, WD]
  u_emb = params["user_embedding"][user_index].reshape(b, 1, EMB)  # [B, 1, EMB]
  cat_idx = news_category_index[user_clicked_newsindex]            # [B, MC]
  cat_emb = params["category_embedding"][cat_idx]                  # [B, MC, CAT_DIM]

  # --- wrapper-side im2col; cand+clicked stacked along titles; title count
  #     padded so the per-user bf16 slab stays (16,128)-tile aligned ---
  cand_col = _im2col_titles(cand_emb)                              # [B, S, L, KC]
  click_col = _im2col_titles(click_emb)                            # [B, MC, L, KC]
  pad_t = jnp.zeros((b, T_PAD - T_ALL, L, KC), cand_col.dtype)
  titles = jnp.concatenate([cand_col, click_col, pad_t], axis=1)   # [B, T_PAD, L, KC]
  titles_flat = titles.reshape(b * TL, KC).astype(jnp.bfloat16)

  # --- packed bf16 conv filters: cand | click along N ---
  conv_w = jnp.concatenate(
      [params["cand_conv_w"].reshape(WS * WD, NF),
       params["click_conv_w"].reshape(WS * WD, NF)], axis=1)       # [96, 2NF]
  conv_w = jnp.pad(conv_w, ((0, KC - WS * WD), (0, 0))).astype(jnp.bfloat16)

  # --- block-structured fused query-projection weight ---
  qp_w = jnp.zeros((2 * Q, 3 * NF), jnp.float32)
  qp_w = qp_w.at[:Q, 0:NF].set(params["cand_att_w"])
  qp_w = qp_w.at[:Q, NF:2 * NF].set(params["click_att_w"])
  qp_w = qp_w.at[Q:, 2 * NF:3 * NF].set(params["uatt_w"])

  ue_w = jnp.concatenate([params["ue_fc1_w"], params["ue_fc2_w"]], axis=1)  # [EMB, 2Q]

  # --- consolidated f32 weight slab ---
  w_slab = jnp.zeros((W_ROWS, 128), jnp.float32)
  w_slab = w_slab.at[_R_UE:_R_UE + EMB, 0:2 * Q].set(ue_w)
  w_slab = w_slab.at[_R_QP:_R_QP + 2 * Q, 0:3 * NF].set(qp_w)
  w_slab = w_slab.at[_R_CAT:_R_CAT + CAT_DIM, 0:MULTI].set(params["cat_fc1_w"])
  w_slab = w_slab.at[_R_ADD:_R_ADD + MULTI, 0:Q].set(params["add_w"])

  # --- consolidated bias / query-vector slab ---
  b_slab = jnp.zeros((8, 128), jnp.float32)
  b_slab = b_slab.at[0, 0:2 * Q].set(
      jnp.concatenate([params["ue_fc1_b"], params["ue_fc2_b"]], axis=1)[0])
  b_slab = b_slab.at[1, 0:3 * NF].set(
      jnp.concatenate([params["cand_att_b"], params["click_att_b"],
                       params["uatt_b"]], axis=1)[0])
  b_slab = b_slab.at[2, 0:MULTI].set(params["cat_fc1_b"][0])
  b_slab = b_slab.at[3, 0:Q].set(params["add_b"][0])
  b_slab = b_slab.at[4, 0:Q].set(params["add_q"][0])
  b_slab = b_slab.at[5, 0:2 * NF].set(
      jnp.concatenate([params["cand_conv_b"], params["click_conv_b"]], axis=1)[0])

  gsz = _pick_grid_size(b)
  out = fused_npa_pallas(u_emb, titles_flat, cat_emb, w_slab, b_slab, conv_w, gsz)

  score = out[:, 0, 0:s]                                           # [B, S]
  user_att_rep = out[:, 0, 32:32 + MULTI].reshape(b, 1, MULTI)     # [B, 1, MULTI]

  # TODO(synk): zeroshot_user_simple_tower / zeroshot_news_simple_tower are not defined
  # in the reference source -> their losses are returned as zeros.
  loss_zeroshot_news = jnp.zeros((), jnp.float32)
  loss_zeroshot_user = jnp.zeros((), jnp.float32)
  la = jnp.zeros((), jnp.float32)
  lc = jnp.zeros((), jnp.float32)
  ld = jnp.zeros((), jnp.float32)
  return score, loss_zeroshot_news, loss_zeroshot_user, la, lc, ld, user_att_rep


# =====================================================================
if __name__ == "__main__":
  key = jax.random.PRNGKey(0)
  pkey, dkey = jax.random.split(key)
  params = init_params(pkey)

  k1, k2, k3, k4, k5 = jax.random.split(dkey, 5)
  news_title_word_index = jax.random.randint(k1, (NEWS_NUM, L), 0, VOCAB, dtype=jnp.int32)
  news_category_index = jax.random.randint(k2, (NEWS_NUM,), 0, CAT_NUM, dtype=jnp.int32)
  candidate_newsindex = jax.random.randint(k3, (B, S), 0, NEWS_NUM, dtype=jnp.int32)
  user_index = jax.random.randint(k4, (B,), 0, USER_NUM, dtype=jnp.int32)
  user_clicked_newsindex = jax.random.randint(k5, (B, MC), 0, NEWS_NUM, dtype=jnp.int32)

  fwd = jax.jit(functools.partial(
      zeroshot_npa_forward, params, news_title_word_index, news_category_index))
  outs = fwd(candidate_newsindex, user_index, user_clicked_newsindex)
  outs = jax.block_until_ready(outs)

  score = outs[0]
  user_att_rep = outs[-1]
  assert score.shape == (B, S), score.shape
  assert user_att_rep.shape == (B, 1, MULTI), user_att_rep.shape
  assert jnp.all(jnp.isfinite(score))
  assert jnp.all(jnp.isfinite(user_att_rep))
  print("KERNEL_OK")
</pallas_src>

<mosaic_0001>
module attributes {stable_mosaic.version = 11 : i64} {
  func.func @_fused_npa_kernel(%arg0: i32, %arg1: memref<2x1x32xf32, #tpu.memory_space<vmem>>, %arg2: memref<864x128xbf16, #tpu.memory_space<vmem>>, %arg3: memref<2x50x16xf32, #tpu.memory_space<vmem>>, %arg4: memref<112x128xf32, #tpu.memory_space<vmem>>, %arg5: memref<8x128xf32, #tpu.memory_space<vmem>>, %arg6: memref<128x64xbf16, #tpu.memory_space<vmem>>, %arg7: memref<2x1x128xf32, #tpu.memory_space<vmem>>) attributes {dimension_semantics = [#tpu.dimension_semantics<parallel>], iteration_bounds = array<i64: 1>, scalar_prefetch = 0 : i64, scratch_operands = 0 : i64, tpu.core_type = #tpu.core_type<tc>, window_params = [{transform_indices = @transform_0, window_bounds = array<i64: 2, 1, 32>}, {transform_indices = @transform_1, window_bounds = array<i64: 864, 128>}, {transform_indices = @transform_2, window_bounds = array<i64: 2, 50, 16>}, {pipeline_mode = #tpu.pipeline_mode<synchronous>, transform_indices = @transform_3, window_bounds = array<i64: 112, 128>}, {pipeline_mode = #tpu.pipeline_mode<synchronous>, transform_indices = @transform_4, window_bounds = array<i64: 8, 128>}, {pipeline_mode = #tpu.pipeline_mode<synchronous>, transform_indices = @transform_5, window_bounds = array<i64: 128, 64>}, {transform_indices = @transform_6, window_bounds = array<i64: 2, 1, 128>}]} {
    %c0 = arith.constant 0 : index
    %c0_0 = arith.constant 0 : index
    %0 = vector.load %arg4[%c0, %c0_0] : memref<112x128xf32, #tpu.memory_space<vmem>>, vector<32x32xf32>
    %c32 = arith.constant 32 : index
    %c0_1 = arith.constant 0 : index
    %1 = vector.load %arg4[%c32, %c0_1] : memref<112x128xf32, #tpu.memory_space<vmem>>, vector<32x96xf32>
    %c64 = arith.constant 64 : index
    %c0_2 = arith.constant 0 : index
    %2 = vector.load %arg4[%c64, %c0_2] : memref<112x128xf32, #tpu.memory_space<vmem>>, vector<16x32xf32>
    %c80 = arith.constant 80 : index
    %c0_3 = arith.constant 0 : index
    %3 = vector.load %arg4[%c80, %c0_3] : memref<112x128xf32, #tpu.memory_space<vmem>>, vector<32x16xf32>
    %c0_4 = arith.constant 0 : index
    %c0_5 = arith.constant 0 : index
    %4 = vector.load %arg5[%c0_4, %c0_5] : memref<8x128xf32, #tpu.memory_space<vmem>>, vector<1x32xf32>
    %c1 = arith.constant 1 : index
    %c0_6 = arith.constant 0 : index
    %5 = vector.load %arg5[%c1, %c0_6] : memref<8x128xf32, #tpu.memory_space<vmem>>, vector<1x96xf32>
    %c2 = arith.constant 2 : index
    %c0_7 = arith.constant 0 : index
    %6 = vector.load %arg5[%c2, %c0_7] : memref<8x128xf32, #tpu.memory_space<vmem>>, vector<1x32xf32>
    %c3 = arith.constant 3 : index
    %c0_8 = arith.constant 0 : index
    %7 = vector.load %arg5[%c3, %c0_8] : memref<8x128xf32, #tpu.memory_space<vmem>>, vector<1x16xf32>
    %c4 = arith.constant 4 : index
    %c0_9 = arith.constant 0 : index
    %8 = vector.load %arg5[%c4, %c0_9] : memref<8x128xf32, #tpu.memory_space<vmem>>, vector<1x16xf32>
    %c5 = arith.constant 5 : index
    %c0_10 = arith.constant 0 : index
    %9 = vector.load %arg5[%c5, %c0_10] : memref<8x128xf32, #tpu.memory_space<vmem>>, vector<1x64xf32>
    %c0_11 = arith.constant 0 : index
    %c0_12 = arith.constant 0 : index
    %c0_13 = arith.constant 0 : index
    %10 = vector.load %arg1[%c0_11, %c0_12, %c0_13] : memref<2x1x32xf32, #tpu.memory_space<vmem>>, vector<2x1x32xf32>
    %11 = vector.shape_cast %10 : vector<2x1x32xf32> to vector<2x32xf32>
    %cst = arith.constant dense<0.000000e+00> : vector<2x32xf32>
    %12 = tpu.matmul %11, %0, %cst {dimension_numbers = #tpu.dot_dimension_numbers<[1], [0], [0], [1], [0, 0, 1, 1], [], []>} : vector<2x32xf32>, vector<32x32xf32>, vector<2x32xf32> -> vector<2x32xf32>
    %13 = vector.broadcast %4 : vector<1x32xf32> to vector<2x32xf32>
    %14 = arith.addf %12, %13 : vector<2x32xf32>
    %cst_14 = arith.constant 0.000000e+00 : f32
    %15 = vector.broadcast %cst_14 : f32 to vector<2x32xf32>
    %16 = arith.maximumf %14, %15 : vector<2x32xf32>
    %cst_15 = arith.constant dense<0.000000e+00> : vector<2x96xf32>
    %17 = tpu.matmul %16, %1, %cst_15 {dimension_numbers = #tpu.dot_dimension_numbers<[1], [0], [0], [1], [0, 0, 1, 1], [], []>} : vector<2x32xf32>, vector<32x96xf32>, vector<2x96xf32> -> vector<2x96xf32>
    %18 = vector.broadcast %5 : vector<1x96xf32> to vector<2x96xf32>
    %19 = arith.addf %17, %18 : vector<2x96xf32>
    %20 = math.tanh %19 : vector<2x96xf32>
    %21 = vector.extract_strided_slice %20 {offsets = [0, 0], sizes = [2, 32], strides = [1, 1]} : vector<2x96xf32> to vector<2x32xf32>
    %22 = vector.extract_strided_slice %20 {offsets = [0, 32], sizes = [2, 32], strides = [1, 1]} : vector<2x96xf32> to vector<2x32xf32>
    %23 = vector.extract_strided_slice %20 {offsets = [0, 64], sizes = [2, 32], strides = [1, 1]} : vector<2x96xf32> to vector<2x32xf32>
    %c0_16 = arith.constant 0 : index
    %c0_17 = arith.constant 0 : index
    %24 = vector.load %arg2[%c0_16, %c0_17] : memref<864x128xbf16, #tpu.memory_space<vmem>>, vector<864x128xbf16>
    %c0_18 = arith.constant 0 : index
    %c0_19 = arith.constant 0 : index
    %25 = vector.load %arg6[%c0_18, %c0_19] : memref<128x64xbf16, #tpu.memory_space<vmem>>, vector<128x64xbf16>
    %cst_20 = arith.constant dense<0.000000e+00> : vector<864x64xf32>
    %26 = tpu.matmul %24, %25, %cst_20 {dimension_numbers = #tpu.dot_dimension_numbers<[1], [0], [0], [1], [0, 0, 1, 1], [], []>} : vector<864x128xbf16>, vector<128x64xbf16>, vector<864x64xf32> -> vector<864x64xf32>
    %27 = vector.broadcast %9 : vector<1x64xf32> to vector<864x64xf32>
    %28 = arith.addf %26, %27 : vector<864x64xf32>
    %cst_21 = arith.constant 0.000000e+00 : f32
    %29 = vector.broadcast %cst_21 : f32 to vector<864x64xf32>
    %30 = arith.maximumf %28, %29 : vector<864x64xf32>
    %31 = vector.shape_cast %30 : vector<864x64xf32> to vector<2x54x8x64xf32>
    %32 = vector.extract_strided_slice %31 {offsets = [0, 0, 0, 0], sizes = [2, 3, 8, 32], strides = [1, 1, 1, 1]} : vector<2x54x8x64xf32> to vector<2x3x8x32xf32>
    %33 = vector.extract_strided_slice %31 {offsets = [0, 3, 0, 32], sizes = [2, 50, 8, 32], strides = [1, 1, 1, 1]} : vector<2x54x8x64xf32> to vector<2x50x8x32xf32>
    %34 = vector.shape_cast %21 : vector<2x32xf32> to vector<2x1x1x32xf32>
    %35 = vector.broadcast %34 : vector<2x1x1x32xf32> to vector<2x3x8x32xf32>
    %36 = arith.mulf %32, %35 : vector<2x3x8x32xf32>
    %cst_22 = arith.constant dense<0.000000e+00> : vector<2x3x8xf32>
    %37 = vector.multi_reduction <add>, %36, %cst_22 [3] : vector<2x3x8x32xf32> to vector<2x3x8xf32>
    %38 = vector.shape_cast %37 : vector<2x3x8xf32> to vector<2x3x8x1xf32>
    %cst_23 = arith.constant dense<0xFF800000> : vector<2x3x1xf32>
    %39 = vector.multi_reduction <maximumf>, %38, %cst_23 [2] : vector<2x3x8x1xf32> to vector<2x3x1xf32>
    %40 = vector.shape_cast %39 : vector<2x3x1xf32> to vector<2x3x1x1xf32>
    %41 = vector.broadcast %40 : vector<2x3x1x1xf32> to vector<2x3x8x1xf32>
    %42 = arith.subf %38, %41 : vector<2x3x8x1xf32>
    %43 = math.exp %42 : vector<2x3x8x1xf32>
    %44 = vector.broadcast %43 : vector<2x3x8x1xf32> to vector<2x3x8x32xf32>
    %45 = arith.mulf %44, %32 : vector<2x3x8x32xf32>
    %cst_24 = arith.constant dense<0.000000e+00> : vector<2x3x32xf32>
    %46 = vector.multi_reduction <add>, %45, %cst_24 [2] : vector<2x3x8x32xf32> to vector<2x3x32xf32>
    %cst_25 = arith.constant dense<0.000000e+00> : vector<2x3x1xf32>
    %47 = vector.multi_reduction <add>, %43, %cst_25 [2] : vector<2x3x8x1xf32> to vector<2x3x1xf32>
    %48 = tpu.reciprocal %47 {approx = true} : vector<2x3x1xf32> -> vector<2x3x1xf32>
    %49 = vector.broadcast %48 : vector<2x3x1xf32> to vector<2x3x32xf32>
    %50 = arith.mulf %46, %49 : vector<2x3x32xf32>
    %51 = vector.shape_cast %22 : vector<2x32xf32> to vector<2x1x1x32xf32>
    %52 = vector.broadcast %51 : vector<2x1x1x32xf32> to vector<2x50x8x32xf32>
    %53 = arith.mulf %33, %52 : vector<2x50x8x32xf32>
    %cst_26 = arith.constant dense<0.000000e+00> : vector<2x50x8xf32>
    %54 = vector.multi_reduction <add>, %53, %cst_26 [3] : vector<2x50x8x32xf32> to vector<2x50x8xf32>
    %55 = vector.shape_cast %54 : vector<2x50x8xf32> to vector<2x50x8x1xf32>
    %cst_27 = arith.constant dense<0xFF800000> : vector<2x50x1xf32>
    %56 = vector.multi_reduction <maximumf>, %55, %cst_27 [2] : vector<2x50x8x1xf32> to vector<2x50x1xf32>
    %57 = vector.shape_cast %56 : vector<2x50x1xf32> to vector<2x50x1x1xf32>
    %58 = vector.broadcast %57 : vector<2x50x1x1xf32> to vector<2x50x8x1xf32>
    %59 = arith.subf %55, %58 : vector<2x50x8x1xf32>
    %60 = math.exp %59 : vector<2x50x8x1xf32>
    %61 = vector.broadcast %60 : vector<2x50x8x1xf32> to vector<2x50x8x32xf32>
    %62 = arith.mulf %61, %33 : vector<2x50x8x32xf32>
    %cst_28 = arith.constant dense<0.000000e+00> : vector<2x50x32xf32>
    %63 = vector.multi_reduction <add>, %62, %cst_28 [2] : vector<2x50x8x32xf32> to vector<2x50x32xf32>
    %cst_29 = arith.constant dense<0.000000e+00> : vector<2x50x1xf32>
    %64 = vector.multi_reduction <add>, %60, %cst_29 [2] : vector<2x50x8x1xf32> to vector<2x50x1xf32>
    %65 = tpu.reciprocal %64 {approx = true} : vector<2x50x1xf32> -> vector<2x50x1xf32>
    %66 = vector.broadcast %65 : vector<2x50x1xf32> to vector<2x50x32xf32>
    %67 = arith.mulf %63, %66 : vector<2x50x32xf32>
    %68 = vector.extract_strided_slice %67 {offsets = [0, 0, 0], sizes = [1, 50, 32], strides = [1, 1, 1]} : vector<2x50x32xf32> to vector<1x50x32xf32>
    %69 = vector.shape_cast %68 : vector<1x50x32xf32> to vector<50x32xf32>
    %70 = vector.extract_strided_slice %23 {offsets = [0, 0], sizes = [1, 32], strides = [1, 1]} : vector<2x32xf32> to vector<1x32xf32>
    %cst_30 = arith.constant dense<0.000000e+00> : vector<1x50xf32>
    %71 = tpu.matmul %70, %69, %cst_30 {dimension_numbers = #tpu.dot_dimension_numbers<[1], [1], [0], [0], [0, 0, 1, 0], [], []>} : vector<1x32xf32>, vector<50x32xf32>, vector<1x50xf32> -> vector<1x50xf32>
    %cst_31 = arith.constant dense<0xFF800000> : vector<1xf32>
    %72 = vector.multi_reduction <maximumf>, %71, %cst_31 [1] : vector<1x50xf32> to vector<1xf32>
    %73 = vector.shape_cast %72 : vector<1xf32> to vector<1x1xf32>
    %74 = vector.broadcast %73 : vector<1x1xf32> to vector<1x50xf32>
    %75 = arith.subf %71, %74 : vector<1x50xf32>
    %76 = math.exp %75 : vector<1x50xf32>
    %cst_32 = arith.constant dense<0.000000e+00> : vector<1xf32>
    %77 = vector.multi_reduction <add>, %76, %cst_32 [1] : vector<1x50xf32> to vector<1xf32>
    %78 = vector.shape_cast %77 : vector<1xf32> to vector<1x1xf32>
    %cst_33 = arith.constant dense<0.000000e+00> : vector<1x32xf32>
    %79 = tpu.matmul %76, %69, %cst_33 {dimension_numbers = #tpu.dot_dimension_numbers<[1], [0], [0], [1], [0, 0, 1, 1], [], []>} : vector<1x50xf32>, vector<50x32xf32>, vector<1x32xf32> -> vector<1x32xf32>
    %80 = tpu.reciprocal %78 {approx = true} : vector<1x1xf32> -> vector<1x1xf32>
    %81 = vector.broadcast %80 : vector<1x1xf32> to vector<1x32xf32>
    %82 = arith.mulf %79, %81 : vector<1x32xf32>
    %83 = vector.extract_strided_slice %50 {offsets = [0, 0, 0], sizes = [1, 3, 32], strides = [1, 1, 1]} : vector<2x3x32xf32> to vector<1x3x32xf32>
    %84 = vector.shape_cast %83 : vector<1x3x32xf32> to vector<3x32xf32>
    %cst_34 = arith.constant dense<0.000000e+00> : vector<1x3xf32>
    %85 = tpu.matmul %82, %84, %cst_34 {dimension_numbers = #tpu.dot_dimension_numbers<[1], [1], [0], [0], [0, 0, 1, 0], [], []>} : vector<1x32xf32>, vector<3x32xf32>, vector<1x3xf32> -> vector<1x3xf32>
    %c0_35 = arith.constant 0 : index
    %c0_36 = arith.constant 0 : index
    %c0_37 = arith.constant 0 : index
    %86 = vector.load %arg3[%c0_35, %c0_36, %c0_37] : memref<2x50x16xf32, #tpu.memory_space<vmem>>, vector<1x50x16xf32>
    %87 = vector.shape_cast %86 : vector<1x50x16xf32> to vector<50x16xf32>
    %cst_38 = arith.constant dense<0.000000e+00> : vector<50x32xf32>
    %88 = tpu.matmul %87, %2, %cst_38 {dimension_numbers = #tpu.dot_dimension_numbers<[1], [0], [0], [1], [0, 0, 1, 1], [], []>} : vector<50x16xf32>, vector<16x32xf32>, vector<50x32xf32> -> vector<50x32xf32>
    %89 = vector.broadcast %6 : vector<1x32xf32> to vector<50x32xf32>
    %90 = arith.addf %88, %89 : vector<50x32xf32>
    %91 = math.tanh %90 : vector<50x32xf32>
    %cst_39 = arith.constant dense<0.000000e+00> : vector<50x16xf32>
    %92 = tpu.matmul %91, %3, %cst_39 {dimension_numbers = #tpu.dot_dimension_numbers<[1], [0], [0], [1], [0, 0, 1, 1], [], []>} : vector<50x32xf32>, vector<32x16xf32>, vector<50x16xf32> -> vector<50x16xf32>
    %93 = vector.broadcast %7 : vector<1x16xf32> to vector<50x16xf32>
    %94 = arith.addf %92, %93 : vector<50x16xf32>
    %95 = math.tanh %94 : vector<50x16xf32>
    %cst_40 = arith.constant dense<0.000000e+00> : vector<1x50xf32>
    %96 = tpu.matmul %8, %95, %cst_40 {dimension_numbers = #tpu.dot_dimension_numbers<[1], [1], [0], [0], [0, 0, 1, 0], [], []>} : vector<1x16xf32>, vector<50x16xf32>, vector<1x50xf32> -> vector<1x50xf32>
    %cst_41 = arith.constant dense<0xFF800000> : vector<1xf32>
    %97 = vector.multi_reduction <maximumf>, %96, %cst_41 [1] : vector<1x50xf32> to vector<1xf32>
    %98 = vector.shape_cast %97 : vector<1xf32> to vector<1x1xf32>
    %99 = vector.broadcast %98 : vector<1x1xf32> to vector<1x50xf32>
    %100 = arith.subf %96, %99 : vector<1x50xf32>
    %101 = math.exp %100 : vector<1x50xf32>
    %cst_42 = arith.constant dense<0.000000e+00> : vector<1xf32>
    %102 = vector.multi_reduction <add>, %101, %cst_42 [1] : vector<1x50xf32> to vector<1xf32>
    %103 = vector.shape_cast %102 : vector<1xf32> to vector<1x1xf32>
    %cst_43 = arith.constant dense<0.000000e+00> : vector<1x32xf32>
    %104 = tpu.matmul %101, %91, %cst_43 {dimension_numbers = #tpu.dot_dimension_numbers<[1], [0], [0], [1], [0, 0, 1, 1], [], []>} : vector<1x50xf32>, vector<50x32xf32>, vector<1x32xf32> -> vector<1x32xf32>
    %105 = tpu.reciprocal %103 {approx = true} : vector<1x1xf32> -> vector<1x1xf32>
    %106 = vector.broadcast %105 : vector<1x1xf32> to vector<1x32xf32>
    %107 = arith.mulf %104, %106 : vector<1x32xf32>
    %108 = math.tanh %107 : vector<1x32xf32>
    %cst_44 = arith.constant 0.000000e+00 : f32
    %109 = vector.broadcast %cst_44 : f32 to vector<1x29xf32>
    %cst_45 = arith.constant 0.000000e+00 : f32
    %110 = vector.broadcast %cst_45 : f32 to vector<1x64xf32>
    %111 = tpu.concatenate %85, %109, %108, %110 in 1 : vector<1x3xf32>, vector<1x29xf32>, vector<1x32xf32>, vector<1x64xf32> -> vector<1x128xf32>
    %112 = vector.extract_strided_slice %67 {offsets = [1, 0, 0], sizes = [1, 50, 32], strides = [1, 1, 1]} : vector<2x50x32xf32> to vector<1x50x32xf32>
    %113 = vector.shape_cast %112 : vector<1x50x32xf32> to vector<50x32xf32>
    %114 = vector.extract_strided_slice %23 {offsets = [1, 0], sizes = [1, 32], strides = [1, 1]} : vector<2x32xf32> to vector<1x32xf32>
    %cst_46 = arith.constant dense<0.000000e+00> : vector<1x50xf32>
    %115 = tpu.matmul %114, %113, %cst_46 {dimension_numbers = #tpu.dot_dimension_numbers<[1], [1], [0], [0], [0, 0, 1, 0], [], []>} : vector<1x32xf32>, vector<50x32xf32>, vector<1x50xf32> -> vector<1x50xf32>
    %cst_47 = arith.constant dense<0xFF800000> : vector<1xf32>
    %116 = vector.multi_reduction <maximumf>, %115, %cst_47 [1] : vector<1x50xf32> to vector<1xf32>
    %117 = vector.shape_cast %116 : vector<1xf32> to vector<1x1xf32>
    %118 = vector.broadcast %117 : vector<1x1xf32> to vector<1x50xf32>
    %119 = arith.subf %115, %118 : vector<1x50xf32>
    %120 = math.exp %119 : vector<1x50xf32>
    %cst_48 = arith.constant dense<0.000000e+00> : vector<1xf32>
    %121 = vector.multi_reduction <add>, %120, %cst_48 [1] : vector<1x50xf32> to vector<1xf32>
    %122 = vector.shape_cast %121 : vector<1xf32> to vector<1x1xf32>
    %cst_49 = arith.constant dense<0.000000e+00> : vector<1x32xf32>
    %123 = tpu.matmul %120, %113, %cst_49 {dimension_numbers = #tpu.dot_dimension_numbers<[1], [0], [0], [1], [0, 0, 1, 1], [], []>} : vector<1x50xf32>, vector<50x32xf32>, vector<1x32xf32> -> vector<1x32xf32>
    %124 = tpu.reciprocal %122 {approx = true} : vector<1x1xf32> -> vector<1x1xf32>
    %125 = vector.broadcast %124 : vector<1x1xf32> to vector<1x32xf32>
    %126 = arith.mulf %123, %125 : vector<1x32xf32>
    %127 = vector.extract_strided_slice %50 {offsets = [1, 0, 0], sizes = [1, 3, 32], strides = [1, 1, 1]} : vector<2x3x32xf32> to vector<1x3x32xf32>
    %128 = vector.shape_cast %127 : vector<1x3x32xf32> to vector<3x32xf32>
    %cst_50 = arith.constant dense<0.000000e+00> : vector<1x3xf32>
    %129 = tpu.matmul %126, %128, %cst_50 {dimension_numbers = #tpu.dot_dimension_numbers<[1], [1], [0], [0], [0, 0, 1, 0], [], []>} : vector<1x32xf32>, vector<3x32xf32>, vector<1x3xf32> -> vector<1x3xf32>
    %c1_51 = arith.constant 1 : index
    %c0_52 = arith.constant 0 : index
    %c0_53 = arith.constant 0 : index
    %130 = vector.load %arg3[%c1_51, %c0_52, %c0_53] : memref<2x50x16xf32, #tpu.memory_space<vmem>>, vector<1x50x16xf32>
    %131 = vector.shape_cast %130 : vector<1x50x16xf32> to vector<50x16xf32>
    %cst_54 = arith.constant dense<0.000000e+00> : vector<50x32xf32>
    %132 = tpu.matmul %131, %2, %cst_54 {dimension_numbers = #tpu.dot_dimension_numbers<[1], [0], [0], [1], [0, 0, 1, 1], [], []>} : vector<50x16xf32>, vector<16x32xf32>, vector<50x32xf32> -> vector<50x32xf32>
    %133 = vector.broadcast %6 : vector<1x32xf32> to vector<50x32xf32>
    %134 = arith.addf %132, %133 : vector<50x32xf32>
    %135 = math.tanh %134 : vector<50x32xf32>
    %cst_55 = arith.constant dense<0.000000e+00> : vector<50x16xf32>
    %136 = tpu.matmul %135, %3, %cst_55 {dimension_numbers = #tpu.dot_dimension_numbers<[1], [0], [0], [1], [0, 0, 1, 1], [], []>} : vector<50x32xf32>, vector<32x16xf32>, vector<50x16xf32> -> vector<50x16xf32>
    %137 = vector.broadcast %7 : vector<1x16xf32> to vector<50x16xf32>
    %138 = arith.addf %136, %137 : vector<50x16xf32>
    %139 = math.tanh %138 : vector<50x16xf32>
    %cst_56 = arith.constant dense<0.000000e+00> : vector<1x50xf32>
    %140 = tpu.matmul %8, %139, %cst_56 {dimension_numbers = #tpu.dot_dimension_numbers<[1], [1], [0], [0], [0, 0, 1, 0], [], []>} : vector<1x16xf32>, vector<50x16xf32>, vector<1x50xf32> -> vector<1x50xf32>
    %cst_57 = arith.constant dense<0xFF800000> : vector<1xf32>
    %141 = vector.multi_reduction <maximumf>, %140, %cst_57 [1] : vector<1x50xf32> to vector<1xf32>
    %142 = vector.shape_cast %141 : vector<1xf32> to vector<1x1xf32>
    %143 = vector.broadcast %142 : vector<1x1xf32> to vector<1x50xf32>
    %144 = arith.subf %140, %143 : vector<1x50xf32>
    %145 = math.exp %144 : vector<1x50xf32>
    %cst_58 = arith.constant dense<0.000000e+00> : vector<1xf32>
    %146 = vector.multi_reduction <add>, %145, %cst_58 [1] : vector<1x50xf32> to vector<1xf32>
    %147 = vector.shape_cast %146 : vector<1xf32> to vector<1x1xf32>
    %cst_59 = arith.constant dense<0.000000e+00> : vector<1x32xf32>
    %148 = tpu.matmul %145, %135, %cst_59 {dimension_numbers = #tpu.dot_dimension_numbers<[1], [0], [0], [1], [0, 0, 1, 1], [], []>} : vector<1x50xf32>, vector<50x32xf32>, vector<1x32xf32> -> vector<1x32xf32>
    %149 = tpu.reciprocal %147 {approx = true} : vector<1x1xf32> -> vector<1x1xf32>
    %150 = vector.broadcast %149 : vector<1x1xf32> to vector<1x32xf32>
    %151 = arith.mulf %148, %150 : vector<1x32xf32>
    %152 = math.tanh %151 : vector<1x32xf32>
    %cst_60 = arith.constant 0.000000e+00 : f32
    %153 = vector.broadcast %cst_60 : f32 to vector<1x29xf32>
    %cst_61 = arith.constant 0.000000e+00 : f32
    %154 = vector.broadcast %cst_61 : f32 to vector<1x64xf32>
    %155 = tpu.concatenate %129, %153, %152, %154 in 1 : vector<1x3xf32>, vector<1x29xf32>, vector<1x32xf32>, vector<1x64xf32> -> vector<1x128xf32>
    %156 = tpu.concatenate %111, %155 in 0 : vector<1x128xf32>, vector<1x128xf32> -> vector<2x128xf32>
    %157 = vector.shape_cast %156 : vector<2x128xf32> to vector<2x1x128xf32>
    %c0_62 = arith.constant 0 : index
    %c0_63 = arith.constant 0 : index
    %c0_64 = arith.constant 0 : index
    %158 = vector.load %arg7[%c0_62, %c0_63, %c0_64] : memref<2x1x128xf32, #tpu.memory_space<vmem>>, vector<2x1x128xf32>
    tpu.vector_store %arg7[%c0_62, %c0_63, %c0_64], %157 {strides = array<i32>} : memref<2x1x128xf32, #tpu.memory_space<vmem>>, vector<2x1x128xf32>,
    return
  }
  func.func @transform_0(%arg0: i32) -> (i32, i32, i32) {
    %c0_i32 = arith.constant 0 : i32
    %c0_i32_0 = arith.constant 0 : i32
    %c0_i32_1 = arith.constant 0 : i32
    return %arg0, %c0_i32, %c0_i32_0 : i32, i32, i32
  }
  func.func @transform_1(%arg0: i32) -> (i32, i32) {
    %c0_i32 = arith.constant 0 : i32
    %c0_i32_0 = arith.constant 0 : i32
    return %arg0, %c0_i32 : i32, i32
  }
  func.func @transform_2(%arg0: i32) -> (i32, i32, i32) {
    %c0_i32 = arith.constant 0 : i32
    %c0_i32_0 = arith.constant 0 : i32
    %c0_i32_1 = arith.constant 0 : i32
    return %arg0, %c0_i32, %c0_i32_0 : i32, i32, i32
  }
  func.func @transform_3(%arg0: i32) -> (i32, i32) {
    %c0_i32 = arith.constant 0 : i32
    %c0_i32_0 = arith.constant 0 : i32
    %c0_i32_1 = arith.constant 0 : i32
    return %c0_i32, %c0_i32_0 : i32, i32
  }
  func.func @transform_4(%arg0: i32) -> (i32, i32) {
    %c0_i32 = arith.constant 0 : i32
    %c0_i32_0 = arith.constant 0 : i32
    %c0_i32_1 = arith.constant 0 : i32
    return %c0_i32, %c0_i32_0 : i32, i32
  }
  func.func @transform_5(%arg0: i32) -> (i32, i32) {
    %c0_i32 = arith.constant 0 : i32
    %c0_i32_0 = arith.constant 0 : i32
    %c0_i32_1 = arith.constant 0 : i32
    return %c0_i32, %c0_i32_0 : i32, i32
  }
  func.func @transform_6(%arg0: i32) -> (i32, i32, i32) {
    %c0_i32 = arith.constant 0 : i32
    %c0_i32_0 = arith.constant 0 : i32
    %c0_i32_1 = arith.constant 0 : i32
    return %arg0, %c0_i32, %c0_i32_0 : i32, i32, i32
  }
}

</mosaic_0001>

<bundles_post_ra>
// kernel: zeroshot_npa_forward.1
= control target key start
LH: loop header
LB: loop body
LE: loop exit
PB: predicated region body
PF: predicated region fallthrough
CT: control target
= control target key end

     0   :  { %vm52_vm0 = vcmask 261120   ;;  %s6312_s7 = smov 96   ;;  %vm2961_vm1 = vcmask 523520   ;;  %vm4514_vm2 = vcmask 1041409   ;;  %vm4516_vm3 = vcmask 1042434   ;;  %s10086_s3 = inlined_call_operand.vmem [shape: f32[112,128], index: 3, kind: input, shape index: {}]   ;;  %s10087_s5 = inlined_call_operand.vmem [shape: bf16[128,64], index: 5, kind: input, shape index: {}]   ;;  %s10088_s0 = inlined_call_operand.vmem [shape: f32[2,1,32], index: 0, kind: input, shape index: {}]   ;;  %s10089_s4 = inlined_call_operand.vmem [shape: f32[8,128], index: 4, kind: input, shape index: {}]   ;;  %s10090_s1 = inlined_call_operand.vmem [shape: bf16[864,128], index: 1, kind: input, shape index: {}]   ;;  %s10091_s2 = inlined_call_operand.vmem [shape: f32[2,50,16], index: 2, kind: input, shape index: {}]   ;;  %s10092_s6 = inlined_call_operand.vmem [shape: f32[2,1,128], index: 6, kind: output, shape index: {}]  }
   0x1   :  { %v26_v0 = vld [vmem:[%s10086_s3 + $0x18] sm:$0xff]  ;;  %v25_v1 = vld [vmem:[%s10086_s3 + $0x10] sm:$0xff]  ;;  %v24_v3 = vld [vmem:[%s10086_s3 + $0x8] sm:$0xff]  ;;  %vm4518_vm4 = vcmask 1043459   ;;  %vm4520_vm5 = vcmask 1044484   ;;  %vm4522_vm6 = vcmask 1045509  }
   0x2   :  { %v6359_v2 = vld [vmem:[%s10087_s5 + $0x38] sm:$0xff]  ;;  %67 = vmatpush.msra.mxu2 %v26_v0  ;;  %v6369_v4 = vld [vmem:[%s10087_s5 + $0x30] sm:$0xff]  ;;  %v43_v5 = vld [vmem:[%s10088_s0] sm:$0x1]  ;;  %vm4524_vm7 = vcmask 1046534   ;;  %vm4526_vm8 = vcmask 1047559  }
   0x3   :  { %598 = vmatpush.bf16.msra.mxu0 %v6359_v2  ;;  %5770 = vmatpush.bf16.msra.mxu3 %v6359_v2  ;;  %v44_v6 = vld [vmem:[%s10088_s0 + $0x1] sm:$0x1]  ;;  %48 = vst [vmem:[#allocation1] ss:$9 sm:$0xff] %v43_v5  ;;  %v6385_v8 = vld [vmem:[%s10087_s5 + $0x28] sm:$0xff]  ;;  %v5763_v11 = vld [vmem:[%s10087_s5 + $0x18] sm:$0xff] }
   0x4   :  { %68 = vmatpush.msra.mxu2 %v25_v1  ;;  %v23_v7 = vld [vmem:[%s10086_s3] sm:$0xff]  ;;  %50 = vst [vmem:[#allocation1 + $0x1] ss:$9 sm:$0xff] %v44_v6  ;;  %v5762_v12 = vld [vmem:[%s10087_s5 + $0x10] sm:$0xff]  ;;  %v5761_v13 = vld [vmem:[%s10087_s5 + $0x8] sm:$0xff]  ;;  %vm4634_vm9 = vcmask 1041408  }
   0x5   :  { %v6393_v9 = vld [vmem:[%s10087_s5 + $0x20] sm:$0xff]  ;;  %v5748_v16 = vld [vmem:[%s10090_s1 + $0x150] sm:$0xff]  ;;  %v5729_v17 = vld [vmem:[%s10090_s1 + $0xb8] sm:$0xff]  ;;  %vm4614_vm10 = vcmask 401408   ;;  %vm4630_vm11 = vcmask 408576   ;;  %vm4697_vm12 = vcmask 130048  }
   0x6   :  { %69 = vmatpush.msra.mxu2 %v24_v3  ;;  %v5760_v14 = vld [vmem:[%s10087_s5] sm:$0xff]  ;;  %v5707_v18 = vld [vmem:[%s10090_s1 + $0x8] sm:$0xff]  ;;  %v5749_v19 = vld [vmem:[%s10090_s1 + $0x158] sm:$0xff]  ;;  %vm4916_vm13 = vcmask 23552   ;;  %vm4919_vm14 = vcmask 523264   ;;  %vm5366_vm15 = vcmask 1040384  }
   0x7   :  { %599 = vmatpush.bf16.msra.mxu0 %v6369_v4  ;;  %5773 = vmatpush.bf16.msra.mxu3 %v6369_v4  ;;  %v5706_v15 = vld [vmem:[%s10090_s1] sm:$0xff]  ;;  %v5708_v21 = vld [vmem:[%s10090_s1 + $0x10] sm:$0xff]  ;;  %v5731_v23 = vld [vmem:[%s10090_s1 + $0xc8] sm:$0xff] }
   0x8   :  { %70 = vmatpush.msra.mxu2 %v23_v7  ;;  %v5730_v20 = vld [vmem:[%s10090_s1 + $0xc0] sm:$0xff]  ;;  %v5709_v24 = vld [vmem:[%s10090_s1 + $0x18] sm:$0xff]  ;;  %v5751_v25 = vld [vmem:[%s10090_s1 + $0x168] sm:$0xff] }
   0x9   :  { %v5750_v22 = vld [vmem:[%s10090_s1 + $0x160] sm:$0xff]  ;;  %v30_v26 = vld [vmem:[%s10086_s3 + $0x38] sm:$0xff]  ;;  %v29_v27 = vld [vmem:[%s10086_s3 + $0x30] sm:$0xff] }
   0xa   :  { %5769 = vmatpush.bf16.msrb.mxu2 %v6359_v2  ;;  %92 = vmatpush.msra.mxu1 %v30_v26  ;;  %v5732_v28 = vld [vmem:[%s10090_s1 + $0xd0] sm:$0xff]  ;;  %v28_v29 = vld [vmem:[%s10086_s3 + $0x28] sm:$0xff]  ;;  %v27_v30 = vld [vmem:[%s10086_s3 + $0x20] sm:$0xff] }
   0xb   :  { %600 = vmatpush.bf16.msra.mxu0 %v6385_v8  ;;  %5776 = vmatpush.bf16.msra.mxu3 %v6385_v8  ;;  %v51_v10 = vld [vmem:[#allocation1] sm:$0xff]  ;;  %v5752_v32 = vld [vmem:[%s10090_s1 + $0x170] sm:$0xff]  ;;  %v5733_v33 = vld [vmem:[%s10090_s1 + $0xd8] sm:$0xff] }
   0xc   :  { %5377 = vmatmul.msk.f32.vlgmr.msra.gmra.mxu2 %vm52_vm0, %v51_v10  ;;  %93 = vmatpush.msra.mxu1 %v29_v27  ;;  %v5710_v31 = vld [vmem:[%s10090_s1 + $0x20] sm:$0xff]  ;;  %v5711_v34 = vld [vmem:[%s10090_s1 + $0x28] sm:$0xff]  ;;  %v5753_v35 = vld [vmem:[%s10090_s1 + $0x178] sm:$0xff] }
   0xd   :  { %v5734_v36 = vld [vmem:[%s10090_s1 + $0xe0] sm:$0xff]  ;;  %v5712_v37 = vld [vmem:[%s10090_s1 + $0x30] sm:$0xff]  ;;  %v5735_v39 = vld [vmem:[%s10090_s1 + $0xe8] sm:$0xff] }
   0xe   :  { %5772 = vmatpush.bf16.msrb.mxu2 %v6369_v4  ;;  %94 = vmatpush.msra.mxu1 %v28_v29  ;;  %v5754_v38 = vld [vmem:[%s10090_s1 + $0x180] sm:$0xff]  ;;  %v5713_v41 = vld [vmem:[%s10090_s1 + $0x38] sm:$0xff]  ;;  %v5755_v42 = vld [vmem:[%s10090_s1 + $0x188] sm:$0xff] }
   0xf   :  { %601 = vmatpush.bf16.msra.mxu0 %v6393_v9  ;;  %5779 = vmatpush.bf16.msra.mxu3 %v6393_v9  ;;  %v5795_v40 = vld [vmem:[%s10089_s4] ss:$0 sm:$0xff]  ;;  %v5736_v46 = vld [vmem:[%s10090_s1 + $0xf0] sm:$0xff]  ;;  %v5737_v51 = vld [vmem:[%s10090_s1 + $0xf8] sm:$0xff] }
  0x10   :  { %95 = vmatpush.msra.mxu1 %v27_v30  ;;  %v5718_v47 = vld [vmem:[%s10090_s1 + $0x60] sm:$0xff]  ;;  %v5756_v50 = vld [vmem:[%s10090_s1 + $0x190] sm:$0xff]  ;;  %v5719_v54 = vld [vmem:[%s10090_s1 + $0x68] sm:$0xff] }
  0x11   :  { %v5714_v48 = vld [vmem:[%s10090_s1 + $0x40] sm:$0xff]  ;;  %v5715_v57 = vld [vmem:[%s10090_s1 + $0x48] sm:$0xff]  ;;  %v5757_v59 = vld [vmem:[%s10090_s1 + $0x198] sm:$0xff] }
  0x12   :  { %5775 = vmatpush.bf16.msrb.mxu2 %v6385_v8  ;;  %5768 = vmatpush.bf16.msrb.mxu1 %v6359_v2  ;;  %v5738_v61 = vld [vmem:[%s10090_s1 + $0x100] sm:$0xff]  ;;  %v5720_v0 = vld [vmem:[%s10090_s1 + $0x70] sm:$0xff]  ;;  %v5739_v7 = vld [vmem:[%s10090_s1 + $0x108] sm:$0xff] }
  0x13   :  { %602 = vmatpush.bf16.msra.mxu0 %v5763_v11  ;;  %5782 = vmatpush.bf16.msra.mxu3 %v5763_v11  ;;  %v5716_v3 = vld [vmem:[%s10090_s1 + $0x50] sm:$0xff]  ;;  %v5758_v5 = vld [vmem:[%s10090_s1 + $0x1a0] sm:$0xff]  ;;  %v5721_v10 = vld [vmem:[%s10090_s1 + $0x78] sm:$0xff] }
  0x16   :  { %5778 = vmatpush.bf16.msrb.mxu2 %v6393_v9  ;;  %5771 = vmatpush.bf16.msrb.mxu1 %v6369_v4 }
  0x17   :  { %603 = vmatpush.bf16.msra.mxu0 %v5762_v12  ;;  %5785 = vmatpush.bf16.msra.mxu3 %v5762_v12 }
  0x1a   :  { %5781 = vmatpush.bf16.msrb.mxu2 %v5763_v11  ;;  %5774 = vmatpush.bf16.msrb.mxu1 %v6385_v8 }
  0x1b   :  { %604 = vmatpush.bf16.msra.mxu0 %v5761_v13  ;;  %5788 = vmatpush.bf16.msra.mxu3 %v5761_v13 }
  0x1e   :  { %5784 = vmatpush.bf16.msrb.mxu2 %v5762_v12  ;;  %5777 = vmatpush.bf16.msrb.mxu1 %v6393_v9 }
  0x1f   :  { %605 = vmatpush.bf16.msra.mxu0 %v5760_v14  ;;  %5791 = vmatpush.bf16.msra.mxu3 %v5760_v14 }
  0x22   :  { %5787 = vmatpush.bf16.msrb.mxu2 %v5761_v13  ;;  %606 = vmatmul.bf16.vlgmr.msra.gmra.mxu0 %v5706_v15  ;;  %v5759_v15 = vld [vmem:[%s10090_s1 + $0x1a8] sm:$0xff] }
  0x23   :  { %815 = vmatmul.bf16.vlgmr.msra.gmra.mxu3 %v5748_v16  ;;  %5780 = vmatpush.bf16.msrb.mxu1 %v5763_v11 }
  0x26   :  { %5790 = vmatpush.bf16.msrb.mxu2 %v5760_v14 }
  0x27   :  { %5783 = vmatpush.bf16.msrb.mxu1 %v5762_v12 }
  0x29   :  { %721 = vmatmul.bf16.vlgmr.msrb.gmra.mxu2 %v5729_v17  ;;  %v5740_v17 = vld [vmem:[%s10090_s1 + $0x110] sm:$0xff] }
  0x2b   :  { %5786 = vmatpush.bf16.msrb.mxu1 %v5761_v13  ;;  %v5717_v13 = vld [vmem:[%s10090_s1 + $0x58] sm:$0xff] }
  0x2f   :  { %5789 = vmatpush.bf16.msrb.mxu1 %v5760_v14 }
  0x32   :  { %611 = vmatmul.bf16.gmra.mxu0 %v5707_v18 }
  0x33   :  { %820 = vmatmul.bf16.gmra.mxu3 %v5749_v19 }
  0x39   :  { %726 = vmatmul.bf16.gmra.mxu2 %v5730_v20  ;;  %v5722_v20 = vld [vmem:[%s10090_s1 + $0x80] sm:$0xff] }
  0x42   :  { %616 = vmatmul.bf16.gmra.mxu0 %v5708_v21 }
  0x43   :  { %825 = vmatmul.bf16.gmra.mxu3 %v5750_v22 }
  0x49   :  { %731 = vmatmul.bf16.gmra.mxu2 %v5731_v23 }
  0x52   :  { %621 = vmatmul.bf16.gmra.mxu0 %v5709_v24 }
  0x53   :  { %830 = vmatmul.bf16.gmra.mxu3 %v5751_v25  ;;  %v5741_v25 = vld [vmem:[%s10090_s1 + $0x118] sm:$0xff] }
  0x59   :  { %736 = vmatmul.bf16.gmra.mxu2 %v5732_v28  ;;  %v5723_v28 = vld [vmem:[%s10090_s1 + $0x88] sm:$0xff] }
  0x62   :  { %626 = vmatmul.bf16.gmra.mxu0 %v5710_v31  ;;  %v5742_v31 = vld [vmem:[%s10090_s1 + $0x120] sm:$0xff] }
  0x63   :  { %835 = vmatmul.bf16.gmra.mxu3 %v5752_v32 }
  0x69   :  { %740 = vmatmul.bf16.gmra.mxu2 %v5733_v33 }
  0x72   :  { %631 = vmatmul.bf16.gmra.mxu0 %v5711_v34  ;;  %v5724_v34 = vld [vmem:[%s10090_s1 + $0x90] sm:$0xff] }
  0x73   :  { %840 = vmatmul.bf16.gmra.mxu3 %v5753_v35 }
  0x79   :  { %745 = vmatmul.bf16.gmra.mxu2 %v5734_v36 }
  0x82   :  { %636 = vmatmul.bf16.gmra.mxu0 %v5712_v37  ;;  %v5743_v37 = vld [vmem:[%s10090_s1 + $0x128] sm:$0xff] }
  0x83   :  { %845 = vmatmul.bf16.gmra.mxu3 %v5754_v38 }
  0x89   :  { %750 = vmatmul.bf16.gmra.mxu2 %v5735_v39  ;;  %v5725_v39 = vld [vmem:[%s10090_s1 + $0x98] sm:$0xff] }
  0x8f   :  { %v72_v43 = vpop.f32.mrf.mxu2 }
  0x90   :  { %v73_v44 = vadd.f32 %v5795_v40, %v72_v43 }
  0x92   :  { %641 = vmatmul.bf16.gmra.mxu0 %v5713_v41  ;;  %v75_v45 = vmax.f32 %v73_v44, 0.0 }
  0x93   :  { %850 = vmatmul.bf16.gmra.mxu3 %v5755_v42  ;;  %v5799_v42 = vld [vmem:[%s10089_s4 + $0x1] ss:$0 sm:$0xff] }
  0x94   :  { %5378 = vmatmul.msk.f32.vlgmr.msra.gmra.mxu1 %vm52_vm0, %v75_v45  ;;  %v5744_v45 = vld [vmem:[%s10090_s1 + $0x130] sm:$0xff] }
  0x99   :  { %755 = vmatmul.bf16.gmra.mxu2 %v5736_v46 }
  0x9c   :  { %666 = vmatmul.bf16.vlgmr.msrb.gmra.mxu1 %v5718_v47 }
  0x9f   :  { %v6511_v49 = vpop.f32.mrf.mxu0 }
  0xa0   :  { %10311 = vst [vmem:[#allocation2_spill] sm:$0xff] %v6511_v49 }
  0xa2   :  { %646 = vmatmul.bf16.gmra.mxu0 %v5714_v48 }
  0xa3   :  { %855 = vmatmul.bf16.gmra.mxu3 %v5756_v50  ;;  %v6653_v50 = vld [vmem:[%s10089_s4 + $0x5] ss:$0 sm:$0xff] }
  0xa6   :  { %v6519_v52 = vpop.f32.mrf.mxu3 }
  0xa7   :  { %10312 = vst [vmem:[#allocation3_spill] sm:$0xff] %v6519_v52  ;;  %v6521_v53 = vpop.f32.mrf.mxu0 }
  0xa8   :  { %10313 = vst [vmem:[#allocation4_spill] sm:$0xff] %v6521_v53 }
  0xa9   :  { %760 = vmatmul.bf16.gmra.mxu2 %v5737_v51  ;;  %v5726_v51 = vld [vmem:[%s10090_s1 + $0xa0] sm:$0xff] }
  0xac   :  { %v6526_v55 = vpop.f32.mrf.mxu2  ;;  %671 = vmatmul.bf16.gmra.mxu1 %v5719_v54 }
  0xae   :  { %v6528_v56 = vpop.f32.mrf.mxu3 }
  0xaf   :  { %10314 = vst [vmem:[#allocation5_spill] sm:$0xff] %v6528_v56  ;;  %v6533_v58 = vpop.f32.mrf.mxu0 }
  0xb0   :  { %10315 = vst [vmem:[#allocation6_spill] sm:$0xff] %v6533_v58 }
  0xb2   :  { %651 = vmatmul.bf16.gmra.mxu0 %v5715_v57 }
  0xb3   :  { %860 = vmatmul.bf16.gmra.mxu3 %v5757_v59 }
  0xb4   :  { %v6538_v60 = vpop.f32.mrf.mxu2 }
  0xb6   :  { %v6543_v62 = vpop.f32.mrf.mxu3 }
  0xb7   :  { %10316 = vst [vmem:[#allocation7_spill] sm:$0xff] %v6543_v62  ;;  %v6545_v63 = vpop.f32.mrf.mxu0 }
  0xb9   :  { %765 = vmatmul.bf16.gmra.mxu2 %v5738_v61  ;;  %v6667_v61 = vadd.f32 %v6653_v50, %v6526_v55 }
  0xbc   :  { %v6550_v1 = vpop.f32.mrf.mxu2  ;;  %676 = vmatmul.bf16.gmra.mxu1 %v5720_v0  ;;  %v6671_v0 = vadd.f32 %v6653_v50, %v6538_v60 }
  0xbe   :  { %v6552_v2 = vpop.f32.mrf.mxu3  ;;  %10331 = vst [vmem:[#allocation22_spill] sm:$0xff] %v6671_v0 }
  0xbf   :  { %10317 = vst [vmem:[#allocation8_spill] sm:$0xff] %v6552_v2  ;;  %v6557_v4 = vpop.f32.mrf.mxu0 }
  0xc2   :  { %656 = vmatmul.bf16.gmra.mxu0 %v5716_v3 }
  0xc3   :  { %865 = vmatmul.bf16.gmra.mxu3 %v5758_v5 }
  0xc4   :  { %v6562_v6 = vpop.f32.mrf.mxu2 }
  0xc6   :  { %v6567_v8 = vpop.f32.mrf.mxu3 }
  0xc7   :  { %10318 = vst [vmem:[#allocation9_spill] sm:$0xff] %v6567_v8  ;;  %v6569_v9 = vpop.f32.mrf.mxu0 }
  0xc9   :  { %770 = vmatmul.bf16.gmra.mxu2 %v5739_v7 }
  0xcc   :  { %v6574_v11 = vpop.f32.mrf.mxu2  ;;  %681 = vmatmul.bf16.gmra.mxu1 %v5721_v10 }
  0xce   :  { %v6576_v12 = vpop.f32.mrf.mxu3 }
  0xcf   :  { %10319 = vst [vmem:[#allocation10_spill] sm:$0xff] %v6576_v12  ;;  %v6581_v14 = vpop.f32.mrf.mxu0 }
  0xd2   :  { %661 = vmatmul.bf16.gmra.mxu0 %v5717_v13  ;;  %v10099_v13 = vmax.f32 %v6667_v61, 0.0 }
  0xd3   :  { %870 = vmatmul.bf16.gmra.mxu3 %v5759_v15  ;;  %v10096_v15 = vmax.f32 %v6671_v0, 0.0 }
  0xd4   :  { %v734_v16 = vpop.f32.mrf.mxu2 }
  0xd5   :  { %v6659_v54 = vadd.f32 %v6653_v50, %v734_v16 }
  0xd6   :  { %v6589_v18 = vpop.f32.mrf.mxu3 }
  0xd7   :  { %10320 = vst [vmem:[#allocation11_spill] sm:$0xff] %v6589_v18  ;;  %v6591_v19 = vpop.f32.mrf.mxu0  ;;  %v10101_v3 = vmax.f32 %v6659_v54, 0.0 }
  0xd8   :  { %v6847_v8 = vadd.f32 %v6653_v50, %v6591_v19 }
  0xd9   :  { %775 = vmatmul.bf16.gmra.mxu2 %v5740_v17 }
  0xda   :  { %10351 = vst [vmem:[#allocation42_spill] sm:$0xff] %v6847_v8  ;;  %v10109_v19 = vmax.f32 %v6847_v8, 0.0 }
  0xdc   :  { %v737_v21 = vpop.f32.mrf.mxu2  ;;  %686 = vmatmul.bf16.gmra.mxu1 %v5722_v20  ;;  %v6695_v20 = vadd.f32 %v6653_v50, %v6574_v11  ;;  %v5745_v11 = vld [vmem:[%s10090_s1 + $0x138] sm:$0xff] }
  0xdd   :  { %v6686_v16 = vadd.f32 %v6653_v50, %v737_v21  ;;  %v6706_v21 = vadd.f32 %v6653_v50, %v6550_v1 }
  0xde   :  { %v6596_v22 = vpop.f32.mrf.mxu3  ;;  %10335 = vst [vmem:[#allocation26_spill] sm:$0xff] %v6695_v20 }
  0xdf   :  { %10321 = vst [vmem:[#allocation12_spill] sm:$0xff] %v6596_v22  ;;  %v6598_v23 = vpop.f32.mrf.mxu0 }
  0xe0   :  { %10336 = vst [vmem:[#allocation27_spill] sm:$0xff] %v6706_v21 }
  0xe4   :  { %v739_v24 = vpop.f32.mrf.mxu2 }
  0xe6   :  { %v6603_v26 = vpop.f32.mrf.mxu3 }
  0xe7   :  { %10322 = vst [vmem:[#allocation13_spill] sm:$0xff] %v6603_v26  ;;  %v6605_v27 = vpop.f32.mrf.mxu0 }
  0xe9   :  { %780 = vmatmul.bf16.gmra.mxu2 %v5741_v25 }
  0xec   :  { %691 = vmatmul.bf16.gmra.mxu1 %v5723_v28  ;;  %v6648_v48 = vpop.f32.mrf.mxu2  ;;  %v10100_v28 = vmax.f32 %v6686_v16, 0.0 }
  0xed   :  { %10329 = vst [vmem:[#allocation20_spill] sm:$0xff] %v6648_v48 }
  0xee   :  { %v6610_v29 = vpop.f32.mrf.mxu3 }
  0xef   :  { %10323 = vst [vmem:[#allocation14_spill] sm:$0xff] %v6610_v29  ;;  %v6612_v30 = vpop.f32.mrf.mxu0 }
  0xf4   :  { %v6683_v55 = vpop.f32.mrf.mxu2 }
  0xf5   :  { %10334 = vst [vmem:[#allocation25_spill] sm:$0xff] %v6683_v55 }
  0xf6   :  { %v6617_v32 = vpop.f32.mrf.mxu3 }
  0xf7   :  { %10324 = vst [vmem:[#allocation15_spill] sm:$0xff] %v6617_v32  ;;  %v6619_v33 = vpop.f32.mrf.mxu0 }
  0xf9   :  { %785 = vmatmul.bf16.gmra.mxu2 %v5742_v31 }
  0xfc   :  { %696 = vmatmul.bf16.gmra.mxu1 %v5724_v34  ;;  %v10093_v34 = vmax.f32 %v6695_v20, 0.0 }
  0xfe   :  { %v6624_v35 = vpop.f32.mrf.mxu3 }
  0xff   :  { %10325 = vst [vmem:[#allocation16_spill] sm:$0xff] %v6624_v35  ;;  %v6626_v36 = vpop.f32.mrf.mxu0 }
 0x106   :  { %v6631_v38 = vpop.f32.mrf.mxu3 }
 0x107   :  { %10326 = vst [vmem:[#allocation17_spill] sm:$0xff] %v6631_v38  ;;  %v6636_v40 = vpop.f32.mrf.mxu0 }
 0x109   :  { %790 = vmatmul.bf16.gmra.mxu2 %v5743_v37  ;;  %v10094_v37 = vmax.f32 %v6706_v21, 0.0 }
 0x10c   :  { %701 = vmatmul.bf16.gmra.mxu1 %v5725_v39 }
 0x10e   :  { %v6638_v41 = vpop.f32.mrf.mxu3 }
 0x10f   :  { %10327 = vst [vmem:[#allocation18_spill] sm:$0xff] %v6638_v41  ;;  %v642_v46 = vpop.f32.mrf.mxu0 }
 0x111   :  { %v97_v43 = vpop.f32.mrf.mxu1 }
 0x112   :  { %v98_v44 = vadd.f32 %v5799_v42, %v97_v43  ;;  %v5727_v43 = vld [vmem:[%s10090_s1 + $0xa8] sm:$0xff] }
 0x114   :  { %5800 = vtanh.f32 %v98_v44  ;;  %v6728_v44 = vpop.f32.mrf.mxu2 }
 0x115   :  { %10338 = vst [vmem:[#allocation29_spill] sm:$0xff] %v6728_v44  ;;  %v6818_v44 = vadd.f32 %v6653_v50, %v6569_v9 }
 0x116   :  { %v6646_v47 = vpop.f32.mrf.mxu3 }
 0x117   :  { %10328 = vst [vmem:[#allocation19_spill] sm:$0xff] %v6646_v47  ;;  %v6679_v10 = vpop.f32.mrf.mxu0 }
 0x118   :  { %10347 = vst [vmem:[#allocation38_spill] sm:$0xff] %v6818_v44 }
 0x119   :  { %795 = vmatmul.bf16.gmra.mxu2 %v5744_v45  ;;  %v6661_v57 = vpop.f32.mrf.mxu1 }
 0x11a   :  { %v6663_v59 = vpop.eup %5800  ;;  %v6874_v29 = vadd.f32 %v6653_v50, %v6661_v57 }
 0x11b   :  { %10330 = vst [vmem:[#allocation21_spill] sm:$0xff] %v6663_v59  ;;  %v6675_v5 = vperm.slane %v6663_v59, 0 }
 0x11c   :  { %706 = vmatmul.bf16.gmra.mxu1 %v5726_v51  ;;  %10356 = vst [vmem:[#allocation47_spill] sm:$0xff] %v6874_v29 }
 0x11d   :  { %10332 = vst [vmem:[#allocation23_spill] sm:$0xff] %v6675_v5  ;;  %v1209_v60 = vmul.f32 %v6675_v5, %v10101_v3  ;;  %v1205_v24 = vmul.f32 %v6675_v5, %v10096_v15  ;;  %v1204_v25 = vmul.f32 %v6675_v5, %v10099_v13  ;;  %v1210_v1 = vmul.f32 %v6675_v5, %v10100_v28  ;;  %v6781_v15 = vpop.f32.mrf.mxu2 }
 0x11e   :  { %v6677_v7 = vpop.f32.mrf.mxu3  ;;  %v1206_v45 = vmul.f32 %v6675_v5, %v10094_v37  ;;  %v1208_v51 = vmul.f32 %v6675_v5, %v10093_v34  ;;  %10343 = vst [vmem:[#allocation34_spill] sm:$0xff] %v6781_v15  ;;  %v1165_v52 = vmul.f32 %v6675_v5, %v10109_v19 }
 0x11f   :  { %10333 = vst [vmem:[#allocation24_spill] sm:$0xff] %v6677_v7  ;;  %1457 = vrot.lane.b32.xlu2 %v1209_v60, %s6312_s7  ;;  %1449 = vrot.lane.b32.xlu0 %v1205_v24, %s6312_s7  ;;  %v6721_v39 = vpop.f32.mrf.mxu0  ;;  %v6737_v60 = vadd.f32 %v6653_v50, %v642_v46  ;;  %v6741_v24 = vadd.f32 %v6653_v50, %v6562_v6 }
 0x120   :  { %1447 = vrot.lane.b32.xlu1 %v1204_v25, %s6312_s7  ;;  %v6746_v25 = vadd.f32 %v6653_v50, %v6619_v33 }
 0x121   :  { %v6691_v17 = vpop.f32.mrf.mxu1  ;;  %10339 = vst [vmem:[#allocation30_spill] sm:$0xff] %v6741_v24  ;;  %v10097_v46 = vmax.f32 %v6737_v60, 0.0  ;;  %v10095_v34 = vmax.f32 %v6741_v24, 0.0 }
 0x122   :  { %v10098_v6 = vmax.f32 %v6746_v25, 0.0 }
 0x123   :  { %v1207_v33 = vmul.f32 %v6675_v5, %v10095_v34  ;;  %v1172_v37 = vmul.f32 %v6675_v5, %v10097_v46  ;;  %v6779_v34 = vadd.f32 %v6653_v50, %v6545_v63 }
 0x125   :  { %10342 = vst [vmem:[#allocation33_spill] sm:$0xff] %v6779_v34  ;;  %v10104_v13 = vmax.f32 %v6779_v34, 0.0 }
 0x126   :  { %v6714_v31 = vpop.f32.mrf.mxu3 }
 0x127   :  { %10337 = vst [vmem:[#allocation28_spill] sm:$0xff] %v6714_v31  ;;  %1459 = vrot.lane.b32.xlu2 %v1210_v1, %s6312_s7  ;;  %1451 = vrot.lane.b32.xlu0 %v1206_v45, %s6312_s7  ;;  %v6757_v1 = vadd.f32 %v6653_v50, %v6626_v36  ;;  %v6774_v36 = vpop.f32.mrf.mxu0  ;;  %v1161_v3 = vmul.f32 %v6675_v5, %v10104_v13 }
 0x128   :  { %1455 = vrot.lane.b32.xlu1 %v1208_v51, %s6312_s7  ;;  %v1169_v51 = vmul.f32 %v6675_v5, %v10098_v6 }
 0x129   :  { %800 = vmatmul.bf16.gmra.mxu2 %v5745_v11  ;;  %v6723_v42 = vpop.f32.mrf.mxu1  ;;  %v10102_v46 = vmax.f32 %v6757_v1, 0.0 }
 0x12b   :  { %v1170_v63 = vmul.f32 %v6675_v5, %v10102_v46  ;;  %v6814_v46 = vadd.f32 %v6653_v50, %v6557_v4  ;;  %v10106_v4 = vmax.f32 %v6818_v44, 0.0 }
 0x12c   :  { %711 = vmatmul.bf16.gmra.mxu1 %v5727_v43  ;;  %v6766_v43 = vadd.f32 %v6653_v50, %v6636_v40  ;;  %v5746_v40 = vld [vmem:[%s10090_s1 + $0x140] sm:$0xff] }
 0x12d   :  { %10346 = vst [vmem:[#allocation37_spill] sm:$0xff] %v6814_v46  ;;  %v10107_v55 = vmax.f32 %v6814_v46, 0.0 }
 0x12e   :  { %v6750_v11 = vpop.f32.mrf.mxu3  ;;  %10341 = vst [vmem:[#allocation32_spill] sm:$0xff] %v6766_v43 }
 0x12f   :  { %10340 = vst [vmem:[#allocation31_spill] sm:$0xff] %v6750_v11  ;;  %1453 = vrot.lane.b32.xlu2 %v1207_v33, %s6312_s7  ;;  %1383 = vrot.lane.b32.xlu0 %v1172_v37, %s6312_s7  ;;  %v10103_v33 = vmax.f32 %v6766_v43, 0.0 }
 0x130   :  { %1377 = vrot.lane.b32.xlu1 %v1169_v51, %s6312_s7  ;;  %v5728_v51 = vld [vmem:[%s10090_s1 + $0xb0] sm:$0xff] }
 0x131   :  { %v6762_v45 = vpop.f32.mrf.mxu1  ;;  %v1171_v28 = vmul.f32 %v6675_v5, %v10103_v33  ;;  %v652_v33 = vpop.f32.mrf.mxu0 }
 0x132   :  { %v6907_v15 = vadd.f32 %v6653_v50, %v6762_v45 }
 0x134   :  { %10362 = vst [vmem:[#allocation52_spill] sm:$0xff] %v6907_v15  ;;  %v10368_v26 = vmax.f32 %v6907_v15, 0.0 }
 0x136   :  { %v6789_v6 = vpop.f32.mrf.mxu3 }
 0x137   :  { %10344 = vst [vmem:[#allocation35_spill] sm:$0xff] %v6789_v6  ;;  %1379 = vrot.lane.b32.xlu2 %v1170_v63, %s6312_s7  ;;  %1361 = vrot.lane.b32.xlu0 %v1161_v3, %s6312_s7  ;;  %v1162_v3 = vmul.f32 %v6675_v5, %v10107_v55 }
 0x138   :  { %1381 = vrot.lane.b32.xlu1 %v1171_v28, %s6312_s7  ;;  %v1163_v28 = vmul.f32 %v6675_v5, %v10106_v4  ;;  %v5747_v4 = vld [vmem:[%s10090_s1 + $0x148] sm:$0xff]  ;;  %s6313_s1 = smov 64  }
 0x139   :  { %805 = vmatmul.bf16.gmra.mxu2 %v5746_v40  ;;  %v6796_v37 = vpop.f32.mrf.mxu1  ;;  %v6809_v40 = vadd.f32 %v6653_v50, %v6581_v14  ;;  %v6824_v14 = vpop.f32.mrf.mxu2 }
 0x13a   :  { %10349 = vst [vmem:[#allocation40_spill] sm:$0xff] %v6824_v14  ;;  %v654_v55 = vpop.f32.mrf.mxu0 }
 0x13b   :  { %10345 = vst [vmem:[#allocation36_spill] sm:$0xff] %v6809_v40  ;;  %v10105_v63 = vmax.f32 %v6809_v40, 0.0 }
 0x13c   :  { %716 = vmatmul.bf16.gmra.mxu1 %v5728_v51  ;;  %v6842_v51 = vadd.f32 %v6653_v50, %v6598_v23 }
 0x13d   :  { %v1164_v9 = vmul.f32 %v6675_v5, %v10105_v63  ;;  %v6851_v63 = vadd.f32 %v6653_v50, %v6605_v27  ;;  %v6867_v27 = vadd.f32 %v6653_v50, %v6679_v10  ;;  %v6885_v10 = vadd.f32 %v6653_v50, %v6612_v30 }
 0x13e   :  { %v6822_v13 = vpop.f32.mrf.mxu3  ;;  %10350 = vst [vmem:[#allocation41_spill] sm:$0xff] %v6842_v51  ;;  %v6899_v30 = vadd.f32 %v6653_v50, %v6691_v17 }
 0x13f   :  { %10348 = vst [vmem:[#allocation39_spill] sm:$0xff] %v6822_v13  ;;  %1367 = vrot.lane.b32.xlu2 %v1164_v9, %s6312_s7  ;;  %1365 = vrot.lane.b32.xlu0 %v1163_v28, %s6312_s7  ;;  %v10108_v9 = vmax.f32 %v6842_v51, 0.0  ;;  %v10357_v13 = vmax.f32 %v6851_v63, 0.0  ;;  %v10110_v57 = vmax.f32 %v6867_v27, 0.0 }
 0x140   :  { %10352 = vst [vmem:[#allocation43_spill] sm:$0xff] %v6851_v63  ;;  %1363 = vrot.lane.b32.xlu1 %v1162_v3, %s6312_s7  ;;  %v10112_v17 = vmax.f32 %v6899_v30, 0.0 }
 0x141   :  { %v6832_v48 = vpop.f32.mrf.mxu1  ;;  %v6863_v32 = vpop.f32.mrf.mxu2  ;;  %10355 = vst [vmem:[#allocation46_spill] sm:$0xff] %v6867_v27  ;;  %v1166_v3 = vmul.f32 %v6675_v5, %v10108_v9 }
 0x142   :  { %10354 = vst [vmem:[#allocation45_spill] sm:$0xff] %v6863_v32  ;;  %v10111_v32 = vmax.f32 %v6885_v10, 0.0 }
 0x143   :  { %10358 = vst [vmem:[#allocation48_spill] sm:$0xff] %v6885_v10 }
 0x144   :  { %10360 = vst [vmem:[#allocation50_spill] sm:$0xff] %v6899_v30  ;;  %v1168_v19 = vmul.f32 %v6675_v5, %v10111_v32  ;;  %v6925_v32 = vadd.f32 %v6653_v50, %v6721_v39  ;;  %v1185_v39 = vmul.f32 %v6675_v5, %v10368_v26  ;;  %v6953_v26 = vadd.f32 %v6653_v50, %v654_v55 }
 0x146   :  { %v6858_v23 = vpop.f32.mrf.mxu3  ;;  %10365 = vst [vmem:[#allocation54_spill] sm:$0xff] %v6925_v32  ;;  %v10117_v55 = vmax.f32 %v6953_v26, 0.0 }
 0x147   :  { %10353 = vst [vmem:[#allocation44_spill] sm:$0xff] %v6858_v23  ;;  %1371 = vrot.lane.b32.xlu2 %v1166_v3, %s6312_s7  ;;  %v657_v3 = vpop.f32.mrf.mxu0 }
 0x148   :  { %1369 = vrot.lane.b32.xlu1 %v1165_v52, %s6312_s7  ;;  %10369 = vst [vmem:[#allocation57_spill] sm:$0xff] %v6953_v26 }
 0x149   :  { %810 = vmatmul.bf16.gmra.mxu2 %v5747_v4  ;;  %v682_v28 = vpop.f32.mrf.mxu1  ;;  %v1167_v4 = vmul.f32 %v6675_v5, %v10357_v13  ;;  %v1173_v13 = vmul.f32 %v6675_v5, %v10110_v57  ;;  %v10363_v57 = vmax.f32 %v6874_v29, 0.0 }
 0x14b   :  { %1373 = vrot.lane.b32.xlu0 %v1167_v4, %s6312_s7  ;;  %v6903_v4 = vadd.f32 %v6653_v50, %v6723_v42  ;;  %v1182_v2 = vmul.f32 %v6675_v5, %v10363_v57  ;;  %v1183_v57 = vmul.f32 %v6675_v5, %v10112_v17 }
 0x14d   :  { %10361 = vst [vmem:[#allocation51_spill] sm:$0xff] %v6903_v4  ;;  %v10113_v45 = vmax.f32 %v6903_v4, 0.0 }
 0x14e   :  { %v6890_v9 = vpop.f32.mrf.mxu3 }
 0x14f   :  { %10359 = vst [vmem:[#allocation49_spill] sm:$0xff] %v6890_v9  ;;  %1385 = vrot.lane.b32.xlu2 %v1173_v13, %s6312_s7  ;;  %v1184_v38 = vmul.f32 %v6675_v5, %v10113_v45  ;;  %v659_v6 = vpop.f32.mrf.mxu0 }
 0x150   :  { %1375 = vrot.lane.b32.xlu1 %v1168_v19, %s6312_s7  ;;  %v6935_v19 = vadd.f32 %v6653_v50, %v652_v33  ;;  %v7000_v14 = vadd.f32 %v6653_v50, %v659_v6 }
 0x151   :  { %v684_v52 = vpop.f32.mrf.mxu1 }
 0x152   :  { %10367 = vst [vmem:[#allocation56_spill] sm:$0xff] %v6935_v19  ;;  %v10116_v11 = vmax.f32 %v6935_v19, 0.0 }
 0x153   :  { %1403 = vrot.lane.b32.xlu0 %v1182_v2, %s6312_s7  ;;  %v6932_v2 = vadd.f32 %v6653_v50, %v6774_v36  ;;  %v10115_v36 = vmax.f32 %v6925_v32, 0.0  ;;  %10375 = vst [vmem:[#allocation63_spill] sm:$0xff] %v7000_v14 }
 0x155   :  { %10366 = vst [vmem:[#allocation55_spill] sm:$0xff] %v6932_v2  ;;  %v10114_v33 = vmax.f32 %v6932_v2, 0.0  ;;  %v1174_v45 = vmul.f32 %v6675_v5, %v10115_v36 }
 0x156   :  { %v6919_v42 = vpop.f32.mrf.mxu3 }
 0x157   :  { %10364 = vst [vmem:[#allocation53_spill] sm:$0xff] %v6919_v42  ;;  %1405 = vrot.lane.b32.xlu2 %v1183_v57, %s6312_s7  ;;  %v6963_v57 = vadd.f32 %v6653_v50, %v6796_v37  ;;  %v1177_v37 = vmul.f32 %v6675_v5, %v10117_v55 }
 0x158   :  { %1407 = vrot.lane.b32.xlu1 %v1184_v38, %s6312_s7  ;;  %v1175_v38 = vmul.f32 %v6675_v5, %v10114_v33  ;;  %v662_v33 = vpop.f32.mrf.mxu0 }
 0x159   :  { %v687_v13 = vpop.f32.mrf.mxu1  ;;  %10370 = vst [vmem:[#allocation58_spill] sm:$0xff] %v6963_v57  ;;  %v10119_v36 = vmax.f32 %v6963_v57, 0.0 }
 0x15b   :  { %1409 = vrot.lane.b32.xlu0 %v1185_v39, %s6312_s7  ;;  %v6967_v39 = vadd.f32 %v6653_v50, %v6832_v48  ;;  %v6979_v48 = vadd.f32 %v6653_v50, %v682_v28 }
 0x15d   :  { %10371 = vst [vmem:[#allocation59_spill] sm:$0xff] %v6967_v39  ;;  %v10120_v28 = vmax.f32 %v6979_v48, 0.0 }
 0x15e   :  { %v873_v17 = vpop.f32.mrf.mxu3  ;;  %10372 = vst [vmem:[#allocation60_spill] sm:$0xff] %v6979_v48 }
 0x15f   :  { %v1176_v17 = vmul.f32 %v6675_v5, %v10116_v11  ;;  %1387 = vrot.lane.b32.xlu2 %v1174_v45, %s6312_s7  ;;  %v10118_v11 = vmax.f32 %v6967_v39, 0.0  ;;  %v6982_v45 = vadd.f32 %v6653_v50, %v657_v3 }
 0x160   :  { %1389 = vrot.lane.b32.xlu1 %v1175_v38, %s6312_s7  ;;  %v6985_v38 = vadd.f32 %v6653_v50, %v684_v52  ;;  %v664_v55 = vpop.f32.mrf.mxu0 }
 0x161   :  { %v689_v31 = vpop.f32.mrf.mxu1  ;;  %10373 = vst [vmem:[#allocation61_spill] sm:$0xff] %v6982_v45  ;;  %v1187_v58 = vmul.f32 %v6675_v5, %v10118_v11  ;;  %v10121_v3 = vmax.f32 %v6982_v45, 0.0  ;;  %v1188_v11 = vmul.f32 %v6675_v5, %v10120_v28  ;;  %v10123_v28 = vmax.f32 %v7000_v14, 0.0 }
 0x162   :  { %10374 = vst [vmem:[#allocation62_spill] sm:$0xff] %v6985_v38  ;;  %v10122_v52 = vmax.f32 %v6985_v38, 0.0  ;;  %v7039_v56 = vadd.f32 %v6653_v50, %v689_v31 }
 0x163   :  { %1391 = vrot.lane.b32.xlu0 %v1176_v17, %s6312_s7  ;;  %v1186_v17 = vmul.f32 %v6675_v5, %v10119_v36 }
 0x164   :  { %v1189_v6 = vmul.f32 %v6675_v5, %v10122_v52  ;;  %10380 = vst [vmem:[#allocation68_spill] sm:$0xff] %v7039_v56 }
 0x167   :  { %1393 = vrot.lane.b32.xlu2 %v1177_v37, %s6312_s7  ;;  %v1178_v37 = vmul.f32 %v6675_v5, %v10121_v3 }
 0x168   :  { %1411 = vrot.lane.b32.xlu1 %v1186_v17, %s6312_s7  ;;  %v7012_v17 = vadd.f32 %v6653_v50, %v664_v55  ;;  %v1179_v55 = vmul.f32 %v6675_v5, %v10123_v28 }
 0x169   :  { %v692_v47 = vpop.f32.mrf.mxu1 }
 0x16a   :  { %10377 = vst [vmem:[#allocation65_spill] sm:$0xff] %v7012_v17  ;;  %v7027_v62 = vadd.f32 %v6653_v50, %v692_v47 }
 0x16b   :  { %1413 = vrot.lane.b32.xlu0 %v1187_v58, %s6312_s7  ;;  %v7009_v58 = vadd.f32 %v6653_v50, %v662_v33  ;;  %v10125_v33 = vmax.f32 %v7012_v17, 0.0 }
 0x16c   :  { %10378 = vst [vmem:[#allocation66_spill] sm:$0xff] %v7027_v62  ;;  %v10126_v47 = vmax.f32 %v7027_v62, 0.0 }
 0x16d   :  { %10376 = vst [vmem:[#allocation64_spill] sm:$0xff] %v7009_v58  ;;  %v10124_v3 = vmax.f32 %v7009_v58, 0.0 }
 0x16e   :  { %v1192_v31 = vmul.f32 %v6675_v5, %v10126_v47 }
 0x16f   :  { %1415 = vrot.lane.b32.xlu2 %v1188_v11, %s6312_s7  ;;  %v1180_v11 = vmul.f32 %v6675_v5, %v10124_v3 }
 0x170   :  { %1417 = vrot.lane.b32.xlu1 %v1189_v6, %s6312_s7  ;;  %v1181_v6 = vmul.f32 %v6675_v5, %v10125_v33 }
 0x171   :  { %v694_v36 = vpop.f32.mrf.mxu1 }
 0x173   :  { %1395 = vrot.lane.b32.xlu0 %v1178_v37, %s6312_s7  ;;  %v7033_v37 = vadd.f32 %v6653_v50, %v687_v13  ;;  %v10128_v13 = vmax.f32 %v7039_v56, 0.0 }
 0x175   :  { %10379 = vst [vmem:[#allocation67_spill] sm:$0xff] %v7033_v37  ;;  %v10127_v28 = vmax.f32 %v7033_v37, 0.0 }
 0x177   :  { %1397 = vrot.lane.b32.xlu2 %v1179_v55, %s6312_s7  ;;  %v7054_v55 = vadd.f32 %v6653_v50, %v694_v36 }
 0x178   :  { %1399 = vrot.lane.b32.xlu1 %v1180_v11, %s6312_s7  ;;  %v1190_v11 = vmul.f32 %v6675_v5, %v10127_v28 }
 0x179   :  { %v697_v52 = vpop.f32.mrf.mxu1  ;;  %10382 = vst [vmem:[#allocation70_spill] sm:$0xff] %v7054_v55  ;;  %v10130_v47 = vmax.f32 %v7054_v55, 0.0 }
 0x17a   :  { %v7048_v3 = vadd.f32 %v6653_v50, %v697_v52 }
 0x17b   :  { %1401 = vrot.lane.b32.xlu0 %v1181_v6, %s6312_s7  ;;  %v1191_v6 = vmul.f32 %v6675_v5, %v10128_v13 }
 0x17c   :  { %10381 = vst [vmem:[#allocation69_spill] sm:$0xff] %v7048_v3  ;;  %v10129_v52 = vmax.f32 %v7048_v3, 0.0 }
 0x17e   :  { %v1194_v36 = vmul.f32 %v6675_v5, %v10129_v52  ;;  %v1458_v52 = vpop.permute.xlu2 %1457 }
 0x17f   :  { %1423 = vrot.lane.b32.xlu2 %v1192_v31, %s6312_s7  ;;  %v1193_v31 = vmul.f32 %v6675_v5, %v10130_v47 }
 0x180   :  { %1419 = vrot.lane.b32.xlu1 %v1190_v11, %s6312_s7 }
 0x181   :  { %v699_v33 = vpop.f32.mrf.mxu1 }
 0x182   :  { %v7071_v28 = vadd.f32 %v6653_v50, %v699_v33 }
 0x183   :  { %1421 = vrot.lane.b32.xlu0 %v1191_v6, %s6312_s7 }
 0x184   :  { %10383 = vst [vmem:[#allocation71_spill] sm:$0xff] %v7071_v28  ;;  %v10132_v13 = vmax.f32 %v7071_v28, 0.0 }
 0x187   :  { %1427 = vrot.lane.b32.xlu2 %v1194_v36, %s6312_s7  ;;  %v1460_v36 = vpop.permute.xlu2 %1459 }
 0x188   :  { %1425 = vrot.lane.b32.xlu1 %v1193_v31, %s6312_s7  ;;  %v1808_v49 = vsel %vm52_vm0, %v1460_v36, 0.0 }
 0x189   :  { %v702_v18 = vpop.f32.mrf.mxu1 }
 0x18a   :  { %v7077_v11 = vadd.f32 %v6653_v50, %v702_v18  ;;  %v1195_v18 = vmul.f32 %v6675_v5, %v10132_v13  ;;  %v1805_v13 = vsel %vm52_vm0, %v1458_v52, 0.0 }
 0x18c   :  { %10384 = vst [vmem:[#allocation72_spill] sm:$0xff] %v7077_v11  ;;  %v10131_v6 = vmax.f32 %v7077_v11, 0.0 }
 0x18e   :  { %v1196_v33 = vmul.f32 %v6675_v5, %v10131_v6 }
 0x18f   :  { %v1454_v31 = vpop.permute.xlu2 %1453 }
 0x190   :  { %1431 = vrot.lane.b32.xlu0 %v1196_v33, %s6312_s7  ;;  %1429 = vrot.lane.b32.xlu1 %v1195_v18, %s6312_s7  ;;  %v1799_v41 = vsel %vm52_vm0, %v1454_v31, 0.0 }
 0x191   :  { %v1450_v47 = vpop.permute.xlu0 %1449 }
 0x192   :  { %v1448_v35 = vpop.permute.xlu1 %1447  ;;  %v1793_v9 = vsel %vm52_vm0, %v1450_v47, 0.0 }
 0x193   :  { %v1790_v12 = vsel %vm52_vm0, %v1448_v35, 0.0  ;;  %v704_v35 = vpop.f32.mrf.mxu1 }
 0x197   :  { %v1380_v7 = vpop.permute.xlu2 %1379 }
 0x199   :  { %v1452_v42 = vpop.permute.xlu0 %1451 }
 0x19a   :  { %v1456_v23 = vpop.permute.xlu1 %1455  ;;  %v1796_v36 = vsel %vm52_vm0, %v1452_v42, 0.0 }
 0x19b   :  { %v1802_v10 = vsel %vm52_vm0, %v1456_v23, 0.0  ;;  %v707_v52 = vpop.f32.mrf.mxu1 }
 0x19f   :  { %v7092_v6 = vpop.permute.xlu2 %1367 }
 0x1a1   :  { %v1384_v22 = vpop.permute.xlu0 %1383 }
 0x1a2   :  { %v1378_v33 = vpop.permute.xlu1 %1377 }
 0x1a7   :  { %v7098_v53 = vpop.permute.xlu2 %1371 }
 0x1a9   :  { %v1362_v18 = vpop.permute.xlu0 %1361 }
 0x1af   :  { %v1386_v47 = vpop.permute.xlu2 %1385 }
 0x1b0   :  { %1791 = vadd.xlane.f32.xlu2 %v1790_v12  ;;  %v1382_v12 = vpop.permute.xlu1 %1381 }
 0x1b1   :  { %v1691_v42 = vsel %vm52_vm0, %v1382_v12, 0.0  ;;  %v7121_v12 = vadd.f32 %v6653_v50, %v704_v35 }
 0x1b3   :  { %10385 = vst [vmem:[#allocation73_spill] sm:$0xff] %v7121_v12 }
 0x1b8   :  { %1806 = vadd.xlane.f32.xlu2 %v1805_v13  ;;  %v1688_v13 = vsel %vm52_vm0, %v1380_v7, 0.0  ;;  %v7106_v31 = vpop.permute.xlu1 %1363  ;;  %v1661_v7 = vsel %vm52_vm0, %v1362_v18, 0.0 }
 0x1ba   :  { %1809 = vadd.xlane.f32.xlu0 %v1808_v49  ;;  %1794 = vadd.xlane.f32.xlu1 %v1793_v9  ;;  %v7102_v49 = vpop.permute.xlu0 %1365  ;;  %v1685_v9 = vsel %vm52_vm0, %v1378_v33, 0.0  ;;  %v709_v33 = vpop.f32.mrf.mxu1 }
 0x1c0   :  { %1803 = vadd.xlane.f32.xlu2 %v1802_v10  ;;  %v1697_v10 = vsel %vm52_vm0, %v1386_v47, 0.0 }
 0x1c2   :  { %1800 = vadd.xlane.f32.xlu0 %v1799_v41  ;;  %1797 = vadd.xlane.f32.xlu1 %v1796_v36  ;;  %v1694_v41 = vsel %vm52_vm0, %v1384_v22, 0.0  ;;  %v7109_v23 = vpop.permute.xlu0 %1373  ;;  %v1406_v36 = vpop.permute.xlu2 %1405 }
 0x1c8   :  { %1686 = vadd.xlane.f32.xlu2 %v1685_v9  ;;  %v1727_v9 = vsel %vm52_vm0, %v1406_v36, 0.0 }
 0x1ca   :  { %1689 = vadd.xlane.f32.xlu0 %v1688_v13  ;;  %1695 = vadd.xlane.f32.xlu1 %v1694_v41  ;;  %v7114_v13 = vpop.permute.xlu1 %1369  ;;  %v1404_v63 = vpop.permute.xlu0 %1403 }
 0x1cb   :  { %v1724_v22 = vsel %vm52_vm0, %v1404_v63, 0.0  ;;  %v712_v41 = vpop.f32.mrf.mxu1  ;;  %v7132_v63 = vadd.f32 %v6653_v50, %v707_v52 }
 0x1cc   :  { %v7124_v18 = vadd.f32 %v6653_v50, %v712_v41 }
 0x1cd   :  { %10387 = vst [vmem:[#allocation75_spill] sm:$0xff] %v7132_v63 }
 0x1ce   :  { %10386 = vst [vmem:[#allocation74_spill] sm:$0xff] %v7124_v18 }
 0x1d0   :  { %1692 = vadd.xlane.f32.xlu2 %v1691_v42  ;;  %v10136_v42 = vmax.f32 %v7124_v18, 0.0 }
 0x1d2   :  { %1698 = vadd.xlane.f32.xlu0 %v1697_v10  ;;  %1662 = vadd.xlane.f32.xlu1 %v1661_v7  ;;  %v7118_v47 = vpop.permute.xlu1 %1375  ;;  %v10135_v10 = vmax.f32 %v7121_v12, 0.0  ;;  %v1200_v35 = vmul.f32 %v6675_v5, %v10136_v42  ;;  %v1410_v42 = vpop.permute.xlu0 %1409 }
 0x1d3   :  { %v714_v40 = vpop.f32.mrf.mxu1  ;;  %v1733_v46 = vsel %vm52_vm0, %v1410_v42, 0.0 }
 0x1d4   :  { %v1197_v7 = vmul.f32 %v6675_v5, %v10135_v10  ;;  %v7147_v10 = vpop.permute.xlu2 %1387  ;;  %v7170_v14 = vadd.f32 %v6653_v50, %v714_v40 }
 0x1d6   :  { %10389 = vst [vmem:[#allocation77_spill] sm:$0xff] %v7170_v14 }
 0x1da   :  { %1728 = vadd.xlane.f32.xlu0 %v1727_v9  ;;  %1725 = vadd.xlane.f32.xlu1 %v1724_v22  ;;  %v1408_v36 = vpop.permute.xlu1 %1407  ;;  %v7139_v9 = vadd.f32 %v6653_v50, %v709_v33  ;;  %v10141_v22 = vmax.f32 %v7132_v63, 0.0  ;;  %v7156_v59 = vpop.permute.xlu0 %1391 }
 0x1dc   :  { %10388 = vst [vmem:[#allocation76_spill] sm:$0xff] %v7139_v9  ;;  %v10146_v41 = vmax.f32 %v7139_v9, 0.0  ;;  %v1198_v52 = vmul.f32 %v6675_v5, %v10141_v22 }
 0x1e2   :  { %v7153_v33 = vpop.permute.xlu1 %1389  ;;  %v1414_v2 = vpop.permute.xlu0 %1413 }
 0x1e3   :  { %v1739_v11 = vsel %vm52_vm0, %v1414_v2, 0.0 }
 0x1e8   :  { %1433 = vrot.lane.b32.xlu2 %v1197_v7, %s6312_s7  ;;  %v1199_v7 = vmul.f32 %v6675_v5, %v10146_v41 }
 0x1ea   :  { %v1412_v51 = vpop.permute.xlu1 %1411  ;;  %v1396_v27 = vpop.permute.xlu0 %1395 }
 0x1eb   :  { %v1736_v18 = vsel %vm52_vm0, %v1412_v51, 0.0  ;;  %v1712_v2 = vsel %vm52_vm0, %v1396_v27, 0.0 }
 0x1ee   :  { %1439 = vrot.lane.b32.xlu0 %v1200_v35, %s6312_s7  ;;  %v1394_v35 = vpop.permute.xlu2 %1393 }
 0x1ef   :  { %v1709_v44 = vsel %vm52_vm0, %v1394_v35, 0.0  ;;  %v717_v35 = vpop.f32.mrf.mxu1 }
 0x1f0   :  { %1435 = vrot.lane.b32.xlu2 %v1198_v52, %s6312_s7 }
 0x1f2   :  { %v1418_v22 = vpop.permute.xlu1 %1417  ;;  %v7166_v17 = vpop.permute.xlu0 %1401 }
 0x1f3   :  { %1437 = vrot.lane.b32.xlu1 %v1199_v7, %s6312_s7  ;;  %v1730_v7 = vsel %vm52_vm0, %v1408_v36, 0.0  ;;  %v1745_v51 = vsel %vm52_vm0, %v1418_v22, 0.0 }
 0x1f6   :  { %v7158_v19 = vpop.permute.xlu2 %1415 }
 0x1f7   :  { %v1742_v24 = vsel %vm52_vm0, %v7158_v19, 0.0 }
 0x1fa   :  { %v1400_v52 = vpop.permute.xlu1 %1399  ;;  %v7183_v40 = vpop.permute.xlu0 %1421 }
 0x1fe   :  { %v7160_v32 = vpop.permute.xlu2 %1397 }
 0x202   :  { %v1420_v8 = vpop.permute.xlu1 %1419 }
 0x203   :  { %v1748_v27 = vsel %vm52_vm0, %v1420_v8, 0.0 }
 0x206   :  { %v7163_v41 = vpop.permute.xlu2 %1423 }
 0x20a   :  { %v1426_v36 = vpop.permute.xlu1 %1425 }
 0x20e   :  { %v7173_v63 = vpop.permute.xlu2 %1427 }
 0x218   :  { %1710 = vadd.xlane.f32.xlu0 %v1709_v44  ;;  %v10155_v44 = vmax.f32 %v7170_v14, 0.0  ;;  %v1718_v14 = vsel %vm52_vm0, %v1400_v52, 0.0 }
 0x219   :  { %1731 = vadd.xlane.f32.xlu2 %v1730_v7 }
 0x21a   :  { %v1201_v42 = vmul.f32 %v6675_v5, %v10155_v44  ;;  %v7194_v44 = vpop.permute.xlu0 %1431 }
 0x21d   :  { %1734 = vadd.xlane.f32.xlu1 %v1733_v46  ;;  %v7181_v46 = vadd.f32 %v6653_v50, %v717_v35 }
 0x21f   :  { %10390 = vst [vmem:[#allocation78_spill] sm:$0xff] %v7181_v46  ;;  %v10158_v7 = vmax.f32 %v7181_v46, 0.0 }
 0x221   :  { %1737 = vadd.xlane.f32.xlu2 %v1736_v18  ;;  %v1202_v35 = vmul.f32 %v6675_v5, %v10158_v7 }
 0x223   :  { %v7187_v18 = vpop.xlane.xlu2 %1791 }
 0x224   :  { %v2219_v56 = vrot.slane %v7187_v18, 4 }
 0x225   :  { %1740 = vadd.xlane.f32.xlu1 %v1739_v11  ;;  %v1430_v11 = vpop.permute.xlu1 %1429 }
 0x226   :  { %v1763_v9 = vsel %vm52_vm0, %v1430_v11, 0.0 }
 0x229   :  { %1746 = vadd.xlane.f32.xlu2 %v1745_v51 }
 0x22b   :  { %v7198_v22 = vpop.xlane.xlu2 %1806 }
 0x22c   :  { %1441 = vrot.lane.b32.xlu0 %v1201_v42, %s6312_s7 }
 0x22d   :  { %1713 = vadd.xlane.f32.xlu1 %v1712_v2  ;;  %v7200_v42 = vpop.xlane.xlu1 %1794  ;;  %v7202_v51 = vpop.xlane.xlu0 %1809 }
 0x22e   :  { %v719_v2 = vpop.f32.mrf.mxu1 }
 0x22f   :  { %v7206_v46 = vadd.f32 %v6653_v50, %v719_v2  ;;  %v2220_v50 = vmax.f32 %v7187_v18, %v2219_v56 }
 0x231   :  { %1719 = vadd.xlane.f32.xlu2 %v1718_v14  ;;  %10391 = vst [vmem:[#allocation79_spill] sm:$0xff] %v7206_v46  ;;  %v10164_v52 = vmax.f32 %v7206_v46, 0.0 }
 0x233   :  { %v7208_v7 = vpop.xlane.xlu2 %1803  ;;  %v1203_v8 = vmul.f32 %v6675_v5, %v10164_v52 }
 0x234   :  { %1443 = vrot.lane.b32.xlu0 %v1202_v35, %s6312_s7  ;;  %v1757_v35 = vsel %vm52_vm0, %v1426_v36, 0.0  ;;  %v2221_v36 = vrot.slane %v2220_v50, 2 }
 0x235   :  { %v7210_v12 = vpop.xlane.xlu1 %1797  ;;  %v7213_v14 = vpop.xlane.xlu0 %1800 }
 0x236   :  { %v2222_v5 = vmax.f32 %v2220_v50, %v2221_v36  ;;  %v2231_v57 = vrot.slane %v7210_v12, 4 }
 0x238   :  { %v2223_v55 = vrot.slane %v2222_v5, 1 }
 0x239   :  { %1749 = vadd.xlane.f32.xlu2 %v1748_v27  ;;  %v2249_v27 = vrot.slane %v7198_v22, 4 }
 0x23a   :  { %v2224_v39 = vmax.f32 %v2222_v5, %v2223_v55  ;;  %v2232_v55 = vmax.f32 %v7210_v12, %v2231_v57 }
 0x23b   :  { %v7223_v2 = vpop.xlane.xlu2 %1686  ;;  %v2250_v52 = vmax.f32 %v7198_v22, %v2249_v27 }
 0x23c   :  { %v2009_v56 = vrot.slane %v7223_v2, 4  ;;  %v2233_v57 = vrot.slane %v2232_v55, 2 }
 0x23d   :  { %v7226_v3 = vpop.xlane.xlu1 %1695  ;;  %v7229_v62 = vpop.xlane.xlu0 %1689  ;;  %v2251_v48 = vrot.slane %v2250_v52, 2 }
 0x23e   :  { %v2010_v11 = vmax.f32 %v7223_v2, %v2009_v56  ;;  %v2027_v28 = vrot.slane %v7226_v3, 4 }
 0x23f   :  { %v2252_v37 = vmax.f32 %v2250_v52, %v2251_v48 }
 0x240   :  { %v2011_v45 = vrot.slane %v2010_v11, 2  ;;  %v2028_v50 = vmax.f32 %v7226_v3, %v2027_v28 }
 0x241   :  { %1758 = vadd.xlane.f32.xlu2 %v1757_v35  ;;  %v2255_v35 = vrot.slane %v7202_v51, 4 }
 0x242   :  { %v2012_v30 = vmax.f32 %v2010_v11, %v2011_v45  ;;  %v2029_v29 = vrot.slane %v2028_v50, 2 }
 0x243   :  { %v2256_v46 = vmax.f32 %v7202_v51, %v2255_v35  ;;  %v7239_v58 = vpop.xlane.xlu2 %1692 }
 0x244   :  { %v2021_v36 = vrot.slane %v7239_v58, 4  ;;  %v2013_v11 = vrot.slane %v2012_v30, 1 }
 0x245   :  { %v2257_v27 = vrot.slane %v2256_v46, 2  ;;  %v7241_v38 = vpop.xlane.xlu1 %1662  ;;  %v7248_v48 = vpop.xlane.xlu0 %1698 }
 0x246   :  { %1445 = vrot.lane.b32.xlu1 %v1203_v8, %s6312_s7  ;;  %v2015_v8 = vrot.slane %v7229_v62, 4  ;;  %v2022_v15 = vmax.f32 %v7239_v58, %v2021_v36  ;;  %v1961_v28 = vrot.slane %v7241_v38, 4  ;;  %v2030_v36 = vmax.f32 %v2028_v50, %v2029_v29 }
 0x247   :  { %v2258_v26 = vmax.f32 %v2256_v46, %v2257_v27  ;;  %v2237_v46 = vrot.slane %v7213_v14, 4  ;;  %v2033_v27 = vrot.slane %v7248_v48, 4 }
 0x248   :  { %v2016_v4 = vmax.f32 %v7229_v62, %v2015_v8  ;;  %v2253_v8 = vrot.slane %v2252_v37, 1  ;;  %v2023_v21 = vrot.slane %v2022_v15, 2  ;;  %v1962_v19 = vmax.f32 %v7241_v38, %v1961_v28 }
 0x249   :  { %1764 = vadd.xlane.f32.xlu2 %v1763_v9  ;;  %v2225_v9 = vrot.slane %v7200_v42, 4  ;;  %v2259_v5 = vrot.slane %v2258_v26, 1  ;;  %v2238_v34 = vmax.f32 %v7213_v14, %v2237_v46  ;;  %v2031_v29 = vrot.slane %v2030_v36, 1 }
 0x24a   :  { %v2017_v56 = vrot.slane %v2016_v4, 2  ;;  %v2254_v45 = vmax.f32 %v2252_v37, %v2253_v8  ;;  %v2014_v37 = vmax.f32 %v2012_v30, %v2013_v11  ;;  %v2034_v8 = vmax.f32 %v7248_v48, %v2033_v27 }
 0x24b   :  { %v2226_v35 = vmax.f32 %v7200_v42, %v2225_v9  ;;  %v2604_v9 = vsub.f32 %v7187_v18, %v2224_v39  ;;  %v2260_v18 = vmax.f32 %v2258_v26, %v2259_v5  ;;  %v2024_v50 = vmax.f32 %v2022_v15, %v2023_v21 }
 0x24c   :  { %v2018_v20 = vmax.f32 %v2016_v4, %v2017_v56  ;;  %v2243_v56 = vrot.slane %v7208_v7, 4  ;;  %v1963_v5 = vrot.slane %v1962_v19, 2  ;;  %v2234_v30 = vmax.f32 %v2232_v55, %v2233_v57 }
 0x24d   :  { %v2227_v52 = vrot.slane %v2226_v35, 2  ;;  %v7259_v43 = vpop.xlane.xlu1 %1725  ;;  %v2747_v39 = vmul.f32 1.442695, %v2604_v9  ;;  %v2239_v46 = vrot.slane %v2238_v34, 2  ;;  %v2569_v15 = vsub.f32 %v7223_v2, %v2014_v37 }
 0x24e   :  { %v2019_v0 = vrot.slane %v2018_v20, 1  ;;  %v2244_v26 = vmax.f32 %v7208_v7, %v2243_v56  ;;  %v2035_v21 = vrot.slane %v2034_v8, 2  ;;  %v2025_v11 = vrot.slane %v2024_v50, 1 }
 0x24f   :  { %v2228_v4 = vmax.f32 %v2226_v35, %v2227_v52  ;;  %v1715_v35 = vsel %vm52_vm0, %v7160_v32, 0.0  ;;  %v7268_v52 = vsel %vm52_vm0, %v7092_v6, 0.0  ;;  %5802 = vpow2.f32 %v2747_v39 }
 0x250   :  { %v2020_v9 = vmax.f32 %v2018_v20, %v2019_v0  ;;  %v7275_v32 = vsel %vm52_vm0, %v7098_v53, 0.0  ;;  %v2032_v6 = vmax.f32 %v2030_v36, %v2031_v29  ;;  %v7279_v0 = vsel %vm52_vm0, %v7106_v31, 0.0  ;;  %v7287_v31 = vpop.xlane.xlu0 %1728 }
 0x251   :  { %v2229_v28 = vrot.slane %v2228_v4, 1  ;;  %v7283_v20 = vsel %vm52_vm0, %v7102_v49, 0.0  ;;  %v2245_v55 = vrot.slane %v2244_v26, 2  ;;  %v1964_v2 = vmax.f32 %v1962_v19, %v1963_v5 }
 0x252   :  { %v2570_v27 = vsub.f32 %v7229_v62, %v2020_v9  ;;  %v2240_v53 = vmax.f32 %v2238_v34, %v2239_v46  ;;  %v2677_v57 = vmul.f32 1.442695, %v2569_v15  ;;  %v7291_v49 = vsel %vm52_vm0, %v7147_v10, 0.0 }
 0x253   :  { %v2572_v62 = vsub.f32 %v7226_v3, %v2032_v6  ;;  %v2026_v19 = vmax.f32 %v2024_v50, %v2025_v11  ;;  %v1754_v37 = vsel %vm52_vm0, %v7163_v41, 0.0  ;;  %v7298_v34 = vsel %vm52_vm0, %v7114_v13, 0.0 }
 0x254   :  { %v2246_v29 = vmax.f32 %v2244_v26, %v2245_v55  ;;  %v2241_v10 = vrot.slane %v2240_v53, 1  ;;  %v2093_v5 = vrot.slane %v7287_v31, 4  ;;  %v7304_v41 = vsel %vm52_vm0, %v7109_v23, 0.0 }
 0x255   :  { %v2683_v13 = vmul.f32 1.442695, %v2572_v62  ;;  %v7310_v26 = vsel %vm52_vm0, %v7118_v47, 0.0  ;;  %v1721_v47 = vsel %vm52_vm0, %v7166_v17, 0.0  ;;  %v7324_v55 = vsel %vm52_vm0, %v7156_v59, 0.0 }
 0x256   :  { %v2242_v6 = vmax.f32 %v2240_v53, %v2241_v10  ;;  %v2094_v23 = vmax.f32 %v7287_v31, %v2093_v5  ;;  %v1760_v59 = vsel %vm52_vm0, %v7173_v63, 0.0  ;;  %v1434_v63 = vpop.permute.xlu2 %1433 }
 0x25e   :  { %1743 = vadd.xlane.f32.xlu0 %v1742_v24  ;;  %v2609_v24 = vsub.f32 %v7198_v22, %v2254_v45  ;;  %v2610_v22 = vsub.f32 %v7202_v51, %v2260_v18  ;;  %v2230_v51 = vmax.f32 %v2228_v4, %v2229_v28  ;;  %v2235_v18 = vrot.slane %v2234_v30, 1  ;;  %v5803_v4 = vpop.eup %5802 }
 0x25f   :  { %v1965_v28 = vrot.slane %v1964_v2, 1  ;;  %v3920_v3 = vrot.slane %v5803_v4, 4 }
 0x260   :  { %v2757_v45 = vmul.f32 1.442695, %v2609_v24  ;;  %v2759_v39 = vmul.f32 1.442695, %v2610_v22  ;;  %v2036_v24 = vmax.f32 %v2034_v8, %v2035_v21  ;;  %v2605_v8 = vsub.f32 %v7200_v42, %v2230_v51 }
 0x261   :  { %v2236_v9 = vmax.f32 %v2234_v30, %v2235_v18  ;;  %v2571_v22 = vsub.f32 %v7239_v58, %v2026_v19  ;;  %v2087_v42 = vrot.slane %v7259_v43, 4  ;;  %v1966_v15 = vmax.f32 %v1964_v2, %v1965_v28 }
 0x262   :  { %5804 = vpow2.f32 %v2757_v45  ;;  %v2037_v50 = vrot.slane %v2036_v24, 1  ;;  %v2749_v46 = vmul.f32 1.442695, %v2605_v8  ;;  %v2247_v45 = vrot.slane %v2246_v29, 1 }
 0x263   :  { %5806 = vpow2.f32 %v2759_v39  ;;  %v2606_v21 = vsub.f32 %v7210_v12, %v2236_v9  ;;  %v7318_v58 = vsel %vm52_vm0, %v7153_v33, 0.0  ;;  %v3921_v11 = vadd.f32 %v5803_v4, %v3920_v3 }
 0x264   :  { %5808 = vpow2.f32 %v2677_v57  ;;  %v2038_v51 = vmax.f32 %v2036_v24, %v2037_v50  ;;  %v2681_v12 = vmul.f32 1.442695, %v2571_v22  ;;  %v2088_v2 = vmax.f32 %v7259_v43, %v2087_v42 }
 0x265   :  { %v1438_v56 = vpop.permute.xlu1 %1437  ;;  %v2248_v18 = vmax.f32 %v2246_v29, %v2247_v45  ;;  %v2561_v17 = vsub.f32 %v7241_v38, %v1966_v15  ;;  %v2751_v53 = vmul.f32 1.442695, %v2606_v21  ;;  %v2095_v57 = vrot.slane %v2094_v23, 2 }
 0x266   :  { %1716 = vadd.xlane.f32.xlu0 %v1715_v35  ;;  %v1775_v36 = vsel %vm52_vm0, %v1438_v56, 0.0  ;;  %v2679_v35 = vmul.f32 1.442695, %v2570_v27  ;;  %v10392_v56 = vmax.f32 %v6659_v54, 0.0  ;;  %v1751_v24 = vsel %vm52_vm0, %v7183_v40, 0.0 }
 0x267   :  { %1776 = vadd.xlane.f32.xlu2 %v1775_v36  ;;  %v2607_v36 = vsub.f32 %v7213_v14, %v2242_v6  ;;  %v3922_v54 = vrot.slane %v3921_v11, 2  ;;  %v2573_v19 = vsub.f32 %v7248_v48, %v2038_v51  ;;  %v2089_v29 = vrot.slane %v2088_v2, 2 }
 0x268   :  { %v7312_v30 = vpop.eup %5804  ;;  %5810 = vpow2.f32 %v2679_v35  ;;  %v10394_v35 = vmax.f32 %v6667_v61, 0.0  ;;  %v2608_v40 = vsub.f32 %v7208_v7, %v2248_v18  ;;  %v2661_v9 = vmul.f32 1.442695, %v2561_v17 }
 0x269   :  { %v7326_v27 = vpop.eup %5806  ;;  %5812 = vpow2.f32 %v2683_v13  ;;  %v2909_v33 = vmul.f32 %v7312_v30, %v10392_v56  ;;  %v1766_v48 = vsel %vm52_vm0, %v7194_v44, 0.0  ;;  %v2096_v3 = vmax.f32 %v2094_v23, %v2095_v57 }
 0x26a   :  { %v5809_v39 = vpop.eup %5808  ;;  %5814 = vpow2.f32 %v2749_v46  ;;  %v7345_v28 = vmul.f32 %v5803_v4, %v10394_v35  ;;  %v7352_v13 = vadd.f32 %v3922_v54, %v3921_v11  ;;  %v10395_v22 = vmax.f32 %v6746_v25, 0.0 }
 0x26b   :  { %v3710_v8 = vrot.slane %v5809_v39, 4  ;;  %5816 = vpow2.f32 %v2681_v12  ;;  %v3298_v14 = vsel %vm2961_vm1, %v2909_v33, 0.0  ;;  %v2685_v4 = vmul.f32 1.442695, %v2573_v19  ;;  %v1436_v19 = vpop.permute.xlu2 %1435 }
 0x26c   :  { %5818 = vpow2.f32 %v2751_v53  ;;  %v2869_v61 = vmul.f32 %v5809_v39, %v10395_v22  ;;  %v3299_v42 = vrot.slane %v3298_v14, 4  ;;  %v10396_v7 = vmax.f32 %v6757_v1, 0.0 }
 0x26d   :  { %v3711_v46 = vadd.f32 %v5809_v39, %v3710_v8  ;;  %v2090_v15 = vmax.f32 %v2088_v2, %v2089_v29  ;;  %v2755_v21 = vmul.f32 1.442695, %v2608_v40  ;;  %5820 = vpow2.f32 %v2661_v9 }
 0x26e   :  { %1755 = vadd.xlane.f32.xlu0 %v1754_v37  ;;  %v5811_v62 = vpop.eup %5810  ;;  %v10393_v37 = vmax.f32 %v6686_v16, 0.0  ;;  %v2753_v16 = vmul.f32 1.442695, %v2607_v36  ;;  %v1769_v23 = vsel %vm52_vm0, %v1434_v63, 0.0  ;;  %v3018_v12 = vsel %vm2961_vm1, %v2869_v61, 0.0  ;;  %v1440_v63 = vpop.permute.xlu0 %1439 }
 0x26f   :  { %v5813_v10 = vpop.eup %5812  ;;  %v3716_v5 = vrot.slane %v5811_v62, 4  ;;  %v2870_v45 = vmul.f32 %v5811_v62, %v10396_v7  ;;  %v3950_v2 = vrot.slane %v7312_v30, 4  ;;  %v3712_v33 = vrot.slane %v3711_v46, 2 }
 0x270   :  { %1722 = vadd.xlane.f32.xlu1 %v1721_v47  ;;  %v2910_v38 = vmul.f32 %v7326_v27, %v10393_v37  ;;  %v7350_v50 = vpop.eup %5814  ;;  %v3728_v6 = vrot.slane %v5813_v10, 4  ;;  %5822 = vpow2.f32 %v2753_v16  ;;  %v2097_v47 = vrot.slane %v2096_v3, 1 }
 0x271   :  { %v5817_v11 = vpop.eup %5816  ;;  %v3926_v51 = vrot.slane %v7350_v50, 4  ;;  %v3717_v25 = vadd.f32 %v5811_v62, %v3716_v5  ;;  %5824 = vpow2.f32 %v2685_v4  ;;  %v3025_v39 = vsel %vm2961_vm1, %v2870_v45, 0.0 }
 0x272   :  { %v3305_v44 = vsel %vm2961_vm1, %v2910_v38, 0.0  ;;  %v7363_v56 = vpop.eup %5818  ;;  %v2091_v18 = vrot.slane %v2090_v15, 1  ;;  %v3300_v17 = vadd.f32 %v3299_v42, %v3298_v14  ;;  %5826 = vpow2.f32 %v2755_v21 }
 0x273   :  { %v3306_v1 = vrot.slane %v3305_v44, 4  ;;  %v3722_v53 = vrot.slane %v5817_v11, 4  ;;  %v3956_v36 = vrot.slane %v7326_v27, 4  ;;  %v7368_v57 = vadd.f32 %v7350_v50, %v3926_v51  ;;  %v5821_v37 = vpop.eup %5820 }
 0x274   :  { %v3718_v62 = vrot.slane %v3717_v25, 2  ;;  %v2098_v54 = vmax.f32 %v2096_v3, %v2097_v47  ;;  %v3932_v38 = vrot.slane %v7363_v56, 4  ;;  %v3026_v8 = vrot.slane %v3025_v39, 4 }
 0x275   :  { %v3307_v29 = vadd.f32 %v3306_v1, %v3305_v44  ;;  %v3951_v14 = vadd.f32 %v7312_v30, %v3950_v2  ;;  %v3713_v40 = vadd.f32 %v3712_v33, %v3711_v46  ;;  %v10397_v9 = vmax.f32 %v6737_v60, 0.0  ;;  %v10404_v1 = vld [vmem:[#allocation32_spill] sm:$0xff] }
 0x276   :  { %1761 = vadd.xlane.f32.xlu0 %v1760_v59  ;;  %v3729_v59 = vadd.f32 %v5813_v10, %v3728_v6  ;;  %v7372_v35 = vpop.eup %5822  ;;  %v2092_v5 = vmax.f32 %v2090_v15, %v2091_v18  ;;  %v3301_v22 = vrot.slane %v3300_v17, 2  ;;  %v3723_v4 = vadd.f32 %v5817_v11, %v3722_v53 }
 0x277   :  { %v7376_v16 = vmul.f32 %v5813_v10, %v10397_v9  ;;  %v7378_v3 = vpop.eup %5824  ;;  %v1772_v42 = vsel %vm52_vm0, %v1436_v19, 0.0  ;;  %v3957_v7 = vadd.f32 %v7326_v27, %v3956_v36  ;;  %v3719_v30 = vadd.f32 %v3718_v62, %v3717_v25 }
 0x278   :  { %1752 = vadd.xlane.f32.xlu1 %v1751_v24  ;;  %v3019_v24 = vrot.slane %v3018_v12, 4  ;;  %v3730_v61 = vrot.slane %v3729_v59, 2  ;;  %v3662_v44 = vrot.slane %v5821_v37, 4  ;;  %v2583_v46 = vsub.f32 %v7287_v31, %v2098_v54  ;;  %v7385_v60 = vpop.eup %5826 }
 0x279   :  { %10398 = vst [vmem:[#allocation80_spill] sm:$0xff] %v7376_v16  ;;  %v7387_v10 = vadd.f32 %v3026_v8, %v3025_v39  ;;  %v3308_v6 = vrot.slane %v3307_v29, 2  ;;  %v3714_v51 = vrot.slane %v3713_v40, 1  ;;  %v3734_v47 = vrot.slane %v7378_v3, 4 }
 0x27a   :  { %v7382_v45 = vadd.f32 %v3019_v24, %v3018_v12  ;;  %v2582_v27 = vsub.f32 %v7259_v43, %v2092_v5  ;;  %v3302_v12 = vadd.f32 %v3301_v22, %v3300_v17  ;;  %v7393_v25 = vadd.f32 %v3730_v61, %v3729_v59  ;;  %v10407_v17 = vld [vmem:[#allocation22_spill] sm:$0xff] }
 0x27b   :  { %10400 = vst [vmem:[#allocation82_spill] sm:$0xff] %v7387_v10  ;;  %v10405_v31 = vmax.f32 %v10404_v1, 0.0  ;;  %v3724_v33 = vrot.slane %v3723_v4, 2  ;;  %v3958_v39 = vrot.slane %v3957_v7, 2  ;;  %v3720_v18 = vrot.slane %v3719_v30, 1  ;;  %v10417_v1 = vld [vmem:[#allocation26_spill] sm:$0xff] }
 0x27c   :  { %10399 = vst [vmem:[#allocation81_spill] sm:$0xff] %v7382_v45  ;;  %v3663_v53 = vadd.f32 %v5821_v37, %v3662_v44  ;;  %v2705_v36 = vmul.f32 1.442695, %v2583_v46  ;;  %v1778_v24 = vsel %vm52_vm0, %v1440_v63, 0.0  ;;  %v3309_v19 = vadd.f32 %v3308_v6, %v3307_v29  ;;  %v10413_v46 = vld [vmem:[#allocation27_spill] sm:$0xff]  ;;  %v10415_v6 = vld [vmem:[#allocation30_spill] sm:$0xff] }
 0x27d   :  { %v7397_v2 = vmul.f32 %v5817_v11, %v10405_v31  ;;  %v10408_v59 = vmax.f32 %v10407_v17, 0.0  ;;  %v7406_v9 = vadd.f32 %v3714_v51, %v3713_v40  ;;  %v7409_v11 = vadd.f32 %v7378_v3, %v3734_v47 }
 0x27e   :  { %1770 = vadd.xlane.f32.xlu0 %v1769_v23  ;;  %v3952_v23 = vrot.slane %v3951_v14, 2  ;;  %v2703_v5 = vmul.f32 1.442695, %v2582_v27  ;;  %v7411_v22 = vadd.f32 %v3724_v33, %v3723_v4  ;;  %v3959_v61 = vadd.f32 %v3958_v39, %v3957_v7 }
 0x27f   :  { %10406 = vst [vmem:[#allocation32_spill] sm:$0xff] %v7397_v2  ;;  %v2905_v8 = vmul.f32 %v7350_v50, %v10408_v59  ;;  %v3263_v29 = vsel %vm2961_vm1, %v7345_v28, 0.0  ;;  %v3664_v50 = vrot.slane %v3663_v53, 2  ;;  %5828 = vpow2.f32 %v2705_v36 }
 0x280   :  { %1767 = vadd.xlane.f32.xlu1 %v1766_v48  ;;  %v10401_v48 = vld [vmem:[#allocation33_spill] sm:$0xff]  ;;  %v3953_v43 = vadd.f32 %v3952_v23, %v3951_v14  ;;  %10409 = vst [vmem:[#allocation22_spill] sm:$0xff] %v7406_v9  ;;  %v7416_v14 = vadd.f32 %v3720_v18, %v3719_v30  ;;  %v3310_v40 = vrot.slane %v3309_v19, 1  ;;  %5830 = vpow2.f32 %v2703_v5 }
 0x281   :  { %v10402_v15 = vmax.f32 %v10401_v48, 0.0  ;;  %10403 = vst [vmem:[#allocation33_spill] sm:$0xff] %v7393_v25  ;;  %v10414_v48 = vmax.f32 %v10413_v46, 0.0  ;;  %v3270_v4 = vsel %vm2961_vm1, %v2905_v8, 0.0  ;;  %v10416_v28 = vmax.f32 %v10415_v6, 0.0 }
 0x282   :  { %10410 = vst [vmem:[#allocation83_spill] sm:$0xff] %v7409_v11  ;;  %v3954_v44 = vrot.slane %v3953_v43, 1  ;;  %v3264_v23 = vrot.slane %v3263_v29, 4  ;;  %v3960_v27 = vrot.slane %v3959_v61, 1  ;;  %v10418_v31 = vmax.f32 %v10417_v1, 0.0 }
 0x283   :  { %v2861_v21 = vmul.f32 %v5821_v37, %v10402_v15  ;;  %v3303_v37 = vrot.slane %v3302_v12, 1  ;;  %10411 = vst [vmem:[#allocation84_spill] sm:$0xff] %v7411_v22  ;;  %v2906_v15 = vmul.f32 %v7363_v56, %v10414_v48  ;;  %v2907_v30 = vmul.f32 %v7372_v35, %v10416_v28 }
 0x284   :  { %10412 = vst [vmem:[#allocation85_spill] sm:$0xff] %v7416_v14  ;;  %v2908_v33 = vmul.f32 %v7385_v60, %v10418_v31  ;;  %v7436_v18 = vadd.f32 %v3664_v50, %v3663_v53  ;;  %v3938_v36 = vrot.slane %v7372_v35, 4  ;;  %v3955_v17 = vadd.f32 %v3954_v44, %v3953_v43 }
 0x285   :  { %v2962_v62 = vsel %vm2961_vm1, %v2861_v21, 0.0  ;;  %v7424_v7 = vadd.f32 %v3303_v37, %v3302_v12  ;;  %v3271_v12 = vrot.slane %v3270_v4, 4  ;;  %v3277_v59 = vsel %vm2961_vm1, %v2906_v15, 0.0  ;;  %v7445_v5 = vpop.eup %5828 }
 0x286   :  { %1773 = vadd.xlane.f32.xlu0 %v1772_v42  ;;  %v2963_v42 = vrot.slane %v2962_v62, 4  ;;  %v3933_v8 = vadd.f32 %v7363_v56, %v3932_v38  ;;  %v3284_v53 = vsel %vm2961_vm1, %v2907_v30, 0.0  ;;  %v3961_v50 = vadd.f32 %v3960_v27, %v3959_v61  ;;  %v7454_v44 = vpop.eup %5830 }
 0x287   :  { %v3272_v38 = vadd.f32 %v3271_v12, %v3270_v4  ;;  %v3278_v46 = vrot.slane %v3277_v59, 4  ;;  %5832 = vrcp.f32 %v3955_v17  ;;  %v3285_v15 = vrot.slane %v3284_v53, 4 }
 0x288   :  { %1779 = vadd.xlane.f32.xlu1 %v1778_v24  ;;  %v7434_v39 = vadd.f32 %v2963_v42, %v2962_v62  ;;  %v7439_v24 = vadd.f32 %v3310_v40, %v3309_v19  ;;  %v3265_v62 = vadd.f32 %v3264_v23, %v3263_v29  ;;  %v3944_v42 = vrot.slane %v7385_v60, 4 }
 0x289   :  { %v3291_v40 = vsel %vm2961_vm1, %v2908_v33, 0.0  ;;  %v3939_v29 = vadd.f32 %v7372_v35, %v3938_v36  ;;  %v3934_v6 = vrot.slane %v3933_v8, 2  ;;  %5834 = vrcp.f32 %v3961_v50 }
 0x28a   :  { %10419 = vst [vmem:[#allocation27_spill] sm:$0xff] %v7434_v39  ;;  %v3266_v30 = vrot.slane %v3265_v62, 2  ;;  %v3292_v23 = vrot.slane %v3291_v40, 4  ;;  %v3945_v27 = vadd.f32 %v7385_v60, %v3944_v42  ;;  %v3273_v33 = vrot.slane %v3272_v38, 2 }
 0x28b   :  { %v7401_v54 = vpop.xlane.xlu0 %1710  ;;  %v3279_v35 = vadd.f32 %v3278_v46, %v3277_v59  ;;  %v3924_v12 = vrot.slane %v7352_v13, 1  ;;  %v3940_v36 = vrot.slane %v3939_v29, 2  ;;  %v3286_v51 = vadd.f32 %v3285_v15, %v3284_v53 }
 0x28c   :  { %v2057_v63 = vrot.slane %v7401_v54, 4  ;;  %v7422_v21 = vpop.xlane.xlu2 %1731  ;;  %v3935_v56 = vadd.f32 %v3934_v6, %v3933_v8  ;;  %v7470_v60 = vadd.f32 %v3292_v23, %v3291_v40 }
 0x28d   :  { %v7472_v42 = vpop.eup %5832  ;;  %v3280_v53 = vrot.slane %v3279_v35, 2  ;;  %v3925_v8 = vadd.f32 %v3924_v12, %v7352_v13  ;;  %v3941_v15 = vadd.f32 %v3940_v36, %v3939_v29  ;;  %v3287_v9 = vrot.slane %v3286_v51, 2 }
 0x28e   :  { %v2058_v47 = vmax.f32 %v7401_v54, %v2057_v63  ;;  %v3928_v63 = vrot.slane %v7368_v57, 2  ;;  %v3936_v23 = vrot.slane %v3935_v56, 1  ;;  %v3294_v36 = vrot.slane %v7470_v60, 2 }
 0x28f   :  { %5836 = vrcp.f32 %v3925_v8 }
 0x290   :  { %v7447_v37 = vpop.xlane.xlu1 %1734  ;;  %v2059_v19 = vrot.slane %v2058_v47, 2  ;;  %v3929_v61 = vadd.f32 %v3928_v63, %v7368_v57  ;;  %v7468_v57 = vadd.f32 %v3266_v30, %v3265_v62  ;;  %v3946_v63 = vrot.slane %v3945_v27, 2  ;;  %v7478_v62 = vpop.eup %5834 }
 0x291   :  { %v2105_v43 = vrot.slane %v7447_v37, 4 }
 0x292   :  { %v2060_v1 = vmax.f32 %v2058_v47, %v2059_v19  ;;  %v3930_v47 = vrot.slane %v3929_v61, 1  ;;  %v3947_v11 = vadd.f32 %v3946_v63, %v3945_v27  ;;  %v3268_v12 = vrot.slane %v7468_v57, 1 }
 0x293   :  { %v2106_v48 = vmax.f32 %v7447_v37, %v2105_v43 }
 0x294   :  { %v7459_v28 = vpop.xlane.xlu2 %1737  ;;  %v2061_v19 = vrot.slane %v2060_v1, 1  ;;  %v3931_v22 = vadd.f32 %v3930_v47, %v3929_v61  ;;  %v7492_v47 = vadd.f32 %v3280_v53, %v3279_v35  ;;  %v3288_v35 = vadd.f32 %v3287_v9, %v3286_v51 }
 0x295   :  { %v2107_v31 = vrot.slane %v2106_v48, 2  ;;  %v2111_v4 = vrot.slane %v7459_v28, 4 }
 0x296   :  { %5838 = vrcp.f32 %v3931_v22 }
 0x297   :  { %v2108_v17 = vmax.f32 %v2106_v48, %v2107_v31  ;;  %v2112_v43 = vmax.f32 %v7459_v28, %v2111_v4  ;;  %v7475_v31 = vadd.f32 %v3273_v33, %v3272_v38  ;;  %v2062_v38 = vmax.f32 %v2060_v1, %v2061_v19 }
 0x298   :  { %v7466_v39 = vpop.xlane.xlu1 %1740  ;;  %v2099_v33 = vrot.slane %v7422_v21, 4 }
 0x299   :  { %v2109_v59 = vrot.slane %v2108_v17, 1  ;;  %v2113_v50 = vrot.slane %v2112_v43, 2  ;;  %v2117_v46 = vrot.slane %v7466_v39, 4 }
 0x29a   :  { %v2100_v63 = vmax.f32 %v7422_v21, %v2099_v33 }
 0x29b   :  { %v2110_v40 = vmax.f32 %v2108_v17, %v2109_v59  ;;  %v2114_v6 = vmax.f32 %v2112_v43, %v2113_v50  ;;  %v2118_v30 = vmax.f32 %v7466_v39, %v2117_v46  ;;  %v3942_v17 = vrot.slane %v3941_v15, 1 }
 0x29c   :  { %v7481_v4 = vpop.xlane.xlu2 %1746  ;;  %v3937_v50 = vadd.f32 %v3936_v23, %v3935_v56  ;;  %v3948_v46 = vrot.slane %v3947_v11, 1  ;;  %v2101_v33 = vrot.slane %v2100_v63, 2 }
 0x29d   :  { %v2115_v25 = vrot.slane %v2114_v6, 1  ;;  %v2119_v13 = vrot.slane %v2118_v30, 2  ;;  %v2129_v29 = vrot.slane %v7481_v4, 4  ;;  %v2585_v43 = vsub.f32 %v7447_v37, %v2110_v40 }
 0x29e   :  { %v1442_v48 = vpop.permute.xlu0 %1441  ;;  %v3943_v8 = vadd.f32 %v3942_v17, %v3941_v15  ;;  %5840 = vrcp.f32 %v3937_v50  ;;  %v3295_v50 = vadd.f32 %v3294_v36, %v7470_v60 }
 0x29f   :  { %v1781_v14 = vsel %vm52_vm0, %v1442_v48, 0.0  ;;  %v2116_v59 = vmax.f32 %v2114_v6, %v2115_v25  ;;  %v2120_v61 = vmax.f32 %v2118_v30, %v2119_v13  ;;  %v2130_v27 = vmax.f32 %v7481_v4, %v2129_v29 }
 0x2a0   :  { %1782 = vadd.xlane.f32.xlu2 %v1781_v14  ;;  %v7490_v1 = vpop.xlane.xlu1 %1713  ;;  %v2577_v14 = vsub.f32 %v7401_v54, %v2062_v38  ;;  %v2709_v40 = vmul.f32 1.442695, %v2585_v43  ;;  %v3949_v13 = vadd.f32 %v3948_v46, %v3947_v11  ;;  %5842 = vrcp.f32 %v3943_v8 }
 0x2a1   :  { %v2586_v19 = vsub.f32 %v7459_v28, %v2116_v59  ;;  %v2121_v48 = vrot.slane %v2120_v61, 1  ;;  %v2131_v37 = vrot.slane %v2130_v27, 2  ;;  %v2063_v25 = vrot.slane %v7490_v1, 4  ;;  %v7502_v28 = vpop.eup %5836 }
 0x2a2   :  { %v2693_v38 = vmul.f32 1.442695, %v2577_v14  ;;  %v5839_v29 = vpop.eup %5838  ;;  %5844 = vpow2.f32 %v2709_v40  ;;  %v3275_v59 = vrot.slane %v7475_v31, 1  ;;  %v2102_v14 = vmax.f32 %v2100_v63, %v2101_v33 }
 0x2a3   :  { %v2711_v22 = vmul.f32 1.442695, %v2586_v19  ;;  %v2122_v53 = vmax.f32 %v2120_v61, %v2121_v48  ;;  %v2132_v54 = vmax.f32 %v2130_v27, %v2131_v37  ;;  %v2064_v30 = vmax.f32 %v7490_v1, %v2063_v25 }
 0x2a4   :  { %v7500_v23 = vpop.xlane.xlu2 %1719  ;;  %v5841_v11 = vpop.eup %5840  ;;  %v3282_v48 = vrot.slane %v7492_v47, 1  ;;  %v3289_v37 = vrot.slane %v3288_v35, 1  ;;  %v3296_v36 = vrot.slane %v3295_v50, 1  ;;  %v10420_v8 = vrot.slane %v7436_v18, 1 }
 0x2a5   :  { %v2075_v15 = vrot.slane %v7500_v23, 4  ;;  %v2587_v9 = vsub.f32 %v7466_v39, %v2122_v53  ;;  %v2133_v51 = vrot.slane %v2132_v54, 1  ;;  %v2065_v17 = vrot.slane %v2064_v30, 2 }
 0x2a6   :  { %v1444_v56 = vpop.permute.xlu0 %1443  ;;  %5846 = vpow2.f32 %v2711_v22  ;;  %v2103_v22 = vrot.slane %v2102_v14, 1  ;;  %v3269_v33 = vadd.f32 %v3268_v12, %v7468_v57 }
 0x2a7   :  { %v1784_v6 = vsel %vm52_vm0, %v1444_v56, 0.0  ;;  %v2076_v43 = vmax.f32 %v7500_v23, %v2075_v15  ;;  %v2713_v61 = vmul.f32 1.442695, %v2587_v9  ;;  %v2134_v27 = vmax.f32 %v2132_v54, %v2133_v51  ;;  %v5843_v56 = vpop.eup %5842 }
 0x2a8   :  { %1785 = vadd.xlane.f32.xlu0 %v1784_v6  ;;  %1665 = vadd.xlane.f32.xlu2 %v7279_v0  ;;  %v4411_v0 = vmul.f32 %v7478_v62, %v7439_v24  ;;  %5848 = vpow2.f32 %v2693_v38  ;;  %v2066_v39 = vmax.f32 %v2064_v30, %v2065_v17  ;;  %v7517_v24 = vadd.f32 %v10420_v8, %v7436_v18  ;;  %v5845_v6 = vpop.eup %5844  ;;  %v10422_v17 = vld [vmem:[#allocation52_spill] sm:$0xff] }
 0x2a9   :  { %v2077_v19 = vrot.slane %v2076_v43, 2  ;;  %v2589_v46 = vsub.f32 %v7481_v4, %v2134_v27  ;;  %5850 = vrcp.f32 %v3949_v13  ;;  %v4410_v4 = vmul.f32 %v7472_v42, %v7424_v7  ;;  %v10424_v27 = vld [vmem:[#allocation47_spill] sm:$0xff] }
 0x2aa   :  { %5852 = vpow2.f32 %v2713_v61  ;;  %v2067_v25 = vrot.slane %v2066_v39, 1  ;;  %10421 = vst [vmem:[#allocation30_spill] sm:$0xff] %v7517_v24  ;;  %v3283_v7 = vadd.f32 %v3282_v48, %v7492_v47  ;;  %v3290_v9 = vadd.f32 %v3289_v37, %v3288_v35 }
 0x2ab   :  { %v2078_v60 = vmax.f32 %v2076_v43, %v2077_v19  ;;  %v2717_v63 = vmul.f32 1.442695, %v2589_v46  ;;  %v7528_v38 = vsel %vm4514_vm2, %v4411_v0, %v4410_v4  ;;  %v3297_v51 = vadd.f32 %v3296_v36, %v3295_v50 }
 0x2ac   :  { %v7520_v40 = vpop.xlane.xlu2 %1749  ;;  %v2068_v53 = vmax.f32 %v2066_v39, %v2067_v25  ;;  %v5847_v18 = vpop.eup %5846  ;;  %v10423_v43 = vmax.f32 %v10422_v17, 0.0  ;;  %v10425_v0 = vmax.f32 %v10424_v27, 0.0  ;;  %v10428_v39 = vld [vmem:[#allocation58_spill] sm:$0xff]  ;;  %v7552_v46 = vmul.f32 %v7502_v28, %v3269_v33  ;;  %v10430_v33 = vld [vmem:[#allocation57_spill] sm:$0xff] }
 0x2ad   :  { %v2079_v54 = vrot.slane %v2078_v60, 1  ;;  %v2135_v30 = vrot.slane %v7520_v40, 4  ;;  %5854 = vpow2.f32 %v2717_v63  ;;  %v10429_v35 = vmax.f32 %v10428_v39, 0.0  ;;  %v10434_v39 = vld [vmem:[#allocation62_spill] sm:$0xff] }
 0x2ae   :  { %v5849_v42 = vpop.eup %5848  ;;  %v2578_v15 = vsub.f32 %v7490_v1, %v2068_v53  ;;  %v2885_v61 = vmul.f32 %v5845_v6, %v10423_v43  ;;  %v7542_v57 = vmul.f32 %v7454_v44, %v10425_v0  ;;  %v3806_v37 = vrot.slane %v5845_v6, 4  ;;  %v10432_v43 = vld [vmem:[#allocation59_spill] sm:$0xff] }
 0x2af   :  { %v2136_v13 = vmax.f32 %v7520_v40, %v2135_v30  ;;  %v2886_v50 = vmul.f32 %v5847_v18, %v10429_v35  ;;  %v2080_v19 = vmax.f32 %v2078_v60, %v2079_v54  ;;  %v3758_v48 = vrot.slane %v5849_v42, 4 }
 0x2b0   :  { %1701 = vadd.xlane.f32.xlu0 %v7291_v49  ;;  %1704 = vadd.xlane.f32.xlu2 %v7318_v58  ;;  %v3276_v49 = vadd.f32 %v3275_v59, %v7475_v31  ;;  %v5851_v58 = vpop.eup %5850  ;;  %v10426_v31 = vld [vmem:[#allocation50_spill] sm:$0xff]  ;;  %v2104_v59 = vmax.f32 %v2102_v14, %v2103_v22  ;;  %v3812_v8 = vrot.slane %v5847_v18, 4  ;;  %v2695_v63 = vmul.f32 1.442695, %v2578_v15 }
 0x2b1   :  { %v10427_v12 = vmax.f32 %v10426_v31, 0.0  ;;  %v5853_v1 = vpop.eup %5852  ;;  %v2137_v25 = vrot.slane %v2136_v13, 2  ;;  %v7556_v4 = vmul.f32 %v5841_v11, %v3283_v7  ;;  %v7558_v53 = vmul.f32 %v5843_v56, %v3290_v9 }
 0x2b2   :  { %v7554_v36 = vmul.f32 %v5839_v29, %v3276_v49  ;;  %v3130_v14 = vsel %vm2961_vm1, %v2885_v61, 0.0  ;;  %v3818_v22 = vrot.slane %v5853_v1, 4  ;;  %v7564_v28 = vmul.f32 %v5851_v58, %v3297_v51 }
 0x2b3   :  { %v7547_v47 = vmul.f32 %v7445_v5, %v10427_v12  ;;  %v2138_v30 = vmax.f32 %v2136_v13, %v2137_v25  ;;  %v2584_v60 = vsub.f32 %v7422_v21, %v2104_v59  ;;  %v3137_v29 = vsel %vm2961_vm1, %v2886_v50, 0.0  ;;  %v5855_v56 = vpop.eup %5854 }
 0x2b4   :  { %v7561_v17 = vpop.xlane.xlu2 %1758  ;;  %v2580_v54 = vsub.f32 %v7500_v23, %v2080_v19  ;;  %v10431_v49 = vmax.f32 %v10430_v33, 0.0  ;;  %v3759_v15 = vadd.f32 %v5849_v42, %v3758_v48  ;;  %v3807_v13 = vadd.f32 %v5845_v6, %v3806_v37 }
 0x2b5   :  { %v2153_v11 = vrot.slane %v7561_v17, 4  ;;  %v2139_v9 = vrot.slane %v2138_v30, 1  ;;  %v3813_v51 = vadd.f32 %v5847_v18, %v3812_v8  ;;  %5856 = vpow2.f32 %v2695_v63 }
 0x2b6   :  { %v2877_v7 = vmul.f32 %v5849_v42, %v10431_v49  ;;  %v3138_v58 = vrot.slane %v3137_v29, 4  ;;  %v10433_v61 = vmax.f32 %v10432_v43, 0.0  ;;  %v3819_v27 = vadd.f32 %v5853_v1, %v3818_v22 }
 0x2b7   :  { %v2154_v21 = vmax.f32 %v7561_v17, %v2153_v11  ;;  %v2140_v0 = vmax.f32 %v2138_v30, %v2139_v9  ;;  %v10435_v42 = vmax.f32 %v10434_v39, 0.0  ;;  %v3760_v18 = vrot.slane %v3759_v15, 2 }
 0x2b8   :  { %1671 = vadd.xlane.f32.xlu0 %v7268_v52  ;;  %1674 = vadd.xlane.f32.xlu2 %v7298_v34  ;;  %v3131_v52 = vrot.slane %v3130_v14, 4  ;;  %v2887_v23 = vmul.f32 %v5853_v1, %v10433_v61  ;;  %v1446_v31 = vpop.permute.xlu1 %1445  ;;  %v2699_v34 = vmul.f32 1.442695, %v2580_v54  ;;  %v3074_v35 = vsel %vm2961_vm1, %v2877_v7, 0.0 }
 0x2b9   :  { %v2155_v12 = vrot.slane %v2154_v21, 2  ;;  %v1787_v59 = vsel %vm52_vm0, %v1446_v31, 0.0  ;;  %v2889_v6 = vmul.f32 %v5855_v56, %v10435_v42  ;;  %v2707_v50 = vmul.f32 1.442695, %v2584_v60 }
 0x2ba   :  { %v2590_v19 = vsub.f32 %v7520_v40, %v2140_v0  ;;  %1788 = vadd.xlane.f32.xlu1 %v1787_v59  ;;  %v3132_v48 = vadd.f32 %v3131_v52, %v3130_v14  ;;  %v3808_v37 = vrot.slane %v3807_v13, 2  ;;  %v3830_v25 = vrot.slane %v5855_v56, 4 }
 0x2bb   :  { %v2156_v1 = vmax.f32 %v2154_v21, %v2155_v12  ;;  %v3139_v8 = vadd.f32 %v3138_v58, %v3137_v29  ;;  %v3814_v63 = vrot.slane %v3813_v51, 2  ;;  %v3144_v54 = vsel %vm2961_vm1, %v2887_v23, 0.0  ;;  %v5857_v11 = vpop.eup %5856 }
 0x2bc   :  { %v2719_v22 = vmul.f32 1.442695, %v2590_v19  ;;  %v7581_v30 = vpop.xlane.xlu2 %1764  ;;  %v3820_v33 = vrot.slane %v3819_v27, 2  ;;  %5858 = vpow2.f32 %v2699_v34  ;;  %v3158_v40 = vsel %vm2961_vm1, %v2889_v6, 0.0 }
 0x2bd   :  { %v2157_v60 = vrot.slane %v2156_v1, 1  ;;  %v3075_v14 = vrot.slane %v3074_v35, 4  ;;  %v3761_v49 = vadd.f32 %v3760_v18, %v3759_v15  ;;  %v2165_v29 = vrot.slane %v7581_v30, 4 }
 0x2be   :  { %5860 = vpow2.f32 %v2719_v22  ;;  %v3809_v7 = vadd.f32 %v3808_v37, %v3807_v13  ;;  %v3831_v9 = vadd.f32 %v5855_v56, %v3830_v25  ;;  %v3145_v21 = vrot.slane %v3144_v54, 4  ;;  %v10436_v25 = vld [vmem:[#allocation61_spill] sm:$0xff]  ;;  %v10438_v22 = vld [vmem:[#allocation67_spill] sm:$0xff] }
 0x2bf   :  { %v2158_v52 = vmax.f32 %v2156_v1, %v2157_v60  ;;  %v3764_v58 = vrot.slane %v5857_v11, 4  ;;  %v2166_v43 = vmax.f32 %v7581_v30, %v2165_v29  ;;  %v3159_v61 = vrot.slane %v3158_v40, 4 }
 0x2c0   :  { %1677 = vadd.xlane.f32.xlu0 %v7275_v32  ;;  %1683 = vadd.xlane.f32.xlu2 %v7310_v26  ;;  %v3815_v32 = vadd.f32 %v3814_v63, %v3813_v51  ;;  %v3821_v23 = vadd.f32 %v3820_v33, %v3819_v27  ;;  %v3133_v26 = vrot.slane %v3132_v48, 2  ;;  %v3140_v31 = vrot.slane %v3139_v8, 2 }
 0x2c1   :  { %v2593_v0 = vsub.f32 %v7561_v17, %v2158_v52  ;;  %v7590_v34 = vadd.f32 %v3075_v14, %v3074_v35  ;;  %v3762_v15 = vrot.slane %v3761_v49, 1  ;;  %5862 = vpow2.f32 %v2707_v50 }
 0x2c2   :  { %v2167_v12 = vrot.slane %v2166_v43, 2  ;;  %1668 = vadd.xlane.f32.xlu1 %v7283_v20  ;;  %v7593_v56 = vpop.eup %5858  ;;  %v3810_v13 = vrot.slane %v3809_v7, 1  ;;  %v3146_v59 = vadd.f32 %v3145_v21, %v3144_v54  ;;  %v3832_v39 = vrot.slane %v3831_v9, 2 }
 0x2c3   :  { %v2725_v51 = vmul.f32 1.442695, %v2593_v0  ;;  %v3816_v6 = vrot.slane %v3815_v32, 1  ;;  %v3765_v27 = vadd.f32 %v5857_v11, %v3764_v58  ;;  %v3160_v17 = vadd.f32 %v3159_v61, %v3158_v40 }
 0x2c4   :  { %v5861_v42 = vpop.eup %5860  ;;  %v2168_v18 = vmax.f32 %v2166_v43, %v2167_v12  ;;  %v3822_v19 = vrot.slane %v3821_v23, 1  ;;  %v3134_v35 = vadd.f32 %v3133_v26, %v3132_v48  ;;  %v3141_v37 = vadd.f32 %v3140_v31, %v3139_v8 }
 0x2c5   :  { %5864 = vpow2.f32 %v2725_v51  ;;  %v10437_v50 = vmax.f32 %v10436_v25, 0.0  ;;  %v3836_v63 = vrot.slane %v5861_v42, 4  ;;  %v10439_v33 = vmax.f32 %v10438_v22, 0.0 }
 0x2c6   :  { %v2169_v20 = vrot.slane %v2168_v18, 1  ;;  %v3811_v14 = vadd.f32 %v3810_v13, %v3809_v7  ;;  %v3776_v54 = vrot.slane %v7593_v56, 4  ;;  %v3147_v29 = vrot.slane %v3146_v59, 2 }
 0x2c7   :  { %v2878_v1 = vmul.f32 %v5857_v11, %v10437_v50  ;;  %v2890_v60 = vmul.f32 %v5861_v42, %v10439_v33  ;;  %v3833_v52 = vadd.f32 %v3832_v39, %v3831_v9  ;;  %v7600_v21 = vpop.eup %5862  ;;  %v3817_v40 = vadd.f32 %v3816_v6, %v3815_v32 }
 0x2c8   :  { %v3766_v58 = vrot.slane %v3765_v27, 2  ;;  %v2170_v43 = vmax.f32 %v2168_v18, %v2169_v20  ;;  %v3161_v48 = vrot.slane %v3160_v17, 2  ;;  %v7602_v8 = vadd.f32 %v3762_v15, %v3761_v49 }
 0x2c9   :  { %v3135_v61 = vrot.slane %v3134_v35, 1  ;;  %v3142_v11 = vrot.slane %v3141_v37, 1  ;;  %v3823_v0 = vadd.f32 %v3822_v19, %v3821_v23  ;;  %v3081_v26 = vsel %vm2961_vm1, %v2878_v1, 0.0  ;;  %v10440_v23 = vld [vmem:[#allocation70_spill] sm:$0xff] }
 0x2ca   :  { %v2595_v31 = vsub.f32 %v7581_v30, %v2170_v43  ;;  %1707 = vadd.xlane.f32.xlu1 %v7324_v55  ;;  %v3165_v7 = vsel %vm2961_vm1, %v2890_v60, 0.0  ;;  %v3837_v9 = vadd.f32 %v5861_v42, %v3836_v63  ;;  %v3777_v32 = vadd.f32 %v7593_v56, %v3776_v54 }
 0x2cb   :  { %v5865_v12 = vpop.eup %5864  ;;  %v3148_v13 = vadd.f32 %v3147_v29, %v3146_v59  ;;  %v3834_v51 = vrot.slane %v3833_v52, 1  ;;  %5866 = vrcp.f32 %v3811_v14  ;;  %v3767_v49 = vadd.f32 %v3766_v58, %v3765_v27 }
 0x2cc   :  { %v2729_v15 = vmul.f32 1.442695, %v2595_v31  ;;  %v3162_v39 = vadd.f32 %v3161_v48, %v3160_v17  ;;  %5868 = vrcp.f32 %v3817_v40  ;;  %v10441_v6 = vmax.f32 %v10440_v23, 0.0  ;;  %v10442_v48 = vld [vmem:[#allocation64_spill] sm:$0xff] }
 0x2cd   :  { %v3166_v30 = vrot.slane %v3165_v7, 4  ;;  %5870 = vrcp.f32 %v3823_v0  ;;  %v3077_v55 = vrot.slane %v7590_v34, 2  ;;  %v3082_v42 = vrot.slane %v3081_v26, 4 }
 0x2ce   :  { %v2893_v18 = vmul.f32 %v5865_v12, %v10441_v6  ;;  %5872 = vpow2.f32 %v2729_v15  ;;  %v3838_v59 = vrot.slane %v3837_v9, 2  ;;  %v3778_v50 = vrot.slane %v3777_v32, 2  ;;  %v10444_v15 = vld [vmem:[#allocation51_spill] sm:$0xff] }
 0x2cf   :  { %v3854_v1 = vrot.slane %v5865_v12, 4  ;;  %v3149_v27 = vrot.slane %v3148_v13, 1  ;;  %v3835_v63 = vadd.f32 %v3834_v51, %v3833_v52  ;;  %v3768_v17 = vrot.slane %v3767_v49, 1 }
 0x2d0   :  { %v3136_v22 = vadd.f32 %v3135_v61, %v3134_v35  ;;  %v3143_v33 = vadd.f32 %v3142_v11, %v3141_v37  ;;  %v3186_v14 = vsel %vm2961_vm1, %v2893_v18, 0.0  ;;  %v3163_v54 = vrot.slane %v3162_v39, 1 }
 0x2d1   :  { %v7611_v19 = vpop.xlane.xlu0 %1743  ;;  %v5867_v60 = vpop.eup %5866  ;;  %v3167_v29 = vadd.f32 %v3166_v30, %v3165_v7  ;;  %v3078_v40 = vadd.f32 %v3077_v55, %v7590_v34  ;;  %v3083_v43 = vadd.f32 %v3082_v42, %v3081_v26  ;;  %v10443_v0 = vmax.f32 %v10442_v48, 0.0  ;;  %v10446_v30 = vld [vmem:[#allocation71_spill] sm:$0xff] }
 0x2d2   :  { %v2123_v25 = vrot.slane %v7611_v19, 4  ;;  %v5869_v58 = vpop.eup %5868  ;;  %1680 = vadd.xlane.f32.xlu1 %v7304_v41  ;;  %v7626_v37 = vadd.f32 %v3778_v50, %v3777_v32  ;;  %v3855_v61 = vadd.f32 %v5865_v12, %v3854_v1  ;;  %v3150_v11 = vadd.f32 %v3149_v27, %v3148_v13 }
 0x2d3   :  { %v7623_v52 = vmul.f32 %v7593_v56, %v10443_v0  ;;  %v5871_v35 = vpop.eup %5870  ;;  %5874 = vrcp.f32 %v3835_v63  ;;  %v7628_v51 = vadd.f32 %v3768_v17, %v3767_v49  ;;  %v3187_v34 = vrot.slane %v3186_v14, 4 }
 0x2d4   :  { %v2124_v20 = vmax.f32 %v7611_v19, %v2123_v25  ;;  %4576 = vrot.lane.b32.xlu0 %v7528_v38, %s6312_s7  ;;  %v3839_v38 = vadd.f32 %v3838_v59, %v3837_v9  ;;  %v5873_v7 = vpop.eup %5872  ;;  %v10445_v23 = vmax.f32 %v10444_v15, 0.0  ;;  %v3164_v41 = vadd.f32 %v3163_v54, %v3162_v39 }
 0x2d5   :  { %v3168_v9 = vrot.slane %v3167_v29, 2  ;;  %v4387_v18 = vmul.f32 %v5869_v58, %v3143_v33  ;;  %v3079_v32 = vrot.slane %v3078_v40, 1  ;;  %v10447_v12 = vmax.f32 %v10446_v30, 0.0 }
 0x2d6   :  { %v2125_v31 = vrot.slane %v2124_v20, 2  ;;  %v7633_v56 = vmul.f32 %v7600_v21, %v10445_v23  ;;  %v3840_v42 = vrot.slane %v3839_v38, 1  ;;  %v3856_v25 = vrot.slane %v3855_v61, 2 }
 0x2d7   :  { %v2895_v13 = vmul.f32 %v5873_v7, %v10447_v12  ;;  %v3866_v59 = vrot.slane %v5873_v7, 4  ;;  %v4386_v50 = vmul.f32 %v5867_v60, %v3136_v22  ;;  %v4388_v1 = vmul.f32 %v5871_v35, %v3150_v11 }
 0x2d8   :  { %v2126_v26 = vmax.f32 %v2124_v20, %v2125_v31  ;;  %v3188_v27 = vadd.f32 %v3187_v34, %v3186_v14  ;;  %v3109_v39 = vsel %vm2961_vm1, %v7542_v57, 0.0  ;;  %v3169_v33 = vadd.f32 %v3168_v9, %v3167_v29 }
 0x2d9   :  { %v7635_v6 = vpop.xlane.xlu0 %1716  ;;  %v5875_v20 = vpop.eup %5874  ;;  %v4542_v54 = vsel %vm4514_vm2, %v4387_v18, %v4386_v50  ;;  %v7644_v58 = vadd.f32 %v3079_v32, %v3078_v40  ;;  %v3084_v48 = vrot.slane %v3083_v43, 2  ;;  %v3841_v60 = vadd.f32 %v3840_v42, %v3839_v38 }
 0x2da   :  { %v2127_v55 = vrot.slane %v2126_v26, 1  ;;  %v2069_v49 = vrot.slane %v7635_v6, 4  ;;  %v7647_v31 = vpop.xlane.xlu2 %1776  ;;  %v3200_v14 = vsel %vm2961_vm1, %v2895_v13, 0.0  ;;  %v3857_v35 = vadd.f32 %v3856_v25, %v3855_v61 }
 0x2db   :  { %v3867_v11 = vadd.f32 %v5873_v7, %v3866_v59  ;;  %v2189_v34 = vrot.slane %v7647_v31, 4  ;;  %v3110_v57 = vrot.slane %v3109_v39, 4  ;;  %v7651_v15 = vmul.f32 %v5875_v20, %v3164_v41 }
 0x2dc   :  { %v2128_v63 = vmax.f32 %v2126_v26, %v2127_v55  ;;  %v2070_v17 = vmax.f32 %v7635_v6, %v2069_v49  ;;  %v3189_v40 = vrot.slane %v3188_v27, 2  ;;  %v3201_v18 = vrot.slane %v3200_v14, 4 }
 0x2dd   :  { %v2190_v23 = vmax.f32 %v7647_v31, %v2189_v34  ;;  %v7656_v32 = vadd.f32 %v3084_v48, %v3083_v43  ;;  %v3116_v7 = vsel %vm2961_vm1, %v7547_v47, 0.0  ;;  %v3858_v30 = vrot.slane %v3857_v35, 1 }
 0x2de   :  { %v2588_v0 = vsub.f32 %v7611_v19, %v2128_v63  ;;  %v2071_v22 = vrot.slane %v2070_v17, 2  ;;  %v3170_v19 = vrot.slane %v3169_v33, 1  ;;  %v3868_v12 = vrot.slane %v3867_v11, 2 }
 0x2df   :  { %v2191_v41 = vrot.slane %v2190_v23, 2  ;;  %v3111_v13 = vadd.f32 %v3110_v57, %v3109_v39  ;;  %v7663_v42 = vsel %vm4516_vm3, %v4388_v1, %v4542_v54  ;;  %v3190_v25 = vadd.f32 %v3189_v40, %v3188_v27 }
 0x2e0   :  { %v2715_v26 = vmul.f32 1.442695, %v2588_v0  ;;  %v2072_v29 = vmax.f32 %v2070_v17, %v2071_v22  ;;  %v3202_v59 = vadd.f32 %v3201_v18, %v3200_v14  ;;  %v3117_v50 = vrot.slane %v3116_v7, 4  ;;  %v10448_v14 = vld [vmem:[#allocation60_spill] sm:$0xff] }
 0x2e1   :  { %v7654_v9 = vpop.xlane.xlu0 %1755  ;;  %v2192_v43 = vmax.f32 %v2190_v23, %v2191_v41  ;;  %v3171_v20 = vadd.f32 %v3170_v19, %v3169_v33  ;;  %v3859_v48 = vadd.f32 %v3858_v30, %v3857_v35  ;;  %v3869_v0 = vadd.f32 %v3868_v12, %v3867_v11 }
 0x2e2   :  { %5876 = vpow2.f32 %v2715_v26  ;;  %v2073_v38 = vrot.slane %v2072_v29, 1  ;;  %v2147_v61 = vrot.slane %v7654_v9, 4  ;;  %v3112_v34 = vrot.slane %v3111_v13, 2 }
 0x2e3   :  { %5878 = vrcp.f32 %v3841_v60  ;;  %v2193_v39 = vrot.slane %v2192_v43, 1  ;;  %v7667_v22 = vpop.xlane.xlu1 %1722  ;;  %v3191_v60 = vrot.slane %v3190_v25, 1  ;;  %v10449_v26 = vmax.f32 %v10448_v14, 0.0 }
 0x2e4   :  { %v2074_v55 = vmax.f32 %v2072_v29, %v2073_v38  ;;  %v2148_v49 = vmax.f32 %v7654_v9, %v2147_v61  ;;  %v2081_v27 = vrot.slane %v7667_v22, 4  ;;  %v3203_v33 = vrot.slane %v3202_v59, 2 }
 0x2e5   :  { %v3118_v23 = vadd.f32 %v3117_v50, %v3116_v7  ;;  %v2194_v35 = vmax.f32 %v2192_v43, %v2193_v39  ;;  %v3870_v61 = vrot.slane %v3869_v0, 1 }
 0x2e6   :  { %v2579_v63 = vsub.f32 %v7635_v6, %v2074_v55  ;;  %v2149_v17 = vrot.slane %v2148_v49, 2  ;;  %v2082_v19 = vmax.f32 %v7667_v22, %v2081_v27  ;;  %v3204_v14 = vadd.f32 %v3203_v33, %v3202_v59 }
 0x2e7   :  { %v3119_v7 = vrot.slane %v3118_v23, 2  ;;  %v2599_v43 = vsub.f32 %v7647_v31, %v2194_v35  ;;  %v3192_v35 = vadd.f32 %v3191_v60, %v3190_v25 }
 0x2e8   :  { %v5877_v57 = vpop.eup %5876  ;;  %v2697_v1 = vmul.f32 1.442695, %v2579_v63  ;;  %v2150_v54 = vmax.f32 %v2148_v49, %v2149_v17  ;;  %v2083_v55 = vrot.slane %v2082_v19, 2 }
 0x2e9   :  { %v2888_v29 = vmul.f32 %v5877_v57, %v10449_v26  ;;  %v3824_v6 = vrot.slane %v5877_v57, 4  ;;  %v7672_v40 = vpop.xlane.xlu0 %1761  ;;  %v5879_v38 = vpop.eup %5878 }
 0x2ea   :  { %v2151_v11 = vrot.slane %v2150_v54, 1  ;;  %v2159_v18 = vrot.slane %v7672_v40, 4  ;;  %5880 = vpow2.f32 %v2697_v1 }
 0x2eb   :  { %v3825_v30 = vadd.f32 %v5877_v57, %v3824_v6  ;;  %v3151_v12 = vsel %vm2961_vm1, %v2888_v29, 0.0  ;;  %5882 = vrcp.f32 %v3859_v48  ;;  %v2084_v57 = vmax.f32 %v2082_v19, %v2083_v55  ;;  %v7680_v1 = vpop.xlane.xlu1 %1752 }
 0x2ec   :  { %v2152_v41 = vmax.f32 %v2150_v54, %v2151_v11  ;;  %v2160_v49 = vmax.f32 %v7672_v40, %v2159_v18  ;;  %v3152_v63 = vrot.slane %v3151_v12, 4  ;;  %v7682_v29 = vmul.f32 %v5879_v38, %v3171_v20 }
 0x2ed   :  { %v3826_v17 = vrot.slane %v3825_v30, 2  ;;  %v7684_v54 = vadd.f32 %v3112_v34, %v3111_v13  ;;  %v2141_v59 = vrot.slane %v7680_v1, 4  ;;  %v3871_v48 = vadd.f32 %v3870_v61, %v3869_v0  ;;  %v7734_v0 = vpop.f32.mrf.mxu2 }
 0x2ee   :  { %v2592_v50 = vsub.f32 %v7654_v9, %v2152_v41  ;;  %v2161_v39 = vrot.slane %v2160_v49, 2  ;;  %v3153_v27 = vadd.f32 %v3152_v63, %v3151_v12  ;;  %v3205_v18 = vrot.slane %v3204_v14, 1  ;;  %10452 = vst [vmem:[#allocation26_spill] sm:$0xff] %v7734_v0 }
 0x2ef   :  { %v3827_v26 = vadd.f32 %v3826_v17, %v3825_v30  ;;  %v7691_v30 = vadd.f32 %v3119_v7, %v3118_v23  ;;  %v2737_v19 = vmul.f32 1.442695, %v2599_v43  ;;  %v2142_v13 = vmax.f32 %v7680_v1, %v2141_v59 }
 0x2f0   :  { %v2723_v6 = vmul.f32 1.442695, %v2592_v50  ;;  %v2162_v11 = vmax.f32 %v2160_v49, %v2161_v39  ;;  %v7687_v33 = vpop.eup %5880  ;;  %v3154_v9 = vrot.slane %v3153_v27, 2  ;;  %v2085_v38 = vrot.slane %v2084_v57, 1 }
 0x2f1   :  { %v7689_v31 = vpop.xlane.xlu0 %1770  ;;  %v5883_v34 = vpop.eup %5882  ;;  %v3828_v41 = vrot.slane %v3827_v26, 1  ;;  %v3770_v61 = vrot.slane %v7687_v33, 4  ;;  %v2143_v49 = vrot.slane %v2142_v13, 2  ;;  %v3206_v23 = vadd.f32 %v3205_v18, %v3204_v14 }
 0x2f2   :  { %5884 = vpow2.f32 %v2723_v6  ;;  %v2163_v20 = vrot.slane %v2162_v11, 1  ;;  %v2177_v12 = vrot.slane %v7689_v31, 4  ;;  %v3155_v60 = vadd.f32 %v3154_v9, %v3153_v27 }
 0x2f3   :  { %5886 = vrcp.f32 %v3871_v48  ;;  %v2144_v7 = vmax.f32 %v2142_v13, %v2143_v49  ;;  %v7700_v43 = vmul.f32 %v5883_v34, %v3192_v35  ;;  %v7702_v50 = vmax.f32 %v2084_v57, %v2085_v38  ;;  %v7704_v6 = vpop.xlane.xlu1 %1767  ;;  %v10450_v57 = vld [vmem:[#allocation66_spill] sm:$0xff] }
 0x2f4   :  { %v2164_v55 = vmax.f32 %v2162_v11, %v2163_v20  ;;  %v2178_v25 = vmax.f32 %v7689_v31, %v2177_v12  ;;  %5888 = vpow2.f32 %v2737_v19  ;;  %v3829_v11 = vadd.f32 %v3828_v41, %v3827_v26 }
 0x2f5   :  { %v7708_v59 = vsel %vm2961_vm1, %v7623_v52, 0.0  ;;  %v7711_v14 = vadd.f32 %v7687_v33, %v3770_v61  ;;  %v2145_v9 = vrot.slane %v2144_v7, 1  ;;  %v10451_v19 = vmax.f32 %v10450_v57, 0.0 }
 0x2f6   :  { %v2594_v17 = vsub.f32 %v7672_v40, %v2164_v55  ;;  %v2179_v39 = vrot.slane %v2178_v25, 2  ;;  %v2171_v40 = vrot.slane %v7704_v6, 4  ;;  %v3156_v13 = vrot.slane %v3155_v60, 1 }
 0x2f7   :  { %v2146_v52 = vmax.f32 %v2144_v7, %v2145_v9  ;;  %v2581_v7 = vsub.f32 %v7667_v22, %v7702_v50 }
 0x2f8   :  { %v5885_v27 = vpop.eup %5884  ;;  %v2727_v48 = vmul.f32 1.442695, %v2594_v17  ;;  %v2180_v35 = vmax.f32 %v2178_v25, %v2179_v39  ;;  %v2172_v38 = vmax.f32 %v7704_v6, %v2171_v40 }
 0x2f9   :  { %v7714_v18 = vpop.xlane.xlu0 %1773  ;;  %v2892_v20 = vmul.f32 %v5885_v27, %v10451_v19  ;;  %v3848_v26 = vrot.slane %v5885_v27, 4  ;;  %v5887_v34 = vpop.eup %5886  ;;  %v2591_v25 = vsub.f32 %v7680_v1, %v2146_v52 }
 0x2fa   :  { %5890 = vpow2.f32 %v2727_v48  ;;  %v2183_v12 = vrot.slane %v7714_v18, 4  ;;  %v2181_v41 = vrot.slane %v2180_v35, 1  ;;  %v7721_v49 = vpop.eup %5888  ;;  %v2173_v17 = vrot.slane %v2172_v38, 2 }
 0x2fb   :  { %v3179_v61 = vsel %vm2961_vm1, %v2892_v20, 0.0  ;;  %v3849_v55 = vadd.f32 %v5885_v27, %v3848_v26  ;;  %5892 = vrcp.f32 %v3829_v11  ;;  %v7728_v40 = vmul.f32 %v5887_v34, %v3206_v23  ;;  %v7732_v52 = vpop.xlane.xlu1 %1779  ;;  %v10453_v34 = vld [vmem:[#allocation69_spill] sm:$0xff] }
 0x2fc   :  { %v2184_v39 = vmax.f32 %v7714_v18, %v2183_v12  ;;  %v3180_v57 = vrot.slane %v3179_v61, 4  ;;  %v2182_v9 = vmax.f32 %v2180_v35, %v2181_v41  ;;  %v2721_v19 = vmul.f32 1.442695, %v2591_v25 }
 0x2fd   :  { %v2174_v20 = vmax.f32 %v2172_v38, %v2173_v17  ;;  %v3157_v12 = vadd.f32 %v3156_v13, %v3155_v60  ;;  %v3850_v62 = vrot.slane %v3849_v55, 2  ;;  %v2195_v50 = vrot.slane %v7732_v52, 4 }
 0x2fe   :  { %v2185_v27 = vrot.slane %v2184_v39, 2  ;;  %v3181_v11 = vadd.f32 %v3180_v57, %v3179_v61  ;;  %v2597_v1 = vsub.f32 %v7689_v31, %v2182_v9  ;;  %5894 = vpow2.f32 %v2721_v19  ;;  %v10455_v31 = vld [vmem:[#allocation76_spill] sm:$0xff] }
 0x2ff   :  { %v2175_v22 = vrot.slane %v2174_v20, 1  ;;  %v10454_v38 = vmax.f32 %v10453_v34, 0.0  ;;  %v10456_v17 = vmax.f32 %v10455_v31, 0.0  ;;  %v2196_v9 = vmax.f32 %v7732_v52, %v2195_v50 }
 0x300   :  { %v5891_v63 = vpop.eup %5890  ;;  %v2186_v23 = vmax.f32 %v2184_v39, %v2185_v27  ;;  %v2733_v25 = vmul.f32 1.442695, %v2597_v1  ;;  %v3182_v47 = vrot.slane %v3181_v11, 2  ;;  %v3851_v27 = vadd.f32 %v3850_v62, %v3849_v55 }
 0x301   :  { %v5893_v35 = vpop.eup %5892  ;;  %v2894_v41 = vmul.f32 %v5891_v63, %v10454_v38  ;;  %v3860_v61 = vrot.slane %v5891_v63, 4  ;;  %v2899_v60 = vmul.f32 %v7721_v49, %v10456_v17  ;;  %v2176_v13 = vmax.f32 %v2174_v20, %v2175_v22 }
 0x302   :  { %v2187_v57 = vrot.slane %v2186_v23, 1  ;;  %5896 = vpow2.f32 %v2733_v25  ;;  %v2197_v38 = vrot.slane %v2196_v9, 2  ;;  %v4389_v26 = vmul.f32 %v5893_v35, %v3157_v12 }
 0x303   :  { %v3193_v19 = vsel %vm2961_vm1, %v2894_v41, 0.0  ;;  %v3861_v39 = vadd.f32 %v5891_v63, %v3860_v61  ;;  %v2596_v48 = vsub.f32 %v7704_v6, %v2176_v13  ;;  %v2701_v1 = vmul.f32 1.442695, %v2581_v7  ;;  %v10457_v61 = vld [vmem:[#allocation68_spill] sm:$0xff]  ;;  %v7752_v13 = vpop.f32.mrf.mxu2 }
 0x304   :  { %v2188_v34 = vmax.f32 %v2186_v23, %v2187_v57  ;;  %v3194_v31 = vrot.slane %v3193_v19, 4  ;;  %v3183_v17 = vadd.f32 %v3182_v47, %v3181_v11  ;;  %v5895_v20 = vpop.eup %5894  ;;  %v2198_v24 = vmax.f32 %v2196_v9, %v2197_v38  ;;  %10459 = vst [vmem:[#allocation52_spill] sm:$0xff] %v7752_v13 }
 0x305   :  { %v3862_v0 = vrot.slane %v3861_v39, 2  ;;  %v2731_v22 = vmul.f32 1.442695, %v2596_v48  ;;  %v3228_v41 = vsel %vm2961_vm1, %v2899_v60, 0.0  ;;  %v10458_v62 = vmax.f32 %v10457_v61, 0.0 }
 0x306   :  { %v2598_v50 = vsub.f32 %v7714_v18, %v2188_v34  ;;  %v3842_v6 = vrot.slane %v5895_v20, 4  ;;  %v3852_v23 = vrot.slane %v3851_v27, 1  ;;  %v2199_v35 = vrot.slane %v2198_v24, 1 }
 0x307   :  { %v3863_v63 = vadd.f32 %v3862_v0, %v3861_v39  ;;  %v2891_v55 = vmul.f32 %v5895_v20, %v10458_v62  ;;  %5898 = vpow2.f32 %v2731_v22  ;;  %v4544_v7 = vsel %vm4518_vm4, %v4389_v26, %v7663_v42  ;;  %v10460_v26 = vld [vmem:[#allocation73_spill] sm:$0xff] }
 0x308   :  { %v2735_v12 = vmul.f32 1.442695, %v2598_v50  ;;  %v5897_v47 = vpop.eup %5896  ;;  %v3195_v11 = vadd.f32 %v3194_v31, %v3193_v19  ;;  %v3184_v18 = vrot.slane %v3183_v17, 1  ;;  %v3843_v25 = vadd.f32 %v5895_v20, %v3842_v6  ;;  %v10462_v6 = vld [vmem:[#allocation72_spill] sm:$0xff] }
 0x309   :  { %v3172_v48 = vsel %vm2961_vm1, %v2891_v55, 0.0  ;;  %v3864_v0 = vrot.slane %v3863_v63, 1  ;;  %v2200_v60 = vmax.f32 %v2198_v24, %v2199_v35  ;;  %v3853_v39 = vadd.f32 %v3852_v23, %v3851_v27 }
 0x30a   :  { %5900 = vpow2.f32 %v2735_v12  ;;  %v3173_v57 = vrot.slane %v3172_v48, 4  ;;  %v3844_v9 = vrot.slane %v3843_v25, 2  ;;  %v3229_v34 = vrot.slane %v3228_v41, 4 }
 0x30b   :  { %5902 = vpow2.f32 %v2701_v1  ;;  %v3878_v38 = vrot.slane %v5897_v47, 4  ;;  %v2600_v22 = vsub.f32 %v7732_v52, %v2200_v60  ;;  %v10461_v19 = vmax.f32 %v10460_v26, 0.0 }
 0x30c   :  { %v3174_v42 = vadd.f32 %v3173_v57, %v3172_v48  ;;  %v3185_v50 = vadd.f32 %v3184_v18, %v3183_v17  ;;  %v3845_v61 = vadd.f32 %v3844_v9, %v3843_v25  ;;  %v4545_v20 = vsel %vm4520_vm5, %v7651_v15, %v4544_v7  ;;  %v10464_v7 = vld [vmem:[#allocation75_spill] sm:$0xff] }
 0x30d   :  { %v2897_v31 = vmul.f32 %v5897_v47, %v10461_v19  ;;  %v5899_v62 = vpop.eup %5898  ;;  %v7759_v24 = vadd.f32 %v3864_v0, %v3863_v63  ;;  %v2739_v1 = vmul.f32 1.442695, %v2600_v22  ;;  %v3196_v27 = vrot.slane %v3195_v11, 2 }
 0x30e   :  { %v3175_v55 = vrot.slane %v3174_v42, 2  ;;  %v10463_v23 = vmax.f32 %v10462_v6, 0.0  ;;  %v3872_v52 = vrot.slane %v5899_v62, 4  ;;  %v3846_v35 = vrot.slane %v3845_v61, 1 }
 0x30f   :  { %5904 = vrcp.f32 %v3853_v39  ;;  %v3879_v60 = vadd.f32 %v5897_v47, %v3878_v38  ;;  %v3214_v18 = vsel %vm2961_vm1, %v2897_v31, 0.0  ;;  %v10465_v0 = vmax.f32 %v10464_v7, 0.0 }
 0x310   :  { %v2896_v12 = vmul.f32 %v5899_v62, %v10463_v23  ;;  %v5901_v48 = vpop.eup %5900  ;;  %5906 = vpow2.f32 %v2739_v1  ;;  %v3176_v17 = vadd.f32 %v3175_v55, %v3174_v42  ;;  %v3873_v15 = vadd.f32 %v5899_v62, %v3872_v52 }
 0x311   :  { %v7764_v25 = vpop.eup %5902  ;;  %v3847_v63 = vadd.f32 %v3846_v35, %v3845_v61  ;;  %v2898_v57 = vmul.f32 %v5901_v48, %v10465_v0  ;;  %v3230_v9 = vadd.f32 %v3229_v34, %v3228_v41  ;;  %v4546_v22 = vsel %vm4522_vm6, %v7682_v29, %v4545_v20  ;;  %v7776_v61 = vpop.f32.mrf.mxu2 }
 0x312   :  { %v3197_v26 = vadd.f32 %v3196_v27, %v3195_v11  ;;  %v3207_v39 = vsel %vm2961_vm1, %v2896_v12, 0.0  ;;  %v10466_v47 = vrot.slane %v7721_v49, 4  ;;  %v3874_v42 = vrot.slane %v3873_v15, 2  ;;  %10467 = vst [vmem:[#allocation47_spill] sm:$0xff] %v7776_v61 }
 0x313   :  { %5908 = vrcp.f32 %v3847_v63  ;;  %v3208_v19 = vrot.slane %v3207_v39, 4  ;;  %v3215_v31 = vrot.slane %v3214_v18, 4  ;;  %v7778_v62 = vpop.xlane.xlu2 %1782  ;;  %v3177_v41 = vrot.slane %v3176_v17, 1  ;;  %v10468_v63 = vld [vmem:[#allocation74_spill] sm:$0xff] }
 0x314   :  { %v7774_v38 = vadd.f32 %v7721_v49, %v10466_v47  ;;  %v3221_v29 = vsel %vm2961_vm1, %v2898_v57, 0.0  ;;  %v3880_v11 = vrot.slane %v3879_v60, 2  ;;  %v2201_v20 = vrot.slane %v7778_v62, 4 }
 0x315   :  { %v5905_v34 = vpop.eup %5904  ;;  %v3209_v1 = vadd.f32 %v3208_v19, %v3207_v39  ;;  %v3216_v55 = vadd.f32 %v3215_v31, %v3214_v18  ;;  %v3231_v49 = vrot.slane %v3230_v9, 2  ;;  %v3875_v6 = vadd.f32 %v3874_v42, %v3873_v15 }
 0x316   :  { %v5907_v27 = vpop.eup %5906  ;;  %v3884_v23 = vrot.slane %v5901_v48, 4  ;;  %v3198_v12 = vrot.slane %v3197_v26, 1  ;;  %v3222_v52 = vrot.slane %v3221_v29, 4  ;;  %v2202_v35 = vmax.f32 %v7778_v62, %v2201_v20 }
 0x317   :  { %v10469_v7 = vmax.f32 %v10468_v63, 0.0  ;;  %v3210_v47 = vrot.slane %v3209_v1, 2  ;;  %v3217_v61 = vrot.slane %v3216_v55, 2  ;;  %v3178_v57 = vadd.f32 %v3177_v41, %v3176_v17 }
 0x318   :  { %v4393_v13 = vmul.f32 %v5905_v34, %v3185_v50  ;;  %v3223_v10 = vadd.f32 %v3222_v52, %v3221_v29  ;;  %v2203_v39 = vrot.slane %v2202_v35, 2  ;;  %v7785_v19 = vadd.f32 %v3231_v49, %v3230_v9 }
 0x319   :  { %v2900_v0 = vmul.f32 %v5907_v27, %v10469_v7  ;;  %v5909_v45 = vpop.eup %5908  ;;  %v3211_v18 = vadd.f32 %v3210_v47, %v3209_v1  ;;  %v7788_v31 = vadd.f32 %v3217_v61, %v3216_v55  ;;  %v3881_v16 = vadd.f32 %v3880_v11, %v3879_v60  ;;  %v7801_v55 = vpop.f32.mrf.mxu2 }
 0x31a   :  { %v4392_v42 = vmul.f32 %v5909_v45, %v3178_v57  ;;  %v3224_v20 = vrot.slane %v3223_v10, 2  ;;  %v2204_v63 = vmax.f32 %v2202_v35, %v2203_v39  ;;  %v7792_v2 = vadd.f32 %v3198_v12, %v3197_v26  ;;  %10470 = vst [vmem:[#allocation50_spill] sm:$0xff] %v7801_v55 }
 0x31b   :  { %v3235_v15 = vsel %vm2961_vm1, %v2900_v0, 0.0  ;;  %v7790_v7 = vpop.xlane.xlu0 %1785  ;;  %v3876_v50 = vrot.slane %v3875_v6, 1  ;;  %v3885_v17 = vadd.f32 %v5901_v48, %v3884_v23  ;;  %v7795_v29 = vpop.xlane.xlu2 %1665  ;;  %v3212_v34 = vrot.slane %v3211_v18, 1 }
 0x31c   :  { %v4547_v41 = vsel %vm4524_vm7, %v4392_v42, %v4546_v22  ;;  %v2207_v9 = vrot.slane %v7790_v7, 4  ;;  %v3236_v1 = vrot.slane %v3235_v15, 4  ;;  %v2205_v45 = vrot.slane %v2204_v63, 1 }
 0x31d   :  { %v4548_v61 = vsel %vm4526_vm8, %v4393_v13, %v4547_v41  ;;  %v1967_v60 = vrot.slane %v7795_v29, 4  ;;  %v3233_v11 = vrot.slane %v7785_v19, 1  ;;  %v3219_v22 = vrot.slane %v7788_v31, 1 }
 0x31e   :  { %4570 = vrot.lane.b32.xlu0 %v4548_v61, %s6312_s7  ;;  %v2208_v48 = vmax.f32 %v7790_v7, %v2207_v9  ;;  %v7806_v26 = vadd.f32 %v3224_v20, %v3223_v10  ;;  %v3882_v49 = vrot.slane %v3881_v16, 1  ;;  %v2206_v23 = vmax.f32 %v2204_v63, %v2205_v45 }
 0x31f   :  { %v1968_v12 = vmax.f32 %v7795_v29, %v1967_v60  ;;  %v3877_v52 = vadd.f32 %v3876_v50, %v3875_v6  ;;  %v3886_v13 = vrot.slane %v3885_v17, 2  ;;  %v7809_v0 = vadd.f32 %v3212_v34, %v3211_v18 }
 0x320   :  { %v2209_v35 = vrot.slane %v2208_v48, 2  ;;  %v3237_v47 = vadd.f32 %v3236_v1, %v3235_v15  ;;  %v3892_v57 = vrot.slane %v7774_v38, 2  ;;  %v2601_v39 = vsub.f32 %v7778_v62, %v2206_v23 }
 0x321   :  { %v1969_v42 = vrot.slane %v1968_v12, 2  ;;  %v3887_v41 = vadd.f32 %v3886_v13, %v3885_v17  ;;  %v3896_v9 = vrot.slane %v5907_v27, 4  ;;  %v3226_v10 = vrot.slane %v7806_v26, 1 }
 0x322   :  { %v2210_v61 = vmax.f32 %v2208_v48, %v2209_v35  ;;  %v3893_v20 = vadd.f32 %v3892_v57, %v7774_v38  ;;  %5910 = vrcp.f32 %v7759_v24  ;;  %v2741_v6 = vmul.f32 1.442695, %v2601_v39 }
 0x323   :  { %v1970_v63 = vmax.f32 %v1968_v12, %v1969_v42  ;;  %v7816_v50 = vpop.xlane.xlu0 %1701  ;;  %v3888_v18 = vrot.slane %v3887_v41, 1  ;;  %v3897_v15 = vadd.f32 %v5907_v27, %v3896_v9  ;;  %v7818_v1 = vpop.xlane.xlu2 %1704  ;;  %v3883_v17 = vadd.f32 %v3882_v49, %v3881_v16 }
 0x324   :  { %v2211_v34 = vrot.slane %v2210_v61, 1  ;;  %v2039_v62 = vrot.slane %v7816_v50, 4  ;;  %v3894_v45 = vrot.slane %v3893_v20, 1  ;;  %5912 = vpow2.f32 %v2741_v6  ;;  %v7824_v42 = vpop.f32.mrf.mxu2 }
 0x325   :  { %v1971_v60 = vrot.slane %v1970_v63, 1  ;;  %v2045_v48 = vrot.slane %v7818_v1, 4  ;;  %v3889_v38 = vadd.f32 %v3888_v18, %v3887_v41  ;;  %v3238_v12 = vrot.slane %v3237_v47, 2 }
 0x326   :  { %v2212_v23 = vmax.f32 %v2210_v61, %v2211_v34  ;;  %v2040_v24 = vmax.f32 %v7816_v50, %v2039_v62  ;;  %v3898_v13 = vrot.slane %v3897_v15, 2  ;;  %v3895_v57 = vadd.f32 %v3894_v45, %v3893_v20 }
 0x327   :  { %v1972_v35 = vmax.f32 %v1970_v63, %v1971_v60  ;;  %v2046_v27 = vmax.f32 %v7818_v1, %v2045_v48  ;;  %5914 = vrcp.f32 %v3877_v52  ;;  %v3220_v34 = vadd.f32 %v3219_v22, %v7788_v31 }
 0x328   :  { %v5911_v39 = vpop.eup %5910  ;;  %v2602_v16 = vsub.f32 %v7790_v7, %v2212_v23  ;;  %v2041_v49 = vrot.slane %v2040_v24, 2  ;;  %v3899_v9 = vadd.f32 %v3898_v13, %v3897_v15  ;;  %5916 = vrcp.f32 %v3883_v17  ;;  %v10471_v15 = vld [vmem:[#allocation77_spill] sm:$0xff] }
 0x329   :  { %v2562_v41 = vsub.f32 %v7795_v29, %v1972_v35  ;;  %v2047_v61 = vrot.slane %v2046_v27, 2  ;;  %5918 = vrcp.f32 %v3889_v38  ;;  %v4395_v6 = vmul.f32 %v5911_v39, %v7792_v2 }
 0x32a   :  { %v2743_v18 = vmul.f32 1.442695, %v2602_v16  ;;  %v2042_v63 = vmax.f32 %v2040_v24, %v2041_v49  ;;  %v3900_v20 = vrot.slane %v3899_v9, 1  ;;  %v5913_v52 = vpop.eup %5912  ;;  %5920 = vrcp.f32 %v3895_v57 }
 0x32b   :  { %v2663_v62 = vmul.f32 1.442695, %v2562_v41  ;;  %v2048_v45 = vmax.f32 %v2046_v27, %v2047_v61  ;;  %v4549_v7 = vsel %vm4514_vm2, %v4395_v6, %v7700_v43  ;;  %v10472_v17 = vmax.f32 %v10471_v15, 0.0 }
 0x32c   :  { %v3902_v29 = vrot.slane %v5913_v52, 4  ;;  %5922 = vpow2.f32 %v2743_v18  ;;  %v2043_v48 = vrot.slane %v2042_v63, 1  ;;  %v3227_v23 = vadd.f32 %v3226_v10, %v7806_v26 }
 0x32d   :  { %v2901_v60 = vmul.f32 %v5913_v52, %v10472_v17  ;;  %v5915_v38 = vpop.eup %5914  ;;  %v2049_v2 = vrot.slane %v2048_v45, 1  ;;  %v3239_v24 = vadd.f32 %v3238_v12, %v3237_v47  ;;  %v3901_v31 = vadd.f32 %v3900_v20, %v3899_v9  ;;  %v7840_v47 = vpop.xlane.xlu2 %1674 }
 0x32e   :  { %v5917_v22 = vpop.eup %5916  ;;  %v3903_v13 = vadd.f32 %v5913_v52, %v3902_v29  ;;  %5924 = vpow2.f32 %v2663_v62  ;;  %v4397_v35 = vmul.f32 %v5915_v38, %v7809_v0  ;;  %v4550_v43 = vsel %vm4516_vm3, %v7728_v40, %v4549_v7  ;;  %v7857_v20 = vpop.f32.mrf.mxu2 }
 0x32f   :  { %v5919_v27 = vpop.eup %5918  ;;  %v3242_v57 = vsel %vm2961_vm1, %v2901_v60, 0.0  ;;  %v2050_v39 = vmax.f32 %v2048_v45, %v2049_v2  ;;  %v2044_v16 = vmax.f32 %v2042_v63, %v2043_v48  ;;  %5926 = vrcp.f32 %v3901_v31  ;;  %v7863_v7 = vpop.xlane.xlu0 %1671 }
 0x330   :  { %v3904_v49 = vrot.slane %v3903_v13, 2  ;;  %v4398_v41 = vmul.f32 %v5917_v22, %v3220_v34  ;;  %v4399_v61 = vmul.f32 %v5919_v27, %v3227_v23  ;;  %v4551_v26 = vsel %vm4518_vm4, %v4397_v35, %v4550_v43  ;;  %v5921_v10 = vpop.eup %5920  ;;  %v10477_v23 = vld [vmem:[#allocation63_spill] sm:$0xff] }
 0x331   :  { %v10473_v0 = vrot.slane %v7711_v14, 2  ;;  %v3240_v40 = vrot.slane %v3239_v24, 1  ;;  %v10474_v9 = vrot.slane %v7656_v32, 1  ;;  %v10475_v18 = vrot.slane %v7684_v54, 1 }
 0x332   :  { %v5923_v34 = vpop.eup %5922  ;;  %v3243_v52 = vrot.slane %v3242_v57, 4  ;;  %v3905_v62 = vadd.f32 %v3904_v49, %v3903_v13  ;;  %v4552_v45 = vsel %vm4520_vm5, %v4398_v41, %v4551_v26  ;;  %v1985_v15 = vrot.slane %v7840_v47, 4  ;;  %v10479_v13 = vld [vmem:[#allocation78_spill] sm:$0xff] }
 0x333   :  { %v7845_v12 = vadd.f32 %v10473_v0, %v7711_v14  ;;  %v7850_v6 = vadd.f32 %v10474_v9, %v7656_v32  ;;  %v7855_v63 = vadd.f32 %v10475_v18, %v7684_v54  ;;  %v3234_v14 = vadd.f32 %v3233_v11, %v7785_v19 }
 0x334   :  { %v4553_v32 = vsel %vm4522_vm6, %v4399_v61, %v4552_v45  ;;  %v10476_v17 = vrot.slane %v7691_v30, 1  ;;  %v5925_v29 = vpop.eup %5924  ;;  %v3782_v48 = vrot.slane %v7764_v25, 4  ;;  %v2575_v19 = vsub.f32 %v7818_v1, %v2050_v39  ;;  %v10481_v39 = vld [vmem:[#allocation37_spill] sm:$0xff] }
 0x335   :  { %v2574_v11 = vsub.f32 %v7816_v50, %v2044_v16  ;;  %v4400_v38 = vmul.f32 %v5921_v10, %v3234_v14  ;;  %v5927_v2 = vpop.eup %5926  ;;  %v10478_v31 = vmax.f32 %v10477_v23, 0.0  ;;  %v10480_v35 = vmax.f32 %v10479_v13, 0.0  ;;  %v7902_v23 = vpop.xlane.xlu2 %1683 }
 0x336   :  { %v7871_v60 = vadd.f32 %v10476_v17, %v7691_v30  ;;  %v3908_v27 = vrot.slane %v5923_v34, 4  ;;  %v3241_v49 = vadd.f32 %v3240_v40, %v3239_v24  ;;  %v7882_v41 = vadd.f32 %v3243_v52, %v3242_v57 }
 0x337   :  { %v2879_v22 = vmul.f32 %v7687_v33, %v10478_v31  ;;  %v2902_v43 = vmul.f32 %v5923_v34, %v10480_v35  ;;  %v3906_v61 = vrot.slane %v3905_v62, 1  ;;  %v4554_v1 = vsel %vm4524_vm7, %v4400_v38, %v4553_v32  ;;  %v7888_v33 = vpop.xlane.xlu1 %1788  ;;  %v7906_v31 = vpop.f32.mrf.mxu2 }
 0x338   :  { %v10482_v50 = vmax.f32 %v10481_v39, 0.0  ;;  %v3668_v26 = vrot.slane %v5925_v29, 4  ;;  %v4401_v10 = vmul.f32 %v5927_v2, %v3241_v49  ;;  %v1986_v0 = vmax.f32 %v7840_v47, %v1985_v15  ;;  %10483 = vst [vmem:[#allocation58_spill] sm:$0xff] %v7906_v31 }
 0x339   :  { %v7891_v9 = vadd.f32 %v7764_v25, %v3782_v48  ;;  %v2689_v24 = vmul.f32 1.442695, %v2575_v19  ;;  %v2687_v40 = vmul.f32 1.442695, %v2574_v11  ;;  %v1979_v57 = vrot.slane %v7863_v7, 4 }
 0x33a   :  { %v2862_v16 = vmul.f32 %v5925_v29, %v10482_v50  ;;  %v3249_v18 = vsel %vm2961_vm1, %v2902_v43, 0.0  ;;  %v3909_v52 = vadd.f32 %v5923_v34, %v3908_v27  ;;  %v4555_v14 = vsel %vm4526_vm8, %v4401_v10, %v4554_v1  ;;  %v7904_v34 = vpop.xlane.xlu0 %1677 }
 0x33b   :  { %v1987_v45 = vrot.slane %v1986_v0, 2  ;;  %v3245_v32 = vrot.slane %v7882_v41, 2  ;;  %4572 = vrot.lane.b32.xlu2 %v4555_v14, %s6312_s7  ;;  %v1980_v15 = vmax.f32 %v7863_v7, %v1979_v57  ;;  %v2213_v17 = vrot.slane %v7888_v33, 4 }
 0x33c   :  { %v3088_v48 = vsel %vm2961_vm1, %v2879_v22, 0.0  ;;  %v3907_v19 = vadd.f32 %v3906_v61, %v3905_v62  ;;  %v2969_v11 = vsel %vm2961_vm1, %v2862_v16, 0.0  ;;  %v3669_v38 = vadd.f32 %v5925_v29, %v3668_v26 }
 0x33d   :  { %v1988_v2 = vmax.f32 %v1986_v0, %v1987_v45  ;;  %v3250_v13 = vrot.slane %v3249_v18, 4  ;;  %5928 = vpow2.f32 %v2687_v40  ;;  %v1981_v35 = vrot.slane %v1980_v15, 2 }
 0x33e   :  { %v2214_v43 = vmax.f32 %v7888_v33, %v2213_v17  ;;  %v3910_v27 = vrot.slane %v3909_v52, 2  ;;  %5930 = vpow2.f32 %v2689_v24  ;;  %v2003_v62 = vrot.slane %v7902_v23, 4 }
 0x33f   :  { %v1989_v49 = vrot.slane %v1988_v2, 1  ;;  %v2970_v22 = vrot.slane %v2969_v11, 4  ;;  %v1982_v61 = vmax.f32 %v1980_v15, %v1981_v35  ;;  %v1991_v1 = vrot.slane %v7904_v34, 4  ;;  %v7912_v26 = vpop.xlane.xlu1 %1668  ;;  %v7926_v31 = vpop.f32.mrf.mxu2 }
 0x340   :  { %v2215_v29 = vrot.slane %v2214_v43, 2  ;;  %5932 = vrcp.f32 %v3907_v19  ;;  %v3670_v39 = vrot.slane %v3669_v38, 2  ;;  %v2004_v16 = vmax.f32 %v7902_v23, %v2003_v62 }
 0x341   :  { %v1990_v50 = vmax.f32 %v1988_v2, %v1989_v49  ;;  %v3251_v10 = vadd.f32 %v3250_v13, %v3249_v18  ;;  %v1983_v0 = vrot.slane %v1982_v61, 1  ;;  %v1992_v24 = vmax.f32 %v7904_v34, %v1991_v1 }
 0x342   :  { %v2216_v40 = vmax.f32 %v2214_v43, %v2215_v29  ;;  %v3911_v57 = vadd.f32 %v3910_v27, %v3909_v52  ;;  %v2005_v45 = vrot.slane %v2004_v16, 2  ;;  %v1973_v15 = vrot.slane %v7912_v26, 4 }
 0x343   :  { %v2565_v14 = vsub.f32 %v7840_v47, %v1990_v50  ;;  %v7917_v17 = vpop.eup %5928  ;;  %v1984_v19 = vmax.f32 %v1982_v61, %v1983_v0  ;;  %v1993_v2 = vrot.slane %v1992_v24, 2  ;;  %v3089_v49 = vrot.slane %v3088_v48, 4 }
 0x344   :  { %v2217_v35 = vrot.slane %v2216_v40, 1  ;;  %v7919_v62 = vpop.eup %5930  ;;  %v7921_v30 = vadd.f32 %v2970_v22, %v2969_v11  ;;  %v3671_v18 = vadd.f32 %v3670_v39, %v3669_v38  ;;  %v2006_v13 = vmax.f32 %v2004_v16, %v2005_v45 }
 0x345   :  { %v1974_v43 = vmax.f32 %v7912_v26, %v1973_v15  ;;  %v3252_v52 = vrot.slane %v3251_v10, 2  ;;  %v2564_v47 = vsub.f32 %v7863_v7, %v1984_v19  ;;  %v1994_v29 = vmax.f32 %v1992_v24, %v1993_v2 }
 0x346   :  { %v2218_v27 = vmax.f32 %v2216_v40, %v2217_v35  ;;  %v5933_v1 = vpop.eup %5932  ;;  %v3912_v50 = vrot.slane %v3911_v57, 1  ;;  %v2669_v54 = vmul.f32 1.442695, %v2565_v14  ;;  %v3246_v0 = vadd.f32 %v3245_v32, %v7882_v41  ;;  %v4577_v7 = vpop.permute.xlu0 %4576 }
 0x347   :  { %v1975_v61 = vrot.slane %v1974_v43, 2  ;;  %v2007_v22 = vrot.slane %v2006_v13, 1  ;;  %v1995_v38 = vrot.slane %v1994_v29, 1  ;;  %v3090_v39 = vadd.f32 %v3089_v49, %v3088_v48  ;;  %v7929_v55 = vpop.xlane.xlu1 %1707  ;;  %5627 = vmatpush.xpose.msk.msrb.mxu3 %vm52_vm0, %v4577_v7  ;;  %5635 = vmatpush.msk.msrb.mxu0 %vm4634_vm9, %v4577_v7 }
 0x348   :  { %v2603_v11 = vsub.f32 %v7888_v33, %v2218_v27  ;;  %v3672_v16 = vrot.slane %v3671_v18, 1  ;;  %v2667_v45 = vmul.f32 1.442695, %v2564_v47  ;;  %v3740_v40 = vrot.slane %v7917_v17, 4 }
 0x349   :  { %v1976_v15 = vmax.f32 %v1974_v43, %v1975_v61  ;;  %v1996_v14 = vmax.f32 %v1994_v29, %v1995_v38  ;;  %v2051_v41 = vrot.slane %v7929_v55, 4  ;;  %v3913_v33 = vadd.f32 %v3912_v50, %v3911_v57 }
 0x34a   :  { %v2745_v24 = vmul.f32 1.442695, %v2603_v11  ;;  %5934 = vpow2.f32 %v2669_v54  ;;  %v3247_v48 = vrot.slane %v3246_v0, 1  ;;  %v2008_v19 = vmax.f32 %v2006_v13, %v2007_v22  ;;  %v10484_v11 = vld [vmem:[#allocation65_spill] sm:$0xff] }
 0x34b   :  { %v1977_v32 = vrot.slane %v1976_v15, 1  ;;  %v2052_v35 = vmax.f32 %v7929_v55, %v2051_v41  ;;  %v3091_v2 = vrot.slane %v3090_v39, 2  ;;  %v3673_v49 = vadd.f32 %v3672_v16, %v3671_v18 }
 0x34c   :  { %5936 = vpow2.f32 %v2745_v24  ;;  %v3253_v47 = vadd.f32 %v3252_v52, %v3251_v10  ;;  %v2566_v29 = vsub.f32 %v7904_v34, %v1996_v14  ;;  %v10485_v38 = vmax.f32 %v10484_v11, 0.0 }
 0x34d   :  { %5938 = vpow2.f32 %v2667_v45  ;;  %v1978_v43 = vmax.f32 %v1976_v15, %v1977_v32  ;;  %v2053_v61 = vrot.slane %v2052_v35, 2  ;;  %v10486_v18 = vrot.slane %v7708_v59, 4 }
 0x34e   :  { %v2881_v54 = vmul.f32 %v7764_v25, %v10485_v38  ;;  %5940 = vrcp.f32 %v3913_v33  ;;  %v2568_v10 = vsub.f32 %v7902_v23, %v2008_v19  ;;  %v3248_v22 = vadd.f32 %v3247_v48, %v3246_v0  ;;  %v7953_v23 = vpop.f32.mrf.mxu2  ;;  %v10488_v0 = vld [vmem:[#allocation79_spill] sm:$0xff] }
 0x34f   :  { %v2563_v13 = vsub.f32 %v7912_v26, %v1978_v43  ;;  %v3097_v50 = vadd.f32 %v10486_v18, %v7708_v59  ;;  %v2054_v52 = vmax.f32 %v2052_v35, %v2053_v61  ;;  %v3092_v16 = vadd.f32 %v3091_v2, %v3090_v39  ;;  %v7950_v15 = vpop.xlane.xlu1 %1680  ;;  %10487 = vst [vmem:[#allocation57_spill] sm:$0xff] %v7953_v23 }
 0x350   :  { %v5935_v34 = vpop.eup %5934  ;;  %5942 = vrcp.f32 %v3673_v49  ;;  %v7948_v45 = vadd.f32 %v7917_v17, %v3740_v40  ;;  %v3254_v7 = vrot.slane %v3253_v47, 1  ;;  %v2671_v26 = vmul.f32 1.442695, %v2566_v29 }
 0x351   :  { %v2665_v25 = vmul.f32 1.442695, %v2563_v13  ;;  %v2055_v14 = vrot.slane %v2054_v52, 1  ;;  %v1997_v41 = vrot.slane %v7950_v15, 4  ;;  %v4402_v59 = vmul.f32 %v5933_v1, %v3248_v22 }
 0x352   :  { %v5937_v24 = vpop.eup %5936  ;;  %v10489_v39 = vmax.f32 %v10488_v0, 0.0  ;;  %v3098_v40 = vrot.slane %v3097_v50, 2  ;;  %v2675_v19 = vmul.f32 1.442695, %v2568_v10  ;;  %v3093_v49 = vrot.slane %v3092_v16, 1 }
 0x353   :  { %v5939_v33 = vpop.eup %5938  ;;  %v3914_v48 = vrot.slane %v5937_v24, 4  ;;  %5944 = vpow2.f32 %v2665_v25  ;;  %v2056_v35 = vmax.f32 %v2054_v52, %v2055_v14  ;;  %v1998_v2 = vmax.f32 %v7950_v15, %v1997_v41  ;;  %v10490_v14 = vld [vmem:[#allocation42_spill] sm:$0xff] }
 0x354   :  { %v2903_v32 = vmul.f32 %v5937_v24, %v10489_v39  ;;  %v5941_v43 = vpop.eup %5940  ;;  %v3686_v29 = vrot.slane %v5935_v34, 4  ;;  %v3102_v1 = vsel %vm2961_vm1, %v2881_v54, 0.0  ;;  %v3680_v38 = vrot.slane %v5939_v33, 4 }
 0x355   :  { %v3915_v11 = vadd.f32 %v5937_v24, %v3914_v48  ;;  %5946 = vpow2.f32 %v2671_v26  ;;  %v1999_v18 = vrot.slane %v1998_v2, 2  ;;  %v3255_v0 = vadd.f32 %v3254_v7, %v3253_v47 }
 0x356   :  { %v3256_v61 = vsel %vm2961_vm1, %v2903_v32, 0.0  ;;  %v7960_v22 = vpop.eup %5942  ;;  %v3099_v10 = vadd.f32 %v3098_v40, %v3097_v50  ;;  %v3103_v52 = vrot.slane %v3102_v1, 4  ;;  %v10491_v41 = vmax.f32 %v10490_v14, 0.0 }
 0x357   :  { %v3257_v13 = vrot.slane %v3256_v61, 4  ;;  %v3916_v25 = vrot.slane %v3915_v11, 2  ;;  %v2576_v32 = vsub.f32 %v7929_v55, %v2056_v35  ;;  %v3123_v54 = vsel %vm2961_vm1, %v7633_v56, 0.0  ;;  %v10492_v35 = vld [vmem:[#allocation36_spill] sm:$0xff] }
 0x358   :  { %v7964_v39 = vmul.f32 %v5935_v34, %v10491_v41  ;;  %5948 = vpow2.f32 %v2675_v19  ;;  %v4403_v26 = vmul.f32 %v5941_v43, %v3255_v0  ;;  %v3104_v57 = vadd.f32 %v3103_v52, %v3102_v1  ;;  %v10494_v19 = vld [vmem:[#allocation38_spill] sm:$0xff]  ;;  %v7983_v1 = vpop.f32.mrf.mxu2 }
 0x359   :  { %v3258_v27 = vadd.f32 %v3257_v13, %v3256_v61  ;;  %v5945_v24 = vpop.eup %5944  ;;  %v3917_v48 = vadd.f32 %v3916_v25, %v3915_v11  ;;  %v7969_v23 = vadd.f32 %v5935_v34, %v3686_v29  ;;  %v7971_v47 = vadd.f32 %v5939_v33, %v3680_v38 }
 0x35a   :  { %v2000_v50 = vmax.f32 %v1998_v2, %v1999_v18  ;;  %v7973_v7 = vadd.f32 %v3093_v49, %v3092_v16  ;;  %v3100_v61 = vrot.slane %v3099_v10, 1  ;;  %v3124_v13 = vrot.slane %v3123_v54, 4 }
 0x35b   :  { %v3918_v40 = vrot.slane %v3917_v48, 1  ;;  %v3259_v14 = vrot.slane %v3258_v27, 2  ;;  %v7975_v55 = vpop.eup %5946  ;;  %v10493_v56 = vmax.f32 %v10492_v35, 0.0  ;;  %v10495_v43 = vmax.f32 %v10494_v19, 0.0 }
 0x35c   :  { %v2691_v34 = vmul.f32 1.442695, %v2576_v32  ;;  %v3105_v29 = vrot.slane %v3104_v57, 2  ;;  %v3674_v16 = vrot.slane %v5945_v24, 4  ;;  %v4556_v38 = vsel %vm4514_vm2, %v4403_v26, %v4402_v59 }
 0x35d   :  { %v7979_v41 = vmul.f32 %v5939_v33, %v10493_v56  ;;  %v2863_v11 = vmul.f32 %v5945_v24, %v10495_v43  ;;  %v3919_v2 = vadd.f32 %v3918_v40, %v3917_v48  ;;  %v3260_v49 = vadd.f32 %v3259_v14, %v3258_v27 }
 0x35e   :  { %v3688_v18 = vrot.slane %v7969_v23, 2  ;;  %v2001_v25 = vrot.slane %v2000_v50, 1  ;;  %v3125_v0 = vadd.f32 %v3124_v13, %v3123_v54  ;;  %v3780_v52 = vrot.slane %v7626_v37, 1  ;;  %v7988_v33 = vpop.eup %5948 }
 0x35f   :  { %v3682_v35 = vrot.slane %v7971_v47, 2  ;;  %v3692_v32 = vrot.slane %v7975_v55, 4  ;;  %5950 = vrcp.f32 %v3919_v2  ;;  %v7992_v56 = vadd.f32 %v3100_v61, %v3099_v10 }
 0x360   :  { %v7995_v48 = vsel %vm2961_vm1, %v2863_v11, 0.0  ;;  %5952 = vpow2.f32 %v2691_v34  ;;  %v3261_v27 = vrot.slane %v3260_v49, 1  ;;  %v3106_v59 = vadd.f32 %v3105_v29, %v3104_v57 }
 0x361   :  { %v7997_v26 = vadd.f32 %v5945_v24, %v3674_v16  ;;  %v10496_v54 = vrot.slane %v7845_v12, 1  ;;  %v3784_v14 = vrot.slane %v7891_v9, 2  ;;  %v10497_v13 = vrot.slane %v7454_v44, 4 }
 0x362   :  { %v8006_v10 = vmax.f32 %v2000_v50, %v2001_v25  ;;  %v3126_v61 = vrot.slane %v3125_v0, 2  ;;  %v3781_v43 = vadd.f32 %v3780_v52, %v7626_v37  ;;  %v3794_v11 = vrot.slane %v7445_v5, 4 }
 0x363   :  { %v3775_v40 = vadd.f32 %v10496_v54, %v7845_v12  ;;  %v3789_v19 = vadd.f32 %v7454_v44, %v10497_v13  ;;  %v3785_v57 = vadd.f32 %v3784_v14, %v7891_v9  ;;  %v3800_v34 = vrot.slane %v7600_v21, 4 }
 0x364   :  { %5954 = vrcp.f32 %v7602_v8  ;;  %v3262_v12 = vadd.f32 %v3261_v27, %v3260_v49  ;;  %v3107_v29 = vrot.slane %v3106_v59, 1  ;;  %v3795_v2 = vadd.f32 %v7445_v5, %v3794_v11  ;;  %v8021_v49 = vpop.f32.mrf.mxu2 }
 0x365   :  { %v3790_v24 = vrot.slane %v3789_v19, 2  ;;  %5956 = vrcp.f32 %v7628_v51  ;;  %v5951_v44 = vpop.eup %5950  ;;  %v3786_v50 = vrot.slane %v3785_v57, 1  ;;  %v3801_v37 = vadd.f32 %v7600_v21, %v3800_v34 }
 0x366   :  { %5958 = vrcp.f32 %v3775_v40  ;;  %v8016_v25 = vpop.eup %5952  ;;  %v2977_v9 = vrot.slane %v7995_v48, 4  ;;  %v4404_v52 = vmul.f32 %v5951_v44, %v3262_v12  ;;  %v8019_v54 = vadd.f32 %v3126_v61, %v3125_v0 }
 0x367   :  { %v3791_v16 = vadd.f32 %v3790_v24, %v3789_v19  ;;  %v3796_v8 = vrot.slane %v3795_v2, 2  ;;  %v3787_v27 = vadd.f32 %v3786_v50, %v3785_v57  ;;  %v3802_v14 = vrot.slane %v3801_v37, 2 }
 0x368   :  { %5960 = vrcp.f32 %v3781_v43  ;;  %v3676_v51 = vrot.slane %v7997_v26, 2  ;;  %v2567_v21 = vsub.f32 %v7950_v15, %v8006_v10  ;;  %v4557_v40 = vsel %vm4516_vm3, %v4404_v52, %v4556_v38 }
 0x369   :  { %v3792_v5 = vrot.slane %v3791_v16, 1  ;;  %v3797_v13 = vadd.f32 %v3796_v8, %v3795_v2  ;;  %v4558_v0 = vsel %vm4518_vm4, %v7552_v46, %v4557_v40  ;;  %v3108_v61 = vadd.f32 %v3107_v29, %v3106_v59  ;;  %v10500_v8 = vld [vmem:[#allocation54_spill] sm:$0xff] }
 0x36a   :  { %v5955_v19 = vpop.eup %5954  ;;  %v3803_v24 = vadd.f32 %v3802_v14, %v3801_v37  ;;  %v4559_v57 = vsel %vm4520_vm5, %v7554_v36, %v4558_v0  ;;  %v3128_v43 = vrot.slane %v8019_v54, 1  ;;  %5962 = vrcp.f32 %v3787_v27  ;;  %v10498_v37 = vld [vmem:[#allocation46_spill] sm:$0xff]  ;;  %v10504_v14 = vld [vmem:[#allocation56_spill] sm:$0xff] }
 0x36b   :  { %v3793_v11 = vadd.f32 %v3792_v5, %v3791_v16  ;;  %v5957_v34 = vpop.eup %5956  ;;  %v3798_v12 = vrot.slane %v3797_v13, 1  ;;  %v4560_v15 = vsel %vm4522_vm6, %v7556_v4, %v4559_v57  ;;  %v4378_v29 = vmul.f32 %v5955_v19, %v7644_v58  ;;  %v10502_v58 = vld [vmem:[#allocation55_spill] sm:$0xff] }
 0x36c   :  { %v5959_v44 = vpop.eup %5958  ;;  %v3804_v38 = vrot.slane %v3803_v24, 1  ;;  %v4379_v10 = vmul.f32 %v5957_v34, %v7850_v6  ;;  %v4561_v46 = vsel %vm4524_vm7, %v7558_v53, %v4560_v15  ;;  %v10499_v52 = vmax.f32 %v10498_v37, 0.0  ;;  %v10508_v34 = vld [vmem:[#allocation81_spill] sm:$0xff] }
 0x36d   :  { %5964 = vrcp.f32 %v3793_v11  ;;  %v3799_v59 = vadd.f32 %v3798_v12, %v3797_v13  ;;  %v4380_v36 = vmul.f32 %v5959_v44, %v7973_v7  ;;  %v4562_v50 = vsel %vm4526_vm8, %v7564_v28, %v4561_v46  ;;  %v10506_v13 = vld [vmem:[#allocation32_spill] sm:$0xff]  ;;  %v10509_v46 = vld [vmem:[#allocation82_spill] sm:$0xff] }
 0x36e   :  { %v5961_v2 = vpop.eup %5960  ;;  %v3805_v16 = vadd.f32 %v3804_v38, %v3803_v24  ;;  %v2873_v4 = vmul.f32 %v7378_v3, %v10499_v52  ;;  %v10501_v27 = vmax.f32 %v10500_v8, 0.0  ;;  %4574 = vrot.lane.b32.xlu1 %v4562_v50, %s6312_s7  ;;  %v4535_v53 = vsel %vm4514_vm2, %v4379_v10, %v4378_v29  ;;  %v8062_v38 = vpop.f32.mrf.mxu2 }
 0x36f   :  { %5966 = vrcp.f32 %v3799_v59  ;;  %v10503_v7 = vmax.f32 %v10502_v58, 0.0  ;;  %v10505_v28 = vmax.f32 %v10504_v14, 0.0  ;;  %v4536_v3 = vsel %vm4516_vm3, %v4380_v36, %v4535_v53 }
 0x370   :  { %v2874_v6 = vmul.f32 %v7917_v17, %v10501_v27  ;;  %5968 = vrcp.f32 %v3805_v16  ;;  %v3032_v19 = vsel %vm2961_vm1, %v10506_v13, 0.0  ;;  %v10507_v17 = vld [vmem:[#allocation80_spill] sm:$0xff]  ;;  %v5963_v11 = vpop.eup %5962  ;;  %v4381_v24 = vmul.f32 %v5961_v2, %v7992_v56 }
 0x371   :  { %v2875_v5 = vmul.f32 %v7919_v62, %v10503_v7  ;;  %v2876_v40 = vmul.f32 %v8016_v25, %v10505_v28  ;;  %v3039_v0 = vsel %vm2961_vm1, %v10507_v17, 0.0  ;;  %v3021_v57 = vrot.slane %v10508_v34, 2 }
 0x372   :  { %v3033_v12 = vrot.slane %v3032_v19, 4  ;;  %v3040_v44 = vrot.slane %v3039_v0, 4  ;;  %v4382_v10 = vmul.f32 %v5963_v11, %v3108_v61  ;;  %v3028_v59 = vrot.slane %v10509_v46, 2 }
 0x373   :  { %v5965_v15 = vpop.eup %5964  ;;  %v3046_v29 = vsel %vm2961_vm1, %v2873_v4, 0.0  ;;  %v3053_v36 = vsel %vm2961_vm1, %v2874_v6, 0.0  ;;  %v4537_v16 = vsel %vm4518_vm4, %v4381_v24, %v4536_v3  ;;  %v3060_v56 = vsel %vm2961_vm1, %v2875_v5, 0.0 }
 0x374   :  { %v4383_v50 = vmul.f32 %v5965_v15, %v7855_v63  ;;  %v3034_v37 = vadd.f32 %v3033_v12, %v3032_v19  ;;  %v4538_v2 = vsel %vm4520_vm5, %v4382_v10, %v4537_v16  ;;  %v3041_v52 = vadd.f32 %v3040_v44, %v3039_v0  ;;  %v10510_v15 = vld [vmem:[#allocation33_spill] sm:$0xff]  ;;  %v10511_v10 = vld [vmem:[#allocation83_spill] sm:$0xff] }
 0x375   :  { %v3047_v8 = vrot.slane %v3046_v29, 4  ;;  %v3054_v27 = vrot.slane %v3053_v36, 4  ;;  %v5967_v53 = vpop.eup %5966  ;;  %v8072_v61 = vadd.f32 %v3676_v51, %v7997_v26  ;;  %v3129_v4 = vadd.f32 %v3128_v43, %v8019_v54 }
 0x376   :  { %v4539_v6 = vsel %vm4522_vm6, %v4383_v50, %v4538_v2  ;;  %v3035_v58 = vrot.slane %v3034_v37, 2  ;;  %v5969_v63 = vpop.eup %5968  ;;  %v2673_v7 = vmul.f32 1.442695, %v2567_v21  ;;  %v4384_v14 = vmul.f32 %v5967_v53, %v7871_v60 }
 0x377   :  { %v3042_v28 = vrot.slane %v3041_v52, 2  ;;  %v3048_v5 = vadd.f32 %v3047_v8, %v3046_v29  ;;  %v4385_v3 = vmul.f32 %v5969_v63, %v3129_v4  ;;  %v3055_v13 = vadd.f32 %v3054_v27, %v3053_v36 }
 0x378   :  { %v3061_v19 = vrot.slane %v3060_v56, 4  ;;  %v3067_v17 = vsel %vm2961_vm1, %v2876_v40, 0.0  ;;  %v8081_v26 = vadd.f32 %v3688_v18, %v7969_v23  ;;  %v4540_v54 = vsel %vm4524_vm7, %v4384_v14, %v4539_v6 }
 0x379   :  { %v3022_v51 = vadd.f32 %v3021_v57, %v10508_v34  ;;  %v3029_v21 = vadd.f32 %v3028_v59, %v10509_v46  ;;  %v4541_v60 = vsel %vm4526_vm8, %v4385_v3, %v4540_v54  ;;  %v3036_v43 = vadd.f32 %v3035_v58, %v3034_v37  ;;  %v10516_v54 = vld [vmem:[#allocation85_spill] sm:$0xff] }
 0x37a   :  { %v3049_v0 = vrot.slane %v3048_v5, 2  ;;  %v3062_v11 = vadd.f32 %v3061_v19, %v3060_v56  ;;  %v8090_v40 = vadd.f32 %v3682_v35, %v7971_v47  ;;  %v8095_v23 = vadd.f32 %v7975_v55, %v3692_v32  ;;  %4568 = vrot.lane.b32.xlu1 %v4541_v60, %s6312_s7  ;;  %v8104_v47 = vpop.f32.mrf.mxu2 }
 0x37b   :  { %v3043_v18 = vadd.f32 %v3042_v28, %v3041_v52  ;;  %v3068_v24 = vrot.slane %v3067_v17, 4  ;;  %v8101_v34 = vadd.f32 %v2977_v9, %v7995_v48  ;;  %v3678_v57 = vrot.slane %v8072_v61, 1  ;;  %v10513_v52 = vld [vmem:[#allocation84_spill] sm:$0xff] }
 0x37c   :  { %5970 = vpow2.f32 %v2673_v7  ;;  %v3056_v12 = vrot.slane %v3055_v13, 2  ;;  %v3023_v35 = vrot.slane %v3022_v51, 1  ;;  %v3030_v44 = vrot.slane %v3029_v21, 1  ;;  %v10515_v7 = vld [vmem:[#allocation22_spill] sm:$0xff] }
 0x37d   :  { %v3732_v32 = vrot.slane %v10510_v15, 1  ;;  %v3736_v46 = vrot.slane %v10511_v10, 2  ;;  %v3037_v59 = vrot.slane %v3036_v43, 1  ;;  %v3050_v29 = vadd.f32 %v3049_v0, %v3048_v5 }
 0x37e   :  { %v3063_v36 = vrot.slane %v3062_v11, 2  ;;  %v3742_v50 = vrot.slane %v7948_v45, 2  ;;  %v3044_v16 = vrot.slane %v3043_v18, 1  ;;  %v3069_v48 = vadd.f32 %v3068_v24, %v3067_v17 }
 0x37f   :  { %v3737_v9 = vadd.f32 %v3736_v46, %v10511_v10  ;;  %v10512_v37 = vrot.slane %v7919_v62, 4  ;;  %v3057_v2 = vadd.f32 %v3056_v12, %v3055_v13  ;;  %v10514_v8 = vrot.slane %v10513_v52, 1 }
 0x380   :  { %v3743_v53 = vadd.f32 %v3742_v50, %v7948_v45  ;;  %v3752_v4 = vrot.slane %v8016_v25, 4  ;;  %v3733_v6 = vadd.f32 %v3732_v32, %v10510_v15  ;;  %5972 = vrcp.f32 %v10515_v7  ;;  %v10517_v45 = vld [vmem:[#allocation21_spill] sm:$0xff]  ;;  %v10522_v7 = vld [vmem:[#allocation48_spill] sm:$0xff] }
 0x381   :  { %v3747_v56 = vadd.f32 %v7919_v62, %v10512_v37  ;;  %v3727_v27 = vadd.f32 %v10514_v8, %v10513_v52  ;;  %v3738_v58 = vrot.slane %v3737_v9, 1  ;;  %v3051_v28 = vrot.slane %v3050_v29, 1 }
 0x382   :  { %v8120_v14 = vpop.eup %5970  ;;  %v3064_v5 = vadd.f32 %v3063_v36, %v3062_v11  ;;  %v3744_v62 = vrot.slane %v3743_v53, 1  ;;  %v3753_v3 = vadd.f32 %v8016_v25, %v3752_v4  ;;  %v3070_v13 = vrot.slane %v3069_v48, 2  ;;  %4462 = vrot.lane.b32.xlu1 %v10517_v45, %s6313_s1  ;;  %v8126_v36 = vpop.f32.mrf.mxu2 }
 0x383   :  { %v3748_v63 = vrot.slane %v3747_v56, 2  ;;  %v3739_v19 = vadd.f32 %v3738_v58, %v3737_v9  ;;  %5974 = vrcp.f32 %v10516_v54  ;;  %v3058_v60 = vrot.slane %v3057_v2, 1 }
 0x384   :  { %v3745_v0 = vadd.f32 %v3744_v62, %v3743_v53  ;;  %v3754_v24 = vrot.slane %v3753_v3, 2  ;;  %5976 = vrcp.f32 %v3727_v27  ;;  %v3024_v12 = vadd.f32 %v3023_v35, %v3022_v51  ;;  %v10518_v35 = vld [vmem:[#allocation41_spill] sm:$0xff] }
 0x385   :  { %v3749_v17 = vadd.f32 %v3748_v63, %v3747_v56  ;;  %v3031_v15 = vadd.f32 %v3030_v44, %v3029_v21  ;;  %5978 = vrcp.f32 %v3733_v6  ;;  %v3038_v11 = vadd.f32 %v3037_v59, %v3036_v43  ;;  %v10520_v59 = vld [vmem:[#allocation43_spill] sm:$0xff] }
 0x386   :  { %v3065_v10 = vrot.slane %v3064_v5, 1  ;;  %v3755_v25 = vadd.f32 %v3754_v24, %v3753_v3  ;;  %5980 = vrcp.f32 %v3739_v19  ;;  %v5973_v46 = vpop.eup %5972  ;;  %v3071_v50 = vadd.f32 %v3070_v13, %v3069_v48  ;;  %v10524_v19 = vld [vmem:[#allocation27_spill] sm:$0xff] }
 0x387   :  { %v3750_v32 = vrot.slane %v3749_v17, 1  ;;  %5982 = vrcp.f32 %v3745_v0  ;;  %v2983_v37 = vsel %vm2961_vm1, %v7979_v41, 0.0  ;;  %v3045_v56 = vadd.f32 %v3044_v16, %v3043_v18 }
 0x388   :  { %v3052_v52 = vadd.f32 %v3051_v28, %v3050_v29  ;;  %v3059_v8 = vadd.f32 %v3058_v60, %v3057_v2  ;;  %v3756_v51 = vrot.slane %v3755_v25, 1  ;;  %v10519_v43 = vmax.f32 %v10518_v35, 0.0 }
 0x389   :  { %v3751_v9 = vadd.f32 %v3750_v32, %v3749_v17  ;;  %v5975_v21 = vpop.eup %5974  ;;  %v10521_v27 = vmax.f32 %v10520_v59, 0.0  ;;  %v2984_v48 = vrot.slane %v2983_v37, 4  ;;  %v4370_v58 = vmul.f32 %v5973_v46, %v3024_v12 }
 0x38a   :  { %v2866_v44 = vmul.f32 %v7975_v55, %v10519_v43  ;;  %v5977_v4 = vpop.eup %5976  ;;  %v3757_v6 = vadd.f32 %v3756_v51, %v3755_v25  ;;  %v4371_v63 = vmul.f32 %v5975_v21, %v3031_v15  ;;  %v2990_v41 = vsel %vm2961_vm1, %v7964_v39, 0.0  ;;  %v8154_v21 = vpop.f32.mrf.mxu2 }
 0x38b   :  { %5984 = vrcp.f32 %v3751_v9  ;;  %v2867_v53 = vmul.f32 %v8120_v14, %v10521_v27  ;;  %v5979_v18 = vpop.eup %5978  ;;  %v3066_v29 = vadd.f32 %v3065_v10, %v3064_v5  ;;  %v3072_v16 = vrot.slane %v3071_v50, 1 }
 0x38c   :  { %v4372_v2 = vmul.f32 %v5977_v4, %v3038_v11  ;;  %v10523_v28 = vmax.f32 %v10522_v7, 0.0  ;;  %v5981_v62 = vpop.eup %5980  ;;  %5986 = vrcp.f32 %v3757_v6  ;;  %v4373_v3 = vmul.f32 %v5979_v18, %v3045_v56 }
 0x38d   :  { %v4528_v13 = vsel %vm4514_vm2, %v4371_v63, %v4370_v58  ;;  %v2965_v17 = vrot.slane %v10524_v19, 2  ;;  %v5983_v54 = vpop.eup %5982  ;;  %v4374_v60 = vmul.f32 %v5981_v62, %v3052_v52  ;;  %v2985_v39 = vadd.f32 %v2984_v48, %v2983_v37 }
 0x38e   :  { %v2868_v55 = vmul.f32 %v7988_v33, %v10523_v28  ;;  %v4529_v0 = vsel %vm4516_vm3, %v4372_v2, %v4528_v13  ;;  %v2991_v24 = vrot.slane %v2990_v41, 4  ;;  %v4375_v5 = vmul.f32 %v5983_v54, %v3059_v8 }
 0x38f   :  { %v4530_v12 = vsel %vm4518_vm4, %v4373_v3, %v4529_v0  ;;  %v2997_v15 = vsel %vm2961_vm1, %v2866_v44, 0.0  ;;  %v3004_v32 = vsel %vm2961_vm1, %v2867_v53, 0.0  ;;  %v3698_v10 = vrot.slane %v8120_v14, 4 }
 0x390   :  { %v10525_v25 = vrot.slane %v7921_v30, 2  ;;  %v2979_v9 = vrot.slane %v8101_v34, 2  ;;  %v2998_v56 = vrot.slane %v2997_v15, 4  ;;  %v4531_v37 = vsel %vm4520_vm5, %v4374_v60, %v4530_v12 }
 0x391   :  { %v5985_v11 = vpop.eup %5984  ;;  %v3005_v8 = vrot.slane %v3004_v32, 4  ;;  %v3011_v51 = vsel %vm2961_vm1, %v2868_v55, 0.0  ;;  %v3073_v35 = vadd.f32 %v3072_v16, %v3071_v50  ;;  %v4532_v43 = vsel %vm4522_vm6, %v4375_v5, %v4531_v37 }
 0x392   :  { %v2973_v46 = vadd.f32 %v10525_v25, %v7921_v30  ;;  %v4376_v52 = vmul.f32 %v5985_v11, %v3066_v29  ;;  %v2966_v44 = vadd.f32 %v2965_v17, %v10524_v19  ;;  %v2992_v59 = vadd.f32 %v2991_v24, %v2990_v41  ;;  %v5987_v27 = vpop.eup %5986  ;;  %v10526_v17 = vld [vmem:[#allocation30_spill] sm:$0xff]  ;;  %v8175_v11 = vpop.f32.mrf.mxu2 }
 0x393   :  { %v3684_v30 = vrot.slane %v8090_v40, 1  ;;  %v3679_v53 = vadd.f32 %v3678_v57, %v8072_v61  ;;  %v2986_v48 = vrot.slane %v2985_v39, 2  ;;  %v2999_v4 = vadd.f32 %v2998_v56, %v2997_v15 }
 0x394   :  { %v4377_v6 = vmul.f32 %v5987_v27, %v3073_v35  ;;  %v2974_v58 = vrot.slane %v2973_v46, 1  ;;  %v2980_v63 = vadd.f32 %v2979_v9, %v8101_v34  ;;  %v3012_v18 = vrot.slane %v3011_v51, 4 }
 0x395   :  { %v4533_v50 = vsel %vm4524_vm7, %v4376_v52, %v4532_v43  ;;  %v3006_v29 = vadd.f32 %v3005_v8, %v3004_v32  ;;  %v3690_v16 = vrot.slane %v8081_v26, 1  ;;  %v3694_v41 = vrot.slane %v8095_v23, 2 }
 0x396   :  { %v4534_v2 = vsel %vm4526_vm8, %v4377_v6, %v4533_v50  ;;  %v2967_v7 = vrot.slane %v2966_v44, 1  ;;  %v2993_v28 = vrot.slane %v2992_v59, 2  ;;  %v3699_v61 = vadd.f32 %v8120_v14, %v3698_v10  ;;  %v8181_v6 = vld [vmem:[%s10089_s4 + $0x5] ss:$0 sm:$0xff] }
 0x397   :  { %4566 = vrot.lane.b32.xlu0 %v4534_v2, %s6312_s7  ;;  %v2987_v57 = vadd.f32 %v2986_v48, %v2985_v39  ;;  %v3000_v55 = vrot.slane %v2999_v4, 2  ;;  %v3695_v34 = vadd.f32 %v3694_v41, %v8095_v23  ;;  %v3704_v62 = vrot.slane %v7988_v33, 4 }
 0x398   :  { %v3013_v3 = vadd.f32 %v3012_v18, %v3011_v51  ;;  %v3685_v13 = vadd.f32 %v3684_v30, %v8090_v40  ;;  %v3700_v19 = vrot.slane %v3699_v61, 2  ;;  %5988 = vrcp.f32 %v10526_v17 }
 0x399   :  { %v3007_v54 = vrot.slane %v3006_v29, 2  ;;  %v3691_v60 = vadd.f32 %v3690_v16, %v8081_v26  ;;  %v3696_v0 = vrot.slane %v3695_v34, 1  ;;  %v3705_v14 = vadd.f32 %v7988_v33, %v3704_v62 }
 0x39a   :  { %v2975_v24 = vadd.f32 %v2974_v58, %v2973_v46  ;;  %v2994_v5 = vadd.f32 %v2993_v28, %v2992_v59  ;;  %v3701_v39 = vadd.f32 %v3700_v19, %v3699_v61  ;;  %5990 = vrcp.f32 %v3679_v53  ;;  %v10527_v58 = vld [vmem:[#allocation4_spill] sm:$0xff]  ;;  %v8190_v62 = vpop.f32.mrf.mxu2 }
 0x39b   :  { %v2981_v12 = vrot.slane %v2980_v63, 1  ;;  %v3001_v23 = vadd.f32 %v3000_v55, %v2999_v4  ;;  %v3697_v15 = vadd.f32 %v3696_v0, %v3695_v34  ;;  %v3706_v32 = vrot.slane %v3705_v14, 2 }
 0x39c   :  { %v2968_v40 = vadd.f32 %v2967_v7, %v2966_v44  ;;  %v3014_v10 = vrot.slane %v3013_v3, 2  ;;  %v3702_v25 = vrot.slane %v3701_v39, 1  ;;  %5992 = vrcp.f32 %v3685_v13 }
 0x39d   :  { %v2988_v9 = vrot.slane %v2987_v57, 1  ;;  %v3008_v56 = vadd.f32 %v3007_v54, %v3006_v29  ;;  %v3707_v26 = vadd.f32 %v3706_v32, %v3705_v14  ;;  %5994 = vrcp.f32 %v3691_v60  ;;  %v10528_v14 = vld [vmem:[#allocation23_spill] sm:$0xff]  ;;  %v10529_v32 = vld [vmem:[#allocation18_spill] sm:$0xff] }
 0x39e   :  { %v5989_v52 = vpop.eup %5988  ;;  %v2995_v33 = vrot.slane %v2994_v5, 1  ;;  %v3703_v46 = vadd.f32 %v3702_v25, %v3701_v39  ;;  %5996 = vrcp.f32 %v3697_v15  ;;  %v4363_v37 = vmul.f32 %v7960_v22, %v2975_v24 }
 0x39f   :  { %v2982_v8 = vadd.f32 %v2981_v12, %v2980_v63  ;;  %v3002_v51 = vrot.slane %v3001_v23, 1  ;;  %v3708_v35 = vrot.slane %v3707_v26, 1  ;;  %v3015_v59 = vadd.f32 %v3014_v10, %v3013_v3 }
 0x3a0   :  { %v5991_v43 = vpop.eup %5990  ;;  %5998 = vrcp.f32 %v3703_v46  ;;  %v4362_v44 = vmul.f32 %v5989_v52, %v2968_v40  ;;  %v2989_v27 = vadd.f32 %v2988_v9, %v2987_v57  ;;  %v3009_v30 = vrot.slane %v3008_v56, 1  ;;  %v10531_v52 = vld [vmem:[#allocation49_spill] sm:$0xff] }
 0x3a1   :  { %v3709_v53 = vadd.f32 %v3708_v35, %v3707_v26  ;;  %v4364_v48 = vmul.f32 %v5991_v43, %v2982_v8  ;;  %v8185_v22 = vadd.f32 %v8181_v6, %v10527_v58  ;;  %v2996_v63 = vadd.f32 %v2995_v33, %v2994_v5 }
 0x3a2   :  { %v5993_v4 = vpop.eup %5992  ;;  %v4515_v18 = vsel %vm4514_vm2, %v4363_v37, %v4362_v44  ;;  %v3003_v29 = vadd.f32 %v3002_v51, %v3001_v23  ;;  %v3016_v7 = vrot.slane %v3015_v59, 1  ;;  %v3010_v61 = vadd.f32 %v3009_v30, %v3008_v56  ;;  %v8202_v23 = vpop.f32.mrf.mxu2  ;;  %v10532_v37 = vld [vmem:[#allocation2_spill] sm:$0xff] }
 0x3a3   :  { %v5995_v50 = vpop.eup %5994  ;;  %6000 = vrcp.f32 %v3709_v53  ;;  %v4365_v16 = vmul.f32 %v5993_v4, %v2989_v27  ;;  %v4517_v41 = vsel %vm4516_vm3, %v4364_v48, %v4515_v18  ;;  %v10230_v13 = vmax.f32 %v8185_v22, 0.0  ;;  %v10533_v51 = vld [vmem:[#allocation10_spill] sm:$0xff]  ;;  %v10534_v53 = vld [vmem:[#allocation12_spill] sm:$0xff] }
 0x3a4   :  { %v5997_v2 = vpop.eup %5996  ;;  %v4366_v28 = vmul.f32 %v5995_v50, %v2996_v63  ;;  %v3017_v54 = vadd.f32 %v3016_v7, %v3015_v59  ;;  %v8208_v40 = vadd.f32 %v8181_v6, %v10529_v32  ;;  %v10195_v10 = vrot.slane %v10517_v45, 1  ;;  %v10535_v50 = vld [vmem:[#allocation44_spill] sm:$0xff] }
 0x3a5   :  { %v4367_v57 = vmul.f32 %v5997_v2, %v3003_v29  ;;  %v4519_v55 = vsel %vm4518_vm4, %v4365_v16, %v4517_v41  ;;  %v988_v24 = vmul.f32 %v10528_v14, %v10230_v13  ;;  %v8223_v33 = vadd.f32 %v8181_v6, %v10531_v52  ;;  %v10537_v7 = vld [vmem:[#allocation24_spill] sm:$0xff]  ;;  %v10541_v52 = vld [vmem:[#allocation11_spill] sm:$0xff] }
 0x3a6   :  { %v5999_v34 = vpop.eup %5998  ;;  %v4521_v3 = vsel %vm4520_vm5, %v4366_v28, %v4519_v55  ;;  %v10203_v25 = vmax.f32 %v8208_v40, 0.0  ;;  %v8214_v9 = vperm.slane %v10195_v10, 0  ;;  %v8229_v8 = vadd.f32 %v8181_v6, %v10532_v37 }
 0x3a7   :  { %v4368_v19 = vmul.f32 %v5999_v34, %v3010_v61  ;;  %v4523_v17 = vsel %vm4522_vm6, %v4367_v57, %v4521_v3  ;;  %v996_v12 = vsel %vm52_vm0, %v988_v24, 0.0  ;;  %v10220_v46 = vmax.f32 %v8223_v33, 0.0  ;;  %v10539_v24 = vld [vmem:[#allocation16_spill] sm:$0xff] }
 0x3a8   :  { %10530 = vst [vmem:[#allocation59_spill] sm:$0xff] %v8214_v9  ;;  %v1251_v26 = vmul.f32 %v8214_v9, %v10203_v25  ;;  %v8233_v35 = vadd.f32 %v8181_v6, %v10533_v51  ;;  %v10231_v44 = vmax.f32 %v8229_v8, 0.0  ;;  %v8248_v48 = vadd.f32 %v8181_v6, %v10534_v53  ;;  %v10557_v25 = vld [vmem:[#allocation35_spill] sm:$0xff] }
 0x3a9   :  { %v6001_v60 = vpop.eup %6000  ;;  %v4525_v0 = vsel %vm4524_vm7, %v4368_v19, %v4523_v17  ;;  %v1259_v43 = vmul.f32 %v8214_v9, %v10220_v46  ;;  %v8260_v29 = vadd.f32 %v8181_v6, %v10535_v50  ;;  %v8269_v28 = vadd.f32 %v8181_v6, %v10537_v7  ;;  %v4573_v19 = vpop.permute.xlu2 %4572 }
 0x3aa   :  { %v4369_v5 = vmul.f32 %v6001_v60, %v3017_v54  ;;  %v8204_v15 = vpop.f32.mrf.mxu2  ;;  %v10218_v27 = vmax.f32 %v8233_v35, 0.0  ;;  %v987_v30 = vmul.f32 %v10528_v14, %v10231_v44  ;;  %v10215_v18 = vmax.f32 %v8248_v48, 0.0  ;;  %v4571_v17 = vpop.permute.xlu0 %4570  ;;  %v10538_v60 = vld [vmem:[#allocation53_spill] sm:$0xff] }
 0x3ab   :  { %10536 = vst [vmem:[#allocation62_spill] sm:$0xff] %v8260_v29  ;;  %v10200_v41 = vmax.f32 %v8260_v29, 0.0  ;;  %v10223_v34 = vmax.f32 %v8269_v28, 0.0  ;;  %v8303_v37 = vadd.f32 %v8181_v6, %v10541_v52 }
 0x3ac   :  { %v4527_v39 = vsel %vm4526_vm8, %v4369_v5, %v4525_v0  ;;  %997 = vadd.xlane.f32.xlu1 %v996_v12  ;;  %v993_v4 = vsel %vm52_vm0, %v987_v30, 0.0  ;;  %v1243_v58 = vmul.f32 %v8214_v9, %v10218_v27  ;;  %v1245_v16 = vmul.f32 %v8214_v9, %v10215_v18 }
 0x3ad   :  { %4564 = vrot.lane.b32.xlu2 %v4527_v39, %s6312_s7  ;;  %v1258_v61 = vmul.f32 %v8214_v9, %v10200_v41  ;;  %v1253_v54 = vmul.f32 %v8214_v9, %v10223_v34  ;;  %v8286_v0 = vadd.f32 %v8181_v6, %v10538_v60  ;;  %v8291_v5 = vadd.f32 %v8181_v6, %v10539_v24 }
 0x3ae   :  { %v8345_v24 = vadd.f32 %v8181_v6, %v7857_v20  ;;  %v8359_v20 = vadd.f32 %v8181_v6, %v7926_v31 }
 0x3af   :  { %10540 = vst [vmem:[#allocation61_spill] sm:$0xff] %v8291_v5  ;;  %v10222_v32 = vmax.f32 %v8286_v0, 0.0 }
 0x3b1   :  { %v1260_v51 = vmul.f32 %v8214_v9, %v10222_v32 }
 0x3b2   :  { %v8216_v56 = vpop.f32.mrf.mxu2 }
 0x3ba   :  { %v8238_v59 = vpop.f32.mrf.mxu2 }
 0x3c2   :  { %v8255_v63 = vpop.f32.mrf.mxu2 }
 0x3c5   :  { %1541 = vrot.lane.b32.xlu1 %v1251_v26, %s6312_s7  ;;  %v10198_v26 = vmax.f32 %v8291_v5, 0.0 }
 0x3c7   :  { %v1249_v53 = vmul.f32 %v8214_v9, %v10198_v26  ;;  %v10551_v26 = vld [vmem:[#allocation6_spill] sm:$0xff] }
 0x3ca   :  { %v811_v2 = vpop.f32.mrf.mxu2 }
 0x3cb   :  { %v8275_v57 = vadd.f32 %v8181_v6, %v811_v2 }
 0x3cd   :  { %1557 = vrot.lane.b32.xlu1 %v1259_v43, %s6312_s7  ;;  %v10217_v3 = vmax.f32 %v8275_v57, 0.0  ;;  %v10542_v43 = vld [vmem:[#allocation5_spill] sm:$0xff] }
 0x3ce   :  { %v8311_v30 = vadd.f32 %v8181_v6, %v10542_v43 }
 0x3cf   :  { %v1236_v39 = vmul.f32 %v8214_v9, %v10217_v3 }
 0x3d5   :  { %1525 = vrot.lane.b32.xlu1 %v1243_v58, %s6312_s7  ;;  %v10213_v58 = vmax.f32 %v8311_v30, 0.0 }
 0x3d6   :  { %994 = vadd.xlane.f32.xlu2 %v993_v4  ;;  %v10225_v4 = vmax.f32 %v8303_v37, 0.0 }
 0x3d7   :  { %v1239_v7 = vmul.f32 %v8214_v9, %v10213_v58 }
 0x3d8   :  { %v1244_v50 = vmul.f32 %v8214_v9, %v10225_v4 }
 0x3dd   :  { %1529 = vrot.lane.b32.xlu1 %v1245_v16, %s6312_s7  ;;  %v10543_v16 = vld [vmem:[#allocation7_spill] sm:$0xff] }
 0x3de   :  { %v8325_v2 = vadd.f32 %v8181_v6, %v10543_v16  ;;  %v10545_v16 = vld [vmem:[#allocation40_spill] sm:$0xff] }
 0x3df   :  { %v8374_v31 = vadd.f32 %v8181_v6, %v10545_v16  ;;  %v8404_v16 = vadd.f32 %v8181_v6, %v7824_v42 }
 0x3e0   :  { %v4575_v55 = vpop.permute.xlu1 %4574 }
 0x3e1   :  { %5628 = vmatpush.xpose.msk.msrb.mxu3 %vm52_vm0, %v4575_v55  ;;  %4647 = vmatpush.msrb.mxu0 %v4575_v55  ;;  %v8335_v55 = vadd.f32 %v8181_v6, %v8190_v62  ;;  %10546 = vst [vmem:[#allocation70_spill] sm:$0xff] %v8374_v31 }
 0x3e2   :  { %10550 = vst [vmem:[#allocation71_spill] sm:$0xff] %v8404_v16 }
 0x3e3   :  { %4648 = vmatpush.msrb.mxu0 %v4573_v19 }
 0x3e5   :  { %1555 = vrot.lane.b32.xlu1 %v1258_v61, %s6312_s7  ;;  %5629 = vmatpush.xpose.msk.msrb.mxu3 %vm52_vm0, %v4573_v19  ;;  %v10209_v61 = vmax.f32 %v8325_v2, 0.0 }
 0x3e6   :  { %4649 = vmatpush.msrb.mxu0 %v4571_v17 }
 0x3e7   :  { %v1240_v19 = vmul.f32 %v8214_v9, %v10209_v61  ;;  %v10563_v61 = vld [vmem:[#allocation17_spill] sm:$0xff] }
 0x3e9   :  { %5630 = vmatpush.xpose.msk.msrb.mxu3 %vm52_vm0, %v4571_v17  ;;  %v10207_v17 = vmax.f32 %v8335_v55, 0.0 }
 0x3eb   :  { %v1230_v62 = vmul.f32 %v8214_v9, %v10207_v17  ;;  %v813_v17 = vpop.f32.mrf.mxu2 }
 0x3ec   :  { %v4569_v12 = vpop.permute.xlu1 %4568 }
 0x3ed   :  { %1511 = vrot.lane.b32.xlu1 %v1236_v39, %s6312_s7  ;;  %4650 = vmatpush.msrb.mxu0 %v4569_v12 }
 0x3ee   :  { %1545 = vrot.lane.b32.xlu2 %v1253_v54, %s6312_s7  ;;  %5631 = vmatpush.xpose.msk.msrb.mxu3 %vm52_vm0, %v4569_v12  ;;  %v10210_v12 = vmax.f32 %v8345_v24, 0.0 }
 0x3f0   :  { %v1219_v52 = vmul.f32 %v8214_v9, %v10210_v12  ;;  %v8490_v12 = vadd.f32 %v8181_v6, %v10563_v61 }
 0x3f2   :  { %10564 = vst [vmem:[#allocation72_spill] sm:$0xff] %v8490_v12 }
 0x3f4   :  { %v4463_v39 = vpop.permute.xlu1 %4462 }
 0x3f5   :  { %1537 = vrot.lane.b32.xlu1 %v1249_v53, %s6312_s7  ;;  %v8368_v53 = vadd.f32 %v8181_v6, %v8238_v59 }
 0x3f6   :  { %1559 = vrot.lane.b32.xlu2 %v1260_v51, %s6312_s7  ;;  %v10205_v51 = vmax.f32 %v8359_v20, 0.0 }
 0x3f7   :  { %10544 = vst [vmem:[#allocation67_spill] sm:$0xff] %v8368_v53 }
 0x3f8   :  { %v1221_v43 = vmul.f32 %v8214_v9, %v10205_v51  ;;  %v10559_v51 = vld [vmem:[#allocation13_spill] sm:$0xff] }
 0x3fd   :  { %1517 = vrot.lane.b32.xlu1 %v1239_v7, %s6312_s7 }
 0x3fe   :  { %1527 = vrot.lane.b32.xlu2 %v1244_v50, %s6312_s7  ;;  %v10197_v50 = vmax.f32 %v8368_v53, 0.0 }
 0x400   :  { %v1234_v7 = vmul.f32 %v8214_v9, %v10197_v50 }
 0x405   :  { %1519 = vrot.lane.b32.xlu1 %v1240_v19, %s6312_s7  ;;  %v10202_v19 = vmax.f32 %v8374_v31, 0.0 }
 0x407   :  { %v4565_v60 = vpop.permute.xlu2 %4564  ;;  %v1212_v59 = vmul.f32 %v8214_v9, %v10202_v19 }
 0x409   :  { %v4567_v54 = vpop.permute.xlu0 %4566 }
 0x40a   :  { %4651 = vmatpush.msrb.mxu0 %v4567_v54  ;;  %5632 = vmatpush.xpose.msk.msrb.mxu3 %vm52_vm0, %v4567_v54  ;;  %v8386_v54 = vadd.f32 %v8181_v6, %v8062_v38 }
 0x40c   :  { %4652 = vmatpush.msrb.mxu0 %v4565_v60  ;;  %10547 = vst [vmem:[#allocation64_spill] sm:$0xff] %v8386_v54 }
 0x40d   :  { %1499 = vrot.lane.b32.xlu1 %v1230_v62, %s6312_s7  ;;  %v10548_v62 = vld [vmem:[#allocation52_spill] sm:$0xff] }
 0x40e   :  { %5633 = vmatpush.xpose.msk.msrb.mxu3 %vm52_vm0, %v4565_v60  ;;  %v10196_v60 = vmax.f32 %v8386_v54, 0.0 }
 0x411   :  { %5634 = vmatmul.msk.f32.vlgmr.msrb.gmra.mxu3 %vm52_vm0, %v4463_v39  ;;  %v8392_v39 = vadd.f32 %v8181_v6, %v10548_v62 }
 0x413   :  { %10549 = vst [vmem:[#allocation51_spill] sm:$0xff] %v8392_v39 }
 0x415   :  { %1477 = vrot.lane.b32.xlu1 %v1219_v52, %s6312_s7  ;;  %v1225_v52 = vmul.f32 %v8214_v9, %v10196_v60 }
 0x41d   :  { %1481 = vrot.lane.b32.xlu1 %v1221_v43, %s6312_s7  ;;  %v10201_v43 = vmax.f32 %v8392_v39, 0.0 }
 0x41f   :  { %v1215_v38 = vmul.f32 %v8214_v9, %v10201_v43 }
 0x425   :  { %1507 = vrot.lane.b32.xlu1 %v1234_v7, %s6312_s7  ;;  %v10199_v7 = vmax.f32 %v8404_v16, 0.0 }
 0x42d   :  { %1463 = vrot.lane.b32.xlu1 %v1212_v59, %s6312_s7  ;;  %v1218_v59 = vmul.f32 %v8214_v9, %v10199_v7  ;;  %v8419_v7 = vadd.f32 %v8181_v6, %v10551_v26 }
 0x435   :  { %1489 = vrot.lane.b32.xlu1 %v1225_v52, %s6312_s7 }
 0x43d   :  { %1469 = vrot.lane.b32.xlu1 %v1215_v38, %s6312_s7 }
 0x445   :  { %1475 = vrot.lane.b32.xlu1 %v1218_v59, %s6312_s7 }
 0x449   :  { %v8412_v62 = vpop.xlane.xlu2 %994 }
 0x44a   :  { %v1011_v58 = vrot.slane %v8412_v62, 4 }
 0x451   :  { %v1546_v52 = vpop.permute.xlu2 %1545 }
 0x452   :  { %v1937_v10 = vsel %vm52_vm0, %v1546_v52, 0.0  ;;  %v10552_v52 = vld [vmem:[#allocation19_spill] sm:$0xff] }
 0x459   :  { %v1560_v60 = vpop.permute.xlu2 %1559 }
 0x45a   :  { %v1958_v42 = vsel %vm52_vm0, %v1560_v60, 0.0 }
 0x461   :  { %v1528_v50 = vpop.permute.xlu2 %1527 }
 0x462   :  { %v1910_v38 = vsel %vm52_vm0, %v1528_v50, 0.0 }
 0x46f   :  { %1938 = vadd.xlane.f32.xlu1 %v1937_v10  ;;  %v10227_v10 = vmax.f32 %v8419_v7, 0.0 }
 0x471   :  { %v989_v60 = vmul.f32 %v10528_v14, %v10227_v10 }
 0x473   :  { %v999_v50 = vsel %vm52_vm0, %v989_v60, 0.0 }
 0x477   :  { %1959 = vadd.xlane.f32.xlu1 %v1958_v42  ;;  %v8432_v42 = vadd.f32 %v8181_v6, %v10552_v52 }
 0x479   :  { %v10219_v26 = vmax.f32 %v8432_v42, 0.0 }
 0x47f   :  { %1911 = vadd.xlane.f32.xlu1 %v1910_v38  ;;  %v1252_v38 = vmul.f32 %v8214_v9, %v10219_v26  ;;  %v8519_v26 = vadd.f32 %v8181_v6, %v8202_v23  ;;  %v8531_v23 = vadd.f32 %v8181_v6, %v8204_v15 }
 0x481   :  { %10568 = vst [vmem:[#allocation77_spill] sm:$0xff] %v8519_v26  ;;  %v10228_v4 = vmax.f32 %v8531_v23, 0.0 }
 0x482   :  { %10569 = vst [vmem:[#allocation63_spill] sm:$0xff] %v8531_v23 }
 0x494   :  { %v8421_v59 = vpop.f32.mrf.mxu3 }
 0x495   :  { %v4615_v41 = vsel %vm4614_vm10, %v8421_v59, -inf }
 0x496   :  { %4616 = vmax.xlane.f32.xlu0 %v4615_v41  ;;  %v10553_v41 = vld [vmem:[#allocation28_spill] sm:$0xff] }
 0x497   :  { %v8440_v43 = vadd.f32 %v8181_v6, %v10553_v41 }
 0x499   :  { %10554 = vst [vmem:[#allocation60_spill] sm:$0xff] %v8440_v43  ;;  %v10204_v14 = vmax.f32 %v8440_v43, 0.0 }
 0x49b   :  { %v1254_v60 = vmul.f32 %v8214_v9, %v10204_v14 }
 0x49e   :  { %1000 = vadd.xlane.f32.xlu0 %v999_v50  ;;  %v10555_v50 = vld [vmem:[#allocation31_spill] sm:$0xff] }
 0x49f   :  { %v8449_v52 = vadd.f32 %v8181_v6, %v10555_v50  ;;  %v8464_v50 = vadd.f32 %v8181_v6, %v10559_v51 }
 0x4a1   :  { %10556 = vst [vmem:[#allocation66_spill] sm:$0xff] %v8449_v52  ;;  %v10206_v19 = vmax.f32 %v8449_v52, 0.0 }
 0x4a2   :  { %10560 = vst [vmem:[#allocation76_spill] sm:$0xff] %v8464_v50 }
 0x4a3   :  { %v1255_v41 = vmul.f32 %v8214_v9, %v10206_v19  ;;  %v10211_v19 = vmax.f32 %v8464_v50, 0.0 }
 0x4b2   :  { %1543 = vrot.lane.b32.xlu0 %v1252_v38, %s6312_s7  ;;  %v8458_v38 = vadd.f32 %v8181_v6, %v10557_v25  ;;  %v8473_v25 = vadd.f32 %v8181_v6, %v8255_v63 }
 0x4b4   :  { %10558 = vst [vmem:[#allocation69_spill] sm:$0xff] %v8458_v38  ;;  %v10208_v14 = vmax.f32 %v8458_v38, 0.0  ;;  %v10212_v51 = vmax.f32 %v8473_v25, 0.0 }
 0x4b5   :  { %10561 = vst [vmem:[#allocation68_spill] sm:$0xff] %v8473_v25 }
 0x4ba   :  { %1547 = vrot.lane.b32.xlu0 %v1254_v60, %s6312_s7  ;;  %v1256_v60 = vmul.f32 %v8214_v9, %v10208_v14  ;;  %v1235_v14 = vmul.f32 %v8214_v9, %v10212_v51  ;;  %v998_v51 = vpop.xlane.xlu1 %997 }
 0x4c2   :  { %1549 = vrot.lane.b32.xlu0 %v1255_v41, %s6312_s7  ;;  %v1246_v41 = vmul.f32 %v8214_v9, %v10211_v19  ;;  %v10216_v19 = vmax.f32 %v8490_v12, 0.0 }
 0x4ca   :  { %1551 = vrot.lane.b32.xlu0 %v1256_v60, %s6312_s7  ;;  %v8484_v60 = vadd.f32 %v8181_v6, %v813_v17  ;;  %v1250_v17 = vmul.f32 %v8214_v9, %v10216_v19  ;;  %v1017_v19 = vrot.slane %v998_v51, 4 }
 0x4cc   :  { %10562 = vst [vmem:[#allocation73_spill] sm:$0xff] %v8484_v60  ;;  %v10214_v63 = vmax.f32 %v8484_v60, 0.0  ;;  %v1018_v3 = vmax.f32 %v998_v51, %v1017_v19 }
 0x4ce   :  { %v1019_v46 = vrot.slane %v1018_v3, 2 }
 0x4d0   :  { %v1020_v32 = vmax.f32 %v1018_v3, %v1019_v46  ;;  %v1232_v3 = vmul.f32 %v8214_v9, %v10228_v4 }
 0x4d2   :  { %1531 = vrot.lane.b32.xlu0 %v1246_v41, %s6312_s7  ;;  %v1237_v41 = vmul.f32 %v8214_v9, %v10214_v63  ;;  %v10566_v63 = vld [vmem:[#allocation8_spill] sm:$0xff]  ;;  %v1021_v34 = vrot.slane %v1020_v32, 1 }
 0x4da   :  { %1509 = vrot.lane.b32.xlu0 %v1235_v14, %s6312_s7  ;;  %v8502_v14 = vadd.f32 %v8181_v6, %v8154_v21  ;;  %v1012_v21 = vmax.f32 %v8412_v62, %v1011_v58 }
 0x4dc   :  { %10565 = vst [vmem:[#allocation75_spill] sm:$0xff] %v8502_v14  ;;  %v10221_v61 = vmax.f32 %v8502_v14, 0.0  ;;  %v1013_v27 = vrot.slane %v1012_v21, 2 }
 0x4de   :  { %v1228_v18 = vmul.f32 %v8214_v9, %v10221_v61  ;;  %v1014_v61 = vmax.f32 %v1012_v21, %v1013_v27  ;;  %v10570_v21 = vld [vmem:[#allocation57_spill] sm:$0xff] }
 0x4df   :  { %v8538_v46 = vadd.f32 %v8181_v6, %v10570_v21 }
 0x4e0   :  { %v1015_v58 = vrot.slane %v1014_v61, 1 }
 0x4e1   :  { %10571 = vst [vmem:[#allocation78_spill] sm:$0xff] %v8538_v46 }
 0x4e2   :  { %1513 = vrot.lane.b32.xlu0 %v1237_v41, %s6312_s7  ;;  %v8509_v41 = vadd.f32 %v8181_v6, %v10566_v63 }
 0x4e4   :  { %10567 = vst [vmem:[#allocation74_spill] sm:$0xff] %v8509_v41 }
 0x4ea   :  { %1539 = vrot.lane.b32.xlu0 %v1250_v17, %s6312_s7  ;;  %v10224_v17 = vmax.f32 %v8509_v41, 0.0 }
 0x4ec   :  { %v1241_v63 = vmul.f32 %v8214_v9, %v10224_v17  ;;  %v1016_v17 = vmax.f32 %v1014_v61, %v1015_v58  ;;  %v8545_v58 = vpop.permute.xlu1 %1541 }
 0x4ee   :  { %v1047_v27 = vsub.f32 %v8412_v62, %v1016_v17  ;;  %v10572_v17 = vld [vmem:[#allocation34_spill] sm:$0xff] }
 0x4f0   :  { %v1053_v61 = vmul.f32 1.442695, %v1047_v27 }
 0x4f2   :  { %1495 = vrot.lane.b32.xlu0 %v1228_v18, %s6312_s7  ;;  %v10226_v18 = vmax.f32 %v8519_v26, 0.0 }
 0x4f4   :  { %v1231_v19 = vmul.f32 %v8214_v9, %v10226_v18 }
 0x4fa   :  { %1521 = vrot.lane.b32.xlu0 %v1241_v63, %s6312_s7  ;;  %v1022_v63 = vmax.f32 %v1020_v32, %v1021_v34  ;;  %v10229_v34 = vmax.f32 %v8538_v46, 0.0 }
 0x4fc   :  { %v1048_v18 = vsub.f32 %v998_v51, %v1022_v63  ;;  %v1222_v51 = vmul.f32 %v8214_v9, %v10229_v34 }
 0x4fe   :  { %v1055_v62 = vmul.f32 1.442695, %v1048_v18 }
 0x502   :  { %1501 = vrot.lane.b32.xlu0 %v1231_v19, %s6312_s7  ;;  %v8550_v19 = vadd.f32 %v8181_v6, %v10572_v17 }
 0x504   :  { %10573 = vst [vmem:[#allocation37_spill] sm:$0xff] %v8550_v19 }
 0x509   :  { %v4617_v15 = vpop.xlane.xlu0 %4616 }
 0x50a   :  { %v4618_v10 = vsub.f32 %v8421_v59, %v4617_v15  ;;  %1503 = vrot.lane.b32.xlu0 %v1232_v3, %s6312_s7  ;;  %v8557_v3 = vpop.permute.xlu1 %1557 }
 0x50c   :  { %v4619_v32 = vmul.f32 1.442695, %v4618_v10  ;;  %v10237_v10 = vmax.f32 %v8550_v19, 0.0 }
 0x50e   :  { %6002 = vpow2.f32 %v4619_v32 }
 0x50f   :  { %6004 = vpow2.f32 %v1053_v61 }
 0x510   :  { %6006 = vpow2.f32 %v1055_v62  ;;  %v10574_v62 = vld [vmem:[#allocation45_spill] sm:$0xff] }
 0x511   :  { %v1001_v59 = vpop.xlane.xlu0 %1000  ;;  %v8563_v17 = vadd.f32 %v8181_v6, %v10574_v62  ;;  %v10577_v62 = vmax.f32 %v8185_v22, 0.0 }
 0x512   :  { %v1023_v63 = vrot.slane %v1001_v59, 4  ;;  %1483 = vrot.lane.b32.xlu0 %v1222_v51, %s6312_s7  ;;  %v1211_v51 = vmul.f32 %v8214_v9, %v10237_v10 }
 0x513   :  { %10575 = vst [vmem:[#allocation65_spill] sm:$0xff] %v8563_v17  ;;  %v10238_v44 = vmax.f32 %v8563_v17, 0.0 }
 0x514   :  { %v6003_v27 = vpop.eup %6002  ;;  %v1024_v18 = vmax.f32 %v1001_v59, %v1023_v63 }
 0x515   :  { %v6005_v21 = vpop.eup %6004  ;;  %5636 = vmatmul.msk.f32.vlgmr.msrb.gmra.mxu0 %vm4630_vm11, %v6003_v27  ;;  %v4621_v15 = vsel %vm4614_vm10, %v6003_v27, 0.0  ;;  %v10576_v27 = vmax.f32 %v8229_v8, 0.0 }
 0x516   :  { %v1025_v61 = vrot.slane %v1024_v18, 2  ;;  %4622 = vadd.xlane.f32.xlu2 %v4621_v15  ;;  %v6007_v32 = vpop.eup %6006  ;;  %v1113_v4 = vrot.slane %v6005_v21, 4 }
 0x517   :  { %v1119_v34 = vrot.slane %v6007_v32, 4  ;;  %v1065_v15 = vmul.f32 %v6005_v21, %v10576_v27  ;;  %v1066_v54 = vmul.f32 %v6007_v32, %v10577_v62  ;;  %v10581_v62 = vld [vmem:[#allocation50_spill] sm:$0xff] }
 0x518   :  { %v1026_v63 = vmax.f32 %v1024_v18, %v1025_v61  ;;  %v1114_v16 = vadd.f32 %v6005_v21, %v1113_v4  ;;  %v1213_v18 = vmul.f32 %v8214_v9, %v10238_v44  ;;  %v8577_v61 = vpop.permute.xlu1 %1525 }
 0x519   :  { %v1120_v53 = vadd.f32 %v6007_v32, %v1119_v34  ;;  %v1071_v4 = vsel %vm52_vm0, %v1065_v15, 0.0  ;;  %v10579_v34 = vld [vmem:[#allocation39_spill] sm:$0xff] }
 0x51a   :  { %v1027_v13 = vrot.slane %v1026_v63, 1  ;;  %1461 = vrot.lane.b32.xlu0 %v1211_v51, %s6312_s7  ;;  %v8581_v51 = vadd.f32 %v8181_v6, %v8104_v47  ;;  %v1115_v10 = vrot.slane %v1114_v16, 2  ;;  %v1072_v22 = vrot.slane %v1071_v4, 4 }
 0x51c   :  { %v1028_v45 = vmax.f32 %v1026_v63, %v1027_v13  ;;  %10578 = vst [vmem:[#allocation79_spill] sm:$0xff] %v8581_v51  ;;  %v1121_v13 = vrot.slane %v1120_v53, 2  ;;  %v10241_v21 = vmax.f32 %v8581_v51, 0.0  ;;  %v1116_v32 = vadd.f32 %v1115_v10, %v1114_v16 }
 0x51e   :  { %v1049_v19 = vsub.f32 %v1001_v59, %v1028_v45  ;;  %v1078_v45 = vsel %vm52_vm0, %v1066_v54, 0.0  ;;  %v8588_v59 = vadd.f32 %v8181_v6, %v10579_v34  ;;  %v1122_v63 = vadd.f32 %v1121_v13, %v1120_v53 }
 0x51f   :  { %v1079_v47 = vrot.slane %v1078_v45, 4  ;;  %v1117_v34 = vrot.slane %v1116_v32, 1  ;;  %v10583_v53 = vmax.f32 %v8419_v7, 0.0 }
 0x520   :  { %v1057_v8 = vmul.f32 1.442695, %v1049_v19  ;;  %10580 = vst [vmem:[#allocation42_spill] sm:$0xff] %v8588_v59  ;;  %v1073_v19 = vadd.f32 %v1072_v22, %v1071_v4  ;;  %v8601_v44 = vpop.permute.xlu1 %1529  ;;  %v1123_v4 = vrot.slane %v1122_v63, 1  ;;  %v10584_v22 = vld [vmem:[#allocation14_spill] sm:$0xff]  ;;  %v10585_v41 = vmax.f32 %v8588_v59, 0.0 }
 0x521   :  { %v1080_v13 = vadd.f32 %v1079_v47, %v1078_v45 }
 0x522   :  { %6008 = vpow2.f32 %v1057_v8  ;;  %1465 = vrot.lane.b32.xlu0 %v1213_v18, %s6312_s7  ;;  %v8595_v8 = vadd.f32 %v8181_v6, %v10581_v62  ;;  %v1226_v18 = vmul.f32 %v8214_v9, %v10241_v21  ;;  %v8608_v62 = vadd.f32 %v8181_v6, %v10584_v22 }
 0x523   :  { %v1074_v17 = vrot.slane %v1073_v19, 2  ;;  %v1257_v23 = vmul.f32 %v8214_v9, %v10585_v41  ;;  %v1081_v45 = vrot.slane %v1080_v13, 2  ;;  %v1124_v26 = vadd.f32 %v1123_v4, %v1122_v63  ;;  %v10586_v63 = vld [vmem:[#allocation15_spill] sm:$0xff] }
 0x524   :  { %v8591_v27 = vpop.permute.xlu0 %1543  ;;  %10582 = vst [vmem:[#allocation36_spill] sm:$0xff] %v8595_v8  ;;  %v10247_v21 = vmax.f32 %v8595_v8, 0.0 }
 0x525   :  { %v1075_v22 = vadd.f32 %v1074_v17, %v1073_v19  ;;  %v1082_v41 = vadd.f32 %v1081_v45, %v1080_v13  ;;  %v8627_v19 = vadd.f32 %v8181_v6, %v10586_v63  ;;  %v10587_v63 = vld [vmem:[#allocation3_spill] sm:$0xff] }
 0x527   :  { %v1076_v17 = vrot.slane %v1075_v22, 1  ;;  %v1083_v4 = vrot.slane %v1082_v41, 1  ;;  %v10255_v45 = vmax.f32 %v8627_v19, 0.0 }
 0x528   :  { %v6009_v15 = vpop.eup %6008 }
 0x529   :  { %v1125_v16 = vrot.slane %v6009_v15, 4  ;;  %v1067_v10 = vmul.f32 %v6009_v15, %v10583_v53  ;;  %v1118_v53 = vadd.f32 %v1117_v34, %v1116_v32 }
 0x52a   :  { %1491 = vrot.lane.b32.xlu0 %v1226_v18, %s6312_s7 }
 0x52b   :  { %v1126_v54 = vadd.f32 %v6009_v15, %v1125_v16  ;;  %v1085_v51 = vsel %vm52_vm0, %v1067_v10, 0.0  ;;  %v10256_v15 = vmax.f32 %v8608_v62, 0.0  ;;  %v1217_v16 = vmul.f32 %v8214_v9, %v10247_v21 }
 0x52c   :  { %v1086_v7 = vrot.slane %v1085_v51, 4  ;;  %6010 = vrcp.f32 %v1118_v53  ;;  %v8620_v12 = vpop.permute.xlu0 %1547  ;;  %v1077_v53 = vadd.f32 %v1076_v17, %v1075_v22  ;;  %v8638_v21 = vadd.f32 %v8181_v6, %v10587_v63 }
 0x52d   :  { %v1127_v47 = vrot.slane %v1126_v54, 2  ;;  %6012 = vrcp.f32 %v1124_v26 }
 0x52e   :  { %1553 = vrot.lane.b32.xlu2 %v1257_v23, %s6312_s7  ;;  %v1087_v18 = vadd.f32 %v1086_v7, %v1085_v51  ;;  %v8623_v23 = vpop.permute.xlu1 %1555 }
 0x52f   :  { %v1128_v46 = vadd.f32 %v1127_v47, %v1126_v54  ;;  %v1247_v54 = vmul.f32 %v8214_v9, %v10256_v15  ;;  %v1084_v47 = vadd.f32 %v1083_v4, %v1082_v41  ;;  %v8652_v4 = vadd.f32 %v8181_v6, %v8126_v36 }
 0x530   :  { %v1088_v10 = vrot.slane %v1087_v18, 2  ;;  %v8668_v36 = vadd.f32 %v8181_v6, %v8175_v11 }
 0x531   :  { %v1129_v32 = vrot.slane %v1128_v46, 1 }
 0x532   :  { %1473 = vrot.lane.b32.xlu0 %v1217_v16, %s6312_s7  ;;  %v1089_v34 = vadd.f32 %v1088_v10, %v1087_v18  ;;  %v6011_v13 = vpop.eup %6010 }
 0x533   :  { %v1130_v51 = vadd.f32 %v1129_v32, %v1128_v46  ;;  %v6013_v26 = vpop.eup %6012  ;;  %v1155_v46 = vmul.f32 %v6011_v13, %v1077_v53 }
 0x534   :  { %v1090_v7 = vrot.slane %v1089_v34, 1  ;;  %v8634_v10 = vpop.permute.xlu0 %1549  ;;  %v1156_v32 = vmul.f32 %v6013_v26, %v1084_v47  ;;  %v10249_v26 = vmax.f32 %v8652_v4, 0.0 }
 0x535   :  { %6014 = vrcp.f32 %v1130_v51  ;;  %v1248_v51 = vmul.f32 %v8214_v9, %v10255_v45 }
 0x536   :  { %1533 = vrot.lane.b32.xlu2 %v1247_v54, %s6312_s7  ;;  %v1091_v18 = vadd.f32 %v1090_v7, %v1089_v34  ;;  %v8643_v22 = vpop.permute.xlu1 %1511  ;;  %v4662_v17 = vsel %vm4514_vm2, %v1156_v32, %v1155_v46  ;;  %v10252_v34 = vmax.f32 %v8638_v21, 0.0  ;;  %v1227_v47 = vmul.f32 %v8214_v9, %v10249_v26  ;;  %v10588_v32 = vld [vmem:[#allocation9_spill] sm:$0xff] }
 0x537   :  { %v8678_v63 = vadd.f32 %v8181_v6, %v10588_v32 }
 0x538   :  { %v1238_v13 = vmul.f32 %v8214_v9, %v10252_v34  ;;  %v8737_v34 = vadd.f32 %v8181_v6, %v8021_v49  ;;  %v31_v49 = vld [vmem:[%s10086_s3 + $0x40] sm:$0xff] }
 0x539   :  { %10589 = vst [vmem:[#allocation38_spill] sm:$0xff] %v8678_v63  ;;  %v10250_v11 = vmax.f32 %v8678_v63, 0.0 }
 0x53a   :  { %10594 = vst [vmem:[#allocation56_spill] sm:$0xff] %v8737_v34 }
 0x53b   :  { %v6015_v16 = vpop.eup %6014  ;;  %v1242_v32 = vmul.f32 %v8214_v9, %v10250_v11  ;;  %v8719_v11 = vadd.f32 %v8181_v6, %v7983_v1 }
 0x53c   :  { %v1157_v54 = vmul.f32 %v6015_v16, %v1091_v18  ;;  %v8657_v7 = vpop.permute.xlu0 %1551  ;;  %v10248_v18 = vmax.f32 %v8668_v36, 0.0 }
 0x53d   :  { %10593 = vst [vmem:[#allocation55_spill] sm:$0xff] %v8719_v11 }
 0x53e   :  { %1535 = vrot.lane.b32.xlu2 %v1248_v51, %s6312_s7  ;;  %v4663_v41 = vsel %vm4516_vm3, %v1157_v54, %v4662_v17  ;;  %v8660_v53 = vpop.permute.xlu1 %1537  ;;  %v1229_v51 = vmul.f32 %v8214_v9, %v10248_v18  ;;  %v1955_v18 = vsel %vm52_vm0, %v8557_v3, 0.0  ;;  %v1907_v3 = vsel %vm52_vm0, %v8577_v61, 0.0 }
 0x53f   :  { %5637 = vmatpush.xpose.msk.msra.mxu1 %vm52_vm0, %v4663_v41  ;;  %v1934_v41 = vsel %vm52_vm0, %v8591_v27, 0.0  ;;  %v1913_v61 = vsel %vm52_vm0, %v8601_v44, 0.0  ;;  %v32_v44 = vld [vmem:[%s10086_s3 + $0x48] sm:$0xff] }
 0x543   :  { %4733 = vmatpush.msrb.mxu1 %v32_v44  ;;  %v1886_v44 = vsel %vm52_vm0, %v8643_v22, 0.0 }
 0x544   :  { %v8671_v46 = vpop.permute.xlu0 %1531 }
 0x545   :  { %4734 = vmatpush.msrb.mxu1 %v31_v49  ;;  %v1925_v49 = vsel %vm52_vm0, %v8660_v53, 0.0 }
 0x546   :  { %1515 = vrot.lane.b32.xlu2 %v1238_v13, %s6312_s7  ;;  %v8674_v16 = vpop.permute.xlu1 %1517  ;;  %v10590_v13 = vld [vmem:[#allocation58_spill] sm:$0xff] }
 0x547   :  { %v1895_v53 = vsel %vm52_vm0, %v8674_v16, 0.0 }
 0x54c   :  { %v8685_v54 = vpop.permute.xlu0 %1509 }
 0x54e   :  { %1493 = vrot.lane.b32.xlu2 %v1227_v47, %s6312_s7  ;;  %v8687_v17 = vpop.permute.xlu1 %1519  ;;  %v8693_v47 = vadd.f32 %v8181_v6, %v10590_v13 }
 0x54f   :  { %v1898_v16 = vsel %vm52_vm0, %v8687_v17, 0.0 }
 0x550   :  { %10591 = vst [vmem:[#allocation46_spill] sm:$0xff] %v8693_v47 }
 0x554   :  { %v8702_v26 = vpop.permute.xlu0 %1513 }
 0x556   :  { %1497 = vrot.lane.b32.xlu2 %v1229_v51, %s6312_s7  ;;  %v10251_v51 = vmax.f32 %v8693_v47, 0.0  ;;  %v8711_v13 = vpop.permute.xlu1 %1499 }
 0x558   :  { %v1220_v27 = vmul.f32 %v8214_v9, %v10251_v51 }
 0x55c   :  { %1935 = vadd.xlane.f32.xlu0 %v1934_v41  ;;  %v8709_v41 = vadd.f32 %v8181_v6, %v8216_v56  ;;  %v8724_v56 = vpop.permute.xlu0 %1539 }
 0x55e   :  { %1523 = vrot.lane.b32.xlu2 %v1242_v32, %s6312_s7  ;;  %10592 = vst [vmem:[#allocation54_spill] sm:$0xff] %v8709_v41  ;;  %v10253_v32 = vmax.f32 %v8709_v41, 0.0  ;;  %v10597_v41 = vld [vmem:[#allocation47_spill] sm:$0xff] }
 0x560   :  { %v1233_v51 = vmul.f32 %v8214_v9, %v10253_v32 }
 0x564   :  { %1956 = vadd.xlane.f32.xlu0 %v1955_v18  ;;  %v8727_v18 = vpop.permute.xlu1 %1477 }
 0x566   :  { %1479 = vrot.lane.b32.xlu2 %v1220_v27, %s6312_s7  ;;  %v10254_v27 = vmax.f32 %v8719_v11, 0.0 }
 0x568   :  { %v1223_v1 = vmul.f32 %v8214_v9, %v10254_v27  ;;  %v1952_v27 = vsel %vm52_vm0, %v8623_v23, 0.0 }
 0x56c   :  { %1908 = vadd.xlane.f32.xlu0 %v1907_v3  ;;  %v8740_v3 = vpop.permute.xlu0 %1495  ;;  %v8743_v32 = vpop.permute.xlu1 %1481 }
 0x56e   :  { %1505 = vrot.lane.b32.xlu2 %v1233_v51, %s6312_s7  ;;  %v10259_v51 = vmax.f32 %v8737_v34, 0.0 }
 0x570   :  { %v1224_v45 = vmul.f32 %v8214_v9, %v10259_v51  ;;  %v8773_v51 = vadd.f32 %v8181_v6, %v10597_v41 }
 0x572   :  { %10598 = vst [vmem:[#allocation80_spill] sm:$0xff] %v8773_v51 }
 0x574   :  { %1914 = vadd.xlane.f32.xlu0 %v1913_v61  ;;  %v10595_v61 = vld [vmem:[#allocation26_spill] sm:$0xff]  ;;  %v8762_v23 = vpop.permute.xlu0 %1521  ;;  %v8766_v8 = vpop.permute.xlu1 %1507 }
 0x576   :  { %1485 = vrot.lane.b32.xlu2 %v1223_v1, %s6312_s7  ;;  %v8755_v1 = vadd.f32 %v8181_v6, %v10595_v61 }
 0x578   :  { %10596 = vst [vmem:[#allocation32_spill] sm:$0xff] %v8755_v1  ;;  %v10261_v15 = vmax.f32 %v8755_v1, 0.0 }
 0x57a   :  { %v1214_v61 = vmul.f32 %v8214_v9, %v10261_v15 }
 0x57c   :  { %1953 = vadd.xlane.f32.xlu0 %v1952_v27  ;;  %v8779_v22 = vpop.permute.xlu0 %1501  ;;  %v8784_v15 = vpop.permute.xlu1 %1463 }
 0x57e   :  { %1487 = vrot.lane.b32.xlu2 %v1224_v45, %s6312_s7  ;;  %v10264_v45 = vmax.f32 %v8773_v51, 0.0 }
 0x580   :  { %v1216_v63 = vmul.f32 %v8214_v9, %v10264_v45 }
 0x584   :  { %1887 = vadd.xlane.f32.xlu0 %v1886_v44  ;;  %v8790_v14 = vpop.permute.xlu0 %1503 }
 0x586   :  { %1467 = vrot.lane.b32.xlu2 %v1214_v61, %s6312_s7 }
 0x589   :  { %v4623_v27 = vpop.xlane.xlu2 %4622 }
 0x58a   :  { %6016 = vrcp.f32 %v4623_v27  ;;  %v8793_v27 = vpop.permute.xlu1 %1489 }
 0x58c   :  { %1926 = vadd.xlane.f32.xlu0 %v1925_v49 }
 0x58e   :  { %1471 = vrot.lane.b32.xlu2 %v1216_v63, %s6312_s7 }
 0x590   :  { %v6017_v41 = vpop.eup %6016 }
 0x591   :  { %v1554_v6 = vpop.permute.xlu2 %1553 }
 0x592   :  { %v1949_v44 = vsel %vm52_vm0, %v1554_v6, 0.0  ;;  %v4654_v61 = vpop.f32.mrf.mxu0  ;;  %v4689_v6 = vld [vmem:[%s10091_s2] sm:$0xff] }
 0x593   :  { %v4658_v5 = vmul.f32 %v6017_v41, %v4654_v61  ;;  %1950 = vadd.xlane.f32.xlu1 %v1949_v44  ;;  %v8802_v41 = vpop.permute.xlu0 %1483 }
 0x594   :  { %1896 = vadd.xlane.f32.xlu0 %v1895_v53  ;;  %v4690_v53 = vld [vmem:[%s10091_s2 + $0x8] sm:$0xff] }
 0x595   :  { %5638 = vmatmul.msk.f32.vlgmr.msra.gmra.mxu1 %vm52_vm0, %v4658_v5  ;;  %v8804_v5 = vpop.permute.xlu1 %1469 }
 0x596   :  { %v1823_v1 = vsel %vm52_vm0, %v8804_v5, 0.0 }
 0x599   :  { %v1534_v49 = vpop.permute.xlu2 %1533 }
 0x59a   :  { %v1919_v63 = vsel %vm52_vm0, %v1534_v49, 0.0  ;;  %v1868_v49 = vsel %vm52_vm0, %v8711_v13, 0.0 }
 0x59b   :  { %1920 = vadd.xlane.f32.xlu1 %v1919_v63  ;;  %v8813_v17 = vpop.permute.xlu0 %1461 }
 0x59c   :  { %1899 = vadd.xlane.f32.xlu0 %v1898_v16  ;;  %v4691_v16 = vld [vmem:[%s10091_s2 + $0x10] sm:$0xff] }
 0x59d   :  { %5639 = vmatmul.msk.f32.vlgmr.msrb.gmra.mxu1 %vm4697_vm12, %v4689_v6  ;;  %v8821_v45 = vpop.permute.xlu1 %1475 }
 0x59e   :  { %v1832_v5 = vsel %vm52_vm0, %v8821_v45, 0.0 }
 0x5a1   :  { %v1536_v44 = vpop.permute.xlu2 %1535 }
 0x5a2   :  { %v1922_v61 = vsel %vm52_vm0, %v1536_v44, 0.0  ;;  %v1835_v44 = vsel %vm52_vm0, %v8727_v18, 0.0  ;;  %v1931_v18 = vsel %vm52_vm0, %v8545_v58, 0.0  ;;  %v1940_v58 = vsel %vm52_vm0, %v8620_v12, 0.0 }
 0x5a3   :  { %1923 = vadd.xlane.f32.xlu1 %v1922_v61  ;;  %v8832_v9 = vpop.permute.xlu0 %1465  ;;  %v1943_v12 = vsel %vm52_vm0, %v8634_v10, 0.0 }
 0x5a4   :  { %1869 = vadd.xlane.f32.xlu0 %v1868_v49  ;;  %v1841_v49 = vsel %vm52_vm0, %v8743_v32, 0.0  ;;  %v1880_v32 = vsel %vm52_vm0, %v8766_v8, 0.0  ;;  %v1814_v8 = vsel %vm52_vm0, %v8784_v15, 0.0  ;;  %v4695_v15 = vld [vmem:[%s10091_s2 + $0x30] sm:$0x3] }
 0x5a5   :  { %5640 = vmatmul.msk.f32.gmra.mxu1 %vm4697_vm12, %v4690_v53  ;;  %v4692_v53 = vld [vmem:[%s10091_s2 + $0x18] sm:$0xff] }
 0x5a9   :  { %v1516_v63 = vpop.permute.xlu2 %1515 }
 0x5aa   :  { %v1892_v6 = vsel %vm52_vm0, %v1516_v63, 0.0  ;;  %v8830_v63 = vpop.xlane.xlu1 %1938 }
 0x5ab   :  { %1893 = vadd.xlane.f32.xlu1 %v1892_v6 }
 0x5ac   :  { %1836 = vadd.xlane.f32.xlu0 %v1835_v44  ;;  %v4693_v44 = vld [vmem:[%s10091_s2 + $0x20] sm:$0xff] }
 0x5ad   :  { %5641 = vmatmul.msk.f32.gmra.mxu1 %vm4697_vm12, %v4691_v16 }
 0x5b1   :  { %v1494_v13 = vpop.permute.xlu2 %1493 }
 0x5b2   :  { %v1859_v61 = vsel %vm52_vm0, %v1494_v13, 0.0  ;;  %v8843_v13 = vpop.xlane.xlu1 %1959 }
 0x5b3   :  { %1860 = vadd.xlane.f32.xlu1 %v1859_v61  ;;  %v8845_v61 = vpop.permute.xlu0 %1491 }
 0x5b4   :  { %1842 = vadd.xlane.f32.xlu0 %v1841_v49 }
 0x5b5   :  { %5642 = vmatmul.msk.f32.gmra.mxu1 %vm4697_vm12, %v4692_v53 }
 0x5b7   :  { %1932 = vadd.xlane.f32.xlu2 %v1931_v18  ;;  %v4694_v18 = vld [vmem:[%s10091_s2 + $0x28] sm:$0xff] }
 0x5b9   :  { %v1498_v6 = vpop.permute.xlu2 %1497 }
 0x5ba   :  { %v1865_v16 = vsel %vm52_vm0, %v1498_v6, 0.0  ;;  %v2513_v6 = vrot.slane %v8830_v63, 4 }
 0x5bb   :  { %1866 = vadd.xlane.f32.xlu1 %v1865_v16 }
 0x5bc   :  { %1881 = vadd.xlane.f32.xlu0 %v1880_v32  ;;  %v2514_v16 = vmax.f32 %v8830_v63, %v2513_v6  ;;  %v8861_v32 = vpop.permute.xlu0 %1473 }
 0x5bd   :  { %5643 = vmatmul.msk.f32.gmra.mxu1 %vm4697_vm12, %v4693_v44  ;;  %v1912_v44 = vpop.xlane.xlu1 %1911 }
 0x5bf   :  { %1941 = vadd.xlane.f32.xlu2 %v1940_v58 }
 0x5c1   :  { %v1524_v53 = vpop.permute.xlu2 %1523 }
 0x5c2   :  { %v1904_v49 = vsel %vm52_vm0, %v1524_v53, 0.0  ;;  %v2459_v53 = vrot.slane %v1912_v44, 4 }
 0x5c3   :  { %1905 = vadd.xlane.f32.xlu1 %v1904_v49  ;;  %v1853_v49 = vsel %vm52_vm0, %v8793_v27, 0.0 }
 0x5c4   :  { %1815 = vadd.xlane.f32.xlu0 %v1814_v8  ;;  %v2460_v10 = vmax.f32 %v1912_v44, %v2459_v53  ;;  %v1946_v8 = vsel %vm52_vm0, %v8657_v7, 0.0  ;;  %v1916_v7 = vsel %vm52_vm0, %v8671_v46, 0.0 }
 0x5c5   :  { %5644 = vmatmul.msk.f32.gmra.mxu1 %vm4697_vm12, %v4694_v18  ;;  %v2515_v18 = vrot.slane %v2514_v16, 2 }
 0x5c7   :  { %1944 = vadd.xlane.f32.xlu2 %v1943_v12  ;;  %v2516_v6 = vmax.f32 %v2514_v16, %v2515_v18 }
 0x5c9   :  { %v1480_v58 = vpop.permute.xlu2 %1479  ;;  %v2517_v29 = vrot.slane %v2516_v6, 1 }
 0x5ca   :  { %v1838_v51 = vsel %vm52_vm0, %v1480_v58, 0.0  ;;  %v2461_v58 = vrot.slane %v2460_v10, 2 }
 0x5cb   :  { %1839 = vadd.xlane.f32.xlu1 %v1838_v51  ;;  %v2555_v51 = vrot.slane %v8843_v13, 4  ;;  %v2518_v16 = vmax.f32 %v2516_v6, %v2517_v29  ;;  %v1883_v29 = vsel %vm52_vm0, %v8685_v54, 0.0  ;;  %v1889_v54 = vsel %vm52_vm0, %v8702_v26, 0.0 }
 0x5cc   :  { %1854 = vadd.xlane.f32.xlu0 %v1853_v49  ;;  %v2462_v53 = vmax.f32 %v2460_v10, %v2461_v58 }
 0x5cd   :  { %5645 = vmatmul.msk.f32.gmra.mxu1 %vm4697_vm12, %v4695_v15  ;;  %v2556_v18 = vmax.f32 %v8843_v13, %v2555_v51 }
 0x5cf   :  { %1947 = vadd.xlane.f32.xlu2 %v1946_v8  ;;  %v8872_v12 = vpop.xlane.xlu0 %1935  ;;  %v2463_v8 = vrot.slane %v2462_v53, 1  ;;  %v2557_v10 = vrot.slane %v2556_v18, 2 }
 0x5d0   :  { %v2507_v6 = vrot.slane %v8872_v12, 4 }
 0x5d1   :  { %v1506_v59 = vpop.permute.xlu2 %1505  ;;  %v2464_v46 = vmax.f32 %v2462_v53, %v2463_v8 }
 0x5d2   :  { %v1877_v27 = vsel %vm52_vm0, %v1506_v59, 0.0  ;;  %v2653_v59 = vsub.f32 %v8830_v63, %v2518_v16  ;;  %v2508_v16 = vmax.f32 %v8872_v12, %v2507_v6 }
 0x5d3   :  { %1878 = vadd.xlane.f32.xlu1 %v1877_v27  ;;  %v2644_v63 = vsub.f32 %v1912_v44, %v2464_v46 }
 0x5d4   :  { %1824 = vadd.xlane.f32.xlu0 %v1823_v1  ;;  %v2845_v58 = vmul.f32 1.442695, %v2653_v59  ;;  %v2509_v59 = vrot.slane %v2508_v16, 2 }
 0x5d5   :  { %v2827_v8 = vmul.f32 1.442695, %v2644_v63 }
 0x5d6   :  { %6018 = vpow2.f32 %v2845_v58  ;;  %v2510_v46 = vmax.f32 %v2508_v16, %v2509_v59 }
 0x5d7   :  { %1917 = vadd.xlane.f32.xlu2 %v1916_v7  ;;  %v1957_v15 = vpop.xlane.xlu0 %1956  ;;  %v2558_v7 = vmax.f32 %v2556_v18, %v2557_v10  ;;  %6020 = vpow2.f32 %v2827_v8 }
 0x5d8   :  { %v2549_v49 = vrot.slane %v1957_v15, 4 }
 0x5d9   :  { %v1486_v1 = vpop.permute.xlu2 %1485  ;;  %v2559_v53 = vrot.slane %v2558_v7, 1 }
 0x5da   :  { %v2550_v27 = vmax.f32 %v1957_v15, %v2549_v49  ;;  %v1847_v34 = vsel %vm52_vm0, %v1486_v1, 0.0 }
 0x5db   :  { %1848 = vadd.xlane.f32.xlu1 %v1847_v34  ;;  %v2560_v10 = vmax.f32 %v2558_v7, %v2559_v53 }
 0x5dc   :  { %1833 = vadd.xlane.f32.xlu0 %v1832_v5  ;;  %v2551_v45 = vrot.slane %v2550_v27, 2  ;;  %v6019_v18 = vpop.eup %6018 }
 0x5dd   :  { %v4214_v6 = vrot.slane %v6019_v18, 4  ;;  %v2660_v26 = vsub.f32 %v8843_v13, %v2560_v10  ;;  %v6021_v7 = vpop.eup %6020 }
 0x5de   :  { %v2552_v5 = vmax.f32 %v2550_v27, %v2551_v45 }
 0x5df   :  { %1884 = vadd.xlane.f32.xlu2 %v1883_v29  ;;  %v8888_v51 = vpop.xlane.xlu0 %1908  ;;  %v4215_v53 = vadd.f32 %v6019_v18, %v4214_v6  ;;  %v2859_v59 = vmul.f32 1.442695, %v2660_v26 }
 0x5e0   :  { %v2553_v29 = vrot.slane %v2552_v5, 1  ;;  %v2453_v44 = vrot.slane %v8888_v51, 4 }
 0x5e1   :  { %v1488_v49 = vpop.permute.xlu2 %1487  ;;  %v4216_v60 = vrot.slane %v4215_v53, 2  ;;  %6022 = vpow2.f32 %v2859_v59 }
 0x5e2   :  { %v1850_v34 = vsel %vm52_vm0, %v1488_v49, 0.0  ;;  %v2554_v58 = vmax.f32 %v2552_v5, %v2553_v29  ;;  %v2454_v45 = vmax.f32 %v8888_v51, %v2453_v44  ;;  %v1928_v49 = vsel %vm52_vm0, %v8724_v56, 0.0 }
 0x5e3   :  { %1851 = vadd.xlane.f32.xlu1 %v1850_v34  ;;  %v2511_v34 = vrot.slane %v2510_v46, 1  ;;  %v4160_v29 = vrot.slane %v6021_v7, 4  ;;  %v1862_v56 = vsel %vm52_vm0, %v8740_v3, 0.0 }
 0x5e4   :  { %v2659_v16 = vsub.f32 %v1957_v15, %v2554_v58  ;;  %v2455_v8 = vrot.slane %v2454_v45, 2  ;;  %v10599_v15 = vmax.f32 %v8303_v37, 0.0  ;;  %v10600_v37 = vmax.f32 %v8269_v28, 0.0 }
 0x5e5   :  { %v2512_v5 = vmax.f32 %v2510_v46, %v2511_v34  ;;  %v4161_v46 = vadd.f32 %v6021_v7, %v4160_v29 }
 0x5e6   :  { %v2944_v58 = vmul.f32 %v6021_v7, %v10599_v15  ;;  %v2953_v7 = vmul.f32 %v6019_v18, %v10600_v37  ;;  %v10601_v15 = vmax.f32 %v8286_v0, 0.0 }
 0x5e7   :  { %1890 = vadd.xlane.f32.xlu2 %v1889_v54  ;;  %v8894_v1 = vpop.xlane.xlu0 %1914  ;;  %v2652_v6 = vsub.f32 %v8872_v12, %v2512_v5  ;;  %v4162_v3 = vrot.slane %v4161_v46, 2 }
 0x5e8   :  { %v2465_v10 = vrot.slane %v8894_v1, 4  ;;  %v3543_v59 = vsel %vm2961_vm1, %v2944_v58, 0.0  ;;  %v3606_v18 = vsel %vm2961_vm1, %v2953_v7, 0.0 }
 0x5e9   :  { %v1468_v27 = vpop.permute.xlu2 %1467 }
 0x5ea   :  { %v1820_v63 = vsel %vm52_vm0, %v1468_v27, 0.0  ;;  %v2857_v27 = vmul.f32 1.442695, %v2659_v16  ;;  %v2466_v34 = vmax.f32 %v8894_v1, %v2465_v10  ;;  %v2843_v16 = vmul.f32 1.442695, %v2652_v6 }
 0x5eb   :  { %1821 = vadd.xlane.f32.xlu1 %v1820_v63  ;;  %v2456_v63 = vmax.f32 %v2454_v45, %v2455_v8  ;;  %v4163_v10 = vadd.f32 %v4162_v3, %v4161_v46 }
 0x5ec   :  { %6024 = vpow2.f32 %v2857_v27  ;;  %v2467_v29 = vrot.slane %v2466_v34, 2 }
 0x5ed   :  { %v2457_v45 = vrot.slane %v2456_v63, 1  ;;  %6026 = vpow2.f32 %v2843_v16 }
 0x5ee   :  { %v2468_v37 = vmax.f32 %v2466_v34, %v2467_v29  ;;  %v1871_v34 = vsel %vm52_vm0, %v8779_v22, 0.0 }
 0x5ef   :  { %1929 = vadd.xlane.f32.xlu2 %v1928_v49  ;;  %v8902_v54 = vpop.xlane.xlu0 %1953  ;;  %v4217_v49 = vadd.f32 %v4216_v60, %v4215_v53  ;;  %v2458_v5 = vmax.f32 %v2456_v63, %v2457_v45  ;;  %v1901_v60 = vsel %vm52_vm0, %v8762_v23, 0.0 }
 0x5f0   :  { %v2469_v0 = vrot.slane %v2468_v37, 1 }
 0x5f1   :  { %v1472_v44 = vpop.permute.xlu2 %1471  ;;  %v4218_v12 = vrot.slane %v4217_v49, 1  ;;  %v2643_v28 = vsub.f32 %v8888_v51, %v2458_v5  ;;  %v10602_v51 = vmax.f32 %v8223_v33, 0.0 }
 0x5f2   :  { %v1826_v13 = vsel %vm52_vm0, %v1472_v44, 0.0  ;;  %v6023_v44 = vpop.eup %6022  ;;  %v2470_v22 = vmax.f32 %v2468_v37, %v2469_v0 }
 0x5f3   :  { %1827 = vadd.xlane.f32.xlu1 %v1826_v13  ;;  %v6025_v13 = vpop.eup %6024  ;;  %v4256_v27 = vrot.slane %v6023_v44, 4  ;;  %v2960_v63 = vmul.f32 %v6023_v44, %v10601_v15  ;;  %v4219_v58 = vadd.f32 %v4218_v12, %v4217_v49  ;;  %v2825_v50 = vmul.f32 1.442695, %v2643_v28 }
 0x5f4   :  { %v4250_v45 = vrot.slane %v6025_v13, 4  ;;  %v6027_v3 = vpop.eup %6026  ;;  %v2543_v49 = vrot.slane %v8902_v54, 4  ;;  %v2959_v12 = vmul.f32 %v6025_v13, %v10602_v51 }
 0x5f5   :  { %v3655_v23 = vsel %vm2961_vm1, %v2960_v63, 0.0  ;;  %v4257_v46 = vadd.f32 %v6023_v44, %v4256_v27  ;;  %6028 = vrcp.f32 %v4219_v58  ;;  %v4208_v27 = vrot.slane %v6027_v3, 4 }
 0x5f6   :  { %v3656_v39 = vrot.slane %v3655_v23, 4  ;;  %v4251_v5 = vadd.f32 %v6025_v13, %v4250_v45  ;;  %v3648_v63 = vsel %vm2961_vm1, %v2959_v12, 0.0  ;;  %6030 = vpow2.f32 %v2825_v50 }
 0x5f7   :  { %1863 = vadd.xlane.f32.xlu2 %v1862_v56  ;;  %v8911_v26 = vpop.xlane.xlu0 %1887  ;;  %v3544_v56 = vrot.slane %v3543_v59, 4  ;;  %v3649_v33 = vrot.slane %v3648_v63, 4  ;;  %v10603_v13 = vmax.f32 %v8432_v42, 0.0  ;;  %v1874_v50 = vsel %vm52_vm0, %v8790_v14, 0.0 }
 0x5f8   :  { %v2411_v8 = vrot.slane %v8911_v26, 4  ;;  %v3657_v58 = vadd.f32 %v3656_v39, %v3655_v23  ;;  %v4209_v39 = vadd.f32 %v6027_v3, %v4208_v27 }
 0x5f9   :  { %v3545_v16 = vadd.f32 %v3544_v56, %v3543_v59  ;;  %v4258_v56 = vrot.slane %v4257_v46, 2  ;;  %v2952_v45 = vmul.f32 %v6027_v3, %v10603_v13 }
 0x5fa   :  { %v2412_v53 = vmax.f32 %v8911_v26, %v2411_v8  ;;  %v4164_v8 = vrot.slane %v4163_v10, 1 }
 0x5fb   :  { %v3546_v7 = vrot.slane %v3545_v16, 2  ;;  %v8943_v51 = vpop.eup %6028  ;;  %v4259_v25 = vadd.f32 %v4258_v56, %v4257_v46  ;;  %v3599_v0 = vsel %vm2961_vm1, %v2952_v45, 0.0 }
 0x5fc   :  { %v2413_v11 = vrot.slane %v2412_v53, 2  ;;  %v4165_v44 = vadd.f32 %v4164_v8, %v4163_v10  ;;  %v3600_v45 = vrot.slane %v3599_v0, 4 }
 0x5fd   :  { %v8945_v10 = vadd.f32 %v3546_v7, %v3545_v16  ;;  %v6031_v7 = vpop.eup %6030 }
 0x5fe   :  { %v2414_v59 = vmax.f32 %v2412_v53, %v2413_v11  ;;  %v2544_v11 = vmax.f32 %v8902_v54, %v2543_v49  ;;  %v4252_v53 = vrot.slane %v4251_v5, 2  ;;  %6032 = vrcp.f32 %v4165_v44 }
 0x5ff   :  { %1902 = vadd.xlane.f32.xlu2 %v1901_v60  ;;  %v8921_v6 = vpop.xlane.xlu0 %1926  ;;  %v3607_v60 = vrot.slane %v3606_v18, 4  ;;  %v2645_v49 = vsub.f32 %v8894_v1, %v2470_v22  ;;  %v4210_v44 = vrot.slane %v4209_v39, 2  ;;  %v1844_v1 = vsel %vm52_vm0, %v8802_v41, 0.0 }
 0x600   :  { %v2415_v8 = vrot.slane %v2414_v59, 1  ;;  %v4253_v23 = vadd.f32 %v4252_v53, %v4251_v5  ;;  %v2545_v16 = vrot.slane %v2544_v11, 2  ;;  %v2489_v46 = vrot.slane %v8921_v6, 4 }
 0x601   :  { %v8938_v28 = vadd.f32 %v3607_v60, %v3606_v18  ;;  %v3658_v18 = vrot.slane %v3657_v58, 2  ;;  %v4260_v60 = vrot.slane %v4259_v25, 1 }
 0x602   :  { %v4254_v12 = vrot.slane %v4253_v23, 1 }
 0x603   :  { %v4261_v56 = vadd.f32 %v4260_v60, %v4259_v25  ;;  %v3659_v27 = vadd.f32 %v3658_v18, %v3657_v58  ;;  %v10604_v25 = vmax.f32 %v8233_v35, 0.0  ;;  %v2490_v18 = vmax.f32 %v8921_v6, %v2489_v46 }
 0x604   :  { %v8962_v53 = vpop.eup %6032  ;;  %v1811_v35 = vsel %vm52_vm0, %v8813_v17, 0.0 }
 0x605   :  { %v3660_v60 = vrot.slane %v3659_v27, 1 }
 0x606   :  { %v8933_v29 = vpop.xlane.xlu1 %1950 }
 0x607   :  { %1872 = vadd.xlane.f32.xlu2 %v1871_v34  ;;  %v8935_v15 = vpop.xlane.xlu0 %1896  ;;  %v3650_v34 = vadd.f32 %v3649_v33, %v3648_v63  ;;  %v2416_v63 = vmax.f32 %v2414_v59, %v2415_v8  ;;  %v2537_v14 = vrot.slane %v8933_v29, 4  ;;  %v4255_v33 = vadd.f32 %v4254_v12, %v4253_v23 }
 0x608   :  { %v2429_v42 = vrot.slane %v8935_v15, 4  ;;  %v2943_v8 = vmul.f32 %v6031_v7, %v10604_v25 }
 0x609   :  { %v3651_v37 = vrot.slane %v3650_v34, 2  ;;  %6034 = vrcp.f32 %v4255_v33  ;;  %v2636_v58 = vsub.f32 %v8911_v26, %v2416_v63  ;;  %v8977_v26 = vsel %vm52_vm0, %v8832_v9, 0.0 }
 0x60a   :  { %v2430_v59 = vmax.f32 %v8935_v15, %v2429_v42  ;;  %6036 = vrcp.f32 %v4261_v56  ;;  %v2538_v42 = vmax.f32 %v8933_v29, %v2537_v14  ;;  %v4154_v63 = vrot.slane %v6031_v7, 4 }
 0x60b   :  { %v3652_v3 = vadd.f32 %v3651_v37, %v3650_v34  ;;  %v2829_v34 = vmul.f32 1.442695, %v2645_v49  ;;  %v2546_v37 = vmax.f32 %v2544_v11, %v2545_v16  ;;  %v3601_v49 = vadd.f32 %v3600_v45, %v3599_v0 }
 0x60c   :  { %v2431_v11 = vrot.slane %v2430_v59, 2  ;;  %v2811_v56 = vmul.f32 1.442695, %v2636_v58  ;;  %v2539_v0 = vrot.slane %v2538_v42, 2  ;;  %v3661_v45 = vadd.f32 %v3660_v60, %v3659_v27 }
 0x60d   :  { %v3653_v23 = vrot.slane %v3652_v3, 1  ;;  %6038 = vpow2.f32 %v2829_v34  ;;  %v2547_v46 = vrot.slane %v2546_v37, 1  ;;  %v3602_v38 = vrot.slane %v3601_v49, 2 }
 0x60e   :  { %v8953_v5 = vpop.xlane.xlu1 %1920  ;;  %v2432_v47 = vmax.f32 %v2430_v59, %v2431_v11  ;;  %v4155_v58 = vadd.f32 %v6031_v7, %v4154_v63  ;;  %6040 = vpow2.f32 %v2811_v56  ;;  %v2540_v11 = vmax.f32 %v2538_v42, %v2539_v0 }
 0x60f   :  { %1875 = vadd.xlane.f32.xlu2 %v1874_v50  ;;  %v8956_v13 = vpop.xlane.xlu0 %1899  ;;  %v2477_v22 = vrot.slane %v8953_v5, 4  ;;  %v4211_v50 = vadd.f32 %v4210_v44, %v4209_v39  ;;  %v3536_v39 = vsel %vm2961_vm1, %v2943_v8, 0.0  ;;  %v2491_v44 = vrot.slane %v2490_v18, 2 }
 0x610   :  { %v2435_v16 = vrot.slane %v8956_v13, 4  ;;  %v3654_v14 = vadd.f32 %v3653_v23, %v3652_v3  ;;  %v3537_v8 = vrot.slane %v3536_v39, 4  ;;  %v2548_v43 = vmax.f32 %v2546_v37, %v2547_v46  ;;  %v8988_v23 = vld [vmem:[%s10089_s4 + $0x2] ss:$0 sm:$0xff] }
 0x611   :  { %v2478_v12 = vmax.f32 %v8953_v5, %v2477_v22  ;;  %v6035_v22 = vpop.eup %6034  ;;  %v4212_v17 = vrot.slane %v4211_v50, 1  ;;  %v2492_v27 = vmax.f32 %v2490_v18, %v2491_v44  ;;  %v2433_v37 = vrot.slane %v2432_v47, 1  ;;  %v36_v44 = vld [vmem:[%s10086_s3 + $0x68] sm:$0xff] }
 0x612   :  { %v8968_v41 = vpop.f32.mrf.mxu1  ;;  %v6037_v9 = vpop.eup %6036  ;;  %v4460_v34 = vmul.f32 %v6035_v22, %v3654_v14  ;;  %v2436_v52 = vmax.f32 %v8956_v13, %v2435_v16  ;;  %v9005_v42 = vadd.f32 %v3537_v8, %v3536_v39  ;;  %v2658_v14 = vsub.f32 %v8902_v54, %v2548_v43  ;;  %4798 = vmatpush.msra.mxu0 %v36_v44 }
 0x613   :  { %10605 = vst [vmem:[#allocation81_spill] sm:$0xff] %v8968_v41  ;;  %v2479_v25 = vrot.slane %v2478_v12, 2  ;;  %v4461_v3 = vmul.f32 %v6037_v9, %v3661_v45  ;;  %v8992_v31 = vpop.eup %6038  ;;  %v4213_v59 = vadd.f32 %v4212_v17, %v4211_v50  ;;  %v9003_v50 = vsel %vm52_vm0, %v8845_v61, 0.0 }
 0x614   :  { %v2437_v63 = vrot.slane %v2436_v52, 2  ;;  %v4166_v22 = vrot.slane %v8992_v31, 4  ;;  %v2493_v17 = vrot.slane %v2492_v27, 1  ;;  %v9014_v9 = vsel %vm52_vm0, %v8861_v32, 0.0 }
 0x615   :  { %v5015_v16 = vsel %vm4514_vm2, %v4461_v3, %v4460_v34  ;;  %v2480_v7 = vmax.f32 %v2478_v12, %v2479_v25  ;;  %v4156_v12 = vrot.slane %v4155_v58, 2  ;;  %v9016_v61 = vadd.f32 %v3602_v38, %v3601_v49  ;;  %v6041_v34 = vpop.eup %6040 }
 0x616   :  { %v8980_v33 = vpop.xlane.xlu1 %1923  ;;  %5028 = vrot.lane.b32.xlu1 %v5015_v16, %s6312_s7  ;;  %6042 = vrcp.f32 %v4213_v59  ;;  %v2541_v43 = vrot.slane %v2540_v11, 1  ;;  %v2434_v54 = vmax.f32 %v2432_v47, %v2433_v37  ;;  %v2438_v8 = vmax.f32 %v2436_v52, %v2437_v63 }
 0x617   :  { %1845 = vadd.xlane.f32.xlu2 %v1844_v1  ;;  %v8982_v41 = vpop.xlane.xlu0 %1869  ;;  %v2483_v1 = vrot.slane %v8980_v33, 4  ;;  %v2481_v39 = vrot.slane %v2480_v7, 1  ;;  %v2855_v16 = vmul.f32 1.442695, %v2658_v14  ;;  %v4167_v32 = vadd.f32 %v8992_v31, %v4166_v22 }
 0x618   :  { %v2375_v60 = vrot.slane %v8982_v41, 4  ;;  %v2494_v44 = vmax.f32 %v2492_v27, %v2493_v17  ;;  %v4112_v52 = vrot.slane %v6041_v34, 4  ;;  %v2542_v37 = vmax.f32 %v2540_v11, %v2541_v43 }
 0x619   :  { %v2484_v46 = vmax.f32 %v8980_v33, %v2483_v1  ;;  %v2482_v47 = vmax.f32 %v2480_v7, %v2481_v39  ;;  %v2639_v63 = vsub.f32 %v8935_v15, %v2434_v54  ;;  %v4168_v7 = vrot.slane %v4167_v32, 2 }
 0x61a   :  { %v2376_v56 = vmax.f32 %v8982_v41, %v2375_v60  ;;  %v4736_v18 = vpop.f32.mrf.mxu1  ;;  %v9019_v60 = vadd.f32 %v4156_v12, %v4155_v58  ;;  %v2439_v12 = vrot.slane %v2438_v8, 1  ;;  %v4113_v43 = vadd.f32 %v6041_v34, %v4112_v52 }
 0x61b   :  { %v4737_v45 = vadd.f32 %v8988_v23, %v4736_v18  ;;  %v2485_v3 = vrot.slane %v2484_v46, 2  ;;  %v2647_v15 = vsub.f32 %v8953_v5, %v2482_v47  ;;  %v2817_v5 = vmul.f32 1.442695, %v2639_v63 }
 0x61c   :  { %v2377_v0 = vrot.slane %v2376_v56, 2 }
 0x61d   :  { %6044 = vtanh.f32 %v4737_v45  ;;  %v2486_v27 = vmax.f32 %v2484_v46, %v2485_v3  ;;  %v10607_v45 = vmax.f32 %v8275_v57, 0.0  ;;  %v34_v3 = vld [vmem:[%s10086_s3 + $0x58] sm:$0xff] }
 0x61e   :  { %v9010_v25 = vpop.xlane.xlu1 %1893  ;;  %v2378_v38 = vmax.f32 %v2376_v56, %v2377_v0  ;;  %v9031_v56 = vpop.eup %6042  ;;  %v3609_v0 = vrot.slane %v8938_v28, 2  ;;  %6046 = vpow2.f32 %v2855_v16 }
 0x61f   :  { %1812 = vadd.xlane.f32.xlu2 %v1811_v35  ;;  %v2423_v18 = vrot.slane %v9010_v25, 4  ;;  %v35_v35 = vld [vmem:[%s10086_s3 + $0x60] sm:$0xff]  ;;  %v9026_v49 = vpop.xlane.xlu0 %1836  ;;  %10606 = vst [vmem:[#allocation82_spill] sm:$0xff] %v9031_v56  ;;  %v2936_v39 = vmul.f32 %v6041_v34, %v10607_v45  ;;  %v2440_v34 = vmax.f32 %v2438_v8, %v2439_v12  ;;  %v10609_v45 = vmax.f32 %v8248_v48, 0.0 }
 0x620   :  { %4799 = vmatpush.msra.mxu0 %v35_v35  ;;  %v2309_v58 = vrot.slane %v9026_v49, 4  ;;  %v2379_v11 = vrot.slane %v2378_v38, 1  ;;  %v9057_v56 = vadd.f32 %v4168_v7, %v4167_v32 }
 0x621   :  { %v2424_v59 = vmax.f32 %v9010_v25, %v2423_v18  ;;  %v2649_v18 = vsub.f32 %v8921_v6, %v2494_v44  ;;  %v2657_v6 = vsub.f32 %v8933_v29, %v2542_v37  ;;  %v2487_v44 = vrot.slane %v2486_v27, 1 }
 0x622   :  { %v2310_v17 = vmax.f32 %v9026_v49, %v2309_v58  ;;  %v4739_v35 = vpop.f32.mrf.mxu1  ;;  %v33_v58 = vld [vmem:[%s10086_s3 + $0x50] sm:$0xff]  ;;  %4800 = vmatpush.msra.mxu0 %v34_v3  ;;  %v2945_v14 = vmul.f32 %v8992_v31, %v10609_v45  ;;  %v3487_v29 = vsel %vm2961_vm1, %v2936_v39, 0.0  ;;  %v2833_v37 = vmul.f32 1.442695, %v2647_v15 }
 0x623   :  { %v2425_v22 = vrot.slane %v2424_v59, 2  ;;  %v9049_v57 = vpop.eup %6044  ;;  %v2837_v8 = vmul.f32 1.442695, %v2649_v18  ;;  %v2640_v12 = vsub.f32 %v8956_v13, %v2440_v34  ;;  %v4114_v31 = vrot.slane %v4113_v43, 2 }
 0x624   :  { %v2311_v54 = vrot.slane %v2310_v17, 2  ;;  %10608 = vst [vmem:[#allocation33_spill] sm:$0xff] %v9049_v57  ;;  %4801 = vmatpush.msra.mxu0 %v33_v58  ;;  %v2853_v32 = vmul.f32 1.442695, %v2657_v6  ;;  %v2488_v16 = vmax.f32 %v2486_v27, %v2487_v44  ;;  %v3550_v15 = vsel %vm2961_vm1, %v2945_v14, 0.0  ;;  %v9072_v3 = vpop.eup %6046 }
 0x625   :  { %v2426_v46 = vmax.f32 %v2424_v59, %v2425_v22  ;;  %v4740_v59 = vadd.f32 %v8988_v23, %v4739_v35  ;;  %5646 = vmatmul.msk.f32.vlgmr.msra.gmra.mxu0 %vm52_vm0, %v9049_v57  ;;  %v2819_v27 = vmul.f32 1.442695, %v2640_v12  ;;  %v4170_v58 = vrot.slane %v9057_v56, 1 }
 0x626   :  { %v9046_v1 = vpop.xlane.xlu1 %1860  ;;  %v2312_v47 = vmax.f32 %v2310_v17, %v2311_v54  ;;  %v3610_v54 = vadd.f32 %v3609_v0, %v8938_v28  ;;  %v4115_v6 = vadd.f32 %v4114_v31, %v4113_v43  ;;  %v2648_v14 = vsub.f32 %v8980_v33, %v2488_v16 }
 0x627   :  { %1818 = vadd.xlane.f32.xlu2 %v8977_v26  ;;  %v2427_v52 = vrot.slane %v2426_v46, 1  ;;  %v2357_v22 = vrot.slane %v9046_v1, 4  ;;  %v2380_v26 = vmax.f32 %v2378_v38, %v2379_v11  ;;  %6048 = vtanh.f32 %v4740_v59  ;;  %v9064_v38 = vpop.xlane.xlu0 %1842 }
 0x628   :  { %v2313_v17 = vrot.slane %v2312_v47, 1  ;;  %6050 = vpow2.f32 %v2817_v5  ;;  %v2321_v11 = vrot.slane %v9064_v38, 4  ;;  %v10611_v33 = vrot.slane %v9019_v60, 1 }
 0x629   :  { %v2428_v63 = vmax.f32 %v2426_v46, %v2427_v52  ;;  %v2358_v48 = vmax.f32 %v9046_v1, %v2357_v22  ;;  %v2630_v7 = vsub.f32 %v8982_v41, %v2380_v26  ;;  %v3488_v46 = vrot.slane %v3487_v29, 4 }
 0x62a   :  { %v2314_v39 = vmax.f32 %v2312_v47, %v2313_v17  ;;  %6052 = vpow2.f32 %v2833_v37  ;;  %v2322_v41 = vmax.f32 %v9064_v38, %v2321_v11  ;;  %v4742_v0 = vpop.f32.mrf.mxu1  ;;  %v9080_v34 = vpop.xlane.xlu2 %1932  ;;  %v4159_v22 = vadd.f32 %v10611_v33, %v9019_v60 }
 0x62b   :  { %v2359_v18 = vrot.slane %v2358_v48, 2  ;;  %v2638_v13 = vsub.f32 %v9010_v25, %v2428_v63  ;;  %6054 = vpow2.f32 %v2837_v8  ;;  %v2799_v25 = vmul.f32 1.442695, %v2630_v7 }
 0x62c   :  { %6056 = vpow2.f32 %v2853_v32  ;;  %v2323_v47 = vrot.slane %v2322_v41, 2  ;;  %v4743_v59 = vadd.f32 %v8988_v23, %v4742_v0  ;;  %v2501_v43 = vrot.slane %v9080_v34, 4 }
 0x62d   :  { %v2360_v35 = vmax.f32 %v2358_v48, %v2359_v18  ;;  %v9077_v5 = vpop.eup %6048  ;;  %v2815_v52 = vmul.f32 1.442695, %v2638_v13  ;;  %6058 = vpow2.f32 %v2819_v27  ;;  %v3551_v26 = vrot.slane %v3550_v15, 4 }
 0x62e   :  { %10610 = vst [vmem:[#allocation83_spill] sm:$0xff] %v9077_v5  ;;  %v9082_v44 = vpop.eup %6050  ;;  %5647 = vmatmul.msk.f32.gmra.mxu0 %vm52_vm0, %v9077_v5  ;;  %v2835_v8 = vmul.f32 1.442695, %v2648_v14  ;;  %v2324_v37 = vmax.f32 %v2322_v41, %v2323_v47  ;;  %6060 = vtanh.f32 %v4743_v59  ;;  %v2502_v17 = vmax.f32 %v9080_v34, %v2501_v43  ;;  %v9108_v27 = vpop.xlane.xlu1 %1866 }
 0x62f   :  { %1857 = vadd.xlane.f32.xlu2 %v9003_v50  ;;  %v2619_v50 = vsub.f32 %v9026_v49, %v2314_v39  ;;  %v2361_v28 = vrot.slane %v2360_v35, 1  ;;  %v3489_v49 = vadd.f32 %v3488_v46, %v3487_v29  ;;  %6062 = vpow2.f32 %v2799_v25 }
 0x630   :  { %v9091_v63 = vpop.eup %6052  ;;  %v3611_v48 = vrot.slane %v3610_v54, 1  ;;  %v4171_v32 = vadd.f32 %v4170_v58, %v9057_v56  ;;  %v4116_v16 = vrot.slane %v4115_v6, 1  ;;  %v4130_v60 = vrot.slane %v9082_v44, 4 }
 0x631   :  { %v2362_v45 = vmax.f32 %v2360_v35, %v2361_v28  ;;  %v2777_v12 = vmul.f32 1.442695, %v2619_v50  ;;  %v9094_v31 = vpop.eup %6054  ;;  %6064 = vpow2.f32 %v2815_v52  ;;  %v10612_v7 = vrot.slane %v9005_v42, 2 }
 0x632   :  { %v9099_v29 = vpop.eup %6056  ;;  %6066 = vrcp.f32 %v4159_v22  ;;  %v3490_v18 = vrot.slane %v3489_v49, 2  ;;  %v4178_v46 = vrot.slane %v9091_v63, 4  ;;  %v2325_v56 = vrot.slane %v2324_v37, 1 }
 0x633   :  { %v9104_v39 = vadd.f32 %v10612_v7, %v9005_v42  ;;  %v2627_v11 = vsub.f32 %v9046_v1, %v2362_v45  ;;  %6068 = vpow2.f32 %v2835_v8  ;;  %v2503_v13 = vrot.slane %v2502_v17, 2  ;;  %v6059_v35 = vpop.eup %6058 }
 0x634   :  { %6070 = vpow2.f32 %v2777_v12  ;;  %v3548_v42 = vrot.slane %v8945_v10, 1  ;;  %v9114_v58 = vpop.eup %6060  ;;  %v4117_v14 = vadd.f32 %v4116_v16, %v4115_v6  ;;  %v4131_v1 = vadd.f32 %v9082_v44, %v4130_v60 }
 0x635   :  { %10613 = vst [vmem:[#allocation84_spill] sm:$0xff] %v9114_v58  ;;  %6072 = vrcp.f32 %v4171_v32  ;;  %v3612_v25 = vadd.f32 %v3611_v48, %v3610_v54  ;;  %v6063_v50 = vpop.eup %6062  ;;  %v4190_v28 = vrot.slane %v9094_v31, 4  ;;  %v2793_v0 = vmul.f32 1.442695, %v2627_v11 }
 0x636   :  { %v2504_v52 = vmax.f32 %v2502_v17, %v2503_v13  ;;  %5648 = vmatmul.msk.f32.gmra.mxu0 %vm52_vm0, %v9114_v58  ;;  %v9121_v59 = vadd.f32 %v3490_v18, %v3489_v49  ;;  %v4179_v43 = vadd.f32 %v9091_v63, %v4178_v46  ;;  %v2326_v33 = vmax.f32 %v2324_v37, %v2325_v56  ;;  %v9143_v46 = vpop.xlane.xlu0 %1881 }
 0x637   :  { %1830 = vadd.xlane.f32.xlu2 %v9014_v9  ;;  %v9110_v9 = vadd.f32 %v3551_v26, %v3550_v15  ;;  %v2369_v15 = vrot.slane %v9108_v27, 4  ;;  %v6065_v47 = vpop.eup %6064  ;;  %v9125_v6 = vmul.f32 %v8943_v51, %v3612_v25  ;;  %v4136_v22 = vrot.slane %v6059_v35, 4 }
 0x638   :  { %10614 = vst [vmem:[#allocation22_spill] sm:$0xff] %v9121_v59  ;;  %v9127_v54 = vpop.eup %6066  ;;  %v2505_v45 = vrot.slane %v2504_v52, 1  ;;  %v3549_v8 = vadd.f32 %v3548_v42, %v8945_v10  ;;  %6074 = vrcp.f32 %v4117_v14  ;;  %v4238_v17 = vrot.slane %v9099_v29, 4 }
 0x639   :  { %v2370_v26 = vmax.f32 %v9108_v27, %v2369_v15  ;;  %v6069_v12 = vpop.eup %6068  ;;  %v4132_v49 = vrot.slane %v4131_v1, 2  ;;  %v4076_v48 = vrot.slane %v6063_v50, 4  ;;  %v9133_v37 = vadd.f32 %v9094_v31, %v4190_v28  ;;  %v4745_v28 = vpop.f32.mrf.mxu1 }
 0x63a   :  { %v6071_v32 = vpop.eup %6070  ;;  %v4124_v51 = vrot.slane %v6065_v47, 4  ;;  %6076 = vpow2.f32 %v2793_v0  ;;  %v10615_v7 = vmax.f32 %v8311_v30, 0.0  ;;  %v4180_v10 = vrot.slane %v4179_v43, 2 }
 0x63b   :  { %v2371_v16 = vrot.slane %v2370_v26, 2  ;;  %v9135_v60 = vpop.eup %6072  ;;  %v2621_v11 = vsub.f32 %v9064_v38, %v2326_v33  ;;  %v9146_v56 = vmul.f32 %v8962_v53, %v3549_v8  ;;  %v9148_v13 = vadd.f32 %v6059_v35, %v4136_v22 }
 0x63c   :  { %v9140_v18 = vmul.f32 %v9082_v44, %v10615_v7  ;;  %v4184_v42 = vrot.slane %v6069_v12, 4  ;;  %v2506_v14 = vmax.f32 %v2504_v52, %v2505_v45  ;;  %v9151_v0 = vadd.f32 %v9099_v29, %v4238_v17 }
 0x63d   :  { %10617 = vst [vmem:[#allocation41_spill] sm:$0xff] %v9148_v13  ;;  %v2372_v25 = vmax.f32 %v2370_v26, %v2371_v16  ;;  %v9153_v30 = vadd.f32 %v4132_v49, %v4131_v1  ;;  %v4077_v44 = vadd.f32 %v6063_v50, %v4076_v48  ;;  %v10619_v15 = vmax.f32 %v8345_v24, 0.0 }
 0x63e   :  { %10616 = vst [vmem:[#allocation85_spill] sm:$0xff] %v9140_v18  ;;  %v10620_v33 = vmax.f32 %v8608_v62, 0.0  ;;  %v10621_v22 = vmax.f32 %v8325_v2, 0.0  ;;  %v4125_v52 = vadd.f32 %v6065_v47, %v4124_v51  ;;  %v9166_v26 = vpop.eup %6074  ;;  %v9168_v17 = vadd.f32 %v4180_v10, %v4179_v43  ;;  %v9177_v51 = vpop.xlane.xlu2 %1941 }
 0x63f   :  { %10618 = vst [vmem:[#allocation43_spill] sm:$0xff] %v9153_v30  ;;  %v2919_v38 = vmul.f32 %v6071_v32, %v10619_v15  ;;  %v2373_v45 = vrot.slane %v2372_v25, 1  ;;  %v4010_v1 = vrot.slane %v6071_v32, 4  ;;  %v2781_v49 = vmul.f32 1.442695, %v2621_v11 }
 0x640   :  { %v9160_v53 = vmul.f32 %v9091_v63, %v10620_v33  ;;  %v9164_v8 = vmul.f32 %v6059_v35, %v10621_v22  ;;  %10623 = vst [vmem:[#allocation27_spill] sm:$0xff] %v9166_v26  ;;  %v4746_v24 = vadd.f32 %v8988_v23, %v4745_v28  ;;  %v6077_v48 = vpop.eup %6076  ;;  %v9172_v16 = vadd.f32 %v6069_v12, %v4184_v42 }
 0x641   :  { %v10624_v63 = vmax.f32 %v8335_v55, 0.0  ;;  %v2651_v35 = vsub.f32 %v9080_v34, %v2506_v14  ;;  %v4078_v7 = vrot.slane %v4077_v44, 2  ;;  %v3368_v43 = vsel %vm2961_vm1, %v2919_v38, 0.0 }
 0x642   :  { %10622 = vst [vmem:[#allocation48_spill] sm:$0xff] %v9164_v8  ;;  %v2374_v10 = vmax.f32 %v2372_v25, %v2373_v45  ;;  %v2399_v11 = vrot.slane %v9143_v46, 4  ;;  %v10625_v28 = vmax.f32 %v8627_v19, 0.0  ;;  %v10626_v42 = vmax.f32 %v8638_v21, 0.0  ;;  %v10666_v8 = vld [vmem:[#allocation76_spill] sm:$0xff] }
 0x643   :  { %v2930_v2 = vmul.f32 %v6063_v50, %v10624_v63  ;;  %v4126_v22 = vrot.slane %v4125_v52, 2  ;;  %6078 = vtanh.f32 %v4746_v24  ;;  %v4011_v55 = vadd.f32 %v6071_v32, %v4010_v1  ;;  %v9196_v32 = vpop.xlane.xlu0 %1815 }
 0x644   :  { %v9183_v15 = vmul.f32 %v6069_v12, %v10625_v28  ;;  %v2938_v33 = vmul.f32 %v6065_v47, %v10626_v42  ;;  %v4058_v50 = vrot.slane %v6077_v48, 4  ;;  %6080 = vpow2.f32 %v2781_v49  ;;  %v9194_v47 = vpop.xlane.xlu1 %1905 }
 0x645   :  { %v2629_v34 = vsub.f32 %v9108_v27, %v2374_v10  ;;  %v9189_v14 = vsel %vm2961_vm1, %v2930_v2, 0.0  ;;  %v3369_v25 = vrot.slane %v3368_v43, 4  ;;  %v2841_v38 = vmul.f32 1.442695, %v2651_v35 }
 0x646   :  { %10627 = vst [vmem:[#allocation30_spill] sm:$0xff] %v9189_v14  ;;  %v2519_v45 = vrot.slane %v9177_v51, 4  ;;  %v4079_v12 = vadd.f32 %v4078_v7, %v4077_v44  ;;  %v2400_v21 = vmax.f32 %v9143_v46, %v2399_v11  ;;  %v4127_v1 = vadd.f32 %v4126_v22, %v4125_v52 }
 0x647   :  { %v2797_v63 = vmul.f32 1.442695, %v2629_v34  ;;  %v10628_v27 = vmax.f32 %v8652_v4, 0.0  ;;  %v2267_v2 = vrot.slane %v9196_v32, 4  ;;  %v9204_v10 = vsel %vm2961_vm1, %v2938_v33, 0.0 }
 0x648   :  { %v2520_v24 = vmax.f32 %v9177_v51, %v2519_v45  ;;  %v4012_v44 = vrot.slane %v4011_v55, 2  ;;  %v4059_v7 = vadd.f32 %v6077_v48, %v4058_v50  ;;  %v3370_v28 = vadd.f32 %v3369_v25, %v3368_v43  ;;  %v4748_v43 = vpop.f32.mrf.mxu1  ;;  %v9214_v25 = vpop.xlane.xlu2 %1944 }
 0x649   :  { %v2927_v49 = vmul.f32 %v6077_v48, %v10628_v27  ;;  %v9206_v11 = vpop.eup %6078  ;;  %6082 = vpow2.f32 %v2841_v38  ;;  %v2447_v52 = vrot.slane %v9194_v47, 4  ;;  %v4080_v22 = vrot.slane %v4079_v12, 1 }
 0x64a   :  { %10629 = vst [vmem:[#allocation4_spill] sm:$0xff] %v9206_v11  ;;  %v2521_v42 = vrot.slane %v2520_v24, 2  ;;  %v6081_v4 = vpop.eup %6080  ;;  %6084 = vpow2.f32 %v2797_v63  ;;  %v2401_v34 = vrot.slane %v2400_v21, 2  ;;  %v2268_v45 = vmax.f32 %v9196_v32, %v2267_v2  ;;  %5649 = vmatmul.msk.f32.gmra.mxu0 %vm52_vm0, %v9206_v11 }
 0x64b   :  { %v4128_v27 = vrot.slane %v4127_v1, 1  ;;  %v3424_v48 = vsel %vm2961_vm1, %v2927_v49, 0.0  ;;  %v4013_v38 = vadd.f32 %v4012_v44, %v4011_v55  ;;  %v4060_v35 = vrot.slane %v4059_v7, 2 }
 0x64c   :  { %v2522_v50 = vmax.f32 %v2520_v24, %v2521_v42  ;;  %v2269_v62 = vrot.slane %v2268_v45, 2  ;;  %v4749_v63 = vadd.f32 %v8988_v23, %v4748_v43  ;;  %v3371_v19 = vrot.slane %v3370_v28, 2 }
 0x64d   :  { %v4022_v41 = vrot.slane %v6081_v4, 4  ;;  %v2448_v57 = vmax.f32 %v9194_v47, %v2447_v52  ;;  %v3425_v5 = vrot.slane %v3424_v48, 4  ;;  %v2402_v58 = vmax.f32 %v2400_v21, %v2401_v34 }
 0x64e   :  { %v2523_v2 = vrot.slane %v2522_v50, 1  ;;  %v2270_v33 = vmax.f32 %v2268_v45, %v2269_v62  ;;  %v2525_v11 = vrot.slane %v9214_v25, 4  ;;  %v9219_v24 = vadd.f32 %v4080_v22, %v4079_v12  ;;  %v9229_v12 = vpop.xlane.xlu1 %1839 }
 0x64f   :  { %v6083_v49 = vpop.eup %6082  ;;  %v9221_v42 = vadd.f32 %v4128_v27, %v4127_v1  ;;  %6086 = vtanh.f32 %v4749_v63  ;;  %v4014_v43 = vrot.slane %v4013_v38, 1  ;;  %v4061_v14 = vadd.f32 %v4060_v35, %v4059_v7 }
 0x650   :  { %10630 = vst [vmem:[#allocation23_spill] sm:$0xff] %v9219_v24  ;;  %v2524_v55 = vmax.f32 %v2522_v50, %v2523_v2  ;;  %v9223_v44 = vpop.eup %6084  ;;  %v10632_v26 = vmax.f32 %v8359_v20, 0.0  ;;  %v2271_v52 = vrot.slane %v2270_v33, 1  ;;  %v4023_v30 = vadd.f32 %v6081_v4, %v4022_v41 }
 0x651   :  { %10631 = vst [vmem:[#allocation18_spill] sm:$0xff] %v9221_v42  ;;  %v2449_v21 = vrot.slane %v2448_v57, 2  ;;  %v2526_v34 = vmax.f32 %v9214_v25, %v2525_v11  ;;  %v9231_v1 = vadd.f32 %v3371_v19, %v3370_v28  ;;  %v3426_v22 = vadd.f32 %v3425_v5, %v3424_v48 }
 0x652   :  { %v2921_v13 = vmul.f32 %v6081_v4, %v10632_v26  ;;  %v2654_v62 = vsub.f32 %v9177_v51, %v2524_v55  ;;  %v2403_v45 = vrot.slane %v2402_v58, 1  ;;  %v2272_v27 = vmax.f32 %v2270_v33, %v2271_v52 }
 0x653   :  { %10633 = vst [vmem:[#allocation49_spill] sm:$0xff] %v9231_v1  ;;  %v4202_v50 = vrot.slane %v6083_v49, 4  ;;  %v4070_v35 = vrot.slane %v9223_v44, 4  ;;  %v2527_v20 = vrot.slane %v2526_v34, 2  ;;  %v4062_v26 = vrot.slane %v4061_v14, 1 }
 0x654   :  { %v2847_v7 = vmul.f32 1.442695, %v2654_v62  ;;  %v3382_v41 = vsel %vm2961_vm1, %v2921_v13, 0.0  ;;  %v2612_v51 = vsub.f32 %v9196_v32, %v2272_v27  ;;  %v2315_v4 = vrot.slane %v9229_v12, 4 }
 0x655   :  { %v9237_v11 = vpop.eup %6086  ;;  %v4024_v63 = vrot.slane %v4023_v30, 2  ;;  %v10635_v19 = vmax.f32 %v8208_v40, 0.0  ;;  %v2450_v28 = vmax.f32 %v2448_v57, %v2449_v21  ;;  %v2404_v33 = vmax.f32 %v2402_v58, %v2403_v45  ;;  %v4751_v57 = vpop.f32.mrf.mxu1 }
 0x656   :  { %10634 = vst [vmem:[#allocation2_spill] sm:$0xff] %v9237_v11  ;;  %6088 = vpow2.f32 %v2847_v7  ;;  %v2763_v48 = vmul.f32 1.442695, %v2612_v51  ;;  %v2528_v2 = vmax.f32 %v2526_v34, %v2527_v20  ;;  %v2316_v55 = vmax.f32 %v9229_v12, %v2315_v4  ;;  %5650 = vmatmul.msk.f32.gmra.mxu0 %vm52_vm0, %v9237_v11  ;;  %v9249_v7 = vpop.xlane.xlu2 %1947 }
 0x657   :  { %v2951_v5 = vmul.f32 %v6083_v49, %v10635_v19  ;;  %v4015_v13 = vadd.f32 %v4014_v43, %v4013_v38  ;;  %v3427_v32 = vrot.slane %v3426_v22, 2  ;;  %v4203_v52 = vadd.f32 %v6083_v49, %v4202_v50  ;;  %v9245_v19 = vpop.xlane.xlu0 %1854 }
 0x658   :  { %v4071_v62 = vadd.f32 %v9223_v44, %v4070_v35  ;;  %v3383_v27 = vrot.slane %v3382_v41, 4  ;;  %6090 = vpow2.f32 %v2763_v48  ;;  %v2529_v1 = vrot.slane %v2528_v2, 1 }
 0x659   :  { %v2317_v40 = vrot.slane %v2316_v55, 2  ;;  %v4025_v58 = vadd.f32 %v4024_v63, %v4023_v30  ;;  %v2451_v21 = vrot.slane %v2450_v28, 1  ;;  %v2345_v34 = vrot.slane %v9245_v19, 4  ;;  %v9256_v30 = vpop.xlane.xlu1 %1878 }
 0x65a   :  { %v4752_v45 = vadd.f32 %v8988_v23, %v4751_v57  ;;  %v4063_v38 = vadd.f32 %v4062_v26, %v4061_v14  ;;  %v3592_v49 = vsel %vm2961_vm1, %v2951_v5, 0.0  ;;  %v2634_v43 = vsub.f32 %v9143_v46, %v2404_v33 }
 0x65b   :  { %v2318_v50 = vmax.f32 %v2316_v55, %v2317_v40  ;;  %v4204_v20 = vrot.slane %v4203_v52, 2  ;;  %v4072_v51 = vrot.slane %v4071_v62, 2  ;;  %v2346_v4 = vmax.f32 %v9245_v19, %v2345_v34 }
 0x65c   :  { %v9253_v35 = vpop.eup %6088  ;;  %6092 = vtanh.f32 %v4752_v45  ;;  %v9258_v63 = vadd.f32 %v3427_v32, %v3426_v22  ;;  %v2530_v48 = vmax.f32 %v2528_v2, %v2529_v1  ;;  %v2531_v14 = vrot.slane %v9249_v7, 4 }
 0x65d   :  { %6094 = vrcp.f32 %v4015_v13  ;;  %v4026_v26 = vrot.slane %v4025_v58, 1  ;;  %v4220_v5 = vrot.slane %v9253_v35, 4  ;;  %v2452_v46 = vmax.f32 %v2450_v28, %v2451_v21 }
 0x65e   :  { %10636 = vst [vmem:[#allocation10_spill] sm:$0xff] %v9258_v63  ;;  %v2319_v33 = vrot.slane %v2318_v50, 1  ;;  %v6091_v55 = vpop.eup %6090  ;;  %v9262_v40 = vadd.f32 %v3383_v27, %v3382_v41  ;;  %v3593_v57 = vrot.slane %v3592_v49, 4  ;;  %v2807_v11 = vmul.f32 1.442695, %v2634_v43 }
 0x65f   :  { %v2393_v34 = vrot.slane %v9256_v30, 4  ;;  %6096 = vrcp.f32 %v4063_v38  ;;  %v4205_v45 = vadd.f32 %v4204_v20, %v4203_v52  ;;  %v4073_v13 = vadd.f32 %v4072_v51, %v4071_v62  ;;  %v9270_v21 = vpop.xlane.xlu0 %1824 }
 0x660   :  { %10637 = vst [vmem:[#allocation12_spill] sm:$0xff] %v9262_v40  ;;  %v2347_v22 = vrot.slane %v2346_v4, 2  ;;  %v10638_v1 = vmax.f32 %v8668_v36, 0.0  ;;  %v3968_v32 = vrot.slane %v6091_v55, 4  ;;  %v2655_v24 = vsub.f32 %v9214_v25, %v2530_v48 }
 0x661   :  { %v2532_v28 = vmax.f32 %v9249_v7, %v2531_v14  ;;  %v4027_v27 = vadd.f32 %v4026_v26, %v4025_v58  ;;  %v4221_v43 = vadd.f32 %v9253_v35, %v4220_v5  ;;  %v2642_v52 = vsub.f32 %v9194_v47, %v2452_v46 }
 0x662   :  { %v2929_v2 = vmul.f32 %v9223_v44, %v10638_v1  ;;  %v9272_v41 = vpop.eup %6092  ;;  %v2320_v62 = vmax.f32 %v2318_v50, %v2319_v33  ;;  %v3594_v36 = vadd.f32 %v3593_v57, %v3592_v49  ;;  %6098 = vpow2.f32 %v2807_v11  ;;  %v10641_v44 = vld [vmem:[#allocation70_spill] sm:$0xff]  ;;  %v9285_v49 = vpop.xlane.xlu2 %1917 }
 0x663   :  { %10639 = vst [vmem:[#allocation44_spill] sm:$0xff] %v9272_v41  ;;  %v9276_v38 = vpop.eup %6094  ;;  %v10642_v20 = vmax.f32 %v10641_v44, 0.0  ;;  %v2394_v25 = vmax.f32 %v9256_v30, %v2393_v34  ;;  %5651 = vmatmul.msk.f32.gmra.mxu0 %vm52_vm0, %v9272_v41  ;;  %v4206_v48 = vrot.slane %v4205_v45, 1  ;;  %v4074_v14 = vrot.slane %v4073_v13, 1 }
 0x664   :  { %10640 = vst [vmem:[#allocation24_spill] sm:$0xff] %v9276_v38  ;;  %v2348_v58 = vmax.f32 %v2346_v4, %v2347_v22  ;;  %v2285_v26 = vrot.slane %v9270_v21, 4  ;;  %v3438_v47 = vsel %vm2961_vm1, %v2929_v2, 0.0  ;;  %v3969_v50 = vadd.f32 %v6091_v55, %v3968_v32  ;;  %v4754_v32 = vpop.f32.mrf.mxu1 }
 0x665   :  { %v2912_v51 = vmul.f32 %v6091_v55, %v10642_v20  ;;  %v2849_v5 = vmul.f32 1.442695, %v2655_v24  ;;  %v2533_v46 = vrot.slane %v2532_v28, 2  ;;  %v9287_v11 = vpop.eup %6096  ;;  %v4222_v33 = vrot.slane %v4221_v43, 2 }
 0x666   :  { %10643 = vst [vmem:[#allocation53_spill] sm:$0xff] %v9287_v11  ;;  %v2823_v57 = vmul.f32 1.442695, %v2642_v52  ;;  %v2620_v34 = vsub.f32 %v9229_v12, %v2320_v62  ;;  %v2286_v1 = vmax.f32 %v9270_v21, %v2285_v26  ;;  %6100 = vrcp.f32 %v4027_v27 }
 0x667   :  { %v3595_v44 = vrot.slane %v3594_v36, 2  ;;  %v3319_v4 = vsel %vm2961_vm1, %v2912_v51, 0.0  ;;  %v2395_v22 = vrot.slane %v2394_v25, 2  ;;  %v4207_v20 = vadd.f32 %v4206_v48, %v4205_v45 }
 0x668   :  { %v3439_v2 = vrot.slane %v3438_v47, 4  ;;  %v4075_v55 = vadd.f32 %v4074_v14, %v4073_v13  ;;  %v2349_v24 = vrot.slane %v2348_v58, 1  ;;  %v9292_v41 = vpop.eup %6098  ;;  %v3970_v38 = vrot.slane %v3969_v50, 2 }
 0x669   :  { %10644 = vst [vmem:[#allocation16_spill] sm:$0xff] %v9292_v41  ;;  %6102 = vpow2.f32 %v2849_v5  ;;  %v2534_v40 = vmax.f32 %v2532_v28, %v2533_v46  ;;  %v2287_v52 = vrot.slane %v2286_v1, 2  ;;  %v4223_v11 = vadd.f32 %v4222_v33, %v4221_v43  ;;  %v10647_v28 = vld [vmem:[#allocation60_spill] sm:$0xff] }
 0x66a   :  { %6104 = vpow2.f32 %v2823_v57  ;;  %v3320_v12 = vrot.slane %v3319_v4, 4  ;;  %v2779_v62 = vmul.f32 1.442695, %v2620_v34  ;;  %v2396_v27 = vmax.f32 %v2394_v25, %v2395_v22  ;;  %v9307_v57 = vpop.xlane.xlu1 %1848  ;;  %v9313_v22 = vpop.xlane.xlu2 %1884 }
 0x66b   :  { %v2288_v26 = vmax.f32 %v2286_v1, %v2287_v52  ;;  %v4755_v51 = vadd.f32 %v8988_v23, %v4754_v32  ;;  %v2471_v45 = vrot.slane %v9285_v49, 4  ;;  %v9296_v48 = vadd.f32 %v3595_v44, %v3594_v36  ;;  %v9311_v44 = vpop.xlane.xlu0 %1833 }
 0x66c   :  { %6106 = vrcp.f32 %v4207_v20  ;;  %v9298_v13 = vadd.f32 %v3439_v2, %v3438_v47  ;;  %v2350_v14 = vmax.f32 %v2348_v58, %v2349_v24  ;;  %v9300_v63 = vpop.eup %6100  ;;  %v10648_v43 = vmax.f32 %v10647_v28, 0.0 }
 0x66d   :  { %10646 = vst [vmem:[#allocation5_spill] sm:$0xff] %v9300_v63  ;;  %6108 = vrcp.f32 %v4075_v55  ;;  %v3971_v46 = vadd.f32 %v3970_v38, %v3969_v50  ;;  %v2535_v25 = vrot.slane %v2534_v40, 1  ;;  %v2289_v23 = vrot.slane %v2288_v26, 1 }
 0x66e   :  { %10645 = vst [vmem:[#allocation11_spill] sm:$0xff] %v9298_v13  ;;  %v2954_v5 = vmul.f32 %v9253_v35, %v10648_v43  ;;  %6110 = vpow2.f32 %v2779_v62  ;;  %v2472_v36 = vmax.f32 %v9285_v49, %v2471_v45  ;;  %v4224_v34 = vrot.slane %v4223_v11, 1 }
 0x66f   :  { %v6103_v47 = vpop.eup %6102  ;;  %v9309_v58 = vadd.f32 %v3320_v12, %v3319_v4  ;;  %v2397_v1 = vrot.slane %v2396_v27, 1  ;;  %6112 = vtanh.f32 %v4755_v51  ;;  %v2625_v38 = vsub.f32 %v9245_v19, %v2350_v14 }
 0x670   :  { %v9315_v35 = vpop.eup %6104  ;;  %v2473_v50 = vrot.slane %v2472_v36, 2  ;;  %v2333_v20 = vrot.slane %v9307_v57, 4  ;;  %v2303_v2 = vrot.slane %v9311_v44, 4  ;;  %v9321_v55 = vsel %vm2961_vm1, %v2954_v5, 0.0 }
 0x671   :  { %v3972_v4 = vrot.slane %v3971_v46, 1  ;;  %v2536_v24 = vmax.f32 %v2534_v40, %v2535_v25  ;;  %v2405_v32 = vrot.slane %v9313_v22, 4  ;;  %v4226_v12 = vrot.slane %v6103_v47, 4 }
 0x672   :  { %v9324_v52 = vpop.eup %6106  ;;  %v2290_v62 = vmax.f32 %v2288_v26, %v2289_v23  ;;  %v2474_v51 = vmax.f32 %v2472_v36, %v2473_v50  ;;  %v2334_v45 = vmax.f32 %v9307_v57, %v2333_v20  ;;  %v2398_v28 = vmax.f32 %v2396_v27, %v2397_v1  ;;  %v10651_v50 = vld [vmem:[#allocation66_spill] sm:$0xff] }
 0x673   :  { %v9327_v19 = vpop.eup %6108  ;;  %v2304_v43 = vmax.f32 %v9311_v44, %v2303_v2  ;;  %v2406_v5 = vmax.f32 %v9313_v22, %v2405_v32  ;;  %v9333_v25 = vadd.f32 %v4224_v34, %v4223_v11  ;;  %v2789_v26 = vmul.f32 1.442695, %v2625_v38  ;;  %v10653_v34 = vld [vmem:[#allocation46_spill] sm:$0xff] }
 0x674   :  { %10649 = vst [vmem:[#allocation7_spill] sm:$0xff] %v9327_v19  ;;  %v6111_v33 = vpop.eup %6110  ;;  %v3973_v36 = vadd.f32 %v3972_v4, %v3971_v46  ;;  %v10652_v20 = vmax.f32 %v10651_v50, 0.0  ;;  %v2656_v27 = vsub.f32 %v9249_v7, %v2536_v24  ;;  %v2475_v1 = vrot.slane %v2474_v51, 1  ;;  %v9353_v7 = vpop.xlane.xlu2 %1890 }
 0x675   :  { %v9336_v23 = vpop.eup %6112  ;;  %v9343_v2 = vadd.f32 %v6103_v47, %v4226_v12  ;;  %v2615_v32 = vsub.f32 %v9270_v21, %v2290_v62  ;;  %v2335_v14 = vrot.slane %v2334_v45, 2  ;;  %v2305_v11 = vrot.slane %v2304_v43, 2 }
 0x676   :  { %10650 = vst [vmem:[#allocation40_spill] sm:$0xff] %v9336_v23  ;;  %v9340_v19 = vmul.f32 %v6103_v47, %v10652_v20  ;;  %5652 = vmatmul.msk.f32.gmra.mxu0 %vm52_vm0, %v9336_v23  ;;  %v10654_v38 = vmax.f32 %v10653_v34, 0.0  ;;  %v2633_v46 = vsub.f32 %v9256_v30, %v2398_v28  ;;  %v2476_v4 = vmax.f32 %v2474_v51, %v2475_v1  ;;  %v9351_v20 = vpop.xlane.xlu1 %1851 }
 0x677   :  { %v2407_v50 = vrot.slane %v2406_v5, 2  ;;  %v4016_v47 = vrot.slane %v6111_v33, 4  ;;  %6114 = vpow2.f32 %v2789_v26  ;;  %v2336_v24 = vmax.f32 %v2334_v45, %v2335_v14 }
 0x678   :  { %v2920_v40 = vmul.f32 %v6111_v33, %v10654_v38  ;;  %v2339_v21 = vrot.slane %v9351_v20, 4  ;;  %v2851_v12 = vmul.f32 1.442695, %v2656_v27  ;;  %v2646_v62 = vsub.f32 %v9285_v49, %v2476_v4 }
 0x679   :  { %v2408_v63 = vmax.f32 %v2406_v5, %v2407_v50  ;;  %v2417_v34 = vrot.slane %v9353_v7, 4  ;;  %v2769_v38 = vmul.f32 1.442695, %v2615_v32  ;;  %v2337_v23 = vrot.slane %v2336_v24, 1 }
 0x67a   :  { %v2306_v30 = vmax.f32 %v2304_v43, %v2305_v11  ;;  %v2340_v51 = vmax.f32 %v9351_v20, %v2339_v21  ;;  %v3375_v28 = vsel %vm2961_vm1, %v2920_v40, 0.0  ;;  %v2831_v1 = vmul.f32 1.442695, %v2646_v62 }
 0x67b   :  { %v2409_v13 = vrot.slane %v2408_v63, 1  ;;  %v2418_v26 = vmax.f32 %v9353_v7, %v2417_v34  ;;  %6116 = vrcp.f32 %v3973_v36  ;;  %v4017_v45 = vadd.f32 %v6111_v33, %v4016_v47 }
 0x67c   :  { %v2805_v14 = vmul.f32 1.442695, %v2633_v46  ;;  %v2338_v27 = vmax.f32 %v2336_v24, %v2337_v23  ;;  %6118 = vpow2.f32 %v2831_v1  ;;  %v2341_v5 = vrot.slane %v2340_v51, 2  ;;  %v9369_v34 = vpop.xlane.xlu2 %1929 }
 0x67d   :  { %v2410_v49 = vmax.f32 %v2408_v63, %v2409_v13  ;;  %v2419_v4 = vrot.slane %v2418_v26, 2  ;;  %v9361_v50 = vpop.eup %6114  ;;  %v3376_v32 = vrot.slane %v3375_v28, 4  ;;  %6120 = vpow2.f32 %v2769_v38 }
 0x67e   :  { %10655 = vst [vmem:[#allocation52_spill] sm:$0xff] %v9361_v50  ;;  %v2623_v43 = vsub.f32 %v9307_v57, %v2338_v27  ;;  %v2307_v11 = vrot.slane %v2306_v30, 1  ;;  %6122 = vpow2.f32 %v2851_v12  ;;  %v2342_v21 = vmax.f32 %v2340_v51, %v2341_v5  ;;  %v9365_v36 = vpop.xlane.xlu1 %1821 }
 0x67f   :  { %v2635_v40 = vsub.f32 %v9313_v22, %v2410_v49  ;;  %v2420_v62 = vmax.f32 %v2418_v26, %v2419_v4  ;;  %v4228_v33 = vrot.slane %v9343_v2, 2  ;;  %6124 = vpow2.f32 %v2805_v14 }
 0x680   :  { %v2785_v63 = vmul.f32 1.442695, %v2623_v43  ;;  %v2279_v13 = vrot.slane %v9365_v36, 4  ;;  %v4018_v23 = vrot.slane %v4017_v45, 2  ;;  %v2343_v47 = vrot.slane %v2342_v21, 1 }
 0x681   :  { %v2809_v46 = vmul.f32 1.442695, %v2635_v40  ;;  %v2421_v24 = vrot.slane %v2420_v62, 1  ;;  %v9371_v57 = vpop.eup %6116  ;;  %v3377_v12 = vadd.f32 %v3376_v32, %v3375_v28  ;;  %v2308_v22 = vmax.f32 %v2306_v30, %v2307_v11 }
 0x682   :  { %10656 = vst [vmem:[#allocation6_spill] sm:$0xff] %v9371_v57  ;;  %v2280_v38 = vmax.f32 %v9365_v36, %v2279_v13  ;;  %v2495_v51 = vrot.slane %v9369_v34, 4  ;;  %v6119_v1 = vpop.eup %6118  ;;  %v4046_v26 = vrot.slane %v9361_v50, 4  ;;  %6126 = vpow2.f32 %v2785_v63 }
 0x683   :  { %v2344_v14 = vmax.f32 %v2342_v21, %v2343_v47  ;;  %v2422_v27 = vmax.f32 %v2420_v62, %v2421_v24  ;;  %v9376_v49 = vpop.eup %6120  ;;  %v10657_v5 = vrot.slane %v9309_v58, 2  ;;  %v4172_v43 = vrot.slane %v6119_v1, 4 }
 0x684   :  { %6128 = vpow2.f32 %v2809_v46  ;;  %v2281_v30 = vrot.slane %v2280_v38, 2  ;;  %v6123_v28 = vpop.eup %6122  ;;  %v4019_v32 = vadd.f32 %v4018_v23, %v4017_v45  ;;  %v2496_v63 = vmax.f32 %v9369_v34, %v2495_v51 }
 0x685   :  { %v9381_v4 = vadd.f32 %v10657_v5, %v9309_v58  ;;  %v2624_v11 = vsub.f32 %v9351_v20, %v2344_v14  ;;  %v2637_v40 = vsub.f32 %v9353_v7, %v2422_v27  ;;  %v9386_v21 = vpop.eup %6124  ;;  %v9389_v62 = vadd.f32 %v4228_v33, %v9343_v2  ;;  %v10661_v7 = vld [vmem:[#allocation69_spill] sm:$0xff] }
 0x686   :  { %10659 = vst [vmem:[#allocation28_spill] sm:$0xff] %v9386_v21  ;;  %v3378_v13 = vrot.slane %v3377_v12, 2  ;;  %v2618_v58 = vsub.f32 %v9311_v44, %v2308_v22  ;;  %v2282_v47 = vmax.f32 %v2280_v38, %v2281_v30  ;;  %v9393_v46 = vadd.f32 %v9361_v50, %v4046_v26  ;;  %v9396_v24 = vpop.xlane.xlu1 %1827  ;;  %v9403_v30 = vpop.xlane.xlu2 %1863 }
 0x687   :  { %10658 = vst [vmem:[#allocation19_spill] sm:$0xff] %v9381_v4  ;;  %v3986_v45 = vrot.slane %v9376_v49, 4  ;;  %v2813_v23 = vmul.f32 1.442695, %v2637_v40  ;;  %v2497_v20 = vrot.slane %v2496_v63, 2  ;;  %v10662_v51 = vmax.f32 %v10661_v7, 0.0 }
 0x688   :  { %10660 = vst [vmem:[#allocation31_spill] sm:$0xff] %v9393_v46  ;;  %v4173_v27 = vadd.f32 %v6119_v1, %v4172_v43  ;;  %v2283_v2 = vrot.slane %v2282_v47, 1  ;;  %v2291_v33 = vrot.slane %v9396_v24, 4  ;;  %v6127_v5 = vpop.eup %6126  ;;  %v4020_v44 = vrot.slane %v4019_v32, 1 }
 0x689   :  { %v9400_v14 = vmul.f32 %v6123_v28, %v10662_v51  ;;  %v4232_v22 = vrot.slane %v6123_v28, 4  ;;  %v2787_v38 = vmul.f32 1.442695, %v2624_v11  ;;  %v2498_v26 = vmax.f32 %v2496_v63, %v2497_v20  ;;  %v10664_v51 = vld [vmem:[#allocation68_spill] sm:$0xff] }
 0x68a   :  { %v6129_v57 = vpop.eup %6128  ;;  %v4094_v40 = vrot.slane %v9386_v21, 4  ;;  %v2775_v4 = vmul.f32 1.442695, %v2618_v58  ;;  %6130 = vpow2.f32 %v2813_v23  ;;  %v2284_v46 = vmax.f32 %v2282_v47, %v2283_v2 }
 0x68b   :  { %v9406_v7 = vadd.f32 %v3378_v13, %v3377_v12  ;;  %v3987_v43 = vadd.f32 %v9376_v49, %v3986_v45  ;;  %v10665_v50 = vmax.f32 %v10664_v51, 0.0  ;;  %v4106_v42 = vrot.slane %v6129_v57, 4 }
 0x68c   :  { %v4174_v59 = vrot.slane %v4173_v27, 2  ;;  %v2614_v11 = vsub.f32 %v9365_v36, %v2284_v46  ;;  %v2292_v63 = vmax.f32 %v9396_v24, %v2291_v33  ;;  %v2363_v20 = vrot.slane %v9403_v30, 4 }
 0x68d   :  { %10663 = vst [vmem:[#allocation35_spill] sm:$0xff] %v9406_v7  ;;  %v2935_v41 = vmul.f32 %v6129_v57, %v10665_v50  ;;  %v10667_v18 = vmax.f32 %v10666_v8, 0.0  ;;  %v4034_v23 = vrot.slane %v6127_v5, 4  ;;  %6132 = vpow2.f32 %v2787_v38  ;;  %v10669_v38 = vld [vmem:[#allocation51_spill] sm:$0xff] }
 0x68e   :  { %v2499_v12 = vrot.slane %v2498_v26, 1  ;;  %v9416_v13 = vadd.f32 %v6123_v28, %v4232_v22  ;;  %6134 = vpow2.f32 %v2775_v4  ;;  %v2767_v47 = vmul.f32 1.442695, %v2614_v11 }
 0x68f   :  { %v2946_v58 = vmul.f32 %v6119_v1, %v10667_v18  ;;  %v2293_v45 = vrot.slane %v2292_v63, 2  ;;  %v4021_v50 = vadd.f32 %v4020_v44, %v4019_v32  ;;  %v3480_v2 = vsel %vm2961_vm1, %v2935_v41, 0.0 }
 0x690   :  { %v4107_v51 = vadd.f32 %v6129_v57, %v4106_v42  ;;  %v2364_v36 = vmax.f32 %v9403_v30, %v2363_v20  ;;  %v6131_v46 = vpop.eup %6130  ;;  %v9421_v33 = vadd.f32 %v9386_v21, %v4094_v40  ;;  %v3988_v8 = vrot.slane %v3987_v43, 2  ;;  %v9432_v20 = vpop.xlane.xlu2 %1902 }
 0x691   :  { %v4175_v18 = vadd.f32 %v4174_v59, %v4173_v27  ;;  %6136 = vpow2.f32 %v2767_v47  ;;  %v9424_v1 = vsel %vm2961_vm1, %v2946_v58, 0.0  ;;  %v4035_v28 = vadd.f32 %v6127_v5, %v4034_v23 }
 0x692   :  { %10668 = vst [vmem:[#allocation13_spill] sm:$0xff] %v9421_v33  ;;  %v4118_v4 = vrot.slane %v6131_v46, 4  ;;  %v2500_v22 = vmax.f32 %v2498_v26, %v2499_v12  ;;  %v3481_v44 = vrot.slane %v3480_v2, 4  ;;  %v2294_v41 = vmax.f32 %v2292_v63, %v2293_v45 }
 0x693   :  { %v2365_v42 = vrot.slane %v2364_v36, 2  ;;  %v6133_v57 = vpop.eup %6132  ;;  %6138 = vrcp.f32 %v4021_v50  ;;  %v10670_v11 = vmax.f32 %v10669_v38, 0.0  ;;  %v4108_v59 = vrot.slane %v4107_v51, 2 }
 0x694   :  { %v4119_v27 = vadd.f32 %v6131_v46, %v4118_v4  ;;  %v9434_v58 = vpop.eup %6134  ;;  %v9436_v23 = vadd.f32 %v3988_v8, %v3987_v43  ;;  %v4176_v12 = vrot.slane %v4175_v18, 1  ;;  %v2295_v63 = vrot.slane %v2294_v41, 1 }
 0x695   :  { %v9430_v40 = vmul.f32 %v9376_v49, %v10670_v11  ;;  %10672 = vst [vmem:[#allocation8_spill] sm:$0xff] %v9434_v58  ;;  %v4036_v47 = vrot.slane %v4035_v28, 2  ;;  %v2650_v45 = vsub.f32 %v9369_v34, %v2500_v22  ;;  %v2366_v50 = vmax.f32 %v2364_v36, %v2365_v42  ;;  %v10674_v11 = vld [vmem:[#allocation55_spill] sm:$0xff]  ;;  %v10681_v58 = vld [vmem:[#allocation42_spill] sm:$0xff] }
 0x696   :  { %10673 = vst [vmem:[#allocation57_spill] sm:$0xff] %v9436_v23  ;;  %v2441_v38 = vrot.slane %v9432_v20, 4  ;;  %v10675_v32 = vmax.f32 %v10674_v11, 0.0  ;;  %v4040_v7 = vrot.slane %v6133_v57, 4  ;;  %v2296_v33 = vmax.f32 %v2294_v41, %v2295_v63 }
 0x697   :  { %10671 = vst [vmem:[#allocation17_spill] sm:$0xff] %v9430_v40  ;;  %v6137_v49 = vpop.eup %6136  ;;  %v3482_v40 = vadd.f32 %v3481_v44, %v3480_v2  ;;  %v4109_v8 = vadd.f32 %v4108_v59, %v4107_v51  ;;  %v4120_v26 = vrot.slane %v4119_v27, 2  ;;  %v9446_v21 = vadd.f32 %v4176_v12, %v4175_v18  ;;  %v10679_v51 = vld [vmem:[#allocation56_spill] sm:$0xff] }
 0x698   :  { %v9443_v4 = vmul.f32 %v6127_v5, %v10675_v32  ;;  %v3980_v23 = vrot.slane %v6137_v49, 4  ;;  %v2616_v34 = vsub.f32 %v9396_v24, %v2296_v33  ;;  %v2367_v36 = vrot.slane %v2366_v50, 1  ;;  %v10677_v5 = vld [vmem:[#allocation73_spill] sm:$0xff] }
 0x699   :  { %v2442_v22 = vmax.f32 %v9432_v20, %v2441_v38  ;;  %v9450_v42 = vpop.eup %6138  ;;  %v9452_v11 = vadd.f32 %v4036_v47, %v4035_v28  ;;  %v10678_v2 = vmax.f32 %v10677_v5, 0.0  ;;  %v2839_v41 = vmul.f32 1.442695, %v2650_v45 }
 0x69a   :  { %10676 = vst [vmem:[#allocation34_spill] sm:$0xff] %v9450_v42  ;;  %v3981_v44 = vadd.f32 %v6137_v49, %v3980_v23  ;;  %v3483_v63 = vrot.slane %v3482_v40, 2  ;;  %v10680_v59 = vmax.f32 %v10679_v51, 0.0  ;;  %v9460_v18 = vadd.f32 %v6133_v57, %v4040_v7  ;;  %v10684_v7 = vld [vmem:[#allocation62_spill] sm:$0xff] }
 0x69b   :  { %v2937_v32 = vmul.f32 %v6131_v46, %v10678_v2  ;;  %v2368_v24 = vmax.f32 %v2366_v50, %v2367_v36  ;;  %v4110_v33 = vrot.slane %v4109_v8, 1  ;;  %v4121_v12 = vadd.f32 %v4120_v26, %v4119_v27 }
 0x69c   :  { %v9458_v43 = vmul.f32 %v6133_v57, %v10680_v59  ;;  %v2443_v38 = vrot.slane %v2442_v22, 2  ;;  %v10682_v42 = vmax.f32 %v10681_v58, 0.0  ;;  %v3982_v47 = vrot.slane %v3981_v44, 2 }
 0x69d   :  { %v2771_v5 = vmul.f32 1.442695, %v2616_v34  ;;  %v2628_v46 = vsub.f32 %v9403_v30, %v2368_v24  ;;  %v10683_v23 = vrot.slane %v9321_v55, 4  ;;  %v3494_v2 = vsel %vm2961_vm1, %v2937_v32, 0.0  ;;  %v10686_v34 = vld [vmem:[#allocation32_spill] sm:$0xff] }
 0x69e   :  { %v2957_v28 = vmul.f32 %v9099_v29, %v10682_v42  ;;  %6140 = vpow2.f32 %v2839_v41  ;;  %v10685_v57 = vmax.f32 %v10684_v7, 0.0  ;;  %v3620_v58 = vsel %vm2961_vm1, %v9340_v19, 0.0 }
 0x69f   :  { %v3615_v45 = vadd.f32 %v10683_v23, %v9321_v55  ;;  %v2444_v26 = vmax.f32 %v2442_v22, %v2443_v38  ;;  %v3621_v50 = vrot.slane %v3620_v58, 4  ;;  %v3627_v30 = vsel %vm2961_vm1, %v9400_v14, 0.0 }
 0x6a0   :  { %v2958_v27 = vmul.f32 %v9072_v3, %v10685_v57  ;;  %v10687_v36 = vmax.f32 %v10686_v34, 0.0  ;;  %v2795_v55 = vmul.f32 1.442695, %v2628_v46  ;;  %v3628_v51 = vrot.slane %v3627_v30, 4 }
 0x6a1   :  { %v3616_v29 = vrot.slane %v3615_v45, 2  ;;  %v3634_v32 = vsel %vm2961_vm1, %v2957_v28, 0.0  ;;  %v4122_v41 = vrot.slane %v4121_v12, 1  ;;  %v3983_v59 = vadd.f32 %v3982_v47, %v3981_v44 }
 0x6a2   :  { %v2914_v42 = vmul.f32 %v6137_v49, %v10687_v36  ;;  %6142 = vpow2.f32 %v2771_v5  ;;  %v3622_v24 = vadd.f32 %v3621_v50, %v3620_v58  ;;  %v9480_v23 = vadd.f32 %v3483_v63, %v3482_v40  ;;  %v9490_v40 = vpop.xlane.xlu2 %1872 }
 0x6a3   :  { %v4111_v19 = vadd.f32 %v4110_v33, %v4109_v8  ;;  %v3495_v38 = vrot.slane %v3494_v2, 4  ;;  %v2445_v7 = vrot.slane %v2444_v26, 1  ;;  %v3617_v57 = vadd.f32 %v3616_v29, %v3615_v45 }
 0x6a4   :  { %v3635_v14 = vrot.slane %v3634_v32, 4  ;;  %v3641_v34 = vsel %vm2961_vm1, %v2958_v27, 0.0  ;;  %v9484_v49 = vpop.eup %6140  ;;  %v9487_v46 = vsel %vm2961_vm1, %v2914_v42, 0.0  ;;  %6144 = vpow2.f32 %v2795_v55 }
 0x6a5   :  { %v3597_v44 = vrot.slane %v9296_v48, 1  ;;  %v3629_v28 = vadd.f32 %v3628_v51, %v3627_v30  ;;  %v4123_v8 = vadd.f32 %v4122_v41, %v4121_v12  ;;  %v3984_v63 = vrot.slane %v3983_v59, 1 }
 0x6a6   :  { %v3604_v33 = vrot.slane %v9016_v61, 1  ;;  %v3623_v47 = vrot.slane %v3622_v24, 2  ;;  %6146 = vrcp.f32 %v4111_v19  ;;  %v9493_v5 = vadd.f32 %v3495_v38, %v3494_v2 }
 0x6a7   :  { %v3642_v45 = vrot.slane %v3641_v34, 4  ;;  %v4230_v27 = vrot.slane %v9389_v62, 1  ;;  %v9498_v29 = vmax.f32 %v2444_v26, %v2445_v7  ;;  %v3618_v50 = vrot.slane %v3617_v57, 1  ;;  %v10690_v7 = vld [vmem:[#allocation80_spill] sm:$0xff] }
 0x6a8   :  { %v9496_v58 = vpop.eup %6142  ;;  %v3636_v36 = vadd.f32 %v3635_v14, %v3634_v32  ;;  %v10688_v30 = vrot.slane %v9416_v13, 2  ;;  %v3598_v2 = vadd.f32 %v3597_v44, %v9296_v48  ;;  %v3630_v51 = vrot.slane %v3629_v28, 2 }
 0x6a9   :  { %6148 = vrcp.f32 %v4123_v8  ;;  %v9506_v41 = vadd.f32 %v3984_v63, %v3983_v59  ;;  %v3605_v19 = vadd.f32 %v3604_v33, %v9016_v61  ;;  %v3624_v26 = vadd.f32 %v3623_v47, %v3622_v24  ;;  %v10694_v47 = vld [vmem:[#allocation75_spill] sm:$0xff] }
 0x6aa   :  { %v4235_v12 = vadd.f32 %v10688_v30, %v9416_v13  ;;  %v6145_v38 = vpop.eup %6144  ;;  %v10691_v32 = vmax.f32 %v10690_v7, 0.0  ;;  %v3643_v13 = vadd.f32 %v3642_v45, %v3641_v34  ;;  %v4231_v30 = vadd.f32 %v4230_v27, %v9389_v62  ;;  %v10697_v7 = vld [vmem:[#allocation82_spill] sm:$0xff] }
 0x6ab   :  { %10689 = vst [vmem:[#allocation45_spill] sm:$0xff] %v9506_v41  ;;  %v3992_v22 = vrot.slane %v9496_v58, 4  ;;  %v2641_v48 = vsub.f32 %v9432_v20, %v9498_v29  ;;  %v3619_v59 = vadd.f32 %v3618_v50, %v3617_v57  ;;  %v3637_v44 = vrot.slane %v3636_v36, 2 }
 0x6ac   :  { %v9512_v14 = vmul.f32 %v9496_v58, %v10691_v32  ;;  %v4236_v42 = vrot.slane %v4235_v12, 1  ;;  %v9518_v8 = vpop.eup %6146  ;;  %v3631_v61 = vadd.f32 %v3630_v51, %v3629_v28  ;;  %v4240_v63 = vrot.slane %v9151_v0, 2  ;;  %v9529_v28 = vpop.permute.xlu1 %5028 }
 0x6ad   :  { %v10693_v33 = vrot.slane %v9072_v3, 4  ;;  %v10695_v62 = vmax.f32 %v10694_v47, 0.0  ;;  %v3625_v27 = vrot.slane %v3624_v26, 1  ;;  %6150 = vrcp.f32 %v9333_v25  ;;  %10696 = vst [vmem:[#allocation50_spill] sm:$0xff] %v9529_v28  ;;  %5663 = vmatpush.xpose.msk.msra.mxu1 %vm52_vm0, %v9529_v28 }
 0x6ae   :  { %10692 = vst [vmem:[#allocation39_spill] sm:$0xff] %v9512_v14  ;;  %v4237_v24 = vadd.f32 %v4236_v42, %v4235_v12  ;;  %v4452_v20 = vmul.f32 %v9324_v52, %v3598_v2  ;;  %v3644_v57 = vrot.slane %v3643_v13, 2  ;;  %v4241_v29 = vadd.f32 %v4240_v63, %v9151_v0  ;;  %v9531_v12 = vpop.xlane.xlu2 %1875 }
 0x6af   :  { %v4245_v34 = vadd.f32 %v9072_v3, %v10693_v33  ;;  %v2928_v45 = vmul.f32 %v6145_v38, %v10695_v62  ;;  %6152 = vrcp.f32 %v4231_v30  ;;  %v9533_v42 = vpop.eup %6148  ;;  %v4064_v3 = vrot.slane %v6145_v38, 4 }
 0x6b0   :  { %v3638_v51 = vadd.f32 %v3637_v44, %v3636_v36  ;;  %6154 = vrcp.f32 %v4237_v24  ;;  %v4453_v32 = vmul.f32 %v10697_v7, %v3605_v19  ;;  %v3632_v52 = vrot.slane %v3631_v61, 1 }
 0x6b1   :  { %v4246_v50 = vrot.slane %v4245_v34, 2  ;;  %v4242_v25 = vrot.slane %v4241_v29, 1  ;;  %v2381_v0 = vrot.slane %v9490_v40, 4  ;;  %v3431_v30 = vsel %vm2961_vm1, %v2928_v45, 0.0 }
 0x6b2   :  { %v3626_v63 = vadd.f32 %v3625_v27, %v3624_v26  ;;  %v5008_v33 = vsel %vm4514_vm2, %v4453_v32, %v4452_v20  ;;  %v2387_v47 = vrot.slane %v9531_v12, 4  ;;  %v3645_v62 = vadd.f32 %v3644_v57, %v3643_v13 }
 0x6b3   :  { %v4247_v2 = vadd.f32 %v4246_v50, %v4245_v34  ;;  %v4243_v36 = vadd.f32 %v4242_v25, %v4241_v29  ;;  %v5009_v19 = vsel %vm4516_vm3, %v9125_v6, %v5008_v33  ;;  %v6151_v24 = vpop.eup %6150  ;;  %v4065_v7 = vadd.f32 %v6145_v38, %v4064_v3 }
 0x6b4   :  { %v3639_v55 = vrot.slane %v3638_v51, 1  ;;  %v2382_v34 = vmax.f32 %v9490_v40, %v2381_v0  ;;  %v2388_v50 = vmax.f32 %v9531_v12, %v2387_v47  ;;  %v3432_v45 = vrot.slane %v3431_v30, 4 }
 0x6b5   :  { %v4248_v44 = vrot.slane %v4247_v2, 1  ;;  %v6153_v28 = vpop.eup %6152  ;;  %v3633_v26 = vadd.f32 %v3632_v52, %v3631_v61  ;;  %v4455_v20 = vmul.f32 %v6151_v24, %v3619_v59  ;;  %6156 = vrcp.f32 %v4243_v36 }
 0x6b6   :  { %v6155_v32 = vpop.eup %6154  ;;  %v4456_v13 = vmul.f32 %v6153_v28, %v3626_v63  ;;  %v2383_v57 = vrot.slane %v2382_v34, 2  ;;  %v2389_v29 = vrot.slane %v2388_v50, 2  ;;  %v9547_v25 = vadd.f32 %v9496_v58, %v3992_v22  ;;  %v1846_v3 = vpop.xlane.xlu2 %1845 }
 0x6b7   :  { %v4249_v27 = vadd.f32 %v4248_v44, %v4247_v2  ;;  %v3646_v6 = vrot.slane %v3645_v62, 1  ;;  %v4457_v38 = vmul.f32 %v6155_v32, %v3633_v26  ;;  %v2821_v0 = vmul.f32 1.442695, %v2641_v48 }
 0x6b8   :  { %v2384_v33 = vmax.f32 %v2382_v34, %v2383_v57  ;;  %v2390_v47 = vmax.f32 %v2388_v50, %v2389_v29  ;;  %v2327_v41 = vrot.slane %v1846_v3, 4  ;;  %v9549_v14 = vadd.f32 %v3432_v45, %v3431_v30 }
 0x6b9   :  { %6158 = vrcp.f32 %v4249_v27  ;;  %v4066_v61 = vrot.slane %v4065_v7, 2  ;;  %v3640_v59 = vadd.f32 %v3639_v55, %v3638_v51  ;;  %v5010_v52 = vsel %vm4518_vm4, %v4455_v20, %v5009_v19  ;;  %v10698_v51 = vld [vmem:[#allocation61_spill] sm:$0xff] }
 0x6ba   :  { %v5011_v28 = vsel %vm4520_vm5, %v4456_v13, %v5010_v52  ;;  %v2385_v2 = vrot.slane %v2384_v33, 1  ;;  %v2391_v63 = vrot.slane %v2390_v47, 1  ;;  %v2328_v22 = vmax.f32 %v1846_v3, %v2327_v41  ;;  %v10700_v41 = vld [vmem:[#allocation72_spill] sm:$0xff] }
 0x6bb   :  { %v3647_v58 = vadd.f32 %v3646_v6, %v3645_v62  ;;  %v5012_v36 = vsel %vm4522_vm6, %v4457_v38, %v5011_v28  ;;  %v3564_v48 = vsel %vm2961_vm1, %v9160_v53, 0.0  ;;  %v3571_v44 = vsel %vm2961_vm1, %v9183_v15, 0.0  ;;  %v6157_v30 = vpop.eup %6156 }
 0x6bc   :  { %v2386_v24 = vmax.f32 %v2384_v33, %v2385_v2  ;;  %v2392_v34 = vmax.f32 %v2390_v47, %v2391_v63  ;;  %v2329_v55 = vrot.slane %v2328_v22, 2  ;;  %v10699_v19 = vmax.f32 %v10698_v51, 0.0 }
 0x6bd   :  { %v4458_v26 = vmul.f32 %v6157_v30, %v3640_v59  ;;  %v10701_v62 = vmax.f32 %v10700_v41, 0.0  ;;  %v3565_v20 = vrot.slane %v3564_v48, 4  ;;  %v3572_v32 = vrot.slane %v3571_v44, 4 }
 0x6be   :  { %v2949_v50 = vmul.f32 %v9094_v31, %v10699_v19  ;;  %v2631_v13 = vsub.f32 %v9490_v40, %v2386_v24  ;;  %v2330_v15 = vmax.f32 %v2328_v22, %v2329_v55  ;;  %v10702_v57 = vrot.slane %v9424_v1, 4 }
 0x6bf   :  { %v6159_v45 = vpop.eup %6158  ;;  %v2950_v27 = vmul.f32 %v9484_v49, %v10701_v62  ;;  %v3994_v6 = vrot.slane %v9547_v25, 2  ;;  %v5013_v31 = vsel %vm4524_vm7, %v4458_v26, %v5012_v36  ;;  %v2632_v38 = vsub.f32 %v9531_v12, %v2392_v34 }
 0x6c0   :  { %v4459_v53 = vmul.f32 %v6159_v45, %v3647_v58  ;;  %v3559_v29 = vadd.f32 %v10702_v57, %v9424_v1  ;;  %v3566_v33 = vadd.f32 %v3565_v20, %v3564_v48  ;;  %6160 = vpow2.f32 %v2821_v0 }
 0x6c1   :  { %v2801_v59 = vmul.f32 1.442695, %v2631_v13  ;;  %v2331_v52 = vrot.slane %v2330_v15, 1  ;;  %v3434_v28 = vrot.slane %v9549_v14, 2  ;;  %v4067_v40 = vadd.f32 %v4066_v61, %v4065_v7 }
 0x6c2   :  { %v5014_v47 = vsel %vm4526_vm8, %v4459_v53, %v5013_v31  ;;  %v3553_v2 = vrot.slane %v9110_v9, 2  ;;  %v3573_v1 = vadd.f32 %v3572_v32, %v3571_v44  ;;  %v3560_v22 = vrot.slane %v3559_v29, 2 }
 0x6c3   :  { %5026 = vrot.lane.b32.xlu2 %v5014_v47, %s6312_s7  ;;  %v2332_v63 = vmax.f32 %v2330_v15, %v2331_v52  ;;  %v3578_v58 = vsel %vm2961_vm1, %v2949_v50, 0.0  ;;  %v3585_v12 = vsel %vm2961_vm1, %v2950_v27, 0.0  ;;  %6162 = vpow2.f32 %v2801_v59 }
 0x6c4   :  { %v2803_v0 = vmul.f32 1.442695, %v2632_v38  ;;  %v3567_v36 = vrot.slane %v3566_v33, 2  ;;  %v3574_v48 = vrot.slane %v3573_v1, 2  ;;  %v3579_v24 = vrot.slane %v3578_v58, 4  ;;  %v9594_v38 = vpop.xlane.xlu2 %1812 }
 0x6c5   :  { %v2622_v30 = vsub.f32 %v1846_v3, %v2332_v63  ;;  %v3586_v34 = vrot.slane %v3585_v12, 4  ;;  %v4182_v7 = vrot.slane %v9168_v17, 1  ;;  %v3541_v61 = vrot.slane %v9104_v39, 1 }
 0x6c6   :  { %v3554_v55 = vadd.f32 %v3553_v2, %v9110_v9  ;;  %v10703_v44 = vrot.slane %v9172_v16, 2  ;;  %v4192_v19 = vrot.slane %v9133_v37, 2  ;;  %v9584_v50 = vpop.eup %6160  ;;  %v3561_v26 = vadd.f32 %v3560_v22, %v3559_v29 }
 0x6c7   :  { %v2783_v45 = vmul.f32 1.442695, %v2622_v30  ;;  %v3580_v41 = vadd.f32 %v3579_v24, %v3578_v58  ;;  %v3587_v3 = vadd.f32 %v3586_v34, %v3585_v12  ;;  %6164 = vpow2.f32 %v2803_v0 }
 0x6c8   :  { %v4187_v51 = vadd.f32 %v10703_v44, %v9172_v16  ;;  %v3568_v62 = vadd.f32 %v3567_v36, %v3566_v33  ;;  %v4193_v20 = vadd.f32 %v4192_v19, %v9133_v37  ;;  %v3575_v32 = vadd.f32 %v3574_v48, %v3573_v1 }
 0x6c9   :  { %6166 = vpow2.f32 %v2783_v45  ;;  %v4183_v9 = vadd.f32 %v4182_v7, %v9168_v17  ;;  %v10704_v53 = vrot.slane %v9484_v49, 4  ;;  %v9591_v13 = vpop.eup %6162  ;;  %v4068_v15 = vrot.slane %v4067_v40, 1 }
 0x6ca   :  { %v4188_v27 = vrot.slane %v4187_v51, 1  ;;  %v4142_v57 = vrot.slane %v9584_v50, 4  ;;  %v3581_v29 = vrot.slane %v3580_v41, 2  ;;  %v9597_v33 = vadd.f32 %v3434_v28, %v9549_v14 }
 0x6cb   :  { %v4197_v16 = vadd.f32 %v9484_v49, %v10704_v53  ;;  %v3555_v37 = vrot.slane %v3554_v55, 1  ;;  %v3562_v47 = vrot.slane %v3561_v26, 1  ;;  %v3588_v59 = vrot.slane %v3587_v3, 2 }
 0x6cc   :  { %v4189_v31 = vadd.f32 %v4188_v27, %v4187_v51  ;;  %v3569_v17 = vrot.slane %v3568_v62, 1  ;;  %v4194_v52 = vrot.slane %v4193_v20, 1  ;;  %6168 = vrcp.f32 %v9446_v21 }
 0x6cd   :  { %v4198_v2 = vrot.slane %v4197_v16, 2  ;;  %v4082_v49 = vrot.slane %v9591_v13, 4  ;;  %v3542_v1 = vadd.f32 %v3541_v61, %v9104_v39  ;;  %v3576_v63 = vrot.slane %v3575_v32, 1  ;;  %v6165_v22 = vpop.eup %6164 }
 0x6ce   :  { %6170 = vrcp.f32 %v4183_v9  ;;  %v3582_v58 = vadd.f32 %v3581_v29, %v3580_v41  ;;  %v4195_v12 = vadd.f32 %v4194_v52, %v4193_v20  ;;  %v4069_v28 = vadd.f32 %v4068_v15, %v4067_v40  ;;  %v1819_v9 = vpop.xlane.xlu2 %1818 }
 0x6cf   :  { %v4199_v0 = vadd.f32 %v4198_v2, %v4197_v16  ;;  %6172 = vrcp.f32 %v4189_v31  ;;  %v6167_v14 = vpop.eup %6166  ;;  %v3556_v36 = vadd.f32 %v3555_v37, %v3554_v55  ;;  %v3589_v48 = vadd.f32 %v3588_v59, %v3587_v3 }
 0x6d0   :  { %v4444_v30 = vmul.f32 %v9127_v54, %v3542_v1  ;;  %v4028_v24 = vrot.slane %v6167_v14, 4  ;;  %v3563_v34 = vadd.f32 %v3562_v47, %v3561_v26  ;;  %v3570_v21 = vadd.f32 %v3569_v17, %v3568_v62 }
 0x6d1   :  { %v4200_v7 = vrot.slane %v4199_v0, 1  ;;  %v3577_v44 = vadd.f32 %v3576_v63, %v3575_v32  ;;  %6174 = vrcp.f32 %v4195_v12  ;;  %v4446_v39 = vmul.f32 %v9135_v60, %v3556_v36  ;;  %v10707_v63 = vld [vmem:[#allocation77_spill] sm:$0xff] }
 0x6d2   :  { %v2261_v61 = vrot.slane %v9594_v38, 4  ;;  %v6169_v51 = vpop.eup %6168  ;;  %v9606_v19 = vadd.f32 %v9591_v13, %v4082_v49  ;;  %v4088_v45 = vrot.slane %v6165_v22, 4  ;;  %v3583_v40 = vrot.slane %v3582_v58, 1 }
 0x6d3   :  { %v4201_v55 = vadd.f32 %v4200_v7, %v4199_v0  ;;  %v3590_v3 = vrot.slane %v3589_v48, 1  ;;  %v4447_v54 = vmul.f32 %v6169_v51, %v3563_v34  ;;  %v5001_v26 = vsel %vm4514_vm2, %v9146_v56, %v4444_v30  ;;  %v10705_v56 = vld [vmem:[#allocation78_spill] sm:$0xff] }
 0x6d4   :  { %v6171_v41 = vpop.eup %6170  ;;  %v2262_v62 = vmax.f32 %v9594_v38, %v2261_v61  ;;  %v4029_v20 = vadd.f32 %v6167_v14, %v4028_v24  ;;  %v5002_v32 = vsel %vm4516_vm3, %v4446_v39, %v5001_v26  ;;  %v2273_v29 = vrot.slane %v1819_v9, 4 }
 0x6d5   :  { %v6173_v27 = vpop.eup %6172  ;;  %6176 = vrcp.f32 %v4201_v55  ;;  %v4448_v60 = vmul.f32 %v6171_v41, %v3570_v21  ;;  %v5003_v16 = vsel %vm4518_vm4, %v4447_v54, %v5002_v32  ;;  %v9614_v31 = vadd.f32 %v9584_v50, %v4142_v57  ;;  %v10709_v57 = vld [vmem:[#allocation63_spill] sm:$0xff]  ;;  %v10711_v41 = vld [vmem:[#allocation74_spill] sm:$0xff] }
 0x6d6   :  { %v4449_v53 = vmul.f32 %v6173_v27, %v3577_v44  ;;  %v2263_v15 = vrot.slane %v2262_v62, 2  ;;  %v9616_v37 = vadd.f32 %v6165_v22, %v4088_v45  ;;  %v10706_v47 = vmax.f32 %v10705_v56, 0.0 }
 0x6d7   :  { %v5004_v17 = vsel %vm4520_vm5, %v4448_v60, %v5003_v16  ;;  %v6175_v52 = vpop.eup %6174  ;;  %6178 = vrcp.f32 %v4069_v28  ;;  %v2274_v1 = vmax.f32 %v1819_v9, %v2273_v29  ;;  %v10708_v12 = vmax.f32 %v10707_v63, 0.0 }
 0x6d8   :  { %v2922_v59 = vmul.f32 %v6167_v14, %v10706_v47  ;;  %v5005_v2 = vsel %vm4522_vm6, %v4449_v53, %v5004_v17  ;;  %v2264_v49 = vmax.f32 %v2262_v62, %v2263_v15  ;;  %v10710_v36 = vmax.f32 %v10709_v57, 0.0 }
 0x6d9   :  { %v9625_v0 = vmul.f32 %v9591_v13, %v10708_v12  ;;  %v4030_v24 = vrot.slane %v4029_v20, 2  ;;  %v3584_v34 = vadd.f32 %v3583_v40, %v3582_v58  ;;  %v4084_v14 = vrot.slane %v9606_v19, 2 }
 0x6da   :  { %v9629_v30 = vmul.f32 %v6165_v22, %v10710_v36  ;;  %v3591_v21 = vadd.f32 %v3590_v3, %v3589_v48  ;;  %v2265_v7 = vrot.slane %v2264_v49, 1  ;;  %v2275_v28 = vrot.slane %v2274_v1, 2  ;;  %v10713_v3 = vld [vmem:[#allocation38_spill] sm:$0xff] }
 0x6db   :  { %v6177_v44 = vpop.eup %6176  ;;  %v4090_v39 = vrot.slane %v9616_v37, 2  ;;  %v9634_v61 = vsel %vm2961_vm1, %v2922_v59, 0.0  ;;  %v4450_v51 = vmul.f32 %v6175_v52, %v3584_v34  ;;  %v3497_v13 = vrot.slane %v9493_v5, 2  ;;  %v10717_v59 = vld [vmem:[#allocation48_spill] sm:$0xff] }
 0x6dc   :  { %v4451_v45 = vmul.f32 %v6177_v44, %v3591_v21  ;;  %v2266_v55 = vmax.f32 %v2264_v49, %v2265_v7  ;;  %v2276_v22 = vmax.f32 %v2274_v1, %v2275_v28  ;;  %v10712_v54 = vmax.f32 %v10711_v41, 0.0  ;;  %v10718_v1 = vld [vmem:[#allocation22_spill] sm:$0xff] }
 0x6dd   :  { %v9640_v40 = vadd.f32 %v4030_v24, %v4029_v20  ;;  %v5006_v48 = vsel %vm4524_vm7, %v4450_v51, %v5005_v2  ;;  %v10714_v26 = vmax.f32 %v10713_v3, 0.0  ;;  %v10715_v27 = vrot.slane %v9204_v10, 4  ;;  %v9649_v32 = vpop.eup %6178 }
 0x6de   :  { %v2941_v58 = vmul.f32 %v9584_v50, %v10712_v54  ;;  %v5007_v53 = vsel %vm4526_vm8, %v4451_v45, %v5006_v48  ;;  %v2611_v16 = vsub.f32 %v9594_v38, %v2266_v55  ;;  %v2277_v15 = vrot.slane %v2276_v22, 1  ;;  %v10716_v50 = vld [vmem:[#allocation85_spill] sm:$0xff]  ;;  %v9661_v38 = vpop.f32.mrf.mxu0  ;;  %v10719_v45 = vld [vmem:[#allocation43_spill] sm:$0xff] }
 0x6df   :  { %v2942_v62 = vmul.f32 %v9315_v35, %v10714_v26  ;;  %v3503_v60 = vadd.f32 %v10715_v27, %v9204_v10  ;;  %v3508_v20 = vsel %vm2961_vm1, %v10716_v50, 0.0  ;;  %5024 = vrot.lane.b32.xlu0 %v5007_v53, %s6312_s7  ;;  %v3485_v29 = vrot.slane %v9480_v23, 1 }
 0x6e0   :  { %v3498_v56 = vadd.f32 %v3497_v13, %v9493_v5  ;;  %v3509_v47 = vrot.slane %v3508_v20, 4  ;;  %v3515_v10 = vsel %vm2961_vm1, %v10717_v59, 0.0  ;;  %v2761_v17 = vmul.f32 1.442695, %v2611_v16 }
 0x6e1   :  { %v2278_v52 = vmax.f32 %v2276_v22, %v2277_v15  ;;  %v3516_v2 = vrot.slane %v3515_v10, 4  ;;  %v3522_v49 = vsel %vm2961_vm1, %v2941_v58, 0.0  ;;  %v3492_v63 = vrot.slane %v10718_v1, 1  ;;  %v10720_v22 = vld [vmem:[#allocation41_spill] sm:$0xff] }
 0x6e2   :  { %v3504_v12 = vrot.slane %v3503_v60, 2  ;;  %v3510_v57 = vadd.f32 %v3509_v47, %v3508_v20  ;;  %v3523_v36 = vrot.slane %v3522_v49, 4  ;;  %6180 = vpow2.f32 %v2761_v17 }
 0x6e3   :  { %v2613_v24 = vsub.f32 %v1819_v9, %v2278_v52  ;;  %v3517_v34 = vadd.f32 %v3516_v2, %v3515_v10  ;;  %v3529_v5 = vsel %vm2961_vm1, %v2942_v62, 0.0  ;;  %v3499_v21 = vrot.slane %v3498_v56, 1  ;;  %v9681_v10 = vpop.xlane.xlu2 %1857 }
 0x6e4   :  { %v3511_v7 = vrot.slane %v3510_v57, 2  ;;  %v3524_v28 = vadd.f32 %v3523_v36, %v3522_v49  ;;  %v3530_v44 = vrot.slane %v3529_v5, 4  ;;  %v4134_v55 = vrot.slane %v10719_v45, 1 }
 0x6e5   :  { %v2765_v51 = vmul.f32 1.442695, %v2613_v24  ;;  %v3518_v13 = vrot.slane %v3517_v34, 2  ;;  %v10721_v41 = vrot.slane %v10720_v22, 2  ;;  %v9670_v58 = vadd.f32 %v4084_v14, %v9606_v19 }
 0x6e6   :  { %v3390_v9 = vrot.slane %v9634_v61, 4  ;;  %v4032_v48 = vrot.slane %v9640_v40, 1  ;;  %v3505_v3 = vadd.f32 %v3504_v12, %v3503_v60  ;;  %v3486_v26 = vadd.f32 %v3485_v29, %v9480_v23  ;;  %v10723_v23 = vld [vmem:[#allocation37_spill] sm:$0xff] }
 0x6e7   :  { %v4139_v54 = vadd.f32 %v10721_v41, %v10720_v22  ;;  %6182 = vpow2.f32 %v2765_v51  ;;  %v3531_v62 = vadd.f32 %v3530_v44, %v3529_v5  ;;  %v3493_v53 = vadd.f32 %v3492_v63, %v10718_v1 }
 0x6e8   :  { %v3512_v16 = vadd.f32 %v3511_v7, %v3510_v57  ;;  %v4135_v15 = vadd.f32 %v4134_v55, %v10719_v45  ;;  %v4144_v50 = vrot.slane %v9614_v31, 2  ;;  %v6181_v20 = vpop.eup %6180  ;;  %v3500_v19 = vadd.f32 %v3499_v21, %v3498_v56  ;;  %v10725_v57 = vld [vmem:[#allocation18_spill] sm:$0xff] }
 0x6e9   :  { %v4140_v27 = vrot.slane %v4139_v54, 1  ;;  %v3519_v14 = vadd.f32 %v3518_v13, %v3517_v34  ;;  %v3525_v47 = vrot.slane %v3524_v28, 2  ;;  %v10722_v59 = vrot.slane %v9315_v35, 4 }
 0x6ea   :  { %v10724_v29 = vmax.f32 %v10723_v23, 0.0  ;;  %v3962_v52 = vrot.slane %v6181_v20, 4  ;;  %v3506_v2 = vrot.slane %v3505_v3, 1  ;;  %v3532_v1 = vrot.slane %v3531_v62, 2 }
 0x6eb   :  { %v4149_v60 = vadd.f32 %v9315_v35, %v10722_v59  ;;  %v4141_v49 = vadd.f32 %v4140_v27, %v4139_v54  ;;  %v4145_v63 = vadd.f32 %v4144_v50, %v9614_v31  ;;  %6184 = vrcp.f32 %v10725_v57  ;;  %v9688_v35 = vpop.f32.mrf.mxu0  ;;  %v10726_v31 = vld [vmem:[#allocation65_spill] sm:$0xff] }
 0x6ec   :  { %v2911_v17 = vmul.f32 %v6181_v20, %v10724_v29  ;;  %v3963_v36 = vadd.f32 %v6181_v20, %v3962_v52  ;;  %v3513_v24 = vrot.slane %v3512_v16, 1  ;;  %6186 = vrcp.f32 %v4135_v15 }
 0x6ed   :  { %v4150_v12 = vrot.slane %v4149_v60, 2  ;;  %v6183_v34 = vpop.eup %6182  ;;  %v3520_v5 = vrot.slane %v3519_v14, 1  ;;  %v3526_v21 = vadd.f32 %v3525_v47, %v3524_v28  ;;  %v4146_v7 = vrot.slane %v4145_v63, 1 }
 0x6ee   :  { %v3312_v56 = vsel %vm2961_vm1, %v2911_v17, 0.0  ;;  %v3964_v13 = vrot.slane %v3963_v36, 2  ;;  %v3974_v45 = vrot.slane %v6183_v34, 4  ;;  %6188 = vrcp.f32 %v4141_v49  ;;  %v10728_v49 = vld [vmem:[#allocation27_spill] sm:$0xff] }
 0x6ef   :  { %v4151_v44 = vadd.f32 %v4150_v12, %v4149_v60  ;;  %v3313_v51 = vrot.slane %v3312_v56, 4  ;;  %v10727_v55 = vmax.f32 %v10726_v31, 0.0  ;;  %v3533_v41 = vadd.f32 %v3532_v1, %v3531_v62 }
 0x6f0   :  { %v4147_v54 = vadd.f32 %v4146_v7, %v4145_v63  ;;  %v3965_v50 = vadd.f32 %v3964_v13, %v3963_v36  ;;  %v3975_v20 = vadd.f32 %v6183_v34, %v3974_v45  ;;  %v3507_v15 = vadd.f32 %v3506_v2, %v3505_v3  ;;  %v9696_v3 = vpop.xlane.xlu2 %1830 }
 0x6f1   :  { %v2913_v22 = vmul.f32 %v6183_v34, %v10727_v55  ;;  %v4152_v27 = vrot.slane %v4151_v44, 1  ;;  %v4436_v59 = vmul.f32 %v9518_v8, %v3486_v26  ;;  %v6185_v23 = vpop.eup %6184  ;;  %v3514_v29 = vadd.f32 %v3513_v24, %v3512_v16 }
 0x6f2   :  { %v3527_v28 = vrot.slane %v3526_v21, 1  ;;  %6190 = vrcp.f32 %v4147_v54  ;;  %v6187_v60 = vpop.eup %6186  ;;  %v3314_v17 = vadd.f32 %v3313_v51, %v3312_v56  ;;  %v3976_v52 = vrot.slane %v3975_v20, 2  ;;  %v9706_v51 = vld [vmem:[%s10089_s4 + $0x3] ss:$0 sm:$0xff] }
 0x6f3   :  { %v4153_v47 = vadd.f32 %v4152_v27, %v4151_v44  ;;  %v4437_v12 = vmul.f32 %v10728_v49, %v3493_v53  ;;  %v4438_v57 = vmul.f32 %v9533_v42, %v3500_v19  ;;  %v3326_v62 = vsel %vm2961_vm1, %v2913_v22, 0.0  ;;  %v4809_v24 = vpop.f32.mrf.mxu0 }
 0x6f4   :  { %v3521_v1 = vadd.f32 %v3520_v5, %v3519_v14  ;;  %v3534_v63 = vrot.slane %v3533_v41, 1  ;;  %v6189_v8 = vpop.eup %6188  ;;  %v3966_v26 = vrot.slane %v3965_v50, 1  ;;  %v3977_v16 = vadd.f32 %v3976_v52, %v3975_v20 }
 0x6f5   :  { %6192 = vrcp.f32 %v4153_v47  ;;  %v4439_v2 = vmul.f32 %v6185_v23, %v3507_v15  ;;  %v4994_v36 = vsel %vm4514_vm2, %v4437_v12, %v4436_v59  ;;  %v3528_v56 = vadd.f32 %v3527_v28, %v3526_v21  ;;  %v10729_v12 = vld [vmem:[#allocation54_spill] sm:$0xff] }
 0x6f6   :  { %v4440_v34 = vmul.f32 %v6187_v60, %v3514_v29  ;;  %v4995_v53 = vsel %vm4516_vm3, %v4438_v57, %v4994_v36  ;;  %v2351_v42 = vrot.slane %v9681_v10, 4  ;;  %v3315_v19 = vrot.slane %v3314_v17, 2  ;;  %v10735_v36 = vld [vmem:[#allocation30_spill] sm:$0xff] }
 0x6f7   :  { %v3978_v7 = vrot.slane %v3977_v16, 1  ;;  %v4996_v14 = vsel %vm4518_vm4, %v4439_v2, %v4995_v53  ;;  %v2297_v5 = vrot.slane %v9696_v3, 4  ;;  %v3327_v13 = vrot.slane %v3326_v62, 4 }
 0x6f8   :  { %v6191_v44 = vpop.eup %6190  ;;  %v4441_v45 = vmul.f32 %v6189_v8, %v3521_v1  ;;  %v4997_v21 = vsel %vm4520_vm5, %v4440_v34, %v4996_v14  ;;  %v2352_v31 = vmax.f32 %v9681_v10, %v2351_v42  ;;  %v3967_v55 = vadd.f32 %v3966_v26, %v3965_v50  ;;  %v10731_v1 = vld [vmem:[#allocation28_spill] sm:$0xff] }
 0x6f9   :  { %v3535_v22 = vadd.f32 %v3534_v63, %v3533_v41  ;;  %v4442_v54 = vmul.f32 %v6191_v44, %v3528_v56  ;;  %v2298_v27 = vmax.f32 %v9696_v3, %v2297_v5  ;;  %v9714_v15 = vadd.f32 %v4032_v48, %v9640_v40 }
 0x6fa   :  { %v4998_v59 = vsel %vm4522_vm6, %v4441_v45, %v4997_v21  ;;  %v2353_v23 = vrot.slane %v2352_v31, 2  ;;  %v4810_v29 = vadd.f32 %v9706_v51, %v4809_v24  ;;  %v3979_v28 = vadd.f32 %v3978_v7, %v3977_v16  ;;  %v10737_v7 = vld [vmem:[#allocation10_spill] sm:$0xff]  ;;  %v10738_v45 = vld [vmem:[#allocation11_spill] sm:$0xff] }
 0x6fb   :  { %v6193_v20 = vpop.eup %6192  ;;  %v4999_v60 = vsel %vm4524_vm7, %v4442_v54, %v4998_v59  ;;  %v2299_v50 = vrot.slane %v2298_v27, 2  ;;  %v9719_v41 = vadd.f32 %v3315_v19, %v3314_v17  ;;  %v9721_v52 = vadd.f32 %v3327_v13, %v3326_v62  ;;  %v10732_v17 = vld [vmem:[#allocation67_spill] sm:$0xff]  ;;  %v10734_v62 = vld [vmem:[#allocation16_spill] sm:$0xff]  ;;  %v9738_v19 = vpop.f32.mrf.mxu0 }
 0x6fc   :  { %v4443_v47 = vmul.f32 %v6193_v20, %v3535_v22  ;;  %v2354_v49 = vmax.f32 %v2352_v31, %v2353_v23  ;;  %v10730_v57 = vmax.f32 %v10729_v12, 0.0  ;;  %6194 = vrcp.f32 %v3967_v55 }
 0x6fd   :  { %v2300_v63 = vmax.f32 %v2298_v27, %v2299_v50  ;;  %v3452_v8 = vsel %vm2961_vm1, %v9625_v0, 0.0  ;;  %6196 = vtanh.f32 %v4810_v29  ;;  %v10733_v16 = vmax.f32 %v10732_v17, 0.0 }
 0x6fe   :  { %v2933_v40 = vmul.f32 %v10731_v1, %v10730_v57  ;;  %v5000_v48 = vsel %vm4526_vm8, %v4443_v47, %v4999_v60  ;;  %v2355_v26 = vrot.slane %v2354_v49, 1  ;;  %v10736_v24 = vrot.slane %v10735_v36, 4 }
 0x6ff   :  { %5022 = vrot.lane.b32.xlu1 %v5000_v48, %s6312_s7  ;;  %v2934_v2 = vmul.f32 %v10734_v62, %v10733_v16  ;;  %6198 = vrcp.f32 %v3979_v28  ;;  %v2301_v34 = vrot.slane %v2300_v63, 1  ;;  %v3453_v53 = vrot.slane %v3452_v8, 4 }
 0x700   :  { %v3447_v56 = vadd.f32 %v10736_v24, %v10735_v36  ;;  %v3459_v42 = vsel %vm2961_vm1, %v9629_v30, 0.0  ;;  %v2356_v0 = vmax.f32 %v2354_v49, %v2355_v26  ;;  %v3429_v14 = vrot.slane %v10737_v7, 1  ;;  %v10739_v24 = vld [vmem:[#allocation13_spill] sm:$0xff] }
 0x701   :  { %v3460_v5 = vrot.slane %v3459_v42, 4  ;;  %v3466_v44 = vsel %vm2961_vm1, %v2933_v40, 0.0  ;;  %v2302_v13 = vmax.f32 %v2300_v63, %v2301_v34  ;;  %v3441_v21 = vrot.slane %v10738_v45, 2 }
 0x702   :  { %v3454_v31 = vadd.f32 %v3453_v53, %v3452_v8  ;;  %v3467_v55 = vrot.slane %v3466_v44, 4  ;;  %v2626_v22 = vsub.f32 %v9681_v10, %v2356_v0  ;;  %v3448_v54 = vrot.slane %v3447_v56, 2  ;;  %v9745_v30 = vpop.eup %6194 }
 0x703   :  { %v3461_v27 = vadd.f32 %v3460_v5, %v3459_v42  ;;  %v3473_v20 = vsel %vm2961_vm1, %v2934_v2, 0.0  ;;  %v2617_v59 = vsub.f32 %v9696_v3, %v2302_v13  ;;  %v3436_v23 = vrot.slane %v9597_v33, 1  ;;  %v9749_v47 = vpop.eup %6196  ;;  %v4815_v5 = vpop.f32.mrf.mxu0 }
 0x704   :  { %v3455_v29 = vrot.slane %v3454_v31, 2  ;;  %v3468_v28 = vadd.f32 %v3467_v55, %v3466_v44  ;;  %v2791_v60 = vmul.f32 1.442695, %v2626_v22  ;;  %v3474_v49 = vrot.slane %v3473_v20, 4 }
 0x705   :  { %v3462_v50 = vrot.slane %v3461_v27, 2  ;;  %v4086_v12 = vrot.slane %v9670_v58, 1  ;;  %v9752_v10 = vpop.eup %6198  ;;  %v2773_v57 = vmul.f32 1.442695, %v2617_v59  ;;  %v3430_v1 = vadd.f32 %v3429_v14, %v10737_v7  ;;  %v10741_v14 = vld [vmem:[#allocation23_spill] sm:$0xff]  ;;  %v10742_v59 = vld [vmem:[#allocation53_spill] sm:$0xff] }
 0x706   :  { %v3442_v40 = vadd.f32 %v3441_v21, %v10738_v45  ;;  %v3469_v48 = vrot.slane %v3468_v28, 2  ;;  %6200 = vpow2.f32 %v2791_v60  ;;  %v3449_v3 = vadd.f32 %v3448_v54, %v3447_v56 }
 0x707   :  { %v3456_v63 = vadd.f32 %v3455_v29, %v3454_v31  ;;  %v3475_v8 = vadd.f32 %v3474_v49, %v3473_v20  ;;  %6202 = vpow2.f32 %v2773_v57  ;;  %v3463_v26 = vadd.f32 %v3462_v50, %v3461_v27 }
 0x708   :  { %v4087_v17 = vadd.f32 %v4086_v12, %v9670_v58  ;;  %v4091_v16 = vadd.f32 %v4090_v39, %v9616_v37  ;;  %v3470_v2 = vadd.f32 %v3469_v48, %v3468_v28  ;;  %v4096_v34 = vrot.slane %v10739_v24, 2  ;;  %v10743_v48 = vld [vmem:[#allocation7_spill] sm:$0xff] }
 0x709   :  { %v3476_v36 = vrot.slane %v3475_v8, 2  ;;  %v10740_v53 = vrot.slane %v10734_v62, 4  ;;  %v3437_v56 = vadd.f32 %v3436_v23, %v9597_v33  ;;  %v3443_v0 = vrot.slane %v3442_v40, 1 }
 0x70a   :  { %v4092_v7 = vrot.slane %v4091_v16, 1  ;;  %6204 = vrcp.f32 %v10741_v14  ;;  %v3450_v58 = vrot.slane %v3449_v3, 1  ;;  %v3457_v44 = vrot.slane %v3456_v63, 1 }
 0x70b   :  { %v4101_v42 = vadd.f32 %v10734_v62, %v10740_v53  ;;  %v4097_v13 = vadd.f32 %v4096_v34, %v10739_v24  ;;  %v3464_v39 = vrot.slane %v3463_v26, 1  ;;  %v3477_v45 = vadd.f32 %v3476_v36, %v3475_v8  ;;  %v10744_v24 = vld [vmem:[#allocation64_spill] sm:$0xff] }
 0x70c   :  { %v4093_v21 = vadd.f32 %v4092_v7, %v4091_v16  ;;  %6206 = vrcp.f32 %v4087_v17  ;;  %v9767_v31 = vpop.eup %6200  ;;  %v3471_v55 = vrot.slane %v3470_v2, 1  ;;  %v4429_v33 = vmul.f32 %v9649_v32, %v3437_v56  ;;  %v10746_v53 = vld [vmem:[#allocation52_spill] sm:$0xff]  ;;  %v10747_v56 = vld [vmem:[#allocation79_spill] sm:$0xff] }
 0x70d   :  { %v4102_v37 = vrot.slane %v4101_v42, 2  ;;  %v4098_v62 = vrot.slane %v4097_v13, 1  ;;  %v9770_v54 = vpop.eup %6202  ;;  %v9774_v27 = vadd.f32 %v9706_v51, %v9688_v35  ;;  %v3444_v20 = vadd.f32 %v3443_v0, %v3442_v40 }
 0x70e   :  { %6208 = vrcp.f32 %v4093_v21  ;;  %v4428_v23 = vmul.f32 %v10742_v59, %v3430_v1  ;;  %v3451_v29 = vadd.f32 %v3450_v58, %v3449_v3  ;;  %v3458_v28 = vadd.f32 %v3457_v44, %v3456_v63  ;;  %v4818_v44 = vpop.f32.mrf.mxu0 }
 0x70f   :  { %v4103_v22 = vadd.f32 %v4102_v37, %v4101_v42  ;;  %v4099_v60 = vadd.f32 %v4098_v62, %v4097_v13  ;;  %v3465_v12 = vadd.f32 %v3464_v39, %v3463_v26  ;;  %v3478_v57 = vrot.slane %v3477_v45, 1  ;;  %v10749_v13 = vld [vmem:[#allocation12_spill] sm:$0xff] }
 0x710   :  { %v6205_v49 = vpop.eup %6204  ;;  %v4430_v8 = vmul.f32 %v10743_v48, %v3444_v20  ;;  %v4987_v32 = vsel %vm4514_vm2, %v4429_v33, %v4428_v23  ;;  %v4052_v17 = vrot.slane %v9767_v31, 4  ;;  %v3472_v16 = vadd.f32 %v3471_v55, %v3470_v2 }
 0x711   :  { %v4104_v50 = vrot.slane %v4103_v22, 1  ;;  %6210 = vrcp.f32 %v4099_v60  ;;  %v3998_v36 = vrot.slane %v9770_v54, 4  ;;  %v4431_v1 = vmul.f32 %v6205_v49, %v3451_v29 }
 0x712   :  { %v6207_v40 = vpop.eup %6206  ;;  %v4988_v3 = vsel %vm4516_vm3, %v4430_v8, %v4987_v32  ;;  %v9784_v63 = vadd.f32 %v9706_v51, %v9738_v19  ;;  %v10745_v34 = vmax.f32 %v10744_v24, 0.0  ;;  %v10748_v2 = vmax.f32 %v10747_v56, 0.0 }
 0x713   :  { %v4105_v35 = vadd.f32 %v4104_v50, %v4103_v22  ;;  %v4432_v26 = vmul.f32 %v6207_v40, %v3458_v28  ;;  %v3479_v14 = vadd.f32 %v3478_v57, %v3477_v45  ;;  %v9793_v58 = vadd.f32 %v9706_v51, %v4815_v5 }
 0x714   :  { %v2925_v42 = vmul.f32 %v10746_v53, %v10745_v34  ;;  %v2926_v0 = vmul.f32 %v9767_v31, %v10748_v2  ;;  %v6209_v7 = vpop.eup %6208  ;;  %v3385_v37 = vrot.slane %v10749_v13, 2  ;;  %v3391_v19 = vadd.f32 %v3390_v9, %v9634_v61 }
 0x715   :  { %6212 = vrcp.f32 %v4105_v35  ;;  %v4433_v39 = vmul.f32 %v6209_v7, %v3465_v12  ;;  %v4989_v21 = vsel %vm4518_vm4, %v4431_v1, %v4988_v3  ;;  %v4819_v55 = vadd.f32 %v9706_v51, %v4818_v44  ;;  %v10753_v44 = vld [vmem:[#allocation31_spill] sm:$0xff] }
 0x716   :  { %v3396_v62 = vsel %vm2961_vm1, %v9443_v4, 0.0  ;;  %v9804_v45 = vadd.f32 %v9770_v54, %v3998_v36  ;;  %v4990_v5 = vsel %vm4520_vm5, %v4432_v26, %v4989_v21  ;;  %v3392_v22 = vrot.slane %v3391_v19, 2  ;;  %v10751_v26 = vld [vmem:[#allocation35_spill] sm:$0xff] }
 0x717   :  { %v3397_v33 = vrot.slane %v3396_v62, 4  ;;  %v6211_v20 = vpop.eup %6210  ;;  %v4991_v59 = vsel %vm4522_vm6, %v4433_v39, %v4990_v5  ;;  %v3403_v61 = vsel %vm2961_vm1, %v9458_v43, 0.0  ;;  %v3410_v9 = vsel %vm2961_vm1, %v2925_v42, 0.0  ;;  %v10750_v43 = vld [vmem:[#allocation49_spill] sm:$0xff] }
 0x718   :  { %v3417_v23 = vsel %vm2961_vm1, %v2926_v0, 0.0  ;;  %v4434_v29 = vmul.f32 %v6211_v20, %v3472_v16  ;;  %v3386_v4 = vadd.f32 %v3385_v37, %v10749_v13  ;;  %v3393_v28 = vadd.f32 %v3392_v22, %v3391_v19  ;;  %v4821_v20 = vpop.f32.mrf.mxu0 }
 0x719   :  { %v3398_v60 = vadd.f32 %v3397_v33, %v3396_v62  ;;  %v3404_v49 = vrot.slane %v3403_v61, 4  ;;  %v3411_v12 = vrot.slane %v3410_v9, 4  ;;  %v3418_v57 = vrot.slane %v3417_v23, 4 }
 0x71a   :  { %v4038_v48 = vrot.slane %v9452_v11, 1  ;;  %v4992_v32 = vsel %vm4524_vm7, %v4434_v29, %v4991_v59  ;;  %6214 = vtanh.f32 %v4819_v55  ;;  %v3373_v35 = vrot.slane %v10750_v43, 1 }
 0x71b   :  { %v6213_v50 = vpop.eup %6212  ;;  %v3399_v40 = vrot.slane %v3398_v60, 2  ;;  %v3405_v36 = vadd.f32 %v3404_v49, %v3403_v61  ;;  %v3412_v1 = vadd.f32 %v3411_v12, %v3410_v9  ;;  %v3419_v16 = vadd.f32 %v3418_v57, %v3417_v23  ;;  %v10755_v49 = vld [vmem:[#allocation34_spill] sm:$0xff] }
 0x71c   :  { %v4435_v8 = vmul.f32 %v6213_v50, %v3479_v14  ;;  %v3380_v24 = vrot.slane %v10751_v26, 1  ;;  %v4039_v34 = vadd.f32 %v4038_v48, %v9452_v11  ;;  %v10752_v53 = vrot.slane %v9460_v18, 2 }
 0x71d   :  { %v3387_v56 = vrot.slane %v3386_v4, 1  ;;  %v3394_v2 = vrot.slane %v3393_v28, 1  ;;  %v3400_v0 = vadd.f32 %v3399_v40, %v3398_v60  ;;  %v3406_v7 = vrot.slane %v3405_v36, 2  ;;  %v10754_v60 = vld [vmem:[#allocation24_spill] sm:$0xff] }
 0x71e   :  { %v4993_v3 = vsel %vm4526_vm8, %v4435_v8, %v4992_v32  ;;  %v4043_v42 = vadd.f32 %v10752_v53, %v9460_v18  ;;  %v4048_v13 = vrot.slane %v10753_v44, 2  ;;  %v4053_v37 = vadd.f32 %v9767_v31, %v4052_v17  ;;  %v9829_v18 = vpop.permute.xlu2 %5026  ;;  %v10756_v32 = vld [vmem:[#allocation5_spill] sm:$0xff] }
 0x71f   :  { %5020 = vrot.lane.b32.xlu0 %v4993_v3, %s6312_s7  ;;  %6216 = vrcp.f32 %v9714_v15  ;;  %v3374_v19 = vadd.f32 %v3373_v35, %v10750_v43  ;;  %v3407_v11 = vadd.f32 %v3406_v7, %v3405_v36  ;;  %v3413_v39 = vrot.slane %v3412_v1, 2  ;;  %5664 = vmatpush.xpose.msk.msra.mxu1 %vm52_vm0, %v9829_v18  ;;  %v10757_v35 = vld [vmem:[#allocation21_spill] sm:$0xff]  ;;  %v10761_v7 = vld [vmem:[#allocation71_spill] sm:$0xff] }
 0x720   :  { %v4044_v14 = vrot.slane %v4043_v42, 1  ;;  %v3420_v21 = vrot.slane %v3419_v16, 2  ;;  %v9827_v55 = vpop.eup %6214  ;;  %v4049_v5 = vadd.f32 %v4048_v13, %v10753_v44  ;;  %v4054_v22 = vrot.slane %v4053_v37, 2 }
 0x721   :  { %6218 = vrcp.f32 %v4039_v34  ;;  %v3381_v31 = vadd.f32 %v3380_v24, %v10751_v26  ;;  %v3388_v15 = vadd.f32 %v3387_v56, %v3386_v4  ;;  %v3401_v17 = vrot.slane %v3400_v0, 1  ;;  %v10759_v34 = vld [vmem:[#allocation36_spill] sm:$0xff] }
 0x722   :  { %v4045_v62 = vadd.f32 %v4044_v14, %v4043_v42  ;;  %v3408_v33 = vrot.slane %v3407_v11, 1  ;;  %v3395_v59 = vadd.f32 %v3394_v2, %v3393_v28  ;;  %v4050_v61 = vrot.slane %v4049_v5, 1 }
 0x723   :  { %v4055_v9 = vadd.f32 %v4054_v22, %v4053_v37  ;;  %v3414_v23 = vadd.f32 %v3413_v39, %v3412_v1  ;;  %v3421_v29 = vadd.f32 %v3420_v21, %v3419_v16  ;;  %v4420_v50 = vmul.f32 %v10754_v60, %v3374_v19 }
 0x724   :  { %6220 = vrcp.f32 %v4045_v62  ;;  %v4421_v12 = vmul.f32 %v10755_v49, %v3381_v31  ;;  %v4051_v48 = vadd.f32 %v4050_v61, %v4049_v5  ;;  %v4422_v43 = vmul.f32 %v10756_v32, %v3388_v15  ;;  %v10765_v5 = vld [vmem:[#allocation17_spill] sm:$0xff] }
 0x725   :  { %v6217_v57 = vpop.eup %6216  ;;  %v4056_v8 = vrot.slane %v4055_v9, 1  ;;  %v4822_v4 = vadd.f32 %v9706_v51, %v4821_v20  ;;  %v10758_v40 = vrot.slane %v10757_v35, 1  ;;  %v3402_v28 = vadd.f32 %v3401_v17, %v3400_v0  ;;  %v10763_v0 = vld [vmem:[#allocation8_spill] sm:$0xff]  ;;  %v10766_v17 = vld [vmem:[#allocation39_spill] sm:$0xff] }
 0x726   :  { %v3409_v36 = vadd.f32 %v3408_v33, %v3407_v11  ;;  %v4423_v3 = vmul.f32 %v6217_v57, %v3395_v59  ;;  %v4980_v1 = vsel %vm4514_vm2, %v4421_v12, %v4420_v50  ;;  %6222 = vrcp.f32 %v4051_v48 }
 0x727   :  { %4921 = vrot.lane.b32.xlu0 %v10758_v40, %s6313_s1  ;;  %v6219_v16 = vpop.eup %6218  ;;  %v4057_v26 = vadd.f32 %v4056_v8, %v4055_v9  ;;  %v4981_v24 = vsel %vm4516_vm3, %v4422_v43, %v4980_v1  ;;  %v10760_v53 = vmax.f32 %v10759_v34, 0.0  ;;  %6224 = vtanh.f32 %v4822_v4  ;;  %v10767_v8 = vld [vmem:[#allocation57_spill] sm:$0xff]  ;;  %v10768_v40 = vld [vmem:[#allocation19_spill] sm:$0xff] }
 0x728   :  { %v4424_v56 = vmul.f32 %v6219_v16, %v3402_v28  ;;  %v4982_v2 = vsel %vm4518_vm4, %v4423_v3, %v4981_v24  ;;  %v10762_v14 = vmax.f32 %v10761_v7, 0.0  ;;  %v3415_v37 = vrot.slane %v3414_v23, 1 }
 0x729   :  { %v2917_v42 = vmul.f32 %v9770_v54, %v10760_v53  ;;  %6226 = vrcp.f32 %v4057_v26  ;;  %v3329_v19 = vrot.slane %v9721_v52, 2  ;;  %v10764_v11 = vrot.slane %v9487_v46, 4 }
 0x72a   :  { %v2918_v44 = vmul.f32 %v10763_v0, %v10762_v14  ;;  %v6221_v13 = vpop.eup %6220  ;;  %v3422_v21 = vrot.slane %v3421_v29, 1  ;;  %v4983_v54 = vsel %vm4520_vm5, %v4424_v56, %v4982_v2  ;;  %v3340_v22 = vsel %vm2961_vm1, %v10765_v5, 0.0 }
 0x72b   :  { %v3335_v39 = vadd.f32 %v10764_v11, %v9487_v46  ;;  %v4425_v62 = vmul.f32 %v6221_v13, %v3409_v36  ;;  %6228 = vtanh.f32 %v9793_v58  ;;  %v3330_v31 = vadd.f32 %v3329_v19, %v9721_v52 }
 0x72c   :  { %v3341_v15 = vrot.slane %v3340_v22, 4  ;;  %v3347_v33 = vsel %vm2961_vm1, %v10766_v17, 0.0  ;;  %v3354_v46 = vsel %vm2961_vm1, %v2917_v42, 0.0  ;;  %v3361_v61 = vsel %vm2961_vm1, %v2918_v44, 0.0  ;;  %v6223_v9 = vpop.eup %6222 }
 0x72d   :  { %v4984_v20 = vsel %vm4522_vm6, %v4425_v62, %v4983_v54  ;;  %v3348_v59 = vrot.slane %v3347_v33, 4  ;;  %v3416_v60 = vadd.f32 %v3415_v37, %v3414_v23  ;;  %v3336_v50 = vrot.slane %v3335_v39, 2  ;;  %v6225_v57 = vpop.eup %6224 }
 0x72e   :  { %v3342_v49 = vadd.f32 %v3341_v15, %v3340_v22  ;;  %v3355_v12 = vrot.slane %v3354_v46, 4  ;;  %v3423_v58 = vadd.f32 %v3422_v21, %v3421_v29  ;;  %v3362_v52 = vrot.slane %v3361_v61, 4  ;;  %5653 = vmatpush.xpose.msk.msra.mxu3 %vm4697_vm12, %v6225_v57 }
 0x72f   :  { %v3349_v48 = vadd.f32 %v3348_v59, %v3347_v33  ;;  %v3990_v32 = vrot.slane %v10767_v8, 1  ;;  %v6227_v43 = vpop.eup %6226  ;;  %v4426_v4 = vmul.f32 %v6223_v9, %v3416_v60  ;;  %v3317_v35 = vrot.slane %v9719_v41, 1  ;;  %v10771_v33 = vld [vmem:[#allocation6_spill] sm:$0xff] }
 0x730   :  { %v3324_v28 = vrot.slane %v10768_v40, 1  ;;  %v3343_v36 = vrot.slane %v3342_v49, 2  ;;  %6230 = vtanh.f32 %v9784_v63  ;;  %v4427_v23 = vmul.f32 %v6227_v43, %v3423_v58 }
 0x731   :  { %v3331_v3 = vrot.slane %v3330_v31, 1  ;;  %v3356_v1 = vadd.f32 %v3355_v12, %v3354_v46  ;;  %v6229_v16 = vpop.eup %6228  ;;  %v4985_v29 = vsel %vm4524_vm7, %v4426_v4, %v4984_v20  ;;  %v3337_v26 = vadd.f32 %v3336_v50, %v3335_v39  ;;  %v10770_v39 = vld [vmem:[#allocation45_spill] sm:$0xff] }
 0x732   :  { %v3350_v24 = vrot.slane %v3349_v48, 2  ;;  %v3363_v34 = vadd.f32 %v3362_v52, %v3361_v61  ;;  %v4986_v53 = vsel %vm4526_vm8, %v4427_v23, %v4985_v29  ;;  %v3344_v42 = vadd.f32 %v3343_v36, %v3342_v49  ;;  %5654 = vmatpush.xpose.msk.msra.mxu3 %vm4697_vm12, %v9827_v55 }
 0x733   :  { %v3991_v56 = vadd.f32 %v3990_v32, %v10767_v8  ;;  %v3995_v2 = vadd.f32 %v3994_v6, %v9547_v25  ;;  %5018 = vrot.lane.b32.xlu2 %v4986_v53, %s6312_s7  ;;  %v3318_v63 = vadd.f32 %v3317_v35, %v9719_v41  ;;  %v3325_v7 = vadd.f32 %v3324_v28, %v10768_v40 }
 0x734   :  { %v4000_v14 = vrot.slane %v9804_v45, 2  ;;  %v10769_v44 = vrot.slane %v10763_v0, 4  ;;  %v3332_v37 = vadd.f32 %v3331_v3, %v3330_v31  ;;  %v3357_v19 = vrot.slane %v3356_v1, 2 }
 0x735   :  { %v3996_v11 = vrot.slane %v3995_v2, 1  ;;  %6232 = vrcp.f32 %v10770_v39  ;;  %v3338_v25 = vrot.slane %v3337_v26, 1  ;;  %v3351_v6 = vadd.f32 %v3350_v24, %v3349_v48 }
 0x736   :  { %v4005_v13 = vadd.f32 %v10763_v0, %v10769_v44  ;;  %v4001_v41 = vadd.f32 %v4000_v14, %v9804_v45  ;;  %v6231_v62 = vpop.eup %6230  ;;  %v3345_v54 = vrot.slane %v3344_v42, 1  ;;  %v3364_v5 = vrot.slane %v3363_v34, 2  ;;  %5655 = vmatpush.xpose.msk.msra.mxu3 %vm4697_vm12, %v6229_v16  ;;  %v10772_v16 = vld [vmem:[#allocation20_spill] sm:$0xff]  ;;  %v10776_v14 = vld [vmem:[#allocation2_spill] sm:$0xff] }
 0x737   :  { %v3997_v22 = vadd.f32 %v3996_v11, %v3995_v2  ;;  %6234 = vrcp.f32 %v3991_v56  ;;  %v4804_v0 = vadd.f32 %v9706_v51, %v9661_v38  ;;  %v4412_v31 = vmul.f32 %v9745_v30, %v3318_v63  ;;  %v10773_v56 = vld [vmem:[#allocation40_spill] sm:$0xff]  ;;  %v10774_v2 = vld [vmem:[#allocation59_spill] sm:$0xff]  ;;  %v10780_v11 = vld [vmem:[#allocation33_spill] sm:$0xff] }
 0x738   :  { %v4006_v21 = vrot.slane %v4005_v13, 2  ;;  %v4002_v15 = vrot.slane %v4001_v41, 1  ;;  %v3358_v17 = vadd.f32 %v3357_v19, %v3356_v1  ;;  %v4413_v20 = vmul.f32 %v10771_v33, %v3325_v7  ;;  %v6303_v1 = vld [vmem:[%s10089_s4 + $0x5] ss:$0 sm:$0xff]  ;;  %v10775_v7 = vld [vmem:[#allocation44_spill] sm:$0xff]  ;;  %v10779_v19 = vld [vmem:[#allocation83_spill] sm:$0xff] }
 0x739   :  { %6236 = vrcp.f32 %v3997_v22  ;;  %v4414_v45 = vmul.f32 %v9752_v10, %v3332_v37  ;;  %v3339_v59 = vadd.f32 %v3338_v25, %v3337_v26  ;;  %v3352_v46 = vrot.slane %v3351_v6, 1  ;;  %v10778_v37 = vld [vmem:[#allocation84_spill] sm:$0xff]  ;;  %v10781_v25 = vld [vmem:[#allocation50_spill] sm:$0xff]  ;;  %v10782_v22 = vld [vmem:[#allocation25_spill] sm:$0xff] }
 0x73a   :  { %v4007_v55 = vadd.f32 %v4006_v21, %v4005_v13  ;;  %v4003_v61 = vadd.f32 %v4002_v15, %v4001_v41  ;;  %6238 = vtanh.f32 %v9774_v27  ;;  %v3346_v38 = vadd.f32 %v3345_v54, %v3344_v42  ;;  %5656 = vmatpush.xpose.msk.msra.mxu3 %vm4697_vm12, %v6231_v62  ;;  %v9917_v42 = vld [vmem:[%s10089_s4 + $0x4] sm:$0x1]  ;;  %v10777_v13 = vld [vmem:[#allocation4_spill] sm:$0xff] }
 0x73b   :  { %v6233_v60 = vpop.eup %6232  ;;  %v3365_v51 = vadd.f32 %v3364_v5, %v3363_v34  ;;  %v4973_v50 = vsel %vm4514_vm2, %v4413_v20, %v4412_v31  ;;  %v3359_v10 = vrot.slane %v3358_v17, 1  ;;  %v3353_v58 = vadd.f32 %v3352_v46, %v3351_v6  ;;  %v6305_v5 = vld [vmem:[%s10086_s3 + $0x40] sm:$0xff]  ;;  %v5675_v20 = vld [vmem:[%s10091_s2 + $0x38] sm:$0xff]  ;;  %v5678_v46 = vld [vmem:[%s10091_s2 + $0x50] sm:$0xff] }
 0x73c   :  { %v4008_v9 = vrot.slane %v4007_v55, 1  ;;  %6240 = vrcp.f32 %v4003_v61  ;;  %v4415_v49 = vmul.f32 %v6233_v60, %v3339_v59  ;;  %v4974_v12 = vsel %vm4516_vm3, %v4414_v45, %v4973_v50  ;;  %v5676_v45 = vld [vmem:[%s10091_s2 + $0x40] sm:$0xff]  ;;  %v5677_v59 = vld [vmem:[%s10091_s2 + $0x48] sm:$0xff]  ;;  %v5679_v60 = vld [vmem:[%s10091_s2 + $0x58] sm:$0xff] }
 0x73d   :  { %v6235_v57 = vpop.eup %6234  ;;  %v3366_v27 = vrot.slane %v3365_v51, 1  ;;  %v3360_v35 = vadd.f32 %v3359_v10, %v3358_v17  ;;  %v9906_v29 = vadd.f32 %v6303_v1, %v10772_v16  ;;  %v10783_v61 = vld [vmem:[#allocation29_spill] sm:$0xff] }
 0x73e   :  { %v4009_v30 = vadd.f32 %v4008_v9, %v4007_v55  ;;  %v4416_v48 = vmul.f32 %v6235_v57, %v3346_v38  ;;  %v4975_v52 = vsel %vm4518_vm4, %v4415_v49, %v4974_v12  ;;  %5657 = vmatpush.xpose.msk.msra.mxu3 %vm4697_vm12, %v9749_v47  ;;  %v9974_v9 = vadd.f32 %v6303_v1, %v10783_v61  ;;  %v5680_v49 = vld [vmem:[%s10091_s2 + $0x60] sm:$0xff] }
 0x73f   :  { %v6237_v8 = vpop.eup %6236  ;;  %v3367_v36 = vadd.f32 %v3366_v27, %v3365_v51  ;;  %v928_v53 = vmax.f32 %v9906_v29, 0.0  ;;  %v6307_v27 = vld [vmem:[%s10086_s3 + $0x60] sm:$0xff] }
 0x740   :  { %6242 = vrcp.f32 %v4009_v30  ;;  %v4417_v32 = vmul.f32 %v6237_v8, %v3353_v58  ;;  %v4976_v43 = vsel %vm4520_vm5, %v4416_v48, %v4975_v52  ;;  %v6239_v4 = vpop.eup %6238  ;;  %v930_v51 = vmax.f32 %v9974_v9, 0.0  ;;  %v5681_v48 = vld [vmem:[%s10091_s2 + $0x68] sm:$0x3] }
 0x741   :  { %6244 = vtanh.f32 %v4804_v0  ;;  %v990_v63 = vmul.f32 %v10774_v2, %v928_v53  ;;  %v9949_v0 = vadd.f32 %v6303_v1, %v10782_v22  ;;  %v6306_v8 = vld [vmem:[%s10086_s3 + $0x68] sm:$0xff] }
 0x742   :  { %v6241_v40 = vpop.eup %6240  ;;  %v4977_v28 = vsel %vm4522_vm6, %v4417_v32, %v4976_v43  ;;  %5658 = vmatpush.xpose.msk.msra.mxu3 %vm4697_vm12, %v6239_v4  ;;  %v992_v30 = vmul.f32 %v10774_v2, %v930_v51  ;;  %v6308_v32 = vld [vmem:[%s10086_s3 + $0x58] sm:$0xff]  ;;  %v6309_v43 = vld [vmem:[%s10086_s3 + $0x50] sm:$0xff] }
 0x743   :  { %v4418_v23 = vmul.f32 %v6241_v40, %v3360_v35  ;;  %v1002_v44 = vsel %vm52_vm0, %v990_v63, 0.0  ;;  %v929_v55 = vmax.f32 %v9949_v0, 0.0 }
 0x744   :  { %v1008_v57 = vsel %vm52_vm0, %v992_v30, 0.0 }
 0x745   :  { %v4978_v47 = vsel %vm4524_vm7, %v4418_v23, %v4977_v28  ;;  %v991_v17 = vmul.f32 %v10774_v2, %v929_v55 }
 0x746   :  { %v6243_v3 = vpop.eup %6242 }
 0x747   :  { %v6245_v26 = vpop.eup %6244  ;;  %v4419_v24 = vmul.f32 %v6243_v3, %v3367_v36  ;;  %v1005_v33 = vsel %vm52_vm0, %v991_v17, 0.0 }
 0x748   :  { %5659 = vmatpush.xpose.msk.msra.mxu3 %vm4697_vm12, %v6245_v26 }
 0x749   :  { %v4979_v34 = vsel %vm4526_vm8, %v4419_v24, %v4978_v47 }
 0x74a   :  { %5016 = vrot.lane.b32.xlu1 %v4979_v34, %s6312_s7 }
 0x74b   :  { %5660 = vmatmul.msk.f32.vlgmr.msra.gmra.mxu3 %vm4697_vm12, %v9917_v42 }
 0x74c   :  { %5661 = vmatpush.msk.msrb.mxu3 %vm4634_vm9, %v10773_v56 }
 0x74e   :  { %4899 = vmatpush.msrb.mxu3 %v10775_v7 }
 0x750   :  { %4900 = vmatpush.msrb.mxu3 %v10776_v14 }
 0x751   :  { %1003 = vadd.xlane.f32.xlu0 %v1002_v44  ;;  %v5025_v39 = vpop.permute.xlu0 %5024 }
 0x752   :  { %4901 = vmatpush.msrb.mxu3 %v10777_v13  ;;  %5665 = vmatpush.xpose.msk.msra.mxu1 %vm52_vm0, %v5025_v39 }
 0x754   :  { %4902 = vmatpush.msrb.mxu3 %v10778_v37 }
 0x756   :  { %4903 = vmatpush.msrb.mxu3 %v10779_v19 }
 0x758   :  { %4904 = vmatpush.msrb.mxu3 %v10780_v11  ;;  %v10010_v11 = vld [vmem:[%s10089_s4 + $0x2] ss:$0 sm:$0xff] }
 0x75a   :  { %5671 = vmatpush.msk.msra.mxu3 %vm4634_vm9, %v10781_v25 }
 0x75c   :  { %5096 = vmatpush.msra.mxu3 %v9829_v18  ;;  %v6304_v18 = vld [vmem:[%s10086_s3 + $0x48] sm:$0xff] }
 0x75e   :  { %5097 = vmatpush.msra.mxu3 %v5025_v39 }
 0x771   :  { %v5023_v6 = vpop.permute.xlu1 %5022 }
 0x772   :  { %5666 = vmatpush.xpose.msk.msra.mxu1 %vm52_vm0, %v5023_v6  ;;  %5098 = vmatpush.msra.mxu3 %v5023_v6 }
 0x78d   :  { %v5019_v21 = vpop.permute.xlu2 %5018 }
 0x791   :  { %v5021_v41 = vpop.permute.xlu0 %5020 }
 0x792   :  { %5667 = vmatpush.xpose.msk.msra.mxu1 %vm52_vm0, %v5021_v41  ;;  %5099 = vmatpush.msra.mxu3 %v5021_v41 }
 0x794   :  { %5100 = vmatpush.msra.mxu3 %v5019_v21 }
 0x796   :  { %5668 = vmatpush.xpose.msk.msra.mxu1 %vm52_vm0, %v5019_v21 }
 0x799   :  { %v4922_v54 = vpop.permute.xlu0 %4921 }
 0x7bc   :  { %v5017_v62 = vpop.permute.xlu1 %5016 }
 0x7bd   :  { %5669 = vmatpush.xpose.msk.msra.mxu1 %vm52_vm0, %v5017_v62  ;;  %5101 = vmatpush.msra.mxu3 %v5017_v62 }
 0x7c0   :  { %5670 = vmatmul.msk.f32.vlgmr.msra.gmra.mxu1 %vm52_vm0, %v4922_v54 }
 0x7c1   :  { %5181 = vmatpush.msrb.mxu1 %v6304_v18 }
 0x7c3   :  { %5182 = vmatpush.msrb.mxu1 %v6305_v5 }
 0x7c4   :  { %v1004_v35 = vpop.xlane.xlu0 %1003 }
 0x7c5   :  { %v1029_v28 = vrot.slane %v1004_v35, 4 }
 0x7c7   :  { %v1030_v23 = vmax.f32 %v1004_v35, %v1029_v28 }
 0x7c8   :  { %5682 = vmatmul.msk.f32.vlgmr.msrb.gmra.mxu1 %vm4697_vm12, %v5675_v20 }
 0x7c9   :  { %v1031_v1 = vrot.slane %v1030_v23, 2 }
 0x7cb   :  { %v1032_v26 = vmax.f32 %v1030_v23, %v1031_v1 }
 0x7cd   :  { %v1033_v47 = vrot.slane %v1032_v26, 1 }
 0x7ce   :  { %v4872_v15 = vpop.f32.mrf.mxu3 }
 0x7cf   :  { %v4875_v31 = vsel %vm4614_vm10, %v4872_v15, -inf  ;;  %v1034_v56 = vmax.f32 %v1032_v26, %v1033_v47 }
 0x7d0   :  { %4876 = vmax.xlane.f32.xlu2 %v4875_v31  ;;  %5683 = vmatmul.msk.f32.gmra.mxu1 %vm4697_vm12, %v5676_v45 }
 0x7d1   :  { %v1050_v63 = vsub.f32 %v1004_v35, %v1034_v56 }
 0x7d3   :  { %v1059_v19 = vmul.f32 1.442695, %v1050_v63 }
 0x7d8   :  { %1006 = vadd.xlane.f32.xlu2 %v1005_v33  ;;  %5684 = vmatmul.msk.f32.gmra.mxu1 %vm4697_vm12, %v5677_v59 }
 0x7e0   :  { %5685 = vmatmul.msk.f32.gmra.mxu1 %vm4697_vm12, %v5678_v46 }
 0x7e8   :  { %5686 = vmatmul.msk.f32.gmra.mxu1 %vm4697_vm12, %v5679_v60 }
 0x7f0   :  { %5687 = vmatmul.msk.f32.gmra.mxu1 %vm4697_vm12, %v5680_v49 }
 0x7f8   :  { %5688 = vmatmul.msk.f32.gmra.mxu1 %vm4697_vm12, %v5681_v48 }
 0x83d   :  { %v5063_v38 = vpop.f32.mrf.mxu1 }
 0x83e   :  { %v5066_v50 = vsel %vm4614_vm10, %v5063_v38, -inf }
 0x83f   :  { %5067 = vmax.xlane.f32.xlu1 %v5066_v50 }
 0x843   :  { %v4877_v12 = vpop.xlane.xlu2 %4876 }
 0x844   :  { %v4878_v10 = vsub.f32 %v4872_v15, %v4877_v12 }
 0x845   :  { %v5184_v13 = vpop.f32.mrf.mxu1 }
 0x846   :  { %v4879_v58 = vmul.f32 1.442695, %v4878_v10  ;;  %v5185_v39 = vadd.f32 %v10010_v11, %v5184_v13 }
 0x847   :  { %1009 = vadd.xlane.f32.xlu1 %v1008_v57 }
 0x848   :  { %6246 = vpow2.f32 %v4879_v58 }
 0x84b   :  { %v1007_v4 = vpop.xlane.xlu2 %1006 }
 0x84c   :  { %v1035_v40 = vrot.slane %v1007_v4, 4 }
 0x84d   :  { %v5187_v41 = vpop.f32.mrf.mxu1 }
 0x84e   :  { %v6247_v52 = vpop.eup %6246  ;;  %v1036_v36 = vmax.f32 %v1007_v4, %v1035_v40  ;;  %v5188_v17 = vadd.f32 %v10010_v11, %v5187_v41 }
 0x84f   :  { %5662 = vmatmul.msk.f32.vlgmr.msrb.gmra.mxu3 %vm4630_vm11, %v6247_v52 }
 0x850   :  { %5245 = vmatpush.msrb.mxu3 %v6306_v8  ;;  %v1037_v3 = vrot.slane %v1036_v36, 2 }
 0x852   :  { %5246 = vmatpush.msrb.mxu3 %v6307_v27  ;;  %v1038_v16 = vmax.f32 %v1036_v36, %v1037_v3 }
 0x854   :  { %5247 = vmatpush.msrb.mxu3 %v6308_v32  ;;  %v1039_v24 = vrot.slane %v1038_v16, 1 }
 0x855   :  { %v5190_v59 = vpop.f32.mrf.mxu1 }
 0x856   :  { %5248 = vmatpush.msrb.mxu3 %v6309_v43  ;;  %v1040_v34 = vmax.f32 %v1038_v16, %v1039_v24  ;;  %v5191_v10 = vadd.f32 %v10010_v11, %v5190_v59 }
 0x858   :  { %v1051_v2 = vsub.f32 %v1007_v4, %v1040_v34 }
 0x85a   :  { %v1061_v44 = vmul.f32 1.442695, %v1051_v2 }
 0x85d   :  { %v5193_v8 = vpop.f32.mrf.mxu1 }
 0x85e   :  { %v5194_v4 = vadd.f32 %v10010_v11, %v5193_v8 }
 0x865   :  { %v5196_v16 = vpop.f32.mrf.mxu1 }
 0x8b2   :  { %v5068_v7 = vpop.xlane.xlu1 %5067 }
 0x8b3   :  { %v5069_v14 = vsub.f32 %v5063_v38, %v5068_v7  ;;  %v4881_v38 = vsel %vm4614_vm10, %v6247_v52, 0.0 }
 0x8b5   :  { %v5070_v37 = vmul.f32 1.442695, %v5069_v14  ;;  %v5197_v14 = vadd.f32 %v10010_v11, %v5196_v16 }
 0x8b7   :  { %6248 = vpow2.f32 %v5070_v37 }
 0x8b8   :  { %6250 = vpow2.f32 %v1061_v44 }
 0x8b9   :  { %6252 = vpow2.f32 %v1059_v19 }
 0x8ba   :  { %v1010_v25 = vpop.xlane.xlu1 %1009  ;;  %6254 = vtanh.f32 %v5185_v39 }
 0x8bb   :  { %v1041_v6 = vrot.slane %v1010_v25, 4  ;;  %6256 = vtanh.f32 %v5188_v17 }
 0x8bd   :  { %v6249_v21 = vpop.eup %6248  ;;  %v1042_v62 = vmax.f32 %v1010_v25, %v1041_v6 }
 0x8be   :  { %v6251_v18 = vpop.eup %6250  ;;  %5672 = vmatmul.msk.f32.vlgmr.msra.gmra.mxu3 %vm4630_vm11, %v6249_v21  ;;  %v5072_v54 = vsel %vm4614_vm10, %v6249_v21, 0.0 }
 0x8bf   :  { %v1043_v5 = vrot.slane %v1042_v62, 2  ;;  %5073 = vadd.xlane.f32.xlu0 %v5072_v54  ;;  %v6253_v22 = vpop.eup %6252  ;;  %v1137_v15 = vrot.slane %v6251_v18, 4  ;;  %v1069_v46 = vmul.f32 %v6251_v18, %v929_v55 }
 0x8c0   :  { %v10016_v33 = vpop.eup %6254  ;;  %v1131_v20 = vrot.slane %v6253_v22, 4  ;;  %v1068_v50 = vmul.f32 %v6253_v22, %v928_v53 }
 0x8c1   :  { %v1044_v31 = vmax.f32 %v1042_v62, %v1043_v5  ;;  %v1138_v61 = vadd.f32 %v6251_v18, %v1137_v15  ;;  %v1099_v0 = vsel %vm52_vm0, %v1069_v46, 0.0  ;;  %v10027_v55 = vpop.eup %6256 }
 0x8c2   :  { %v1132_v30 = vadd.f32 %v6253_v22, %v1131_v20  ;;  %v1092_v48 = vsel %vm52_vm0, %v1068_v50, 0.0  ;;  %v1100_v52 = vrot.slane %v1099_v0, 4 }
 0x8c3   :  { %v1045_v45 = vrot.slane %v1044_v31, 1  ;;  %v1139_v12 = vrot.slane %v1138_v61, 2  ;;  %v1093_v53 = vrot.slane %v1092_v48, 4 }
 0x8c4   :  { %v1133_v58 = vrot.slane %v1132_v30, 2  ;;  %v1101_v32 = vadd.f32 %v1100_v52, %v1099_v0 }
 0x8c5   :  { %v1046_v60 = vmax.f32 %v1044_v31, %v1045_v45  ;;  %v1140_v29 = vadd.f32 %v1139_v12, %v1138_v61  ;;  %v1094_v36 = vadd.f32 %v1093_v53, %v1092_v48 }
 0x8c6   :  { %5689 = vmatmul.msk.f32.vlgmr.msrb.gmra.mxu3 %vm52_vm0, %v10016_v33  ;;  %v1134_v27 = vadd.f32 %v1133_v58, %v1132_v30  ;;  %v1102_v26 = vrot.slane %v1101_v32, 2 }
 0x8c7   :  { %v1052_v49 = vsub.f32 %v1010_v25, %v1046_v60  ;;  %4882 = vadd.xlane.f32.xlu0 %v4881_v38  ;;  %v1141_v35 = vrot.slane %v1140_v29, 1  ;;  %v1095_v56 = vrot.slane %v1094_v36, 2  ;;  %v5199_v25 = vpop.f32.mrf.mxu1 }
 0x8c8   :  { %v1135_v3 = vrot.slane %v1134_v27, 1  ;;  %v5200_v22 = vadd.f32 %v10010_v11, %v5199_v25 }
 0x8c9   :  { %v1063_v57 = vmul.f32 1.442695, %v1052_v49  ;;  %v1142_v34 = vadd.f32 %v1141_v35, %v1140_v29  ;;  %v1096_v13 = vadd.f32 %v1095_v56, %v1094_v36 }
 0x8ca   :  { %v1136_v9 = vadd.f32 %v1135_v3, %v1134_v27 }
 0x8cb   :  { %6258 = vpow2.f32 %v1063_v57  ;;  %v1097_v21 = vrot.slane %v1096_v13, 1 }
 0x8cc   :  { %6260 = vtanh.f32 %v5191_v10 }
 0x8cd   :  { %6262 = vtanh.f32 %v5194_v4  ;;  %v1098_v15 = vadd.f32 %v1097_v21, %v1096_v13  ;;  %v10784_v21 = vld [vmem:[#allocation81_spill] sm:$0xff] }
 0x8ce   :  { %5690 = vmatmul.msk.f32.gmra.mxu3 %vm52_vm0, %v10027_v55  ;;  %6264 = vrcp.f32 %v1142_v34 }
 0x8cf   :  { %6266 = vrcp.f32 %v1136_v9  ;;  %v5202_v60 = vpop.f32.mrf.mxu1 }
 0x8d0   :  { %6268 = vtanh.f32 %v5197_v14  ;;  %v5203_v50 = vadd.f32 %v10010_v11, %v5202_v60 }
 0x8d1   :  { %v6259_v43 = vpop.eup %6258 }
 0x8d2   :  { %v1143_v40 = vrot.slane %v6259_v43, 4  ;;  %v1070_v28 = vmul.f32 %v6259_v43, %v930_v51  ;;  %v10035_v23 = vpop.eup %6260  ;;  %v1103_v51 = vadd.f32 %v1102_v26, %v1101_v32  ;;  %v10053_v57 = vpop.f32.mrf.mxu3  ;;  %v6311_v32 = vld [vmem:[%s10089_s4 + $0x3] ss:$0 sm:$0xff]  ;;  %s6314_s4 = smov 32  }
 0x8d3   :  { %v10041_v19 = vpop.eup %6262 }
 0x8d4   :  { %v1144_v1 = vadd.f32 %v6259_v43, %v1143_v40  ;;  %v1106_v24 = vsel %vm52_vm0, %v1070_v28, 0.0  ;;  %v1104_v6 = vrot.slane %v1103_v51, 1  ;;  %v6265_v62 = vpop.eup %6264 }
 0x8d5   :  { %v1107_v47 = vrot.slane %v1106_v24, 4  ;;  %v6267_v5 = vpop.eup %6266 }
 0x8d6   :  { %5691 = vmatmul.msk.f32.gmra.mxu3 %vm52_vm0, %v10035_v23  ;;  %v1145_v2 = vrot.slane %v1144_v1, 2  ;;  %v1105_v54 = vadd.f32 %v1104_v6, %v1103_v51  ;;  %v6269_v17 = vpop.eup %6268  ;;  %v1158_v59 = vmul.f32 %v6267_v5, %v1098_v15 }
 0x8d7   :  { %v1108_v63 = vadd.f32 %v1107_v47, %v1106_v24 }
 0x8d8   :  { %v1146_v7 = vadd.f32 %v1145_v2, %v1144_v1  ;;  %v1159_v31 = vmul.f32 %v6265_v62, %v1105_v54  ;;  %v4917_v62 = vsel %vm4916_vm13, %v10784_v21, 0.0 }
 0x8d9   :  { %v1109_v44 = vrot.slane %v1108_v63, 2 }
 0x8da   :  { %v1147_v37 = vrot.slane %v1146_v7, 1  ;;  %v5111_v61 = vsel %vm4514_vm2, %v1159_v31, %v1158_v59 }
 0x8db   :  { %v1110_v39 = vadd.f32 %v1109_v44, %v1108_v63 }
 0x8dc   :  { %v1148_v41 = vadd.f32 %v1147_v37, %v1146_v7 }
 0x8dd   :  { %v1111_v18 = vrot.slane %v1110_v39, 1 }
 0x8de   :  { %5692 = vmatmul.msk.f32.gmra.mxu3 %vm52_vm0, %v10041_v19  ;;  %6270 = vrcp.f32 %v1148_v41 }
 0x8df   :  { %v1112_v20 = vadd.f32 %v1111_v18, %v1110_v39  ;;  %6272 = vtanh.f32 %v5200_v22 }
 0x8e0   :  { %6274 = vtanh.f32 %v5203_v50 }
 0x8e4   :  { %v6271_v45 = vpop.eup %6270 }
 0x8e5   :  { %v1160_v46 = vmul.f32 %v6271_v45, %v1112_v20  ;;  %v6273_v30 = vpop.eup %6272 }
 0x8e6   :  { %5693 = vmatmul.msk.f32.gmra.mxu3 %vm52_vm0, %v6269_v17  ;;  %v6275_v49 = vpop.eup %6274 }
 0x8e7   :  { %v5112_v38 = vsel %vm4516_vm3, %v1160_v46, %v5111_v61 }
 0x8e8   :  { %5673 = vmatpush.xpose.msk.msrb.mxu0 %vm52_vm0, %v5112_v38 }
 0x8ee   :  { %5694 = vmatmul.msk.f32.gmra.mxu3 %vm52_vm0, %v6273_v30 }
 0x8f6   :  { %5695 = vmatmul.msk.f32.gmra.mxu3 %vm52_vm0, %v6275_v49 }
 0x932   :  { %v5074_v12 = vpop.xlane.xlu0 %5073 }
 0x933   :  { %6276 = vrcp.f32 %v5074_v12 }
 0x939   :  { %v6277_v10 = vpop.eup %6276 }
 0x941   :  { %v5103_v0 = vpop.f32.mrf.mxu3 }
 0x942   :  { %v5107_v58 = vmul.f32 %v6277_v10, %v5103_v0 }
 0x944   :  { %5674 = vmatmul.msk.f32.vlgmr.msrb.gmra.mxu0 %vm52_vm0, %v5107_v58 }
 0x949   :  { %v5250_v48 = vpop.f32.mrf.mxu3 }
 0x94a   :  { %v5251_v24 = vadd.f32 %v6311_v32, %v5250_v48 }
 0x951   :  { %v5253_v8 = vpop.f32.mrf.mxu3 }
 0x952   :  { %v5254_v16 = vadd.f32 %v6311_v32, %v5253_v8 }
 0x959   :  { %v5256_v52 = vpop.f32.mrf.mxu3 }
 0x95a   :  { %v5257_v3 = vadd.f32 %v6311_v32, %v5256_v52 }
 0x961   :  { %v5259_v11 = vpop.f32.mrf.mxu3 }
 0x962   :  { %v5260_v28 = vadd.f32 %v6311_v32, %v5259_v11 }
 0x969   :  { %v5262_v29 = vpop.f32.mrf.mxu3 }
 0x96a   :  { %v5263_v35 = vadd.f32 %v6311_v32, %v5262_v29 }
 0x971   :  { %v5265_v53 = vpop.f32.mrf.mxu3 }
 0x972   :  { %v5266_v4 = vadd.f32 %v6311_v32, %v5265_v53 }
 0x979   :  { %v5268_v27 = vpop.f32.mrf.mxu3 }
 0x97a   :  { %v5269_v43 = vadd.f32 %v6311_v32, %v5268_v27 }
 0x97c   :  { %6278 = vtanh.f32 %v5269_v43 }
 0x97d   :  { %6280 = vtanh.f32 %v5266_v4 }
 0x97e   :  { %6282 = vtanh.f32 %v5263_v35 }
 0x97f   :  { %6284 = vtanh.f32 %v5260_v28 }
 0x980   :  { %6286 = vtanh.f32 %v5257_v3 }
 0x981   :  { %6288 = vtanh.f32 %v5254_v16 }
 0x982   :  { %v6279_v40 = vpop.eup %6278  ;;  %6290 = vtanh.f32 %v5251_v24 }
 0x983   :  { %5696 = vmatpush.xpose.msk.msra.mxu0 %vm4697_vm12, %v6279_v40  ;;  %v6281_v36 = vpop.eup %6280 }
 0x984   :  { %v6283_v1 = vpop.eup %6282 }
 0x985   :  { %v6285_v26 = vpop.eup %6284 }
 0x986   :  { %v6287_v47 = vpop.eup %6286 }
 0x987   :  { %5697 = vmatpush.xpose.msk.msra.mxu0 %vm4697_vm12, %v6281_v36  ;;  %v6289_v34 = vpop.eup %6288 }
 0x988   :  { %v6291_v56 = vpop.eup %6290 }
 0x98b   :  { %5698 = vmatpush.xpose.msk.msra.mxu0 %vm4697_vm12, %v6283_v1 }
 0x98f   :  { %5699 = vmatpush.xpose.msk.msra.mxu0 %vm4697_vm12, %v6285_v26 }
 0x993   :  { %5700 = vmatpush.xpose.msk.msra.mxu0 %vm4697_vm12, %v6287_v47 }
 0x997   :  { %5701 = vmatpush.xpose.msk.msra.mxu0 %vm4697_vm12, %v6289_v34 }
 0x99b   :  { %5702 = vmatpush.xpose.msk.msra.mxu0 %vm4697_vm12, %v6291_v56 }
 0x99e   :  { %5703 = vmatmul.msk.f32.vlgmr.msra.gmra.mxu0 %vm4697_vm12, %v9917_v42 }
 0x99f   :  { %5704 = vmatpush.msk.msrb.mxu0 %vm4634_vm9, %v6275_v49 }
 0x9a1   :  { %5343 = vmatpush.msrb.mxu0 %v6273_v30 }
 0x9a3   :  { %5344 = vmatpush.msrb.mxu0 %v6269_v17 }
 0x9a5   :  { %5345 = vmatpush.msrb.mxu0 %v10041_v19 }
 0x9a7   :  { %5346 = vmatpush.msrb.mxu0 %v10035_v23  ;;  %v4883_v23 = vpop.xlane.xlu0 %4882 }
 0x9a9   :  { %5347 = vmatpush.msrb.mxu0 %v10027_v55 }
 0x9ab   :  { %5348 = vmatpush.msrb.mxu0 %v10016_v33 }
 0x9c1   :  { %v5135_v2 = vpop.f32.mrf.mxu0 }
 0x9c2   :  { %v5360_v18 = vsel %vm4916_vm13, %v5135_v2, 0.0 }
 0xa1b   :  { %v5316_v63 = vpop.f32.mrf.mxu0 }
 0xa1c   :  { %v5319_v9 = vsel %vm4614_vm10, %v5316_v63, -inf }
 0xa1d   :  { %5320 = vmax.xlane.f32.xlu2 %v5319_v9 }
 0xa90   :  { %v5321_v51 = vpop.xlane.xlu2 %5320 }
 0xa91   :  { %v5322_v7 = vsub.f32 %v5316_v63, %v5321_v51 }
 0xa93   :  { %v5323_v14 = vmul.f32 1.442695, %v5322_v7 }
 0xa95   :  { %6292 = vpow2.f32 %v5323_v14 }
 0xa96   :  { %6294 = vrcp.f32 %v4883_v23 }
 0xa9b   :  { %v6293_v42 = vpop.eup %6292 }
 0xa9c   :  { %5705 = vmatmul.msk.f32.vlgmr.msrb.gmra.mxu0 %vm4630_vm11, %v6293_v42  ;;  %v5325_v44 = vsel %vm4614_vm10, %v6293_v42, 0.0  ;;  %v6295_v55 = vpop.eup %6294 }
 0xa9d   :  { %5326 = vadd.xlane.f32.xlu1 %v5325_v44  ;;  %v4910_v33 = vmul.f32 %v6295_v55, %v10053_v57 }
 0xa9f   :  { %6296 = vtanh.f32 %v4910_v33 }
 0xaa5   :  { %v6297_v13 = vpop.eup %6296 }
 0xab6   :  { %4913 = vrot.lane.b32.xlu1 %v6297_v13, %s6314_s4 }
 0xb10   :  { %v5327_v37 = vpop.xlane.xlu1 %5326 }
 0xb11   :  { %6298 = vrcp.f32 %v5327_v37 }
 0xb17   :  { %v6299_v19 = vpop.eup %6298 }
 0xb19   :  { %v5350_v39 = vpop.f32.mrf.mxu0 }
 0xb1a   :  { %v5354_v25 = vmul.f32 %v6299_v19, %v5350_v39 }
 0xb1c   :  { %6300 = vtanh.f32 %v5354_v25 }
 0xb22   :  { %v6301_v6 = vpop.eup %6300 }
 0xb23   :  { %5357 = vrot.lane.b32.xlu2 %v6301_v6, %s6314_s4 }
 0xb28   :  { %v4914_v41 = vpop.permute.xlu1 %4913 }
 0xb29   :  { %v4918_v5 = vsel %vm52_vm0, %v4917_v62, %v4914_v41 }
 0xb2a   :  { %v4920_v17 = vsel %vm4919_vm14, %v4918_v5, 0.0 }
 0xb7d   :  { %v5358_v54 = vpop.permute.xlu2 %5357 }
 0xb7e   :  { %v5361_v22 = vsel %vm52_vm0, %v5360_v18, %v5358_v54 }
 0xb7f   :  { %v5362_v15 = vsel %vm4919_vm14, %v5361_v22, 0.0 }
 0xb80   :  { %v5364_v31 = vrot.slane %v5362_v15, 7 }
 0xb82   :  { %v5367_v20 = vsel %vm5366_vm15, %v4920_v17, %v5364_v31 }
 0xb83   :  { %v5369_v45 = vrot.slane %v5367_v20, 1  ;;  %5371 = vst [vmem:[%s10092_s6] sm:$0x1] %v5367_v20 }
 0xb85   :  { %5372 = vst [vmem:[%s10092_s6 + $0x1] sm:$0x1] %v5369_v45 }

</bundles_post_ra>
